<compile_context>
chip_gen: v5e
topology: v5e:2x2
jax: 0.10.0
libtpu: 0.0.40
codegen_flags: <defaults>
</compile_context>

<pallas_src>
import numpy as np
import jax
import jax.numpy as jnp
from jax import lax
from jax.experimental import pallas as pl
from jax.experimental.pallas import tpu as pltpu


# ----------------------------------------------------------------------------
# Fused Pallas kernel (one batch block of B images per grid step)
# ----------------------------------------------------------------------------
def _make_fused_kernel(B, P_pad, Ho, Wo, Ho2, Wo2, K, C0, C1):
    """Ref shapes:
      x_ref     : (B, H*W, Cin)   bf16   NHWC-flattened images
      poolt_ref : (P_pad, H*W)    bf16   0/1 avg-pool matrix (rows >= Ho*Wo are zero)
      w0_ref    : (Cin, C0)       bf16   1x1 conv weight
      s0/b0_ref : (1, C0)         f32    folded BN scale (incl. 1/25 pool scale) / bias
      w1_ref    : (K*K*C0, C1)    bf16   5x5 conv weight, rows ordered (tap, c)
      s1/b1_ref : (1, C1)         f32    folded BN scale / bias
      wfc_ref   : (C1, 128)       bf16   fc weight, zero-padded to 128 lanes
      bfc_ref   : (1, 128)        f32    fc bias, zero-padded
      o_ref     : (B, 128)        f32    padded logits (dense store)
      y0_s      : (B, P_pad, C0)  bf16   VMEM scratch for the conv0 output
    """
    KK = K * K

    def kernel(x_ref, poolt_ref, w0_ref, s0_ref, b0_ref,
               w1_ref, s1_ref, b1_ref, wfc_ref, bfc_ref, o_ref, y0_s):
        # ---- 1) avg_pool2d(5, 3) as per-image matmuls; channels stay on lanes.
        #         (pooling is inherently per-image; the 1/25 scale is folded into s0)
        poolm = poolt_ref[...]                                     # (P_pad, HW)
        xp_parts = []
        for b in range(B):
            xpb = jnp.dot(poolm, x_ref[b],
                          preferred_element_type=jnp.float32)     # (P_pad, Cin)
            xp_parts.append(xpb.astype(jnp.bfloat16))
        xp = jnp.concatenate(xp_parts, axis=0)                     # (B*P_pad, Cin)

        # ---- 2) conv0 (1x1, no bias) + folded BN + relu: ONE matmul, M = B*P_pad.
        y0 = jnp.dot(xp, w0_ref[...], preferred_element_type=jnp.float32)
        y0 = jnp.maximum(y0 * s0_ref[...] + b0_ref[...], 0.0)
        y0 = y0.astype(jnp.bfloat16)                               # (B*P_pad, C0)

        # Stage y0 in VMEM scratch as (B, P_pad, C0): aligned block stores, and the
        # conv1 im2col below becomes simple indexed ref loads.
        for b in range(B):
            y0_s[b] = y0[b * P_pad:(b + 1) * P_pad, :]

        # ---- 3) conv1 (5x5 valid, no bias) + folded BN + relu, fused with
        #         adaptive_avg_pool2d((1,1)): one big-K matmul per output position
        #         (canonical aux geometry has exactly one position).
        w1m = w1_ref[...]                                          # (KK*C0, C1)
        s1 = s1_ref[...]
        b1 = b1_ref[...]
        feat = None
        for oy in range(Ho2):
            for ox in range(Wo2):
                pieces = []
                for di in range(K):
                    for dj in range(K):
                        p = (oy + di) * Wo + (ox + dj)             # pooled position
                        pieces.append(y0_s[:, p, :])               # (B, C0)
                patch = jnp.concatenate(pieces, axis=1)            # (B, KK*C0), tap-major
                acc = jnp.dot(patch, w1m,
                              preferred_element_type=jnp.float32)  # (B, C1)
                term = jnp.maximum(acc * s1 + b1, 0.0)
                feat = term if feat is None else feat + term
        feat = (feat * (1.0 / (Ho2 * Wo2))).astype(jnp.bfloat16)   # (B, C1)

        # ---- 4) fc, output padded to 128 lanes -> dense (B, 128) f32 store.
        out = jnp.dot(feat, wfc_ref[...], preferred_element_type=jnp.float32)
        o_ref[...] = out + bfc_ref[...]

    return kernel


# ----------------------------------------------------------------------------
# Host-side glue (parameter folding / layout prep)
# ----------------------------------------------------------------------------
def _make_avg_pool_matrix_t(H, W, k, s, rows):
    """0/1 matrix P (rows, H*W); row oi*Wo+oj sums the (k,k) window at stride s.
    Rows beyond Ho*Wo are zero (sublane padding)."""
    Ho = (H - k) // s + 1
    Wo = (W - k) // s + 1
    P = np.zeros((rows, H * W), np.float32)
    for oi in range(Ho):
        for oj in range(Wo):
            for di in range(k):
                for dj in range(k):
                    P[oi * Wo + oj, (oi * s + di) * W + (oj * s + dj)] = 1.0
    return P


def bn_fold(gamma, beta, running_mean, running_var, eps=1e-3):
    scale = gamma / jnp.sqrt(running_var + eps)
    bias = beta - running_mean * scale
    return scale, bias


def _pick_batch_block(N, target=8):
    """Largest multiple of 8 that divides N and is <= target; else N (single step)."""
    b = (min(target, N) // 8) * 8
    while b >= 8:
        if N % b == 0:
            return b
        b -= 8
    return N


def inception_aux_forward(x, p, batch_block=8):
    """Matches InceptionAux.forward(x) (BatchNorm in inference mode)."""
    N, Cin, H, W = x.shape
    K, S = 5, 3
    C0, C1 = 128, 768
    NPAD = 128
    num_classes = p["Wfc"].shape[0]
    assert num_classes <= NPAD

    Ho = (H - K) // S + 1
    Wo = (W - K) // S + 1
    Ho2, Wo2 = Ho - K + 1, Wo - K + 1
    assert Ho2 >= 1 and Wo2 >= 1, "input spatial too small for 5x5 conv after pooling"
    Po = Ho * Wo
    P_pad = ((Po + 15) // 16) * 16        # sublane-aligned pooled-position count
    HW = H * W

    B = _pick_batch_block(N, batch_block)  # >=2 grid steps when N allows (v7x megacore)
    grid = (N // B,)

    # NHWC once at entry; bf16 operands for the MXU.
    # TODO(synk): ideally the producer emits NHWC/bf16 so this prep pass disappears.
    x_rows = jnp.transpose(x, (0, 2, 3, 1)).reshape(N, HW, Cin).astype(jnp.bfloat16)
    poolt = jnp.asarray(_make_avg_pool_matrix_t(H, W, K, S, P_pad), dtype=jnp.bfloat16)

    # conv0: (Cin, 128); BN folded to per-channel scale/bias; 1/25 pool scale folded in.
    w0m = p["W0"].reshape(C0, Cin).T.astype(jnp.bfloat16)
    s0v, b0v = bn_fold(p["g0"], p["be0"], p["m0"], p["v0"])
    s0 = (s0v / float(K * K)).reshape(1, C0).astype(jnp.float32)
    b0 = b0v.reshape(1, C0).astype(jnp.float32)

    # conv1: rows ordered (tap = di*5+dj, c) so no in-kernel weight rearrangement.
    w1m = p["W1"].transpose(2, 3, 1, 0).reshape(K * K * C0, C1).astype(jnp.bfloat16)
    s1v, b1v = bn_fold(p["g1"], p["be1"], p["m1"], p["v1"])
    s1 = s1v.reshape(1, C1).astype(jnp.float32)
    b1 = b1v.reshape(1, C1).astype(jnp.float32)

    # fc, lane-padded to 128 output columns.
    wfc_pad = jnp.zeros((C1, NPAD), jnp.float32).at[:, :num_classes].set(p["Wfc"].T)
    wfc_pad = wfc_pad.astype(jnp.bfloat16)
    bfc_pad = jnp.zeros((1, NPAD), jnp.float32).at[0, :num_classes].set(p["bfc"])

    flops = 2 * N * (P_pad * HW * Cin + P_pad * Cin * C0
                     + Ho2 * Wo2 * K * K * C0 * C1 + C1 * NPAD)
    bytes_accessed = (N * HW * Cin * 2 + P_pad * HW * 2 + Cin * C0 * 2
                      + K * K * C0 * C1 * 2 + C1 * NPAD * 2
                      + (2 * C0 + 2 * C1 + NPAD) * 4 + N * NPAD * 4)

    out_pad = pl.pallas_call(
        _make_fused_kernel(B, P_pad, Ho, Wo, Ho2, Wo2, K, C0, C1),
        out_shape=jax.ShapeDtypeStruct((N, NPAD), jnp.float32),
        grid=grid,
        in_specs=[
            pl.BlockSpec((B, HW, Cin), lambda n: (n, 0, 0)),        # x (batch block)
            pl.BlockSpec((P_pad, HW), lambda n: (0, 0)),            # pool matrix
            pl.BlockSpec((Cin, C0), lambda n: (0, 0)),              # w0
            pl.BlockSpec((1, C0), lambda n: (0, 0)),                # s0
            pl.BlockSpec((1, C0), lambda n: (0, 0)),                # b0
            pl.BlockSpec((K * K * C0, C1), lambda n: (0, 0)),       # w1
            pl.BlockSpec((1, C1), lambda n: (0, 0)),                # s1
            pl.BlockSpec((1, C1), lambda n: (0, 0)),                # b1
            pl.BlockSpec((C1, NPAD), lambda n: (0, 0)),             # wfc (padded)
            pl.BlockSpec((1, NPAD), lambda n: (0, 0)),              # bfc (padded)
        ],
        out_specs=pl.BlockSpec((B, NPAD), lambda n: (n, 0)),
        scratch_shapes=[pltpu.VMEM((B, P_pad, C0), jnp.bfloat16)],  # staged conv0 output
        compiler_params=pltpu.CompilerParams(
            dimension_semantics=("parallel",),
            vmem_limit_bytes=32 * 1024 * 1024),
        cost_estimate=pl.CostEstimate(
            flops=int(flops), transcendentals=0,
            bytes_accessed=int(bytes_accessed)),
    )(x_rows, poolt, w0m, s0, b0, w1m, s1, b1, wfc_pad, bfc_pad)

    return out_pad[:, :num_classes]


# ----------------------------------------------------------------------------
# Pure-XLA reference (f32) for correctness checking
# ----------------------------------------------------------------------------
def reference_forward(x, p):
    dn = ("NCHW", "OIHW", "NCHW")
    xp = lax.reduce_window(x, 0.0, lax.add, (1, 1, 5, 5), (1, 1, 3, 3), "VALID") / 25.0
    s0, b0 = bn_fold(p["g0"], p["be0"], p["m0"], p["v0"])
    y0 = lax.conv_general_dilated(xp, p["W0"], (1, 1), "VALID", dimension_numbers=dn)
    y0 = jnp.maximum(y0 * s0[None, :, None, None] + b0[None, :, None, None], 0.0)
    s1, b1 = bn_fold(p["g1"], p["be1"], p["m1"], p["v1"])
    y1 = lax.conv_general_dilated(y0, p["W1"], (1, 1), "VALID", dimension_numbers=dn)
    y1 = jnp.maximum(y1 * s1[None, :, None, None] + b1[None, :, None, None], 0.0)
    feat = jnp.mean(y1, axis=(2, 3))
    return feat @ p["Wfc"].T + p["bfc"]


# ----------------------------------------------------------------------------
# Main
# ----------------------------------------------------------------------------
if __name__ == "__main__":
    # 17x17 spatial: avg_pool(5,3) -> 5x5, conv 5x5 -> 1x1 (canonical aux-head geometry).
    # N=16 with batch block B=8 -> grid of 2 steps (both v7x TensorCores busy).
    N, Cin, H, W = 16, 4, 17, 17
    num_classes = 10

    key = jax.random.PRNGKey(0)
    ks = jax.random.split(key, 16)
    x = jax.random.normal(ks[0], (N, Cin, H, W), jnp.float32)

    params = {
        # conv0: BasicConv2d(in_channels, 128, kernel_size=1)
        "W0": 0.1 * jax.random.normal(ks[1], (128, Cin, 1, 1), jnp.float32),
        "g0": 1.0 + 0.1 * jax.random.normal(ks[2], (128,), jnp.float32),
        "be0": 0.1 * jax.random.normal(ks[3], (128,), jnp.float32),
        "m0": 0.1 * jax.random.normal(ks[4], (128,), jnp.float32),
        "v0": jax.random.uniform(ks[5], (128,), jnp.float32, 0.5, 1.5),
        # conv1: BasicConv2d(128, 768, kernel_size=5), stddev=0.01
        "W1": 0.01 * jax.random.normal(ks[6], (768, 128, 5, 5), jnp.float32),
        "g1": 1.0 + 0.1 * jax.random.normal(ks[7], (768,), jnp.float32),
        "be1": 0.1 * jax.random.normal(ks[8], (768,), jnp.float32),
        "m1": 0.1 * jax.random.normal(ks[9], (768,), jnp.float32),
        "v1": jax.random.uniform(ks[10], (768,), jnp.float32, 0.5, 1.5),
        # fc: Linear(768, num_classes), stddev=0.001
        "Wfc": 0.001 * jax.random.normal(ks[11], (num_classes, 768), jnp.float32),
        "bfc": 0.01 * jax.random.normal(ks[12], (num_classes,), jnp.float32),
    }

    fwd = jax.jit(inception_aux_forward)
    out = jax.block_until_ready(fwd(x, params))
    ref = jax.block_until_ready(reference_forward(x, params))

    assert out.shape == (N, num_classes), out.shape
    assert bool(jnp.all(jnp.isfinite(out)))
    err = float(jnp.max(jnp.abs(out - ref)))
    assert err < 2e-2, f"max abs err vs f32 reference: {err}"
    print("KERNEL_OK")
</pallas_src>

<mosaic_0001>
module attributes {stable_mosaic.version = 11 : i64} {
  func.func @kernel(%arg0: i32, %arg1: memref<8x289x4xbf16, #tpu.memory_space<vmem>>, %arg2: memref<32x289xbf16, #tpu.memory_space<vmem>>, %arg3: memref<4x128xbf16, #tpu.memory_space<vmem>>, %arg4: memref<1x128xf32, #tpu.memory_space<vmem>>, %arg5: memref<1x128xf32, #tpu.memory_space<vmem>>, %arg6: memref<3200x768xbf16, #tpu.memory_space<vmem>>, %arg7: memref<1x768xf32, #tpu.memory_space<vmem>>, %arg8: memref<1x768xf32, #tpu.memory_space<vmem>>, %arg9: memref<768x128xbf16, #tpu.memory_space<vmem>>, %arg10: memref<1x128xf32, #tpu.memory_space<vmem>>, %arg11: memref<8x128xf32, #tpu.memory_space<vmem>>, %arg12: memref<8x32x128xbf16, #tpu.memory_space<vmem>>) attributes {dimension_semantics = [#tpu.dimension_semantics<parallel>], iteration_bounds = array<i64: 2>, scalar_prefetch = 0 : i64, scratch_operands = 1 : i64, tpu.core_type = #tpu.core_type<tc>, window_params = [{transform_indices = @transform_0, window_bounds = array<i64: 8, 289, 4>}, {pipeline_mode = #tpu.pipeline_mode<synchronous>, transform_indices = @transform_1, window_bounds = array<i64: 32, 289>}, {pipeline_mode = #tpu.pipeline_mode<synchronous>, transform_indices = @transform_2, window_bounds = array<i64: 4, 128>}, {pipeline_mode = #tpu.pipeline_mode<synchronous>, transform_indices = @transform_3, window_bounds = array<i64: 1, 128>}, {pipeline_mode = #tpu.pipeline_mode<synchronous>, transform_indices = @transform_4, window_bounds = array<i64: 1, 128>}, {pipeline_mode = #tpu.pipeline_mode<synchronous>, transform_indices = @transform_5, window_bounds = array<i64: 3200, 768>}, {pipeline_mode = #tpu.pipeline_mode<synchronous>, transform_indices = @transform_6, window_bounds = array<i64: 1, 768>}, {pipeline_mode = #tpu.pipeline_mode<synchronous>, transform_indices = @transform_7, window_bounds = array<i64: 1, 768>}, {pipeline_mode = #tpu.pipeline_mode<synchronous>, transform_indices = @transform_8, window_bounds = array<i64: 768, 128>}, {pipeline_mode = #tpu.pipeline_mode<synchronous>, transform_indices = @transform_9, window_bounds = array<i64: 1, 128>}, {transform_indices = @transform_10, window_bounds = array<i64: 8, 128>}]} {
    %c0 = arith.constant 0 : index
    %c0_0 = arith.constant 0 : index
    %0 = vector.load %arg2[%c0, %c0_0] : memref<32x289xbf16, #tpu.memory_space<vmem>>, vector<32x289xbf16>
    %c0_1 = arith.constant 0 : index
    %c0_2 = arith.constant 0 : index
    %c0_3 = arith.constant 0 : index
    %1 = vector.load %arg1[%c0_1, %c0_2, %c0_3] : memref<8x289x4xbf16, #tpu.memory_space<vmem>>, vector<1x289x4xbf16>
    %2 = vector.shape_cast %1 : vector<1x289x4xbf16> to vector<289x4xbf16>
    %cst = arith.constant dense<0.000000e+00> : vector<32x4xf32>
    %3 = tpu.matmul %0, %2, %cst {dimension_numbers = #tpu.dot_dimension_numbers<[1], [0], [0], [1], [0, 0, 1, 1], [], []>} : vector<32x289xbf16>, vector<289x4xbf16>, vector<32x4xf32> -> vector<32x4xf32>
    %4 = arith.truncf %3 : vector<32x4xf32> to vector<32x4xbf16>
    %c1 = arith.constant 1 : index
    %c0_4 = arith.constant 0 : index
    %c0_5 = arith.constant 0 : index
    %5 = vector.load %arg1[%c1, %c0_4, %c0_5] : memref<8x289x4xbf16, #tpu.memory_space<vmem>>, vector<1x289x4xbf16>
    %6 = vector.shape_cast %5 : vector<1x289x4xbf16> to vector<289x4xbf16>
    %cst_6 = arith.constant dense<0.000000e+00> : vector<32x4xf32>
    %7 = tpu.matmul %0, %6, %cst_6 {dimension_numbers = #tpu.dot_dimension_numbers<[1], [0], [0], [1], [0, 0, 1, 1], [], []>} : vector<32x289xbf16>, vector<289x4xbf16>, vector<32x4xf32> -> vector<32x4xf32>
    %8 = arith.truncf %7 : vector<32x4xf32> to vector<32x4xbf16>
    %c2 = arith.constant 2 : index
    %c0_7 = arith.constant 0 : index
    %c0_8 = arith.constant 0 : index
    %9 = vector.load %arg1[%c2, %c0_7, %c0_8] : memref<8x289x4xbf16, #tpu.memory_space<vmem>>, vector<1x289x4xbf16>
    %10 = vector.shape_cast %9 : vector<1x289x4xbf16> to vector<289x4xbf16>
    %cst_9 = arith.constant dense<0.000000e+00> : vector<32x4xf32>
    %11 = tpu.matmul %0, %10, %cst_9 {dimension_numbers = #tpu.dot_dimension_numbers<[1], [0], [0], [1], [0, 0, 1, 1], [], []>} : vector<32x289xbf16>, vector<289x4xbf16>, vector<32x4xf32> -> vector<32x4xf32>
    %12 = arith.truncf %11 : vector<32x4xf32> to vector<32x4xbf16>
    %c3 = arith.constant 3 : index
    %c0_10 = arith.constant 0 : index
    %c0_11 = arith.constant 0 : index
    %13 = vector.load %arg1[%c3, %c0_10, %c0_11] : memref<8x289x4xbf16, #tpu.memory_space<vmem>>, vector<1x289x4xbf16>
    %14 = vector.shape_cast %13 : vector<1x289x4xbf16> to vector<289x4xbf16>
    %cst_12 = arith.constant dense<0.000000e+00> : vector<32x4xf32>
    %15 = tpu.matmul %0, %14, %cst_12 {dimension_numbers = #tpu.dot_dimension_numbers<[1], [0], [0], [1], [0, 0, 1, 1], [], []>} : vector<32x289xbf16>, vector<289x4xbf16>, vector<32x4xf32> -> vector<32x4xf32>
    %16 = arith.truncf %15 : vector<32x4xf32> to vector<32x4xbf16>
    %c4 = arith.constant 4 : index
    %c0_13 = arith.constant 0 : index
    %c0_14 = arith.constant 0 : index
    %17 = vector.load %arg1[%c4, %c0_13, %c0_14] : memref<8x289x4xbf16, #tpu.memory_space<vmem>>, vector<1x289x4xbf16>
    %18 = vector.shape_cast %17 : vector<1x289x4xbf16> to vector<289x4xbf16>
    %cst_15 = arith.constant dense<0.000000e+00> : vector<32x4xf32>
    %19 = tpu.matmul %0, %18, %cst_15 {dimension_numbers = #tpu.dot_dimension_numbers<[1], [0], [0], [1], [0, 0, 1, 1], [], []>} : vector<32x289xbf16>, vector<289x4xbf16>, vector<32x4xf32> -> vector<32x4xf32>
    %20 = arith.truncf %19 : vector<32x4xf32> to vector<32x4xbf16>
    %c5 = arith.constant 5 : index
    %c0_16 = arith.constant 0 : index
    %c0_17 = arith.constant 0 : index
    %21 = vector.load %arg1[%c5, %c0_16, %c0_17] : memref<8x289x4xbf16, #tpu.memory_space<vmem>>, vector<1x289x4xbf16>
    %22 = vector.shape_cast %21 : vector<1x289x4xbf16> to vector<289x4xbf16>
    %cst_18 = arith.constant dense<0.000000e+00> : vector<32x4xf32>
    %23 = tpu.matmul %0, %22, %cst_18 {dimension_numbers = #tpu.dot_dimension_numbers<[1], [0], [0], [1], [0, 0, 1, 1], [], []>} : vector<32x289xbf16>, vector<289x4xbf16>, vector<32x4xf32> -> vector<32x4xf32>
    %24 = arith.truncf %23 : vector<32x4xf32> to vector<32x4xbf16>
    %c6 = arith.constant 6 : index
    %c0_19 = arith.constant 0 : index
    %c0_20 = arith.constant 0 : index
    %25 = vector.load %arg1[%c6, %c0_19, %c0_20] : memref<8x289x4xbf16, #tpu.memory_space<vmem>>, vector<1x289x4xbf16>
    %26 = vector.shape_cast %25 : vector<1x289x4xbf16> to vector<289x4xbf16>
    %cst_21 = arith.constant dense<0.000000e+00> : vector<32x4xf32>
    %27 = tpu.matmul %0, %26, %cst_21 {dimension_numbers = #tpu.dot_dimension_numbers<[1], [0], [0], [1], [0, 0, 1, 1], [], []>} : vector<32x289xbf16>, vector<289x4xbf16>, vector<32x4xf32> -> vector<32x4xf32>
    %28 = arith.truncf %27 : vector<32x4xf32> to vector<32x4xbf16>
    %c7 = arith.constant 7 : index
    %c0_22 = arith.constant 0 : index
    %c0_23 = arith.constant 0 : index
    %29 = vector.load %arg1[%c7, %c0_22, %c0_23] : memref<8x289x4xbf16, #tpu.memory_space<vmem>>, vector<1x289x4xbf16>
    %30 = vector.shape_cast %29 : vector<1x289x4xbf16> to vector<289x4xbf16>
    %cst_24 = arith.constant dense<0.000000e+00> : vector<32x4xf32>
    %31 = tpu.matmul %0, %30, %cst_24 {dimension_numbers = #tpu.dot_dimension_numbers<[1], [0], [0], [1], [0, 0, 1, 1], [], []>} : vector<32x289xbf16>, vector<289x4xbf16>, vector<32x4xf32> -> vector<32x4xf32>
    %32 = arith.truncf %31 : vector<32x4xf32> to vector<32x4xbf16>
    %33 = tpu.concatenate %4, %8, %12, %16, %20, %24, %28, %32 in 0 : vector<32x4xbf16>, vector<32x4xbf16>, vector<32x4xbf16>, vector<32x4xbf16>, vector<32x4xbf16>, vector<32x4xbf16>, vector<32x4xbf16>, vector<32x4xbf16> -> vector<256x4xbf16>
    %c0_25 = arith.constant 0 : index
    %c0_26 = arith.constant 0 : index
    %34 = vector.load %arg3[%c0_25, %c0_26] : memref<4x128xbf16, #tpu.memory_space<vmem>>, vector<4x128xbf16>
    %cst_27 = arith.constant dense<0.000000e+00> : vector<256x128xf32>
    %35 = tpu.matmul %33, %34, %cst_27 {dimension_numbers = #tpu.dot_dimension_numbers<[1], [0], [0], [1], [0, 0, 1, 1], [], []>} : vector<256x4xbf16>, vector<4x128xbf16>, vector<256x128xf32> -> vector<256x128xf32>
    %c0_28 = arith.constant 0 : index
    %c0_29 = arith.constant 0 : index
    %36 = vector.load %arg4[%c0_28, %c0_29] : memref<1x128xf32, #tpu.memory_space<vmem>>, vector<1x128xf32>
    %37 = vector.broadcast %36 : vector<1x128xf32> to vector<256x128xf32>
    %38 = arith.mulf %35, %37 : vector<256x128xf32>
    %c0_30 = arith.constant 0 : index
    %c0_31 = arith.constant 0 : index
    %39 = vector.load %arg5[%c0_30, %c0_31] : memref<1x128xf32, #tpu.memory_space<vmem>>, vector<1x128xf32>
    %40 = vector.broadcast %39 : vector<1x128xf32> to vector<256x128xf32>
    %41 = arith.addf %38, %40 : vector<256x128xf32>
    %cst_32 = arith.constant 0.000000e+00 : f32
    %42 = vector.broadcast %cst_32 : f32 to vector<256x128xf32>
    %43 = arith.maximumf %41, %42 : vector<256x128xf32>
    %44 = arith.truncf %43 : vector<256x128xf32> to vector<256x128xbf16>
    %45 = vector.extract_strided_slice %44 {offsets = [0, 0], sizes = [32, 128], strides = [1, 1]} : vector<256x128xbf16> to vector<32x128xbf16>
    %c0_33 = arith.constant 0 : index
    %c0_34 = arith.constant 0 : index
    %c0_35 = arith.constant 0 : index
    %46 = vector.load %arg12[%c0_33, %c0_34, %c0_35] : memref<8x32x128xbf16, #tpu.memory_space<vmem>>, vector<1x32x128xbf16>
    %47 = vector.shape_cast %46 : vector<1x32x128xbf16> to vector<32x128xbf16>
    %48 = vector.shape_cast %45 : vector<32x128xbf16> to vector<1x32x128xbf16>
    tpu.vector_store %arg12[%c0_33, %c0_34, %c0_35], %48 {strides = array<i32>} : memref<8x32x128xbf16, #tpu.memory_space<vmem>>, vector<1x32x128xbf16>,
    %49 = vector.extract_strided_slice %44 {offsets = [32, 0], sizes = [32, 128], strides = [1, 1]} : vector<256x128xbf16> to vector<32x128xbf16>
    %c1_36 = arith.constant 1 : index
    %c0_37 = arith.constant 0 : index
    %c0_38 = arith.constant 0 : index
    %50 = vector.load %arg12[%c1_36, %c0_37, %c0_38] : memref<8x32x128xbf16, #tpu.memory_space<vmem>>, vector<1x32x128xbf16>
    %51 = vector.shape_cast %50 : vector<1x32x128xbf16> to vector<32x128xbf16>
    %52 = vector.shape_cast %49 : vector<32x128xbf16> to vector<1x32x128xbf16>
    tpu.vector_store %arg12[%c1_36, %c0_37, %c0_38], %52 {strides = array<i32>} : memref<8x32x128xbf16, #tpu.memory_space<vmem>>, vector<1x32x128xbf16>,
    %53 = vector.extract_strided_slice %44 {offsets = [64, 0], sizes = [32, 128], strides = [1, 1]} : vector<256x128xbf16> to vector<32x128xbf16>
    %c2_39 = arith.constant 2 : index
    %c0_40 = arith.constant 0 : index
    %c0_41 = arith.constant 0 : index
    %54 = vector.load %arg12[%c2_39, %c0_40, %c0_41] : memref<8x32x128xbf16, #tpu.memory_space<vmem>>, vector<1x32x128xbf16>
    %55 = vector.shape_cast %54 : vector<1x32x128xbf16> to vector<32x128xbf16>
    %56 = vector.shape_cast %53 : vector<32x128xbf16> to vector<1x32x128xbf16>
    tpu.vector_store %arg12[%c2_39, %c0_40, %c0_41], %56 {strides = array<i32>} : memref<8x32x128xbf16, #tpu.memory_space<vmem>>, vector<1x32x128xbf16>,
    %57 = vector.extract_strided_slice %44 {offsets = [96, 0], sizes = [32, 128], strides = [1, 1]} : vector<256x128xbf16> to vector<32x128xbf16>
    %c3_42 = arith.constant 3 : index
    %c0_43 = arith.constant 0 : index
    %c0_44 = arith.constant 0 : index
    %58 = vector.load %arg12[%c3_42, %c0_43, %c0_44] : memref<8x32x128xbf16, #tpu.memory_space<vmem>>, vector<1x32x128xbf16>
    %59 = vector.shape_cast %58 : vector<1x32x128xbf16> to vector<32x128xbf16>
    %60 = vector.shape_cast %57 : vector<32x128xbf16> to vector<1x32x128xbf16>
    tpu.vector_store %arg12[%c3_42, %c0_43, %c0_44], %60 {strides = array<i32>} : memref<8x32x128xbf16, #tpu.memory_space<vmem>>, vector<1x32x128xbf16>,
    %61 = vector.extract_strided_slice %44 {offsets = [128, 0], sizes = [32, 128], strides = [1, 1]} : vector<256x128xbf16> to vector<32x128xbf16>
    %c4_45 = arith.constant 4 : index
    %c0_46 = arith.constant 0 : index
    %c0_47 = arith.constant 0 : index
    %62 = vector.load %arg12[%c4_45, %c0_46, %c0_47] : memref<8x32x128xbf16, #tpu.memory_space<vmem>>, vector<1x32x128xbf16>
    %63 = vector.shape_cast %62 : vector<1x32x128xbf16> to vector<32x128xbf16>
    %64 = vector.shape_cast %61 : vector<32x128xbf16> to vector<1x32x128xbf16>
    tpu.vector_store %arg12[%c4_45, %c0_46, %c0_47], %64 {strides = array<i32>} : memref<8x32x128xbf16, #tpu.memory_space<vmem>>, vector<1x32x128xbf16>,
    %65 = vector.extract_strided_slice %44 {offsets = [160, 0], sizes = [32, 128], strides = [1, 1]} : vector<256x128xbf16> to vector<32x128xbf16>
    %c5_48 = arith.constant 5 : index
    %c0_49 = arith.constant 0 : index
    %c0_50 = arith.constant 0 : index
    %66 = vector.load %arg12[%c5_48, %c0_49, %c0_50] : memref<8x32x128xbf16, #tpu.memory_space<vmem>>, vector<1x32x128xbf16>
    %67 = vector.shape_cast %66 : vector<1x32x128xbf16> to vector<32x128xbf16>
    %68 = vector.shape_cast %65 : vector<32x128xbf16> to vector<1x32x128xbf16>
    tpu.vector_store %arg12[%c5_48, %c0_49, %c0_50], %68 {strides = array<i32>} : memref<8x32x128xbf16, #tpu.memory_space<vmem>>, vector<1x32x128xbf16>,
    %69 = vector.extract_strided_slice %44 {offsets = [192, 0], sizes = [32, 128], strides = [1, 1]} : vector<256x128xbf16> to vector<32x128xbf16>
    %c6_51 = arith.constant 6 : index
    %c0_52 = arith.constant 0 : index
    %c0_53 = arith.constant 0 : index
    %70 = vector.load %arg12[%c6_51, %c0_52, %c0_53] : memref<8x32x128xbf16, #tpu.memory_space<vmem>>, vector<1x32x128xbf16>
    %71 = vector.shape_cast %70 : vector<1x32x128xbf16> to vector<32x128xbf16>
    %72 = vector.shape_cast %69 : vector<32x128xbf16> to vector<1x32x128xbf16>
    tpu.vector_store %arg12[%c6_51, %c0_52, %c0_53], %72 {strides = array<i32>} : memref<8x32x128xbf16, #tpu.memory_space<vmem>>, vector<1x32x128xbf16>,
    %73 = vector.extract_strided_slice %44 {offsets = [224, 0], sizes = [32, 128], strides = [1, 1]} : vector<256x128xbf16> to vector<32x128xbf16>
    %c7_54 = arith.constant 7 : index
    %c0_55 = arith.constant 0 : index
    %c0_56 = arith.constant 0 : index
    %74 = vector.load %arg12[%c7_54, %c0_55, %c0_56] : memref<8x32x128xbf16, #tpu.memory_space<vmem>>, vector<1x32x128xbf16>
    %75 = vector.shape_cast %74 : vector<1x32x128xbf16> to vector<32x128xbf16>
    %76 = vector.shape_cast %73 : vector<32x128xbf16> to vector<1x32x128xbf16>
    tpu.vector_store %arg12[%c7_54, %c0_55, %c0_56], %76 {strides = array<i32>} : memref<8x32x128xbf16, #tpu.memory_space<vmem>>, vector<1x32x128xbf16>,
    %c0_57 = arith.constant 0 : index
    %c0_58 = arith.constant 0 : index
    %77 = vector.load %arg6[%c0_57, %c0_58] : memref<3200x768xbf16, #tpu.memory_space<vmem>>, vector<3200x768xbf16>
    %c0_59 = arith.constant 0 : index
    %c0_60 = arith.constant 0 : index
    %78 = vector.load %arg7[%c0_59, %c0_60] : memref<1x768xf32, #tpu.memory_space<vmem>>, vector<1x768xf32>
    %c0_61 = arith.constant 0 : index
    %c0_62 = arith.constant 0 : index
    %79 = vector.load %arg8[%c0_61, %c0_62] : memref<1x768xf32, #tpu.memory_space<vmem>>, vector<1x768xf32>
    %c0_63 = arith.constant 0 : index
    %c0_64 = arith.constant 0 : index
    %c0_65 = arith.constant 0 : index
    %80 = vector.load %arg12[%c0_63, %c0_64, %c0_65] : memref<8x32x128xbf16, #tpu.memory_space<vmem>>, vector<8x1x128xbf16>
    %81 = vector.shape_cast %80 : vector<8x1x128xbf16> to vector<8x128xbf16>
    %c0_66 = arith.constant 0 : index
    %c1_67 = arith.constant 1 : index
    %c0_68 = arith.constant 0 : index
    %82 = vector.load %arg12[%c0_66, %c1_67, %c0_68] : memref<8x32x128xbf16, #tpu.memory_space<vmem>>, vector<8x1x128xbf16>
    %83 = vector.shape_cast %82 : vector<8x1x128xbf16> to vector<8x128xbf16>
    %c0_69 = arith.constant 0 : index
    %c2_70 = arith.constant 2 : index
    %c0_71 = arith.constant 0 : index
    %84 = vector.load %arg12[%c0_69, %c2_70, %c0_71] : memref<8x32x128xbf16, #tpu.memory_space<vmem>>, vector<8x1x128xbf16>
    %85 = vector.shape_cast %84 : vector<8x1x128xbf16> to vector<8x128xbf16>
    %c0_72 = arith.constant 0 : index
    %c3_73 = arith.constant 3 : index
    %c0_74 = arith.constant 0 : index
    %86 = vector.load %arg12[%c0_72, %c3_73, %c0_74] : memref<8x32x128xbf16, #tpu.memory_space<vmem>>, vector<8x1x128xbf16>
    %87 = vector.shape_cast %86 : vector<8x1x128xbf16> to vector<8x128xbf16>
    %c0_75 = arith.constant 0 : index
    %c4_76 = arith.constant 4 : index
    %c0_77 = arith.constant 0 : index
    %88 = vector.load %arg12[%c0_75, %c4_76, %c0_77] : memref<8x32x128xbf16, #tpu.memory_space<vmem>>, vector<8x1x128xbf16>
    %89 = vector.shape_cast %88 : vector<8x1x128xbf16> to vector<8x128xbf16>
    %c0_78 = arith.constant 0 : index
    %c5_79 = arith.constant 5 : index
    %c0_80 = arith.constant 0 : index
    %90 = vector.load %arg12[%c0_78, %c5_79, %c0_80] : memref<8x32x128xbf16, #tpu.memory_space<vmem>>, vector<8x1x128xbf16>
    %91 = vector.shape_cast %90 : vector<8x1x128xbf16> to vector<8x128xbf16>
    %c0_81 = arith.constant 0 : index
    %c6_82 = arith.constant 6 : index
    %c0_83 = arith.constant 0 : index
    %92 = vector.load %arg12[%c0_81, %c6_82, %c0_83] : memref<8x32x128xbf16, #tpu.memory_space<vmem>>, vector<8x1x128xbf16>
    %93 = vector.shape_cast %92 : vector<8x1x128xbf16> to vector<8x128xbf16>
    %c0_84 = arith.constant 0 : index
    %c7_85 = arith.constant 7 : index
    %c0_86 = arith.constant 0 : index
    %94 = vector.load %arg12[%c0_84, %c7_85, %c0_86] : memref<8x32x128xbf16, #tpu.memory_space<vmem>>, vector<8x1x128xbf16>
    %95 = vector.shape_cast %94 : vector<8x1x128xbf16> to vector<8x128xbf16>
    %c0_87 = arith.constant 0 : index
    %c8 = arith.constant 8 : index
    %c0_88 = arith.constant 0 : index
    %96 = vector.load %arg12[%c0_87, %c8, %c0_88] : memref<8x32x128xbf16, #tpu.memory_space<vmem>>, vector<8x1x128xbf16>
    %97 = vector.shape_cast %96 : vector<8x1x128xbf16> to vector<8x128xbf16>
    %c0_89 = arith.constant 0 : index
    %c9 = arith.constant 9 : index
    %c0_90 = arith.constant 0 : index
    %98 = vector.load %arg12[%c0_89, %c9, %c0_90] : memref<8x32x128xbf16, #tpu.memory_space<vmem>>, vector<8x1x128xbf16>
    %99 = vector.shape_cast %98 : vector<8x1x128xbf16> to vector<8x128xbf16>
    %c0_91 = arith.constant 0 : index
    %c10 = arith.constant 10 : index
    %c0_92 = arith.constant 0 : index
    %100 = vector.load %arg12[%c0_91, %c10, %c0_92] : memref<8x32x128xbf16, #tpu.memory_space<vmem>>, vector<8x1x128xbf16>
    %101 = vector.shape_cast %100 : vector<8x1x128xbf16> to vector<8x128xbf16>
    %c0_93 = arith.constant 0 : index
    %c11 = arith.constant 11 : index
    %c0_94 = arith.constant 0 : index
    %102 = vector.load %arg12[%c0_93, %c11, %c0_94] : memref<8x32x128xbf16, #tpu.memory_space<vmem>>, vector<8x1x128xbf16>
    %103 = vector.shape_cast %102 : vector<8x1x128xbf16> to vector<8x128xbf16>
    %c0_95 = arith.constant 0 : index
    %c12 = arith.constant 12 : index
    %c0_96 = arith.constant 0 : index
    %104 = vector.load %arg12[%c0_95, %c12, %c0_96] : memref<8x32x128xbf16, #tpu.memory_space<vmem>>, vector<8x1x128xbf16>
    %105 = vector.shape_cast %104 : vector<8x1x128xbf16> to vector<8x128xbf16>
    %c0_97 = arith.constant 0 : index
    %c13 = arith.constant 13 : index
    %c0_98 = arith.constant 0 : index
    %106 = vector.load %arg12[%c0_97, %c13, %c0_98] : memref<8x32x128xbf16, #tpu.memory_space<vmem>>, vector<8x1x128xbf16>
    %107 = vector.shape_cast %106 : vector<8x1x128xbf16> to vector<8x128xbf16>
    %c0_99 = arith.constant 0 : index
    %c14 = arith.constant 14 : index
    %c0_100 = arith.constant 0 : index
    %108 = vector.load %arg12[%c0_99, %c14, %c0_100] : memref<8x32x128xbf16, #tpu.memory_space<vmem>>, vector<8x1x128xbf16>
    %109 = vector.shape_cast %108 : vector<8x1x128xbf16> to vector<8x128xbf16>
    %c0_101 = arith.constant 0 : index
    %c15 = arith.constant 15 : index
    %c0_102 = arith.constant 0 : index
    %110 = vector.load %arg12[%c0_101, %c15, %c0_102] : memref<8x32x128xbf16, #tpu.memory_space<vmem>>, vector<8x1x128xbf16>
    %111 = vector.shape_cast %110 : vector<8x1x128xbf16> to vector<8x128xbf16>
    %c0_103 = arith.constant 0 : index
    %c16 = arith.constant 16 : index
    %c0_104 = arith.constant 0 : index
    %112 = vector.load %arg12[%c0_103, %c16, %c0_104] : memref<8x32x128xbf16, #tpu.memory_space<vmem>>, vector<8x1x128xbf16>
    %113 = vector.shape_cast %112 : vector<8x1x128xbf16> to vector<8x128xbf16>
    %c0_105 = arith.constant 0 : index
    %c17 = arith.constant 17 : index
    %c0_106 = arith.constant 0 : index
    %114 = vector.load %arg12[%c0_105, %c17, %c0_106] : memref<8x32x128xbf16, #tpu.memory_space<vmem>>, vector<8x1x128xbf16>
    %115 = vector.shape_cast %114 : vector<8x1x128xbf16> to vector<8x128xbf16>
    %c0_107 = arith.constant 0 : index
    %c18 = arith.constant 18 : index
    %c0_108 = arith.constant 0 : index
    %116 = vector.load %arg12[%c0_107, %c18, %c0_108] : memref<8x32x128xbf16, #tpu.memory_space<vmem>>, vector<8x1x128xbf16>
    %117 = vector.shape_cast %116 : vector<8x1x128xbf16> to vector<8x128xbf16>
    %c0_109 = arith.constant 0 : index
    %c19 = arith.constant 19 : index
    %c0_110 = arith.constant 0 : index
    %118 = vector.load %arg12[%c0_109, %c19, %c0_110] : memref<8x32x128xbf16, #tpu.memory_space<vmem>>, vector<8x1x128xbf16>
    %119 = vector.shape_cast %118 : vector<8x1x128xbf16> to vector<8x128xbf16>
    %c0_111 = arith.constant 0 : index
    %c20 = arith.constant 20 : index
    %c0_112 = arith.constant 0 : index
    %120 = vector.load %arg12[%c0_111, %c20, %c0_112] : memref<8x32x128xbf16, #tpu.memory_space<vmem>>, vector<8x1x128xbf16>
    %121 = vector.shape_cast %120 : vector<8x1x128xbf16> to vector<8x128xbf16>
    %c0_113 = arith.constant 0 : index
    %c21 = arith.constant 21 : index
    %c0_114 = arith.constant 0 : index
    %122 = vector.load %arg12[%c0_113, %c21, %c0_114] : memref<8x32x128xbf16, #tpu.memory_space<vmem>>, vector<8x1x128xbf16>
    %123 = vector.shape_cast %122 : vector<8x1x128xbf16> to vector<8x128xbf16>
    %c0_115 = arith.constant 0 : index
    %c22 = arith.constant 22 : index
    %c0_116 = arith.constant 0 : index
    %124 = vector.load %arg12[%c0_115, %c22, %c0_116] : memref<8x32x128xbf16, #tpu.memory_space<vmem>>, vector<8x1x128xbf16>
    %125 = vector.shape_cast %124 : vector<8x1x128xbf16> to vector<8x128xbf16>
    %c0_117 = arith.constant 0 : index
    %c23 = arith.constant 23 : index
    %c0_118 = arith.constant 0 : index
    %126 = vector.load %arg12[%c0_117, %c23, %c0_118] : memref<8x32x128xbf16, #tpu.memory_space<vmem>>, vector<8x1x128xbf16>
    %127 = vector.shape_cast %126 : vector<8x1x128xbf16> to vector<8x128xbf16>
    %c0_119 = arith.constant 0 : index
    %c24 = arith.constant 24 : index
    %c0_120 = arith.constant 0 : index
    %128 = vector.load %arg12[%c0_119, %c24, %c0_120] : memref<8x32x128xbf16, #tpu.memory_space<vmem>>, vector<8x1x128xbf16>
    %129 = vector.shape_cast %128 : vector<8x1x128xbf16> to vector<8x128xbf16>
    %130 = tpu.concatenate %81, %83, %85, %87, %89, %91, %93, %95, %97, %99, %101, %103, %105, %107, %109, %111 in 1 : vector<8x128xbf16>, vector<8x128xbf16>, vector<8x128xbf16>, vector<8x128xbf16>, vector<8x128xbf16>, vector<8x128xbf16>, vector<8x128xbf16>, vector<8x128xbf16>, vector<8x128xbf16>, vector<8x128xbf16>, vector<8x128xbf16>, vector<8x128xbf16>, vector<8x128xbf16>, vector<8x128xbf16>, vector<8x128xbf16>, vector<8x128xbf16> -> vector<8x2048xbf16>
    %131 = tpu.concatenate %113, %115, %117, %119, %121, %123, %125, %127, %129 in 1 : vector<8x128xbf16>, vector<8x128xbf16>, vector<8x128xbf16>, vector<8x128xbf16>, vector<8x128xbf16>, vector<8x128xbf16>, vector<8x128xbf16>, vector<8x128xbf16>, vector<8x128xbf16> -> vector<8x1152xbf16>
    %132 = tpu.concatenate %130, %131 in 1 : vector<8x2048xbf16>, vector<8x1152xbf16> -> vector<8x3200xbf16>
    %cst_121 = arith.constant dense<0.000000e+00> : vector<8x768xf32>
    %133 = tpu.matmul %132, %77, %cst_121 {dimension_numbers = #tpu.dot_dimension_numbers<[1], [0], [0], [1], [0, 0, 1, 1], [], []>} : vector<8x3200xbf16>, vector<3200x768xbf16>, vector<8x768xf32> -> vector<8x768xf32>
    %134 = vector.broadcast %78 : vector<1x768xf32> to vector<8x768xf32>
    %135 = arith.mulf %133, %134 : vector<8x768xf32>
    %136 = vector.broadcast %79 : vector<1x768xf32> to vector<8x768xf32>
    %137 = arith.addf %135, %136 : vector<8x768xf32>
    %cst_122 = arith.constant 0.000000e+00 : f32
    %138 = vector.broadcast %cst_122 : f32 to vector<8x768xf32>
    %139 = arith.maximumf %137, %138 : vector<8x768xf32>
    %cst_123 = arith.constant 1.000000e+00 : f32
    %140 = vector.broadcast %cst_123 : f32 to vector<8x768xf32>
    %141 = arith.mulf %139, %140 : vector<8x768xf32>
    %142 = arith.truncf %141 : vector<8x768xf32> to vector<8x768xbf16>
    %c0_124 = arith.constant 0 : index
    %c0_125 = arith.constant 0 : index
    %143 = vector.load %arg9[%c0_124, %c0_125] : memref<768x128xbf16, #tpu.memory_space<vmem>>, vector<768x128xbf16>
    %cst_126 = arith.constant dense<0.000000e+00> : vector<8x128xf32>
    %144 = tpu.matmul %142, %143, %cst_126 {dimension_numbers = #tpu.dot_dimension_numbers<[1], [0], [0], [1], [0, 0, 1, 1], [], []>} : vector<8x768xbf16>, vector<768x128xbf16>, vector<8x128xf32> -> vector<8x128xf32>
    %c0_127 = arith.constant 0 : index
    %c0_128 = arith.constant 0 : index
    %145 = vector.load %arg10[%c0_127, %c0_128] : memref<1x128xf32, #tpu.memory_space<vmem>>, vector<1x128xf32>
    %146 = vector.broadcast %145 : vector<1x128xf32> to vector<8x128xf32>
    %147 = arith.addf %144, %146 : vector<8x128xf32>
    %c0_129 = arith.constant 0 : index
    %c0_130 = arith.constant 0 : index
    %148 = vector.load %arg11[%c0_129, %c0_130] : memref<8x128xf32, #tpu.memory_space<vmem>>, vector<8x128xf32>
    tpu.vector_store %arg11[%c0_129, %c0_130], %147 {strides = array<i32>} : memref<8x128xf32, #tpu.memory_space<vmem>>, vector<8x128xf32>,
    return
  }
  func.func @transform_0(%arg0: i32) -> (i32, i32, i32) {
    %c0_i32 = arith.constant 0 : i32
    %c0_i32_0 = arith.constant 0 : i32
    %c0_i32_1 = arith.constant 0 : i32
    return %arg0, %c0_i32, %c0_i32_0 : i32, i32, i32
  }
  func.func @transform_1(%arg0: i32) -> (i32, i32) {
    %c0_i32 = arith.constant 0 : i32
    %c0_i32_0 = arith.constant 0 : i32
    %c0_i32_1 = arith.constant 0 : i32
    return %c0_i32, %c0_i32_0 : i32, i32
  }
  func.func @transform_2(%arg0: i32) -> (i32, i32) {
    %c0_i32 = arith.constant 0 : i32
    %c0_i32_0 = arith.constant 0 : i32
    %c0_i32_1 = arith.constant 0 : i32
    return %c0_i32, %c0_i32_0 : i32, i32
  }
  func.func @transform_3(%arg0: i32) -> (i32, i32) {
    %c0_i32 = arith.constant 0 : i32
    %c0_i32_0 = arith.constant 0 : i32
    %c0_i32_1 = arith.constant 0 : i32
    return %c0_i32, %c0_i32_0 : i32, i32
  }
  func.func @transform_4(%arg0: i32) -> (i32, i32) {
    %c0_i32 = arith.constant 0 : i32
    %c0_i32_0 = arith.constant 0 : i32
    %c0_i32_1 = arith.constant 0 : i32
    return %c0_i32, %c0_i32_0 : i32, i32
  }
  func.func @transform_5(%arg0: i32) -> (i32, i32) {
    %c0_i32 = arith.constant 0 : i32
    %c0_i32_0 = arith.constant 0 : i32
    %c0_i32_1 = arith.constant 0 : i32
    return %c0_i32, %c0_i32_0 : i32, i32
  }
  func.func @transform_6(%arg0: i32) -> (i32, i32) {
    %c0_i32 = arith.constant 0 : i32
    %c0_i32_0 = arith.constant 0 : i32
    %c0_i32_1 = arith.constant 0 : i32
    return %c0_i32, %c0_i32_0 : i32, i32
  }
  func.func @transform_7(%arg0: i32) -> (i32, i32) {
    %c0_i32 = arith.constant 0 : i32
    %c0_i32_0 = arith.constant 0 : i32
    %c0_i32_1 = arith.constant 0 : i32
    return %c0_i32, %c0_i32_0 : i32, i32
  }
  func.func @transform_8(%arg0: i32) -> (i32, i32) {
    %c0_i32 = arith.constant 0 : i32
    %c0_i32_0 = arith.constant 0 : i32
    %c0_i32_1 = arith.constant 0 : i32
    return %c0_i32, %c0_i32_0 : i32, i32
  }
  func.func @transform_9(%arg0: i32) -> (i32, i32) {
    %c0_i32 = arith.constant 0 : i32
    %c0_i32_0 = arith.constant 0 : i32
    %c0_i32_1 = arith.constant 0 : i32
    return %c0_i32, %c0_i32_0 : i32, i32
  }
  func.func @transform_10(%arg0: i32) -> (i32, i32) {
    %c0_i32 = arith.constant 0 : i32
    %c0_i32_0 = arith.constant 0 : i32
    return %arg0, %c0_i32 : i32, i32
  }
}

</mosaic_0001>

<bundles_post_ra>
// kernel: inception_aux_forward.1
= control target key start
LH: loop header
LB: loop body
LE: loop exit
PB: predicated region body
PF: predicated region fallthrough
CT: control target
= control target key end

     0   :  { %s30066_s0 = inlined_call_operand.vmem [shape: bf16[16,289,4], index: 0, kind: input, shape index: {}]   ;;  %s30067_s1 = inlined_call_operand.vmem [shape: bf16[32,289], index: 1, kind: input, shape index: {}]   ;;  %s30068_s2 = inlined_call_operand.vmem [shape: bf16[4,128], index: 2, kind: input, shape index: {}]   ;;  %s30069_s3 = inlined_call_operand.vmem [shape: f32[1,128], index: 3, kind: input, shape index: {}]   ;;  %s30070_s4 = inlined_call_operand.vmem [shape: f32[1,128], index: 4, kind: input, shape index: {}]   ;;  %s30071_s5 = inlined_call_operand.vmem [shape: bf16[3200,768], index: 5, kind: input, shape index: {}]   ;;  %s30072_s6 = inlined_call_operand.vmem [shape: f32[1,768], index: 6, kind: input, shape index: {}]   ;;  %s30073_s7 = inlined_call_operand.vmem [shape: f32[1,768], index: 7, kind: input, shape index: {}]   ;;  %s30074_s8 = inlined_call_operand.vmem [shape: bf16[768,128], index: 8, kind: input, shape index: {}]   ;;  %s30075_s9 = inlined_call_operand.vmem [shape: f32[1,128], index: 9, kind: input, shape index: {}]   ;;  %s30076_s10 = inlined_call_operand.hbm [shape: f32[16,128], index: 10, kind: output, shape index: {}]  }
   0x1   :  { %30085 = sst [smem:[#allocation11_spill]] %s30066_s0 }
   0x2   :  { %30086 = sst [smem:[#allocation12_spill]] %s30067_s1 }
   0x3   :  { %15 = vsyncpa [#allocation4], 0 }
   0x4   :  { %17 = vsyncpa [#allocation4 + $0x1], 0  ;;  %s20836_s13 = smov 0   ;;  %s20838_s14 = smov 0  }
   0x5   :  { %s20840_s15 = smov 0   ;;  %s20842_s16 = smov 0  }
   0x6 LB: > { %s13183_s17 = sadd.s32 4294967295, %s20778_s16   ;;  %s13184_s18 = sadd.s32 4294967294, %s20778_s16   ;;  %s20778_s16 = sphi %s20842_s16, %s30159_s16   ;;  %s20774_s15 = sphi %s20840_s15, %s30158_s15   ;;  %s20770_s14 = sphi %s20838_s14, %s30157_s14   ;;  %s20766_s13 = sphi %s20836_s13, %s30156_s13  }
   0x7   : > { %s20859_s19 = sadd.s32 1, %s20778_s16   ;;  %s245_s20 = sadd.s32 1, %s20774_s15 }
   0x8   : > { %s242_s21 = ssub.s32 %s20778_s16, %s20859_s19  ;;  %p255_p0 = scmp.ne.s32.totalorder %s20774_s15, %s20770_s14 }
   0x9   : > { %p243_p1 = scmp.eq.s32.totalorder %s242_s21, 0  ;;  %p256_p2 = scmp.eq.s32.totalorder %s13183_s17, 1 }
   0xa   : > { %p261_p3 = scmp.ne.s32.totalorder %s20770_s14, %s20766_s13  ;;  %p262_p4 = scmp.eq.s32.totalorder %s13184_s18, 1 }
   0xb   : > { %s20869_s22 = scalar_select %p243_p1, %s20774_s15, %s245_s20  }
   0xc   : > { %p20871_p5 = por %p256_p2, %p255_p0  ;;  %p20875_p6 = por %p262_p4, %p261_p3 }
   0xd   : > { %p13187_p7 = scmp.ge.s32.totalorder %s20778_s16, 1  ;;  %p317_p8 = scmp.lt.s32.totalorder %s20778_s16, 3 }
   0xf   : > { %p318_p9 = pnand %p13187_p7, %p317_p8 }
  0x11   : > { %321 = sbr.rel (%p318_p9) target bundleno = 2121 (0x849), region = 60 }
  0x16   : > { %s20881_s25 = sshll.u32 %s13183_s17, 3  ;;  %s30089_s0 = sld [smem:[#allocation11_spill]]  ;;  %vm557_vm0 = vcmask 1040384   ;;  %v20780_v6 = vmov 0   ;;  %vm550_vm1 = vcmask 269312   ;;  %vm2245_vm2 = vcmask 1041408  }
  0x17   : > { %p357_p10 = scmp.lt.s32.totalorder %s20881_s25, 15  ;;  %v20895_v7 = vsel %vm557_vm0, 65535, %v20780_v6  ;;  %s30090_s1 = sld [smem:[#allocation12_spill]]  ;;  %vm2196_vm3 = vcmask 31744   ;;  %vm3852_vm4 = vcmask 1041409   ;;  %vm3855_vm5 = vcmask 1042434  }
  0x18   : > { %vm3858_vm6 = vcmask 1043459   ;;  %vm3861_vm7 = vcmask 1044484   ;;  %vm3864_vm8 = vcmask 1045509   ;;  %vm3867_vm9 = vcmask 1046534   ;;  %s353_s20 = sand.u32 1, %s20770_s14  }
  0x19   : > { %s358_s26 = scalar_select %p357_p10, %s20881_s25, 15  ;;  %vm3870_vm10 = vcmask 1047559  }
  0x1a   : > { %s13188_s21 = sshll.u32 %s353_s20, 3  ;;  %s13110_s12 = scalar_lea.sflag [#allocation4], %s353_s20 }
  0x1b   : > { %s20668_s27 = smul.u32 148, %s358_s26  ;;  %s355_s28 = scalar_lea.vmem [#allocation3], %s13188_s21 }
  0x1c   : > { %s13122_s29 = sshll.u32 %s355_s28, 4  ;;  %s13123_s29 = int_to_ptr.vmem [resolvable:$true] %s13122_s29 }
  0x1d   : > { %s20888_s30 = scalar_lea.vmem %s30089_s0, %s20668_s27  ;;  %v13201_v19 = vld [vmem:[%s30090_s1 + $0x8] sm:$0xf]  ;;  %v19184_v20 = vld [vmem:[%s30090_s1 + $0x10] sm:$0xf0]  ;;  %v13193_v37 = vld [vmem:[%s30090_s1] sm:$0xf]  ;;  %s13120_s27 = scalar_lea.hbm %s30076_s10, %s20881_s25 }
  0x1e   : > { %v19195_v0 = vld [vmem:[%s20888_s30 + $0x38] sm:$0xff]  ;;  %v408_v2 = vld [vmem:[%s20888_s30 + $0x90] sm:$0x1]  ;;  %v19212_v10 = vld [vmem:[%s20888_s30 + $0xc4] sm:$0xff]  ;;  %v20917_v25 = vor.u32 %v19184_v20, %v13201_v19  ;;  %s13124_s11 = sshll.u32 %s13120_s27, 4  ;;  %s20736_s25 = scalar_lea.hbm %s30076_s10, 16  ;;  %s13125_s11 = int_to_ptr.hbm [resolvable:$true] %s13124_s11 }
  0x1f   : > { %v19203_v1 = vld [vmem:[%s20888_s30 + $0x78] sm:$0xff]  ;;  %563 = vmatpush.bf16.msra.mxu0 %v19195_v0  ;;  %v19194_v3 = vld [vmem:[%s20888_s30 + $0x30] sm:$0xff]  ;;  %v512_v5 = vunpack.c.l.b16 %v408_v2  ;;  %v19193_v12 = vld [vmem:[%s20888_s30 + $0x28] sm:$0xff]  ;;  %s20730_s0 = sshra.s32 %s13125_s11, 4  ;;  %s20731_s0 = int_to_ptr.hbm [resolvable:$true] %s20730_s0 }
  0x20   : > { %582 = vmatpush.bf16.msra.mxu1 %v19203_v1  ;;  %v19202_v4 = vld [vmem:[%s20888_s30 + $0x70] sm:$0xff]  ;;  %v19201_v13 = vld [vmem:[%s20888_s30 + $0x68] sm:$0xff]  ;;  %v19211_v15 = vld [vmem:[%s20888_s30 + $0xbc] sm:$0xff]  ;;  %s20732_s17 = scalar_lea.hbm %s20731_s0, 8  ;;  %p20737_p0 = scmp.lt.s32.totalorder %s20731_s0, %s30076_s10 }
  0x21   : > { %v19213_v8 = vld [vmem:[%s20888_s30 + $0xcc] sm:$0xff]  ;;  %v531_v9 = vpack.c.b16 %v512_v5, %v512_v5  ;;  %v19192_v16 = vld [vmem:[%s20888_s30 + $0x20] sm:$0xff]  ;;  %v19210_v22 = vld [vmem:[%s20888_s30 + $0xb4] sm:$0xff]  ;;  %p20733_p11 = scmp.ne.s32.totalorder %s20731_s0, %s20732_s17  ;;  %p20738_p1 = scmp.lt.s32.totalorder %s20736_s25, %s20732_s17 }
  0x22   : > { %776 = vmatpush.bf16.msra.mxu3 %v19213_v8  ;;  %v19205_v14 = vld [vmem:[%s20888_s30 + $0x88] sm:$0xff]  ;;  %v19200_v17 = vld [vmem:[%s20888_s30 + $0x60] sm:$0xff]  ;;  %v19191_v23 = vld [vmem:[%s20888_s30 + $0x18] sm:$0xff] }
  0x23   : > { %564 = vmatpush.bf16.msra.mxu0 %v19194_v3  ;;  %v561_v11 = vand.u32 %v20895_v7, %v531_v9  ;;  %v19204_v18 = vld [vmem:[%s20888_s30 + $0x80] sm:$0xff]  ;;  %v19221_v21 = vld [vmem:[%s20888_s30 + $0x10c] sm:$0xff]  ;;  %v19199_v24 = vld [vmem:[%s20888_s30 + $0x58] sm:$0xff]  ;;  %p20734_p12 = pnand %p20733_p11, %p20871_p5  ;;  %p20739_p2 = por %p20738_p1, %p20737_p0 }
  0x24   : > { %583 = vmatpush.bf16.msra.mxu1 %v19202_v4  ;;  %v13325_v26 = vld [vmem:[%s20888_s30 + $0x124] sm:$0x1]  ;;  %v19209_v28 = vld [vmem:[%s20888_s30 + $0xac] sm:$0xff]  ;;  %v19219_v32 = vld [vmem:[%s20888_s30 + $0xfc] sm:$0xff] }
  0x25   : > { %606 = vmatpush.bf16.msra.mxu2 %v561_v11  ;;  %v19220_v27 = vld [vmem:[%s20888_s30 + $0x104] sm:$0xff]  ;;  %v19190_v29 = vld [vmem:[%s20888_s30 + $0x10] sm:$0xff]  ;;  %v735_v31 = vunpack.c.l.b16 %v13325_v26  ;;  %v19183_v38 = vld [vmem:[%s30090_s1 + $0x8] sm:$0xf0]  ;;  %p20735_p13 = pneg %p20734_p12 }
  0x26   : > { %777 = vmatpush.bf16.msra.mxu3 %v19212_v10  ;;  %v19198_v30 = vld [vmem:[%s20888_s30 + $0x50] sm:$0xff]  ;;  %v19208_v33 = vld [vmem:[%s20888_s30 + $0xa4] sm:$0xff]  ;;  %v19207_v41 = vld [vmem:[%s20888_s30 + $0x9c] sm:$0xff]  ;;  %v20954_v49 = vor.u32 %v19183_v38, %v13193_v37 }
  0x27   : > { %565 = vmatpush.bf16.msra.mxu0 %v19193_v12  ;;  %v19189_v34 = vld [vmem:[%s20888_s30 + $0x8] sm:$0xff]  ;;  %v754_v36 = vpack.c.b16 %v735_v31, %v735_v31  ;;  %v19218_v39 = vld [vmem:[%s20888_s30 + $0xf4] sm:$0xff]  ;;  %v19182_v40 = vld [vmem:[%s30090_s1 + $0x4] sm:$0xf]  ;;  %p20740_p3 = pnand %p20739_p2, %p20735_p13 }
  0x28   : > { %584 = vmatpush.bf16.msra.mxu1 %v19201_v13  ;;  %v19197_v35 = vld [vmem:[%s20888_s30 + $0x48] sm:$0xff]  ;;  %v19188_v42 = vld [vmem:[%s20888_s30] sm:$0xff]  ;;  %v13195_v44 = vld [vmem:[%s30090_s1 + $0xc] sm:$0xf0] }
  0x29   : > { %607 = vmatpush.bf16.msra.mxu2 %v19205_v14  ;;  %v19196_v43 = vld [vmem:[%s20888_s30 + $0x40] sm:$0xff]  ;;  %v774_v46 = vand.u32 %v754_v36, %v20895_v7  ;;  %v19187_v48 = vld [vmem:[%s30090_s1 + $0x28] sm:$0xf0]  ;;  %v20956_v50 = vor.u32 %v19182_v40, %v13195_v44  ;;  %v19206_v52 = vld [vmem:[%s20888_s30 + $0x94] sm:$0xff] }
  0x2a   : > { %778 = vmatpush.bf16.msra.mxu3 %v19211_v15  ;;  %v19231_v45 = vld [vmem:[%s20888_s30 + $0x160] sm:$0xff]  ;;  %v19217_v51 = vld [vmem:[%s20888_s30 + $0xec] sm:$0xff]  ;;  %v19230_v54 = vld [vmem:[%s20888_s30 + $0x158] sm:$0xff] }
  0x2b   : > { %566 = vmatpush.bf16.msra.mxu0 %v19192_v16  ;;  %v13213_v47 = vld [vmem:[%s30090_s1 + $0x20] sm:$0xf]  ;;  %v13436_v57 = vld [vmem:[%s20888_s30 + $0x1b8] sm:$0x1]  ;;  %v19216_v58 = vld [vmem:[%s20888_s30 + $0xe4] sm:$0xff] }
  0x2c   : > { %585 = vmatpush.bf16.msra.mxu1 %v19200_v17  ;;  %v20960_v53 = vor.u32 %v19187_v48, %v13213_v47  ;;  %v19239_v55 = vld [vmem:[%s20888_s30 + $0x1a0] sm:$0xff]  ;;  %v19229_v59 = vld [vmem:[%s20888_s30 + $0x150] sm:$0xff]  ;;  %v948_v60 = vunpack.c.l.b16 %v13436_v57  ;;  %v19238_v61 = vld [vmem:[%s20888_s30 + $0x198] sm:$0xff] }
  0x2d   : > { %608 = vmatpush.bf16.msra.mxu2 %v19204_v18  ;;  %v19223_v56 = vld [vmem:[%s20888_s30 + $0x11c] sm:$0xff]  ;;  %v19222_v62 = vld [vmem:[%s20888_s30 + $0x114] sm:$0xff]  ;;  %v19228_v1 = vld [vmem:[%s20888_s30 + $0x148] sm:$0xff] }
  0x2e   : > { %779 = vmatpush.bf16.msra.mxu3 %v19210_v22  ;;  %v19249_v63 = vld [vmem:[%s20888_s30 + $0x1f4] sm:$0xff]  ;;  %v19215_v0 = vld [vmem:[%s20888_s30 + $0xdc] sm:$0xff]  ;;  %v967_v2 = vpack.c.b16 %v948_v60, %v948_v60  ;;  %v19248_v6 = vld [vmem:[%s20888_s30 + $0x1ec] sm:$0xff] }
  0x2f   : > { %567 = vmatpush.bf16.msra.mxu0 %v19191_v23  ;;  %v19237_v3 = vld [vmem:[%s20888_s30 + $0x190] sm:$0xff]  ;;  %v13205_v5 = vld [vmem:[%s30090_s1 + $0x18] sm:$0xf]  ;;  %v19186_v8 = vld [vmem:[%s30090_s1 + $0x20] sm:$0xf0] }
  0x30   : > { %586 = vmatpush.bf16.msra.mxu1 %v19199_v24  ;;  %13287 = vmatmul.msk.bf16.vlgmr.msra.gmra.mxu2 %vm550_vm1, %v20917_v25  ;;  %v19214_v4 = vld [vmem:[%s20888_s30 + $0xd4] sm:$0xff]  ;;  %v19185_v9 = vld [vmem:[%s30090_s1 + $0x1c] sm:$0xf]  ;;  %v13207_v10 = vld [vmem:[%s30090_s1 + $0x24] sm:$0xf0]  ;;  %v987_v12 = vand.u32 %v967_v2, %v20895_v7  ;;  %v20996_v14 = vor.u32 %v19186_v8, %v13205_v5 }
  0x31   : > { %795 = vmatpush.bf16.msrb.mxu2 %v19221_v21  ;;  %v19227_v11 = vld [vmem:[%s20888_s30 + $0x140] sm:$0xff]  ;;  %v19236_v13 = vld [vmem:[%s20888_s30 + $0x188] sm:$0xff]  ;;  %v20998_v15 = vor.u32 %v19185_v9, %v13207_v10  ;;  %v19226_v17 = vld [vmem:[%s20888_s30 + $0x138] sm:$0xff] }
  0x32   : > { %780 = vmatpush.bf16.msra.mxu3 %v19209_v28  ;;  %v19247_v16 = vld [vmem:[%s20888_s30 + $0x1e4] sm:$0xff]  ;;  %v19241_v19 = vld [vmem:[%s20888_s30 + $0x1b0] sm:$0xff]  ;;  %v19246_v20 = vld [vmem:[%s20888_s30 + $0x1dc] sm:$0xff] }
  0x33   : > { %568 = vmatpush.bf16.msra.mxu0 %v19190_v29  ;;  %v19235_v18 = vld [vmem:[%s20888_s30 + $0x180] sm:$0xff]  ;;  %v19225_v21 = vld [vmem:[%s20888_s30 + $0x130] sm:$0xff]  ;;  %v19234_v22 = vld [vmem:[%s20888_s30 + $0x178] sm:$0xff] }
  0x34   : > { %587 = vmatpush.bf16.msra.mxu1 %v19198_v30  ;;  %v19240_v23 = vld [vmem:[%s20888_s30 + $0x1a8] sm:$0xff]  ;;  %v19245_v26 = vld [vmem:[%s20888_s30 + $0x1d4] sm:$0xff]  ;;  %v19266_v30 = vld [vmem:[%s20888_s30 + $0x280] sm:$0xff] }
  0x35   : > { %796 = vmatpush.bf16.msrb.mxu2 %v19220_v27  ;;  %v19267_v24 = vld [vmem:[%s20888_s30 + $0x288] sm:$0xff]  ;;  %v19257_v28 = vld [vmem:[%s20888_s30 + $0x234] sm:$0xff]  ;;  %v19250_v2 = vld [vmem:[%s20888_s30 + $0x1fc] sm:$0xff] }
  0x36   : > { %781 = vmatpush.bf16.msra.mxu3 %v19208_v33  ;;  %v19224_v27 = vld [vmem:[%s20888_s30 + $0x128] sm:$0xff]  ;;  %v19233_v29 = vld [vmem:[%s20888_s30 + $0x170] sm:$0xff]  ;;  %v19261_v57 = vld [vmem:[%s20888_s30 + $0x258] sm:$0xff] }
  0x37   : > { %569 = vmatpush.bf16.msra.mxu0 %v19189_v34  ;;  %v19244_v31 = vld [vmem:[%s20888_s30 + $0x1cc] sm:$0xff]  ;;  %v19243_v34 = vld [vmem:[%s20888_s30 + $0x1c4] sm:$0xff]  ;;  %v19253_v48 = vld [vmem:[%s20888_s30 + $0x214] sm:$0xff] }
  0x38   : > { %588 = vmatpush.bf16.msra.mxu1 %v19197_v35  ;;  %v19232_v33 = vld [vmem:[%s20888_s30 + $0x168] sm:$0xff]  ;;  %v19265_v35 = vld [vmem:[%s20888_s30 + $0x278] sm:$0xff]  ;;  %v19264_v40 = vld [vmem:[%s20888_s30 + $0x270] sm:$0xff] }
  0x39   : > { %797 = vmatpush.bf16.msrb.mxu2 %v19219_v32  ;;  %v19256_v32 = vld [vmem:[%s20888_s30 + $0x22c] sm:$0xff]  ;;  %v19255_v37 = vld [vmem:[%s20888_s30 + $0x224] sm:$0xff]  ;;  %v19277_v9 = vld [vmem:[%s20888_s30 + $0x2d8] sm:$0xff] }
  0x3a   : > { %782 = vmatpush.bf16.msra.mxu3 %v19207_v41  ;;  %v13547_v36 = vld [vmem:[%s20888_s30 + $0x24c] sm:$0x1]  ;;  %v19259_v47 = vld [vmem:[%s20888_s30 + $0x244] sm:$0xff]  ;;  %v19260_v60 = vld [vmem:[%s20888_s30 + $0x250] sm:$0xff] }
  0x3b   : > { %570 = vmatpush.bf16.msra.mxu0 %v19188_v42  ;;  %v1161_v38 = vunpack.c.l.b16 %v13547_v36  ;;  %v19275_v42 = vld [vmem:[%s20888_s30 + $0x2c8] sm:$0xff]  ;;  %v19270_v5 = vld [vmem:[%s20888_s30 + $0x2a0] sm:$0xff] }
  0x3c   : > { %589 = vmatpush.bf16.msra.mxu1 %v19196_v43  ;;  %v19254_v43 = vld [vmem:[%s20888_s30 + $0x21c] sm:$0xff]  ;;  %v19282_v10 = vld [vmem:[%s20888_s30 + $0x304] sm:$0xff] }
  0x3d   : > { %798 = vmatpush.bf16.msrb.mxu2 %v19218_v39  ;;  %v19242_v39 = vld [vmem:[%s20888_s30 + $0x1bc] sm:$0xff]  ;;  %v1180_v41 = vpack.c.b16 %v1161_v38, %v1161_v38  ;;  %v19302_v36 = vld [vmem:[%s20888_s30 + $0x3a8] sm:$0xff] }
  0x3e   : > { %571 = vmatmul.bf16.vlgmr.msra.gmra.mxu0 %v20954_v49  ;;  %783 = vmatpush.bf16.msra.mxu3 %v19206_v52  ;;  %v19273_v52 = vld [vmem:[%s20888_s30 + $0x2b8] sm:$0xff]  ;;  %v19294_v38 = vld [vmem:[%s20888_s30 + $0x364] sm:$0xff] }
  0x3f   : > { %819 = vmatpush.bf16.msrb.mxu0 %v774_v46  ;;  %590 = vmatmul.bf16.vlgmr.msra.gmra.mxu1 %v20956_v50  ;;  %v1200_v44 = vand.u32 %v1180_v41, %v20895_v7  ;;  %v19274_v46 = vld [vmem:[%s20888_s30 + $0x2c0] sm:$0xff]  ;;  %v13880_v41 = vld [vmem:[%s20888_s30 + $0x408] sm:$0x1] }
  0x40   : > { %989 = vmatpush.bf16.msrb.mxu1 %v19231_v45  ;;  %13288 = vmatmul.msk.bf16.gmra.mxu2 %vm550_vm1, %v20960_v53  ;;  %v19263_v45 = vld [vmem:[%s20888_s30 + $0x268] sm:$0xff] }
  0x41   : > { %799 = vmatpush.bf16.msrb.mxu2 %v19217_v51  ;;  %784 = vmatmul.bf16.vlgmr.msra.gmra.mxu3 %v20954_v49  ;;  %v19262_v51 = vld [vmem:[%s20888_s30 + $0x260] sm:$0xff] }
  0x42   : > { %1008 = vmatpush.bf16.msrb.mxu3 %v19239_v55  ;;  %v19252_v55 = vld [vmem:[%s20888_s30 + $0x20c] sm:$0xff] }
  0x43   : > { %820 = vmatpush.bf16.msrb.mxu0 %v19223_v56  ;;  %v19285_v56 = vld [vmem:[%s20888_s30 + $0x31c] sm:$0xff] }
  0x44   : > { %990 = vmatpush.bf16.msrb.mxu1 %v19230_v54  ;;  %v19258_v54 = vld [vmem:[%s20888_s30 + $0x23c] sm:$0xff] }
  0x45   : > { %800 = vmatpush.bf16.msrb.mxu2 %v19216_v58  ;;  %v19272_v58 = vld [vmem:[%s20888_s30 + $0x2b0] sm:$0xff] }
  0x46   : > { %1009 = vmatpush.bf16.msrb.mxu3 %v19238_v61  ;;  %v13658_v61 = vld [vmem:[%s20888_s30 + $0x2e0] sm:$0x1] }
  0x47   : > { %821 = vmatpush.bf16.msrb.mxu0 %v19222_v62  ;;  %v19271_v62 = vld [vmem:[%s20888_s30 + $0x2a8] sm:$0xff] }
  0x48   : > { %991 = vmatpush.bf16.msrb.mxu1 %v19229_v59  ;;  %v19251_v59 = vld [vmem:[%s20888_s30 + $0x204] sm:$0xff] }
  0x49   : > { %801 = vmatpush.bf16.msrb.mxu2 %v19215_v0  ;;  %v19284_v0 = vld [vmem:[%s20888_s30 + $0x314] sm:$0xff] }
  0x4a   : > { %1010 = vmatpush.bf16.msrb.mxu3 %v19237_v3 }
  0x4b   : > { %1202 = vmatpush.bf16.msra.mxu0 %v19249_v63  ;;  %v19293_v63 = vld [vmem:[%s20888_s30 + $0x35c] sm:$0xff] }
  0x4c   : > { %992 = vmatpush.bf16.msrb.mxu1 %v19228_v1  ;;  %v1374_v1 = vunpack.c.l.b16 %v13658_v61 }
  0x4d   : > { %802 = vmatpush.bf16.msrb.mxu2 %v19214_v4  ;;  %v19283_v4 = vld [vmem:[%s20888_s30 + $0x30c] sm:$0xff] }
  0x4e   : > { %1011 = vmatpush.bf16.msrb.mxu3 %v19236_v13  ;;  %576 = vmatmul.bf16.gmra.mxu0 %v20996_v14  ;;  %v1393_v3 = vpack.c.b16 %v1374_v1, %v1374_v1  ;;  %v19276_v13 = vld [vmem:[%s20888_s30 + $0x2d0] sm:$0xff] }
  0x4f   : > { %1203 = vmatpush.bf16.msra.mxu0 %v19248_v6  ;;  %595 = vmatmul.bf16.gmra.mxu1 %v20998_v15  ;;  %v19292_v6 = vld [vmem:[%s20888_s30 + $0x354] sm:$0xff] }
  0x50   : > { %993 = vmatpush.bf16.msrb.mxu1 %v19227_v11  ;;  %803 = vmatmul.bf16.vlgmr.msrb.gmra.mxu2 %v20956_v50  ;;  %v1413_v8 = vand.u32 %v1393_v3, %v20895_v7  ;;  %v19269_v11 = vld [vmem:[%s20888_s30 + $0x298] sm:$0xff] }
  0x51   : > { %1032 = vmatpush.bf16.msra.mxu2 %v987_v12  ;;  %789 = vmatmul.bf16.gmra.mxu3 %v20996_v14  ;;  %v19291_v12 = vld [vmem:[%s20888_s30 + $0x34c] sm:$0xff] }
  0x52   : > { %1012 = vmatpush.bf16.msrb.mxu3 %v19235_v18  ;;  %v19290_v18 = vld [vmem:[%s20888_s30 + $0x344] sm:$0xff] }
  0x53   : > { %1204 = vmatpush.bf16.msra.mxu0 %v19247_v16  ;;  %v19281_v16 = vld [vmem:[%s20888_s30 + $0x2fc] sm:$0xff] }
  0x54   : > { %994 = vmatpush.bf16.msrb.mxu1 %v19226_v17  ;;  %v19268_v17 = vld [vmem:[%s20888_s30 + $0x290] sm:$0xff] }
  0x55   : > { %1033 = vmatpush.bf16.msra.mxu2 %v19241_v19  ;;  %v19280_v19 = vld [vmem:[%s20888_s30 + $0x2f4] sm:$0xff] }
  0x56   : > { %1013 = vmatpush.bf16.msrb.mxu3 %v19234_v22  ;;  %v19288_v22 = vld [vmem:[%s20888_s30 + $0x334] sm:$0xff] }
  0x57   : > { %1205 = vmatpush.bf16.msra.mxu0 %v19246_v20  ;;  %v19289_v20 = vld [vmem:[%s20888_s30 + $0x33c] sm:$0xff] }
  0x58   : > { %995 = vmatpush.bf16.msrb.mxu1 %v19225_v21  ;;  %v19279_v21 = vld [vmem:[%s20888_s30 + $0x2ec] sm:$0xff] }
  0x59   : > { %1034 = vmatpush.bf16.msra.mxu2 %v19240_v23  ;;  %v19278_v23 = vld [vmem:[%s20888_s30 + $0x2e4] sm:$0xff] }
  0x5a   : > { %1014 = vmatpush.bf16.msrb.mxu3 %v19233_v29 }
  0x5b   : > { %1206 = vmatpush.bf16.msra.mxu0 %v19245_v26  ;;  %v19287_v26 = vld [vmem:[%s20888_s30 + $0x32c] sm:$0xff] }
  0x5c   : > { %996 = vmatpush.bf16.msrb.mxu1 %v19224_v27  ;;  %v19286_v27 = vld [vmem:[%s20888_s30 + $0x324] sm:$0xff] }
  0x5d   : > { %1415 = vmatpush.bf16.msrb.mxu2 %v19267_v24  ;;  %v19311_v24 = vld [vmem:[%s20888_s30 + $0x3f0] sm:$0xff] }
  0x5e   : > { %1015 = vmatpush.bf16.msrb.mxu3 %v19232_v33  ;;  %13398 = vmatmul.msk.bf16.vlgmr.msrb.gmra.mxu0 %vm550_vm1, %v20917_v25  ;;  %v19303_v33 = vld [vmem:[%s20888_s30 + $0x3b0] sm:$0xff] }
  0x5f   : > { %1207 = vmatpush.bf16.msra.mxu0 %v19244_v31  ;;  %997 = vmatmul.bf16.vlgmr.msrb.gmra.mxu1 %v20954_v49  ;;  %v19310_v31 = vld [vmem:[%s20888_s30 + $0x3e8] sm:$0xff] }
  0x60   : > { %1221 = vmatpush.bf16.msra.mxu1 %v19257_v28  ;;  %808 = vmatmul.bf16.gmra.mxu2 %v20998_v15  ;;  %v13769_v28 = vld [vmem:[%s20888_s30 + $0x374] sm:$0x1] }
  0x61   : > { %1416 = vmatpush.bf16.msrb.mxu2 %v19266_v30  ;;  %1016 = vmatmul.bf16.vlgmr.msrb.gmra.mxu3 %v20956_v50  ;;  %v1587_v29 = vunpack.c.l.b16 %v13769_v28 }
  0x62   : > { %1245 = vmatpush.bf16.msra.mxu3 %v1200_v44  ;;  %v19306_v44 = vld [vmem:[%s20888_s30 + $0x3c8] sm:$0xff] }
  0x63   : > { %1208 = vmatpush.bf16.msra.mxu0 %v19243_v34  ;;  %v1606_v30 = vpack.c.b16 %v1587_v29, %v1587_v29  ;;  %v19309_v34 = vld [vmem:[%s20888_s30 + $0x3e0] sm:$0xff] }
  0x64   : > { %1222 = vmatpush.bf16.msra.mxu1 %v19256_v32 }
  0x65   : > { %1417 = vmatpush.bf16.msrb.mxu2 %v19265_v35  ;;  %v1626_v32 = vand.u32 %v1606_v30, %v20895_v7  ;;  %v19295_v35 = vld [vmem:[%s20888_s30 + $0x36c] sm:$0xff] }
  0x66   : > { %1246 = vmatpush.bf16.msra.mxu3 %v19259_v47 }
  0x67   : > { %1209 = vmatpush.bf16.msra.mxu0 %v19242_v39  ;;  %v19301_v39 = vld [vmem:[%s20888_s30 + $0x3a0] sm:$0xff] }
  0x68   : > { %1223 = vmatpush.bf16.msra.mxu1 %v19255_v37  ;;  %v19308_v37 = vld [vmem:[%s20888_s30 + $0x3d8] sm:$0xff] }
  0x69   : > { %1418 = vmatpush.bf16.msrb.mxu2 %v19264_v40  ;;  %v19307_v40 = vld [vmem:[%s20888_s30 + $0x3d0] sm:$0xff] }
  0x6a   : > { %1247 = vmatpush.bf16.msra.mxu3 %v19258_v54  ;;  %v19304_v54 = vld [vmem:[%s20888_s30 + $0x3b8] sm:$0xff] }
  0x6b   : > { %1434 = vmatpush.bf16.msrb.mxu0 %v19275_v42  ;;  %v19300_v42 = vld [vmem:[%s20888_s30 + $0x398] sm:$0xff] }
  0x6c   : > { %1224 = vmatpush.bf16.msra.mxu1 %v19254_v43  ;;  %v1800_v43 = vunpack.c.l.b16 %v13880_v41 }
  0x6d   : > { %1419 = vmatpush.bf16.msrb.mxu2 %v19263_v45 }
  0x6e   : > { %1628 = vmatpush.bf16.msrb.mxu3 %v19285_v56  ;;  %13399 = vmatmul.msk.bf16.gmra.mxu0 %vm550_vm1, %v20960_v53  ;;  %v1819_v45 = vpack.c.b16 %v1800_v43, %v1800_v43  ;;  %v19312_v56 = vld [vmem:[%s20888_s30 + $0x3f8] sm:$0xff] }
  0x6f   : > { %1435 = vmatpush.bf16.msrb.mxu0 %v19274_v46  ;;  %1002 = vmatmul.bf16.gmra.mxu1 %v20996_v14  ;;  %v19299_v46 = vld [vmem:[%s20888_s30 + $0x390] sm:$0xff] }
  0x70   : > { %1225 = vmatpush.bf16.msra.mxu1 %v19253_v48  ;;  %13509 = vmatmul.msk.bf16.vlgmr.msra.gmra.mxu2 %vm550_vm1, %v20917_v25  ;;  %v1839_v47 = vand.u32 %v1819_v45, %v20895_v7  ;;  %v19305_v48 = vld [vmem:[%s20888_s30 + $0x3c0] sm:$0xff] }
  0x71   : > { %1420 = vmatpush.bf16.msrb.mxu2 %v19262_v51  ;;  %1021 = vmatmul.bf16.gmra.mxu3 %v20998_v15  ;;  %v19298_v51 = vld [vmem:[%s20888_s30 + $0x388] sm:$0xff] }
  0x72   : > { %1629 = vmatpush.bf16.msrb.mxu3 %v19284_v0  ;;  %v19321_v45 = vld [vmem:[%s20888_s30 + $0x444] sm:$0xff] }
  0x73   : > { %1436 = vmatpush.bf16.msrb.mxu0 %v19273_v52  ;;  %v19313_v52 = vld [vmem:[%s20888_s30 + $0x400] sm:$0xff] }
  0x74   : > { %1226 = vmatpush.bf16.msra.mxu1 %v19252_v55  ;;  %v19297_v55 = vld [vmem:[%s20888_s30 + $0x380] sm:$0xff] }
  0x75   : > { %1421 = vmatpush.bf16.msrb.mxu2 %v19261_v57  ;;  %v19296_v57 = vld [vmem:[%s20888_s30 + $0x378] sm:$0xff] }
  0x76   : > { %1630 = vmatpush.bf16.msrb.mxu3 %v19283_v4  ;;  %v2195_v4 = vld [vmem:[%s30068_s2] sm:$0x3] }
  0x77   : > { %1437 = vmatpush.bf16.msrb.mxu0 %v19272_v58 }
  0x78   : > { %1227 = vmatpush.bf16.msra.mxu1 %v19251_v59 }
  0x79   : > { %1422 = vmatpush.bf16.msrb.mxu2 %v19260_v60 }
  0x7a   : > { %1631 = vmatpush.bf16.msrb.mxu3 %v19282_v10 }
  0x7b   : > { %1438 = vmatpush.bf16.msrb.mxu0 %v19271_v62 }
  0x7c   : > { %1228 = vmatpush.bf16.msra.mxu1 %v19250_v2 }
  0x7d   : > { %1647 = vmatpush.bf16.msra.mxu2 %v19293_v63 }
  0x7e   : > { %1210 = vmatmul.bf16.vlgmr.msra.gmra.mxu0 %v20954_v49  ;;  %1632 = vmatpush.bf16.msrb.mxu3 %v19281_v16 }
  0x7f   : > { %1439 = vmatpush.bf16.msrb.mxu0 %v19270_v5  ;;  %1229 = vmatmul.bf16.vlgmr.msra.gmra.mxu1 %v20956_v50 }
  0x80   : > { %1458 = vmatpush.bf16.msrb.mxu1 %v1413_v8  ;;  %13510 = vmatmul.msk.bf16.gmra.mxu2 %vm550_vm1, %v20960_v53 }
  0x81   : > { %1648 = vmatpush.bf16.msra.mxu2 %v19292_v6  ;;  %13620 = vmatmul.msk.bf16.vlgmr.msra.gmra.mxu3 %vm550_vm1, %v20917_v25  ;;  %v2247_v6 = vsel %vm2245_vm2, %v2195_v4, 0 }
  0x82   : > { %1633 = vmatpush.bf16.msrb.mxu3 %v19280_v19 }
  0x83   : > { %1440 = vmatpush.bf16.msrb.mxu0 %v19269_v11 }
  0x84   : > { %1459 = vmatpush.bf16.msrb.mxu1 %v19277_v9 }
  0x85   : > { %1649 = vmatpush.bf16.msra.mxu2 %v19291_v12 }
  0x86   : > { %1634 = vmatpush.bf16.msrb.mxu3 %v19279_v21 }
  0x87   : > { %1441 = vmatpush.bf16.msrb.mxu0 %v19268_v17 }
  0x88   : > { %1460 = vmatpush.bf16.msrb.mxu1 %v19276_v13 }
  0x89   : > { %1650 = vmatpush.bf16.msra.mxu2 %v19290_v18 }
  0x8a   : > { %1635 = vmatpush.bf16.msrb.mxu3 %v19278_v23 }
  0x8b   : > { %1671 = vmatpush.bf16.msra.mxu0 %v1626_v32 }
  0x8c   : > { %1841 = vmatpush.bf16.msra.mxu1 %v19303_v33 }
  0x8d   : > { %1651 = vmatpush.bf16.msra.mxu2 %v19289_v20 }
  0x8e   : > { %1860 = vmatpush.bf16.msra.mxu3 %v19311_v24  ;;  %1215 = vmatmul.bf16.gmra.mxu0 %v20996_v14 }
  0x8f   : > { %1234 = vmatmul.bf16.gmra.mxu1 %v20998_v15  ;;  %1672 = vmatpush.bf16.msra.mxu0 %v19295_v35 }
  0x90   : > { %1423 = vmatmul.bf16.vlgmr.msrb.gmra.mxu2 %v20954_v49  ;;  %1842 = vmatpush.bf16.msra.mxu1 %v19302_v36 }
  0x91   : > { %1652 = vmatpush.bf16.msra.mxu2 %v19288_v22  ;;  %13621 = vmatmul.msk.bf16.gmra.mxu3 %vm550_vm1, %v20960_v53 }
  0x92   : > { %1861 = vmatpush.bf16.msra.mxu3 %v19310_v31 }
  0x93   : > { %1673 = vmatpush.bf16.msra.mxu0 %v19294_v38 }
  0x94   : > { %1843 = vmatpush.bf16.msra.mxu1 %v19301_v39 }
  0x95   : > { %1653 = vmatpush.bf16.msra.mxu2 %v19287_v26 }
  0x96   : > { %1862 = vmatpush.bf16.msra.mxu3 %v19309_v34 }
  0x98   : > { %1844 = vmatpush.bf16.msra.mxu1 %v19300_v42 }
  0x99   : > { %1654 = vmatpush.bf16.msra.mxu2 %v19286_v27 }
  0x9a   : > { %1863 = vmatpush.bf16.msra.mxu3 %v19308_v37 }
  0x9c   : > { %1845 = vmatpush.bf16.msra.mxu1 %v19299_v46  ;;  %v19329_v46 = vld [vmem:[%s20888_s30 + $0x484] sm:$0xff] }
  0x9d   : > { %1884 = vmatpush.bf16.msrb.mxu2 %v1839_v47 }
  0x9e   : > { %1442 = vmatmul.bf16.vlgmr.msrb.gmra.mxu0 %v20956_v50  ;;  %1864 = vmatpush.bf16.msra.mxu3 %v19307_v40 }
  0x9f   : > { %13731 = vmatmul.msk.bf16.vlgmr.msrb.gmra.mxu1 %vm550_vm1, %v20917_v25  ;;  %2054 = vmatpush.bf16.msrb.mxu0 %v19321_v45  ;;  %v19323_v45 = vld [vmem:[%s20888_s30 + $0x454] sm:$0xff] }
  0xa0   : > { %1428 = vmatmul.bf16.gmra.mxu2 %v20996_v14  ;;  %1846 = vmatpush.bf16.msra.mxu1 %v19298_v51 }
  0xa1   : > { %1636 = vmatmul.bf16.vlgmr.msrb.gmra.mxu3 %v20954_v49  ;;  %1885 = vmatpush.bf16.msrb.mxu2 %v19313_v52 }
  0xa2   : > { %1865 = vmatpush.bf16.msra.mxu3 %v19306_v44 }
  0xa4   : > { %1847 = vmatpush.bf16.msra.mxu1 %v19297_v55  ;;  %v19320_v55 = vld [vmem:[%s20888_s30 + $0x43c] sm:$0xff] }
  0xa5   : > { %1886 = vmatpush.bf16.msrb.mxu2 %v19312_v56  ;;  %v19328_v56 = vld [vmem:[%s20888_s30 + $0x47c] sm:$0xff]  ;;  %2055 = vmatpush.bf16.msrb.mxu0 %v19320_v55 }
  0xa6   : > { %1866 = vmatpush.bf16.msra.mxu3 %v19305_v48 }
  0xa8   : > { %1848 = vmatpush.bf16.msra.mxu1 %v19296_v57 }
  0xaa   : > { %1867 = vmatpush.bf16.msra.mxu3 %v19304_v54 }
  0xac   : > { %2073 = vmatpush.bf16.msrb.mxu1 %v19329_v46  ;;  %v19330_v46 = vld [vmem:[%s20888_s30 + $0x48c] sm:$0xff] }
  0xae   : > { %1447 = vmatmul.bf16.gmra.mxu0 %v20998_v15 }
  0xaf   : > { %13732 = vmatmul.msk.bf16.gmra.mxu1 %vm550_vm1, %v20960_v53 }
  0xb0   : > { %1655 = vmatmul.bf16.vlgmr.msra.gmra.mxu2 %v20956_v50  ;;  %2074 = vmatpush.bf16.msrb.mxu1 %v19328_v56 }
  0xb1   : > { %1641 = vmatmul.bf16.gmra.mxu3 %v20996_v14  ;;  %2256 = vmatpush.bf16.msra.mxu2 %v2247_v6  ;;  %v19318_v6 = vld [vmem:[%s20888_s30 + $0x42c] sm:$0xff] }
  0xb3   : > { %v610_v58 = vpop.f32.mrf.mxu2 }
  0xbb   : > { %v612_v59 = vpop.f32.mrf.mxu2  ;;  %v572_v60 = vpop.f32.mrf.mxu0 }
  0xbc   : > { %v591_v61 = vpop.f32.mrf.mxu1 }
  0xbd   : > { %v592_v20 = vadd.f32 %v591_v61, %v572_v60  ;;  %v19319_v61 = vld [vmem:[%s20888_s30 + $0x434] sm:$0xff] }
  0xbe   : > { %13842 = vmatmul.msk.bf16.vlgmr.msra.gmra.mxu0 %vm550_vm1, %v20917_v25 }
  0xbf   : > { %1849 = vmatmul.bf16.vlgmr.msra.gmra.mxu1 %v20954_v49  ;;  %v611_v24 = vadd.f32 %v610_v58, %v592_v20  ;;  %2056 = vmatpush.bf16.msrb.mxu0 %v19319_v61 }
  0xc0   : > { %1660 = vmatmul.bf16.gmra.mxu2 %v20998_v15 }
  0xc1   : > { %1868 = vmatmul.bf16.vlgmr.msra.gmra.mxu3 %v20956_v50  ;;  %v620_v29 = vpack.c.bf16 %v611_v24, %v611_v24 }
  0xc3   : > { %v615_v62 = vpop.f32.mrf.mxu2  ;;  %v574_v63 = vpop.f32.mrf.mxu0  ;;  %v2119_v33 = vunpack.c.l.b16 %v620_v29  ;;  %2057 = vmatpush.bf16.msrb.mxu0 %v19318_v6 }
  0xc4   : > { %v593_v0 = vpop.f32.mrf.mxu1  ;;  %v21128_v1 = vpop.f32.mrf.mxu3 }
  0xc5   : > { %v594_v19 = vadd.f32 %v593_v0, %v574_v63 }
  0xc7   : > { %v613_v21 = vadd.f32 %v612_v59, %v594_v19 }
  0xc9   : > { %v621_v28 = vpack.c.bf16 %v613_v21, %v613_v21  ;;  %v19325_v21 = vld [vmem:[%s20888_s30 + $0x464] sm:$0xff] }
  0xcb   : > { %v617_v2 = vpop.f32.mrf.mxu2  ;;  %v577_v3 = vpop.f32.mrf.mxu0  ;;  %v2120_v30 = vunpack.c.l.b16 %v621_v28 }
  0xcc   : > { %v596_v5 = vpop.f32.mrf.mxu1  ;;  %v787_v8 = vpop.f32.mrf.mxu3 }
  0xcd   : > { %v2123_v36 = vpack.c.b16 %v2120_v30, %v2119_v33  ;;  %v597_v38 = vadd.f32 %v596_v5, %v577_v3  ;;  %v13991_v3 = vld [vmem:[%s20888_s30 + $0x49c] sm:$0x1] }
  0xce   : > { %13843 = vmatmul.msk.bf16.gmra.mxu0 %vm550_vm1, %v20960_v53  ;;  %v19316_v30 = vld [vmem:[%s20888_s30 + $0x41c] sm:$0xff] }
  0xcf   : > { %1854 = vmatmul.bf16.gmra.mxu1 %v20996_v14  ;;  %v616_v42 = vadd.f32 %v615_v62, %v597_v38  ;;  %v19327_v62 = vld [vmem:[%s20888_s30 + $0x474] sm:$0xff]  ;;  %v19324_v33 = vld [vmem:[%s20888_s30 + $0x45c] sm:$0xff] }
  0xd0   : > { %13953 = vmatmul.msk.bf16.vlgmr.msrb.gmra.mxu2 %vm550_vm1, %v20917_v25  ;;  %2075 = vmatpush.bf16.msrb.mxu1 %v19327_v62 }
  0xd1   : > { %1873 = vmatmul.bf16.gmra.mxu3 %v20998_v15  ;;  %v622_v48 = vpack.c.bf16 %v616_v42, %v616_v42  ;;  %v19315_v42 = vld [vmem:[%s20888_s30 + $0x414] sm:$0xff] }
  0xd3   : > { %v804_v9 = vpop.f32.mrf.mxu2  ;;  %v579_v10 = vpop.f32.mrf.mxu0  ;;  %v2121_v57 = vunpack.c.l.b16 %v622_v48 }
  0xd4   : > { %v598_v11 = vpop.f32.mrf.mxu1  ;;  %v21139_v12 = vpop.f32.mrf.mxu3  ;;  %v805_v0 = vadd.f32 %v804_v9, %v21128_v1 }
  0xd5   : > { %v599_v37 = vadd.f32 %v598_v11, %v579_v10  ;;  %v19326_v10 = vld [vmem:[%s20888_s30 + $0x46c] sm:$0xff]  ;;  %v2013_v11 = vunpack.c.l.b16 %v13991_v3 }
  0xd6   : > { %2076 = vmatpush.bf16.msrb.mxu1 %v19326_v10 }
  0xd7   : > { %v618_v39 = vadd.f32 %v617_v2, %v599_v37  ;;  %v2032_v1 = vpack.c.b16 %v2013_v11, %v2013_v11 }
  0xd9   : > { %v623_v47 = vpack.c.bf16 %v618_v39, %v618_v39 }
  0xda   : > { %2077 = vmatpush.bf16.msrb.mxu1 %v19325_v21 }
  0xdb   : > { %v806_v13 = vpop.f32.mrf.mxu2  ;;  %v823_v16 = vpop.f32.mrf.mxu0  ;;  %v2122_v51 = vunpack.c.l.b16 %v623_v47 }
  0xdc   : > { %v21141_v17 = vpop.f32.mrf.mxu1  ;;  %v21143_v18 = vpop.f32.mrf.mxu3  ;;  %v807_v63 = vadd.f32 %v806_v13, %v787_v8  ;;  %v824_v19 = vadd.f32 %v823_v16, %v805_v0  ;;  %v19317_v13 = vld [vmem:[%s20888_s30 + $0x424] sm:$0xff] }
  0xdd   : > { %v2124_v60 = vpack.c.b16 %v2122_v51, %v2121_v57  ;;  %2058 = vmatpush.bf16.msrb.mxu0 %v19317_v13  ;;  %v19314_v57 = vld [vmem:[%s20888_s30 + $0x40c] sm:$0xff] }
  0xde   : > { %v833_v24 = vpack.c.bf16 %v824_v19, %v824_v19  ;;  %2078 = vmatpush.bf16.msrb.mxu1 %v19324_v33 }
  0xe0   : > { %13954 = vmatmul.msk.bf16.gmra.mxu2 %vm550_vm1, %v20960_v53  ;;  %v2129_v37 = vunpack.c.l.b16 %v833_v24 }
  0xe1   : > { %2059 = vmatpush.bf16.msrb.mxu0 %v19316_v30 }
  0xe2   : > { %2079 = vmatpush.bf16.msrb.mxu1 %v19323_v45 }
  0xe3   : > { %v21147_v22 = vpop.f32.mrf.mxu2  ;;  %v825_v23 = vpop.f32.mrf.mxu0 }
  0xe4   : > { %v21149_v26 = vpop.f32.mrf.mxu1  ;;  %v21151_v27 = vpop.f32.mrf.mxu3  ;;  %v826_v2 = vadd.f32 %v825_v23, %v807_v63  ;;  %v2052_v23 = vand.u32 %v2032_v1, %v20895_v7  ;;  %v810_v48 = vadd.f32 %v21147_v22, %v21139_v12 }
  0xe5   : > { %2060 = vmatpush.bf16.msrb.mxu0 %v19315_v42  ;;  %v1018_v10 = vadd.f32 %v21151_v27, %v21141_v17 }
  0xe6   : > { %v834_v9 = vpack.c.bf16 %v826_v2, %v826_v2  ;;  %2097 = vmatpush.bf16.msrb.mxu3 %v2052_v23 }
  0xe8   : > { %v2130_v16 = vunpack.c.l.b16 %v834_v9 }
  0xe9   : > { %2061 = vmatpush.bf16.msrb.mxu0 %v19314_v57 }
  0xea   : > { %v2133_v7 = vpack.c.b16 %v2130_v16, %v2129_v37 }
  0xeb   : > { %v21153_v31 = vpop.f32.mrf.mxu2  ;;  %v21155_v32 = vpop.f32.mrf.mxu0 }
  0xec   : > { %v21157_v34 = vpop.f32.mrf.mxu1  ;;  %v21159_v35 = vpop.f32.mrf.mxu3  ;;  %v812_v47 = vadd.f32 %v21153_v31, %v21143_v18  ;;  %v829_v61 = vadd.f32 %v21155_v32, %v810_v48  ;;  %2062 = vmatmul.bf16.vlgmr.msrb.gmra.mxu0 %v20954_v49 }
  0xed   : > { %v1020_v6 = vadd.f32 %v21159_v35, %v21149_v26 }
  0xee   : > { %v835_v12 = vpack.c.bf16 %v829_v61, %v829_v61 }
  0xf0   : > { %14066 = vmatmul.msk.bf16.vlgmr.msra.gmra.mxu2 %vm2196_vm3, %v2123_v36  ;;  %v19331_v36 = vld [vmem:[%s20888_s30 + $0x494] sm:$0xff]  ;;  %v2131_v0 = vunpack.c.l.b16 %v835_v12 }
  0xf1   : > { %2098 = vmatpush.bf16.msrb.mxu3 %v19331_v36 }
  0xf3   : > { %v21162_v40 = vpop.f32.mrf.mxu2  ;;  %v21164_v41 = vpop.f32.mrf.mxu0 }
  0xf4   : > { %v21166_v43 = vpop.f32.mrf.mxu1  ;;  %v21168_v44 = vpop.f32.mrf.mxu3  ;;  %v831_v51 = vadd.f32 %v21164_v41, %v812_v47  ;;  %v1037_v1 = vadd.f32 %v21162_v40, %v1018_v10 }
  0xf5   : > { %2099 = vmatpush.bf16.msrb.mxu3 %v19330_v46 }
  0xf6   : > { %v836_v31 = vpack.c.bf16 %v831_v51, %v831_v51  ;;  %v1046_v24 = vpack.c.bf16 %v1037_v1, %v1037_v1 }
  0xf8   : > { %14064 = vmatmul.msk.bf16.vlgmr.msrb.gmra.mxu3 %vm550_vm1, %v20917_v25  ;;  %v2132_v22 = vunpack.c.l.b16 %v836_v31  ;;  %v2139_v33 = vunpack.c.l.b16 %v1046_v24 }
  0xfa   : > { %v2134_v3 = vpack.c.b16 %v2132_v22, %v2131_v0 }
  0xfb   : > { %v21172_v52 = vpop.f32.mrf.mxu2  ;;  %v21174_v54 = vpop.f32.mrf.mxu0 }
  0xfc   : > { %v21178_v58 = vpop.f32.mrf.mxu1  ;;  %v21180_v59 = vpop.f32.mrf.mxu3  ;;  %v1039_v49 = vadd.f32 %v21172_v52, %v1020_v6  ;;  %2067 = vmatmul.bf16.gmra.mxu0 %v20996_v14 }
  0xfd   : > { %v1025_v42 = vadd.f32 %v21180_v59, %v21166_v43 }
  0xfe   : > { %v1047_v26 = vpack.c.bf16 %v1039_v49, %v1039_v49 }
 0x100   : > { %14067 = vmatmul.msk.bf16.gmra.mxu2 %vm2196_vm3, %v2124_v60  ;;  %v19322_v60 = vld [vmem:[%s20888_s30 + $0x44c] sm:$0xff]  ;;  %v2140_v27 = vunpack.c.l.b16 %v1047_v26 }
 0x101   : > { %2080 = vmatpush.bf16.msrb.mxu1 %v19322_v60 }
 0x103   : > { %v21187_v4 = vpop.f32.mrf.mxu2  ;;  %v21189_v5 = vpop.f32.mrf.mxu0 }
 0x104   : > { %v21193_v20 = vpop.f32.mrf.mxu1  ;;  %v21195_v8 = vpop.f32.mrf.mxu3  ;;  %2081 = vmatmul.bf16.vlgmr.msrb.gmra.mxu1 %v20956_v50 }
 0x108   : > { %14065 = vmatmul.msk.bf16.gmra.mxu3 %vm550_vm1, %v20960_v53 }
 0x10b   : > { %v21200_v28 = vpop.f32.mrf.mxu2  ;;  %v21202_v29 = vpop.f32.mrf.mxu0 }
 0x10c   : > { %v21207_v38 = vpop.f32.mrf.mxu1  ;;  %v21209_v39 = vpop.f32.mrf.mxu3  ;;  %v1044_v45 = vadd.f32 %v21200_v28, %v1025_v42 }
 0x10e   : > { %v1049_v61 = vpack.c.bf16 %v1044_v45, %v1044_v45 }
 0x110   : > { %14068 = vmatmul.msk.bf16.gmra.mxu2 %vm2196_vm3, %v2133_v7  ;;  %v2143_v7 = vpack.c.b16 %v2140_v27, %v2139_v33  ;;  %v2142_v22 = vunpack.c.l.b16 %v1049_v61  ;;  %v1236_v27 = vadd.f32 %v21207_v38, %v21202_v29 }
 0x113   : > { %v1424_v55 = vpop.f32.mrf.mxu2  ;;  %v21220_v56 = vpop.f32.mrf.mxu0 }
 0x114   : > { %v21225_v62 = vpop.f32.mrf.mxu1  ;;  %v21227_v18 = vpop.f32.mrf.mxu3  ;;  %2086 = vmatmul.bf16.gmra.mxu1 %v20998_v15  ;;  %v1023_v15 = vadd.f32 %v21168_v44, %v21157_v34 }
 0x115   : > { %v1255_v42 = vadd.f32 %v21227_v18, %v1236_v27 }
 0x116   : > { %v1042_v51 = vadd.f32 %v21187_v4, %v1023_v15 }
 0x117   : > { %v1261_v38 = vpack.c.bf16 %v1255_v42, %v1255_v42 }
 0x118   : > { %v1048_v43 = vpack.c.bf16 %v1042_v51, %v1042_v51 }
 0x119   : > { %v2151_v61 = vunpack.c.l.b16 %v1261_v38 }
 0x11b   : > { %v1426_v41 = vpop.f32.mrf.mxu2  ;;  %v1443_v63 = vpop.f32.mrf.mxu0 }
 0x11c   : > { %v1462_v32 = vpop.f32.mrf.mxu1  ;;  %v21233_v2 = vpop.f32.mrf.mxu3  ;;  %v1444_v25 = vadd.f32 %v1443_v63, %v1424_v55  ;;  %v2141_v63 = vunpack.c.l.b16 %v1048_v43 }
 0x11e   : > { %v1463_v50 = vadd.f32 %v1462_v32, %v1444_v25  ;;  %v1231_v32 = vadd.f32 %v21178_v58, %v21174_v54  ;;  %v2144_v6 = vpack.c.b16 %v2142_v22, %v2141_v63 }
 0x120   : > { %14069 = vmatmul.msk.bf16.gmra.mxu2 %vm2196_vm3, %v2134_v3  ;;  %v1472_v35 = vpack.c.bf16 %v1463_v50, %v1463_v50  ;;  %v1233_v3 = vadd.f32 %v21193_v20, %v21189_v5  ;;  %v1250_v49 = vadd.f32 %v21195_v8, %v1231_v32 }
 0x122   : > { %v21246_v52 = vunpack.c.l.b16 %v1472_v35  ;;  %v1252_v50 = vadd.f32 %v21209_v39, %v1233_v3  ;;  %v1259_v26 = vpack.c.bf16 %v1250_v49, %v1250_v49 }
 0x123   : > { %v1429_v11 = vpop.f32.mrf.mxu2  ;;  %v1445_v19 = vpop.f32.mrf.mxu0 }
 0x124   : > { %v1446_v9 = vadd.f32 %v1445_v19, %v1426_v41  ;;  %v1464_v13 = vpop.f32.mrf.mxu1  ;;  %v1637_v21 = vpop.f32.mrf.mxu3  ;;  %v1260_v35 = vpack.c.bf16 %v1252_v50, %v1252_v50 }
 0x126   : > { %v1465_v23 = vadd.f32 %v1464_v13, %v1446_v9  ;;  %v2150_v24 = vunpack.c.l.b16 %v1260_v35 }
 0x128   : > { %v1473_v17 = vpack.c.bf16 %v1465_v23, %v1465_v23 }
 0x12a   : > { %v21248_v16 = vunpack.c.l.b16 %v1473_v17 }
 0x12b   : > { %v1431_v40 = vpop.f32.mrf.mxu2  ;;  %v1448_v30 = vpop.f32.mrf.mxu0 }
 0x12c   : > { %v2163_v53 = vpack.c.b16 %v21248_v16, %v21246_v52  ;;  %v1467_v36 = vpop.f32.mrf.mxu1  ;;  %v1639_v37 = vpop.f32.mrf.mxu3  ;;  %v1449_v14 = vadd.f32 %v1448_v30, %v1429_v11 }
 0x12e   : > { %v1468_v46 = vadd.f32 %v1467_v36, %v1449_v14 }
 0x130   : > { %14070 = vmatmul.msk.bf16.gmra.mxu2 %vm2196_vm3, %v2143_v7  ;;  %v1474_v31 = vpack.c.bf16 %v1468_v46, %v1468_v46 }
 0x132   : > { %v21259_v41 = vunpack.c.l.b16 %v1474_v31 }
 0x133   : > { %v1656_v47 = vpop.f32.mrf.mxu2  ;;  %v1450_v48 = vpop.f32.mrf.mxu0 }
 0x134   : > { %v1451_v55 = vadd.f32 %v1450_v48, %v1431_v40  ;;  %v1469_v57 = vpop.f32.mrf.mxu1  ;;  %v1642_v60 = vpop.f32.mrf.mxu3  ;;  %v1657_v25 = vadd.f32 %v1656_v47, %v1637_v21  ;;  %v2149_v21 = vunpack.c.l.b16 %v1259_v26  ;;  %v1238_v40 = vadd.f32 %v21225_v62, %v21220_v56 }
 0x136   : > { %v1470_v12 = vadd.f32 %v1469_v57, %v1451_v55  ;;  %v2153_v30 = vpack.c.b16 %v2150_v24, %v2149_v21  ;;  %v1257_v14 = vadd.f32 %v21233_v2, %v1238_v40  ;;  %v21317_v21 = vld [vmem:[%s30070_s4] ss:$0 sm:$0xff] }
 0x138   : > { %v1475_v59 = vpack.c.bf16 %v1470_v12, %v1470_v12  ;;  %v1262_v51 = vpack.c.bf16 %v1257_v14, %v1257_v14 }
 0x13a   : > { %v21261_v34 = vunpack.c.l.b16 %v1475_v59  ;;  %v2152_v31 = vunpack.c.l.b16 %v1262_v51 }
 0x13b   : > { %v1658_v44 = vpop.f32.mrf.mxu2  ;;  %v1675_v28 = vpop.f32.mrf.mxu0 }
 0x13c   : > { %v2164_v0 = vpack.c.b16 %v21261_v34, %v21259_v41  ;;  %v1644_v4 = vpop.f32.mrf.mxu3  ;;  %v1676_v10 = vadd.f32 %v1675_v28, %v1657_v25  ;;  %v1659_v11 = vadd.f32 %v1658_v44, %v1639_v37  ;;  %v1850_v58 = vpop.f32.mrf.mxu1  ;;  %v2154_v44 = vpack.c.b16 %v2152_v31, %v2151_v61 }
 0x13e   : > { %v1685_v9 = vpack.c.bf16 %v1676_v10, %v1676_v10 }
 0x140   : > { %14071 = vmatmul.msk.bf16.gmra.mxu2 %vm2196_vm3, %v2144_v6  ;;  %v21272_v5 = vunpack.c.l.b16 %v1685_v9 }
 0x143   : > { %v1661_v19 = vpop.f32.mrf.mxu2  ;;  %v1677_v1 = vpop.f32.mrf.mxu0 }
 0x144   : > { %v1678_v13 = vadd.f32 %v1677_v1, %v1659_v11  ;;  %v1869_v23 = vpop.f32.mrf.mxu3  ;;  %v1662_v33 = vadd.f32 %v1661_v19, %v1642_v60  ;;  %v1852_v37 = vpop.f32.mrf.mxu1 }
 0x145   : > { %v1870_v48 = vadd.f32 %v1869_v23, %v1850_v58  ;;  %v21311_v58 = vld [vmem:[%s30069_s3] ss:$0 sm:$0xff] }
 0x146   : > { %v1686_v54 = vpack.c.bf16 %v1678_v13, %v1678_v13 }
 0x148   : > { %v21274_v20 = vunpack.c.l.b16 %v1686_v54 }
 0x14a   : > { %v2173_v8 = vpack.c.b16 %v21274_v20, %v21272_v5 }
 0x14b   : > { %v1663_v39 = vpop.f32.mrf.mxu2  ;;  %v1680_v17 = vpop.f32.mrf.mxu0 }
 0x14c   : > { %v1681_v36 = vadd.f32 %v1680_v17, %v1662_v33  ;;  %v1871_v7 = vpop.f32.mrf.mxu3  ;;  %v1664_v15 = vadd.f32 %v1663_v39, %v1644_v4  ;;  %v1855_v2 = vpop.f32.mrf.mxu1 }
 0x14d   : > { %v1872_v60 = vadd.f32 %v1871_v7, %v1852_v37 }
 0x14e   : > { %v1687_v47 = vpack.c.bf16 %v1681_v36, %v1681_v36 }
 0x150   : > { %14072 = vmatmul.msk.bf16.gmra.mxu2 %vm2196_vm3, %v2153_v30  ;;  %v21285_v62 = vunpack.c.l.b16 %v1687_v47 }
 0x153   : > { %v1888_v45 = vpop.f32.mrf.mxu2  ;;  %v1682_v46 = vpop.f32.mrf.mxu0 }
 0x154   : > { %v1683_v29 = vadd.f32 %v1682_v46, %v1664_v15  ;;  %v1889_v55 = vadd.f32 %v1888_v45, %v1870_v48  ;;  %v1874_v43 = vpop.f32.mrf.mxu3  ;;  %v1857_v25 = vpop.f32.mrf.mxu1 }
 0x155   : > { %v1875_v6 = vadd.f32 %v1874_v43, %v1855_v2 }
 0x156   : > { %v1688_v56 = vpack.c.bf16 %v1683_v29, %v1683_v29  ;;  %v1898_v59 = vpack.c.bf16 %v1889_v55, %v1889_v55 }
 0x158   : > { %v21287_v57 = vunpack.c.l.b16 %v1688_v56  ;;  %v21291_v63 = vunpack.c.l.b16 %v1898_v59 }
 0x15a   : > { %v2174_v18 = vpack.c.b16 %v21287_v57, %v21285_v62 }
 0x15b   : > { %v1890_v12 = vpop.f32.mrf.mxu2 }
 0x15c   : > { %v1891_v22 = vadd.f32 %v1890_v12, %v1872_v60  ;;  %v1876_v10 = vpop.f32.mrf.mxu3 }
 0x15d   : > { %v1877_v50 = vadd.f32 %v1876_v10, %v1857_v25 }
 0x15e   : > { %v1899_v28 = vpack.c.bf16 %v1891_v22, %v1891_v22 }
 0x160   : > { %v21293_v4 = vunpack.c.l.b16 %v1899_v28  ;;  %14073 = vmatmul.msk.bf16.gmra.mxu2 %vm2196_vm3, %v2154_v44 }
 0x162   : > { %v2183_v32 = vpack.c.b16 %v21293_v4, %v21291_v63 }
 0x163   : > { %v1893_v3 = vpop.f32.mrf.mxu2 }
 0x164   : > { %v1894_v49 = vadd.f32 %v1893_v3, %v1875_v6 }
 0x166   : > { %v1900_v19 = vpack.c.bf16 %v1894_v49, %v1894_v49 }
 0x168   : > { %v21298_v13 = vunpack.c.l.b16 %v1900_v19 }
 0x169   : > { %v2063_v62 = vpop.f32.mrf.mxu0 }
 0x16b   : > { %v1895_v11 = vpop.f32.mrf.mxu2 }
 0x16c   : > { %v1896_v1 = vadd.f32 %v1895_v11, %v1877_v50 }
 0x16e   : > { %v1901_v9 = vpack.c.bf16 %v1896_v1, %v1896_v1 }
 0x170   : > { %v21300_v26 = vunpack.c.l.b16 %v1901_v9  ;;  %14074 = vmatmul.msk.bf16.gmra.mxu2 %vm2196_vm3, %v2163_v53 }
 0x171   : > { %v2065_v12 = vpop.f32.mrf.mxu0 }
 0x172   : > { %v2184_v35 = vpack.c.b16 %v21300_v26, %v21298_v13 }
 0x173   : > { %v2258_v54 = vpop.f32.mrf.mxu2 }
 0x174   : > { %v2342_v23 = vmul.f32 %v21311_v58, %v2258_v54 }
 0x176   : > { %v2378_v52 = vadd.f32 %v21317_v21, %v2342_v23 }
 0x178   : > { %v2410_v39 = vmax.f32 %v2378_v52, 0.0 }
 0x179   : > { %v2068_v25 = vpop.f32.mrf.mxu0 }
 0x17b   : > { %v2260_v24 = vpop.f32.mrf.mxu2  ;;  %v2101_v31 = vpop.f32.mrf.mxu3 }
 0x17c   : > { %v2343_v16 = vmul.f32 %v21311_v58, %v2260_v24 }
 0x17e   : > { %v2379_v53 = vadd.f32 %v21317_v21, %v2343_v16 }
 0x180   : > { %v2411_v17 = vmax.f32 %v2379_v53, 0.0  ;;  %14075 = vmatmul.msk.bf16.gmra.mxu2 %vm2196_vm3, %v2164_v0 }
 0x181   : > { %v2082_v55 = vpop.f32.mrf.mxu1  ;;  %v2070_v52 = vpop.f32.mrf.mxu0 }
 0x182   : > { %v20583_v27 = vpack.c.bf16 %v2411_v17, %v2410_v39  ;;  %v2083_v4 = vadd.f32 %v2082_v55, %v2063_v62 }
 0x183   : > { %v2263_v40 = vpop.f32.mrf.mxu2  ;;  %v2103_v44 = vpop.f32.mrf.mxu3 }
 0x184   : > { %20584 = vst [vmem:[#allocation2] sm:$0xff] %v20583_v27   ;;  %v2344_v30 = vmul.f32 %v21311_v58, %v2263_v40  ;;  %v2102_v50 = vadd.f32 %v2101_v31, %v2083_v4 }
 0x186   : > { %v2380_v36 = vadd.f32 %v21317_v21, %v2344_v30  ;;  %v2111_v54 = vpack.c.bf16 %v2102_v50, %v2102_v50 }
 0x188   : > { %v2412_v42 = vmax.f32 %v2380_v36, 0.0  ;;  %v2189_v53 = vunpack.c.l.b16 %v2111_v54 }
 0x189   : > { %v2084_v43 = vpop.f32.mrf.mxu1 }
 0x18a   : > { %v2085_v6 = vadd.f32 %v2084_v43, %v2065_v12 }
 0x18b   : > { %v2265_v33 = vpop.f32.mrf.mxu2  ;;  %v2106_v9 = vpop.f32.mrf.mxu3  ;;  %v3715_v50 = vld [vmem:[#allocation2] sm:$0x1] }
 0x18c   : > { %v2345_v37 = vmul.f32 %v21311_v58, %v2265_v33  ;;  %v2104_v19 = vadd.f32 %v2103_v44, %v2085_v6 }
 0x18e   : > { %v2381_v7 = vadd.f32 %v21317_v21, %v2345_v37  ;;  %v2112_v23 = vpack.c.bf16 %v2104_v19, %v2104_v19 }
 0x190   : > { %v2413_v14 = vmax.f32 %v2381_v7, 0.0  ;;  %14076 = vmatmul.msk.bf16.gmra.mxu2 %vm2196_vm3, %v2173_v8  ;;  %v2190_v39 = vunpack.c.l.b16 %v2112_v23  ;;  %v3827_v23 = vunpack.c.l.b16 %v3715_v50 }
 0x192   : > { %v20588_v41 = vpack.c.bf16 %v2413_v14, %v2412_v42  ;;  %v2193_v30 = vpack.c.b16 %v2190_v39, %v2189_v53  ;;  %v3747_v39 = vld [vmem:[#allocation2 + $0x4] sm:$0x1] }
 0x193   : > { %v2268_v34 = vpop.f32.mrf.mxu2  ;;  %v2108_v40 = vpop.f32.mrf.mxu3 }
 0x194   : > { %20660 = vst [vmem:[#allocation2 + $0x8] sm:$0xff] %v20588_v41   ;;  %v2346_v0 = vmul.f32 %v21311_v58, %v2268_v34 }
 0x196   : > { %v2382_v45 = vadd.f32 %v21317_v21, %v2346_v0 }
 0x198   : > { %v2414_v48 = vmax.f32 %v2382_v45, 0.0 }
 0x19b   : > { %v2270_v15 = vpop.f32.mrf.mxu2 }
 0x19c   : > { %v2347_v46 = vmul.f32 %v21311_v58, %v2270_v15 }
 0x19e   : > { %v2383_v47 = vadd.f32 %v21317_v21, %v2347_v46 }
 0x1a0   : > { %v2415_v29 = vmax.f32 %v2383_v47, 0.0  ;;  %14077 = vmatmul.msk.bf16.gmra.mxu2 %vm2196_vm3, %v2174_v18 }
 0x1a2   : > { %v20593_v38 = vpack.c.bf16 %v2415_v29, %v2414_v48 }
 0x1a3   : > { %v2273_v5 = vpop.f32.mrf.mxu2 }
 0x1a4   : > { %20594 = vst [vmem:[#allocation2 + $0x10] sm:$0xff] %v20593_v38   ;;  %v2348_v20 = vmul.f32 %v21311_v58, %v2273_v5 }
 0x1a6   : > { %v2384_v51 = vadd.f32 %v21317_v21, %v2348_v20 }
 0x1a8   : > { %v2416_v60 = vmax.f32 %v2384_v51, 0.0 }
 0x1ab   : > { %v2275_v8 = vpop.f32.mrf.mxu2 }
 0x1ac   : > { %v2349_v56 = vmul.f32 %v21311_v58, %v2275_v8 }
 0x1ae   : > { %v2385_v57 = vadd.f32 %v21317_v21, %v2349_v56 }
 0x1b0   : > { %v2417_v61 = vmax.f32 %v2385_v57, 0.0  ;;  %14078 = vmatmul.msk.bf16.gmra.mxu2 %vm2196_vm3, %v2183_v32  ;;  %v2087_v32 = vpop.f32.mrf.mxu1 }
 0x1b1   : > { %v2088_v26 = vadd.f32 %v2087_v32, %v2068_v25 }
 0x1b2   : > { %v20598_v18 = vpack.c.bf16 %v2417_v61, %v2416_v60 }
 0x1b3   : > { %v2278_v2 = vpop.f32.mrf.mxu2  ;;  %v2107_v7 = vadd.f32 %v2106_v9, %v2088_v26  ;;  %v21374_v26 = vunpack.i.l.s16 %v3827_v23  ;;  %v19413_v23 = vld [vmem:[%s30071_s5 + $0x284] sm:$0xf0] }
 0x1b4   : > { %20661 = vst [vmem:[#allocation2 + $0x18] sm:$0xff] %v20598_v18   ;;  %v2350_v59 = vmul.f32 %v21311_v58, %v2278_v2 }
 0x1b5   : > { %v2113_v34 = vpack.c.bf16 %v2107_v7, %v2107_v7 }
 0x1b6   : > { %v2386_v28 = vadd.f32 %v21317_v21, %v2350_v59 }
 0x1b7   : > { %v2191_v15 = vunpack.c.l.b16 %v2113_v34 }
 0x1b8   : > { %v2418_v10 = vmax.f32 %v2386_v28, 0.0  ;;  %v2089_v16 = vpop.f32.mrf.mxu1 }
 0x1bb   : > { %v2280_v22 = vpop.f32.mrf.mxu2 }
 0x1bc   : > { %v2351_v63 = vmul.f32 %v21311_v58, %v2280_v22 }
 0x1be   : > { %v2387_v3 = vadd.f32 %v21317_v21, %v2351_v63 }
 0x1c0   : > { %v2419_v49 = vmax.f32 %v2387_v3, 0.0  ;;  %14079 = vmatmul.msk.bf16.gmra.mxu2 %vm2196_vm3, %v2184_v35  ;;  %v2090_v35 = vadd.f32 %v2089_v16, %v2070_v52  ;;  %v3739_v52 = vld [vmem:[#allocation2] sm:$0x8] }
 0x1c2   : > { %v20603_v11 = vpack.c.bf16 %v2419_v49, %v2418_v10  ;;  %v2109_v42 = vadd.f32 %v2108_v40, %v2090_v35  ;;  %v4090_v40 = vunpack.c.l.b16 %v3747_v39 }
 0x1c3   : > { %v2283_v1 = vpop.f32.mrf.mxu2 }
 0x1c4   : > { %20604 = vst [vmem:[#allocation2 + $0x20] sm:$0xff] %v20603_v11   ;;  %v2352_v24 = vmul.f32 %v21311_v58, %v2283_v1  ;;  %v2114_v0 = vpack.c.bf16 %v2109_v42, %v2109_v42  ;;  %v3723_v11 = vld [vmem:[#allocation2] sm:$0x2]  ;;  %v3731_v1 = vld [vmem:[#allocation2] sm:$0x4] }
 0x1c5   : > { %v3962_v53 = vunpack.c.l.b16 %v3731_v1  ;;  %v14356_v42 = vld [vmem:[%s30071_s5 + $0x150] sm:$0xf]  ;;  %v19365_v1 = vld [vmem:[%s30071_s5 + $0x104] sm:$0xf0] }
 0x1c6   : > { %v2388_v27 = vadd.f32 %v21317_v21, %v2352_v24  ;;  %v2192_v46 = vunpack.c.l.b16 %v2114_v0  ;;  %v3898_v24 = vunpack.c.l.b16 %v3723_v11 }
 0x1c8   : > { %v2420_v36 = vmax.f32 %v2388_v27, 0.0  ;;  %v2194_v29 = vpack.c.b16 %v2192_v46, %v2191_v15  ;;  %v21376_v35 = vunpack.i.l.s16 %v3898_v24  ;;  %v14548_v15 = vld [vmem:[%s30071_s5 + $0x2d0] sm:$0xf] }
 0x1c9   : > { %v14740_v46 = vld [vmem:[%s30071_s5 + $0x450] sm:$0xf] }
 0x1ca   : > { %v3922_v34 = vrot.slane %v21376_v35, 2  ;;  %v14692_v24 = vld [vmem:[%s30071_s5 + $0x3f0] sm:$0xf] }
 0x1cb   : > { %v2285_v17 = vpop.f32.mrf.mxu2 }
 0x1cc   : > { %v2353_v13 = vmul.f32 %v21311_v58, %v2285_v17  ;;  %v3755_v17 = vld [vmem:[#allocation2 + $0x4] sm:$0x2] }
 0x1ce   : > { %v2389_v33 = vadd.f32 %v21317_v21, %v2353_v13  ;;  %v4026_v13 = vunpack.c.l.b16 %v3739_v52 }
 0x1d0   : > { %v2421_v37 = vmax.f32 %v2389_v33, 0.0  ;;  %14080 = vmatmul.msk.bf16.gmra.mxu2 %vm2196_vm3, %v2193_v30  ;;  %v4154_v30 = vunpack.c.l.b16 %v3755_v17  ;;  %v21378_v33 = vunpack.i.l.s16 %v3962_v53  ;;  %v19461_v53 = vld [vmem:[%s30071_s5 + $0x404] sm:$0xf0] }
 0x1d2   : > { %v20608_v14 = vpack.c.bf16 %v2421_v37, %v2420_v36  ;;  %v21380_v36 = vunpack.i.l.s16 %v4026_v13  ;;  %v3763_v37 = vld [vmem:[#allocation2 + $0x4] sm:$0x4]  ;;  %v14693_v13 = vor.u32 %v19461_v53, %v14692_v24 }
 0x1d3   : > { %v2288_v41 = vpop.f32.mrf.mxu2 }
 0x1d4   : > { %20662 = vst [vmem:[#allocation2 + $0x28] sm:$0xff] %v20608_v14   ;;  %v2354_v45 = vmul.f32 %v21311_v58, %v2288_v41  ;;  %v19377_v14 = vld [vmem:[%s30071_s5 + $0x164] sm:$0xf0]  ;;  %v3874_v41 = vrot.slane %v21374_v26, 1 }
 0x1d5   : > { %v14357_v0 = vor.u32 %v19377_v14, %v14356_v42  ;;  %v14284_v14 = vld [vmem:[%s30071_s5 + $0xc0] sm:$0xf] }
 0x1d6   : > { %v2390_v48 = vadd.f32 %v21317_v21, %v2354_v45  ;;  %v19425_v45 = vld [vmem:[%s30071_s5 + $0x2e4] sm:$0xf0]  ;;  %v3741_v42 = vld [vmem:[#allocation2 + $0x20] sm:$0x8] }
 0x1d7   : > { %10642 = vmatpush.bf16.msra.mxu0 %v14357_v0  ;;  %v19359_v0 = vld [vmem:[%s30071_s5 + $0xd4] sm:$0xf0] }
 0x1d8   : > { %v2422_v20 = vmax.f32 %v2390_v48, 0.0  ;;  %v21402_v48 = vunpack.i.l.s16 %v4154_v30 }
 0x1db   : > { %v2290_v47 = vpop.f32.mrf.mxu2 }
 0x1dc   : > { %v2355_v38 = vmul.f32 %v21311_v58, %v2290_v47  ;;  %v21400_v47 = vunpack.i.l.s16 %v4090_v40 }
 0x1de   : > { %v2391_v5 = vadd.f32 %v21317_v21, %v2355_v38  ;;  %v19473_v38 = vld [vmem:[%s30071_s5 + $0x464] sm:$0xf0] }
 0x1e0   : > { %v2423_v8 = vmax.f32 %v2391_v5, 0.0  ;;  %14081 = vmatmul.msk.bf16.gmra.mxu2 %vm2196_vm3, %v2194_v29  ;;  %v14549_v29 = vor.u32 %v19425_v45, %v14548_v15  ;;  %v3938_v5 = vrot.slane %v21376_v35, 3  ;;  %v14285_v45 = vor.u32 %v19359_v0, %v14284_v14  ;;  %v19581_v35 = vld [vmem:[%s30071_s5 + $0x7c4] sm:$0xf0] }
 0x1e2   : > { %v20613_v51 = vpack.c.bf16 %v2423_v8, %v2422_v20  ;;  %v3986_v20 = vrot.slane %v21378_v33, 4  ;;  %v4002_v8 = vrot.slane %v21378_v33, 5  ;;  %10655 = vmatpush.bf16.msra.mxu1 %v14549_v29  ;;  %v19407_v29 = vld [vmem:[%s30071_s5 + $0x254] sm:$0xf0] }
 0x1e3   : > { %v2293_v56 = vpop.f32.mrf.mxu2  ;;  %v19527_v33 = vld [vmem:[%s30071_s5 + $0x614] sm:$0xf0] }
 0x1e4   : > { %20614 = vst [vmem:[#allocation2 + $0x30] sm:$0xff] %v20613_v51   ;;  %v2356_v62 = vmul.f32 %v21311_v58, %v2293_v56  ;;  %v14741_v56 = vor.u32 %v19473_v38, %v14740_v46  ;;  %v14476_v46 = vld [vmem:[%s30071_s5 + $0x240] sm:$0xf] }
 0x1e5   : > { %v14668_v38 = vld [vmem:[%s30071_s5 + $0x3c0] sm:$0xf] }
 0x1e6   : > { %v2392_v57 = vadd.f32 %v21317_v21, %v2356_v62  ;;  %10668 = vmatpush.bf16.msra.mxu3 %v14741_v56  ;;  %v19455_v56 = vld [vmem:[%s30071_s5 + $0x3d4] sm:$0xf0] }
 0x1e8   : > { %v2424_v31 = vmax.f32 %v2392_v57, 0.0  ;;  %v4218_v57 = vunpack.c.l.b16 %v3763_v37  ;;  %v3732_v37 = vld [vmem:[#allocation2 + $0x10] sm:$0x4] }
 0x1eb   : > { %v2295_v55 = vpop.f32.mrf.mxu2 }
 0x1ec   : > { %v2357_v60 = vmul.f32 %v21311_v58, %v2295_v55 }
 0x1ee   : > { %v2393_v61 = vadd.f32 %v21317_v21, %v2357_v60  ;;  %v3771_v60 = vld [vmem:[#allocation2 + $0x4] sm:$0x8] }
 0x1f0   : > { %v2425_v18 = vmax.f32 %v2393_v61, 0.0 }
 0x1f2   : > { %v20618_v2 = vpack.c.bf16 %v2425_v18, %v2424_v31  ;;  %v14332_v18 = vld [vmem:[%s30071_s5 + $0x120] sm:$0xf] }
 0x1f3   : > { %v2298_v12 = vpop.f32.mrf.mxu2 }
 0x1f4   : > { %20663 = vst [vmem:[#allocation2 + $0x38] sm:$0xff] %v20618_v2   ;;  %v2358_v43 = vmul.f32 %v21311_v58, %v2298_v12  ;;  %v19371_v2 = vld [vmem:[%s30071_s5 + $0x134] sm:$0xf0]  ;;  %v14524_v12 = vld [vmem:[%s30071_s5 + $0x2a0] sm:$0xf] }
 0x1f6   : > { %v2394_v22 = vadd.f32 %v21317_v21, %v2358_v43  ;;  %v14333_v43 = vor.u32 %v19371_v2, %v14332_v18  ;;  %v14669_v18 = vor.u32 %v19455_v56, %v14668_v38 }
 0x1f8   : > { %v2426_v63 = vmax.f32 %v2394_v22, 0.0  ;;  %v14716_v22 = vld [vmem:[%s30071_s5 + $0x420] sm:$0xf]  ;;  %10643 = vmatpush.bf16.msra.mxu0 %v14333_v43  ;;  %v18820_v43 = vld [vmem:[%s30071_s5 + $0x2430] sm:$0xf] }
 0x1fb   : > { %v2300_v59 = vpop.f32.mrf.mxu2 }
 0x1fc   : > { %v2359_v44 = vmul.f32 %v21311_v58, %v2300_v59  ;;  %v19419_v59 = vld [vmem:[%s30071_s5 + $0x2b4] sm:$0xf0] }
 0x1fe   : > { %v2395_v28 = vadd.f32 %v21317_v21, %v2359_v44  ;;  %v19467_v44 = vld [vmem:[%s30071_s5 + $0x434] sm:$0xf0] }
 0x200   : > { %v2427_v4 = vmax.f32 %v2395_v28, 0.0 }
 0x202   : > { %v20623_v3 = vpack.c.bf16 %v2427_v4, %v2426_v63  ;;  %v14525_v63 = vor.u32 %v19419_v59, %v14524_v12  ;;  %v14717_v4 = vor.u32 %v19467_v44, %v14716_v22  ;;  %v14260_v22 = vld [vmem:[%s30071_s5 + $0x90] sm:$0xf]  ;;  %v19353_v44 = vld [vmem:[%s30071_s5 + $0xa4] sm:$0xf0] }
 0x203   : > { %v2303_v6 = vpop.f32.mrf.mxu2 }
 0x204   : > { %20624 = vst [vmem:[#allocation2 + $0x40] sm:$0xff] %v20623_v3   ;;  %v2360_v25 = vmul.f32 %v21311_v58, %v2303_v6  ;;  %v4282_v3 = vunpack.c.l.b16 %v3771_v60  ;;  %v3716_v6 = vld [vmem:[#allocation2 + $0x10] sm:$0x1]  ;;  %10656 = vmatpush.bf16.msra.mxu1 %v14525_v63  ;;  %10669 = vmatpush.bf16.msra.mxu3 %v14717_v4  ;;  %v14261_v63 = vor.u32 %v19353_v44, %v14260_v22 }
 0x205   : > { %v3828_v40 = vunpack.c.l.b16 %v3716_v6  ;;  %v14452_v4 = vld [vmem:[%s30071_s5 + $0x210] sm:$0xf] }
 0x206   : > { %v2396_v10 = vadd.f32 %v21317_v21, %v2360_v25  ;;  %v3724_v25 = vld [vmem:[#allocation2 + $0x10] sm:$0x2]  ;;  %v21456_v17 = vunpack.i.l.s16 %v4282_v3  ;;  %v19401_v3 = vld [vmem:[%s30071_s5 + $0x224] sm:$0xf0] }
 0x207   : > { %v3899_v30 = vunpack.c.l.b16 %v3724_v25  ;;  %v21479_v2 = vunpack.i.l.s16 %v3828_v40  ;;  %v14644_v6 = vld [vmem:[%s30071_s5 + $0x390] sm:$0xf] }
 0x208   : > { %v2428_v9 = vmax.f32 %v2396_v10, 0.0  ;;  %10670 = vmatpush.bf16.msra.mxu3 %v14693_v13 }
 0x209   : > { %v21481_v12 = vunpack.i.l.s16 %v3899_v30  ;;  %v14236_v30 = vld [vmem:[%s30071_s5 + $0x60] sm:$0xf] }
 0x20b   : > { %v2305_v32 = vpop.f32.mrf.mxu2  ;;  %v3923_v53 = vrot.slane %v21481_v12, 1 }
 0x20c   : > { %v2361_v49 = vmul.f32 %v21311_v58, %v2305_v32  ;;  %10671 = vmatpush.bf16.msra.mxu3 %v14669_v18  ;;  %v3939_v18 = vrot.slane %v21481_v12, 2 }
 0x20e   : > { %v2397_v19 = vadd.f32 %v21317_v21, %v2361_v49  ;;  %v21435_v49 = vunpack.i.l.s16 %v4218_v57  ;;  %v3963_v57 = vunpack.c.l.b16 %v3732_v37  ;;  %v19347_v37 = vld [vmem:[%s30071_s5 + $0x74] sm:$0xf0] }
 0x20f   : > { %v14237_v0 = vor.u32 %v19347_v37, %v14236_v30 }
 0x210   : > { %v2429_v54 = vmax.f32 %v2397_v19, 0.0  ;;  %v14308_v19 = vld [vmem:[%s30071_s5 + $0xf0] sm:$0xf] }
 0x212   : > { %v20628_v16 = vpack.c.bf16 %v2429_v54, %v2428_v9  ;;  %v14309_v9 = vor.u32 %v19365_v1, %v14308_v19  ;;  %v14500_v54 = vld [vmem:[%s30071_s5 + $0x270] sm:$0xf]  ;;  %v20529_v1 = vld [vmem:[%s30071_s5 + $0x2564] sm:$0xf0] }
 0x213   : > { %v2308_v27 = vpop.f32.mrf.mxu2  ;;  %v18964_v19 = vld [vmem:[%s30071_s5 + $0x2550] sm:$0xf] }
 0x214   : > { %20664 = vst [vmem:[#allocation2 + $0x48] sm:$0xff] %v20628_v16   ;;  %v2362_v7 = vmul.f32 %v21311_v58, %v2308_v27  ;;  %v14501_v16 = vor.u32 %v19413_v23, %v14500_v54  ;;  %10644 = vmatpush.bf16.msra.mxu0 %v14309_v9  ;;  %v21509_v9 = vunpack.i.l.s16 %v3963_v57 }
 0x216   : > { %v2398_v61 = vadd.f32 %v21317_v21, %v2362_v7  ;;  %v3740_v7 = vld [vmem:[#allocation2 + $0x10] sm:$0x8]  ;;  %10657 = vmatpush.bf16.msra.mxu1 %v14501_v16  ;;  %v3851_v16 = vrot.slane %v21479_v2, 7  ;;  %v3987_v22 = vrot.slane %v21509_v9, 3  ;;  %v4003_v44 = vrot.slane %v21509_v9, 4 }
 0x217   : > { %v4027_v60 = vunpack.c.l.b16 %v3740_v7  ;;  %v14428_v7 = vld [vmem:[%s30071_s5 + $0x1e0] sm:$0xf]  ;;  %v19575_v9 = vld [vmem:[%s30071_s5 + $0x794] sm:$0xf0] }
 0x218   : > { %v2430_v50 = vmax.f32 %v2398_v61, 0.0  ;;  %v3748_v61 = vld [vmem:[#allocation2 + $0x14] sm:$0x1]  ;;  %10645 = vmatpush.bf16.msra.mxu0 %v14285_v45  ;;  %v19395_v45 = vld [vmem:[%s30071_s5 + $0x1f4] sm:$0xf0] }
 0x219   : > { %v4091_v25 = vunpack.c.l.b16 %v3748_v61  ;;  %v21511_v54 = vunpack.i.l.s16 %v4027_v60  ;;  %v14429_v56 = vor.u32 %v19395_v45, %v14428_v7  ;;  %v18940_v60 = vld [vmem:[%s30071_s5 + $0x2520] sm:$0xf]  ;;  %v20523_v61 = vld [vmem:[%s30071_s5 + $0x2534] sm:$0xf0] }
 0x21a   : > { %v14188_v45 = vld [vmem:[%s30071_s5] sm:$0xf] }
 0x21b   : > { %v2310_v51 = vpop.f32.mrf.mxu2  ;;  %v21535_v38 = vunpack.i.l.s16 %v4091_v25 }
 0x21c   : > { %v2363_v31 = vmul.f32 %v21311_v58, %v2310_v51  ;;  %v14477_v51 = vor.u32 %v19407_v29, %v14476_v46  ;;  %10646 = vmatpush.bf16.msra.mxu0 %v14261_v63  ;;  %v14620_v46 = vld [vmem:[%s30071_s5 + $0x360] sm:$0xf]  ;;  %v19443_v29 = vld [vmem:[%s30071_s5 + $0x374] sm:$0xf0] }
 0x21d   : > { %v14621_v57 = vor.u32 %v19443_v29, %v14620_v46  ;;  %v19335_v46 = vld [vmem:[%s30071_s5 + $0x14] sm:$0xf0] }
 0x21e   : > { %v2399_v28 = vadd.f32 %v21317_v21, %v2363_v31  ;;  %10658 = vmatpush.bf16.msra.mxu1 %v14477_v51  ;;  %v20493_v31 = vld [vmem:[%s30071_s5 + $0x2444] sm:$0xf0] }
 0x220   : > { %v2431_v11 = vmax.f32 %v2399_v28, 0.0  ;;  %v3756_v28 = vld [vmem:[#allocation2 + $0x14] sm:$0x2]  ;;  %10647 = vmatpush.bf16.msra.mxu0 %v14237_v0 }
 0x221   : > { %v4155_v14 = vunpack.c.l.b16 %v3756_v28 }
 0x222   : > { %v20633_v52 = vpack.c.bf16 %v2431_v11, %v2430_v50  ;;  %v14453_v50 = vor.u32 %v19401_v3, %v14452_v4  ;;  %v19449_v11 = vld [vmem:[%s30071_s5 + $0x3a4] sm:$0xf0]  ;;  %v14212_v3 = vld [vmem:[%s30071_s5 + $0x30] sm:$0xf] }
 0x223   : > { %v2313_v27 = vpop.f32.mrf.mxu2  ;;  %v14645_v24 = vor.u32 %v19449_v11, %v14644_v6  ;;  %v19341_v6 = vld [vmem:[%s30071_s5 + $0x44] sm:$0xf0]  ;;  %v21554_v25 = vunpack.i.l.s16 %v4155_v14 }
 0x224   : > { %20634 = vst [vmem:[#allocation2 + $0x50] sm:$0xff] %v20633_v52   ;;  %v2364_v59 = vmul.f32 %v21311_v58, %v2313_v27  ;;  %v18965_v52 = vor.u32 %v20529_v1, %v18964_v19  ;;  %v3764_v27 = vld [vmem:[#allocation2 + $0x14] sm:$0x4]  ;;  %10659 = vmatpush.bf16.msra.mxu1 %v14453_v50  ;;  %v14213_v11 = vor.u32 %v19341_v6, %v14212_v3  ;;  %v14404_v19 = vld [vmem:[%s30071_s5 + $0x1b0] sm:$0xf] }
 0x225   : > { %10672 = vmatpush.bf16.msra.mxu3 %v14645_v24  ;;  %v4219_v50 = vunpack.c.l.b16 %v3764_v27  ;;  %v19389_v1 = vld [vmem:[%s30071_s5 + $0x1c4] sm:$0xf0]  ;;  %v20511_v3 = vld [vmem:[%s30071_s5 + $0x24d4] sm:$0xf0]  ;;  %v3772_v6 = vld [vmem:[#allocation2 + $0x14] sm:$0x8] }
 0x226   : > { %v2400_v13 = vadd.f32 %v21317_v21, %v2364_v59  ;;  %10954 = vmatpush.bf16.msrb.mxu2 %v18965_v52  ;;  %v18941_v59 = vor.u32 %v20523_v61, %v18940_v60  ;;  %v14405_v52 = vor.u32 %v19389_v1, %v14404_v19  ;;  %v19437_v27 = vld [vmem:[%s30071_s5 + $0x344] sm:$0xf0]  ;;  %10648 = vmatpush.bf16.msra.mxu0 %v14213_v11  ;;  %v19383_v60 = vld [vmem:[%s30071_s5 + $0x194] sm:$0xf0]  ;;  %v14572_v61 = vld [vmem:[%s30071_s5 + $0x300] sm:$0xf] }
 0x227   : > { %v14932_v19 = vld [vmem:[%s30071_s5 + $0x5d0] sm:$0xf]  ;;  %v19521_v1 = vld [vmem:[%s30071_s5 + $0x5e4] sm:$0xf0] }
 0x228   : > { %v2432_v63 = vmax.f32 %v2400_v13, 0.0  ;;  %10660 = vmatpush.bf16.msra.mxu1 %v14429_v56  ;;  %v18916_v13 = vld [vmem:[%s30071_s5 + $0x24f0] sm:$0xf]  ;;  %v14189_v56 = vor.u32 %v19335_v46, %v14188_v45  ;;  %v20505_v46 = vld [vmem:[%s30071_s5 + $0x24a4] sm:$0xf0] }
 0x229   : > { %10673 = vmatpush.bf16.msra.mxu3 %v14621_v57  ;;  %v14380_v57 = vld [vmem:[%s30071_s5 + $0x180] sm:$0xf]  ;;  %v18868_v45 = vld [vmem:[%s30071_s5 + $0x2490] sm:$0xf] }
 0x22a   : > { %10955 = vmatpush.bf16.msrb.mxu2 %v18941_v59  ;;  %v14381_v59 = vor.u32 %v19383_v60, %v14380_v57  ;;  %10649 = vmatpush.bf16.msra.mxu0 %v14189_v56  ;;  %v21630_v56 = vld [vmem:[#allocation2 + $0x8] sm:$0x1]  ;;  %v18869_v60 = vor.u32 %v20505_v46, %v18868_v45  ;;  %v20499_v45 = vld [vmem:[%s30071_s5 + $0x2474] sm:$0xf0]  ;;  %v3787_v46 = vld [vmem:[#allocation2 + $0x8] sm:$0x2] }
 0x22b   : > { %v2315_v23 = vpop.f32.mrf.mxu2  ;;  %v3744_v14 = vld [vmem:[#allocation2 + $0x50] sm:$0x8] }
 0x22c   : > { %v2365_v40 = vmul.f32 %v21311_v58, %v2315_v23  ;;  %v14596_v23 = vld [vmem:[%s30071_s5 + $0x330] sm:$0xf]  ;;  %10661 = vmatpush.bf16.msra.mxu1 %v14405_v52  ;;  %v14933_v52 = vor.u32 %v19521_v1, %v14932_v19  ;;  %v15292_v19 = vld [vmem:[%s30071_s5 + $0x8a0] sm:$0xf]  ;;  %v19611_v1 = vld [vmem:[%s30071_s5 + $0x8b4] sm:$0xf0] }
 0x22d   : > { %v14597_v37 = vor.u32 %v19437_v27, %v14596_v23  ;;  %v15124_v23 = vld [vmem:[%s30071_s5 + $0x750] sm:$0xf]  ;;  %v19569_v27 = vld [vmem:[%s30071_s5 + $0x764] sm:$0xf0] }
 0x22e   : > { %v2401_v51 = vadd.f32 %v21317_v21, %v2365_v40  ;;  %v20517_v40 = vld [vmem:[%s30071_s5 + $0x2504] sm:$0xf0]  ;;  %10681 = vmatpush.bf16.msrb.mxu0 %v14933_v52 }
 0x22f   : > { %v18917_v7 = vor.u32 %v20517_v40, %v18916_v13  ;;  %10674 = vmatpush.bf16.msra.mxu3 %v14597_v37  ;;  %v15316_v13 = vld [vmem:[%s30071_s5 + $0x8d0] sm:$0xf]  ;;  %v3813_v37 = vld [vmem:[#allocation2 + $0x2c] sm:$0x1]  ;;  %v21781_v40 = vld [vmem:[#allocation2 + $0x24] sm:$0x1] }
 0x230   : > { %v2433_v4 = vmax.f32 %v2401_v51, 0.0  ;;  %v21583_v51 = vunpack.i.l.s16 %v4219_v50  ;;  %10662 = vmatpush.bf16.msra.mxu1 %v14381_v59  ;;  %v19515_v59 = vld [vmem:[%s30071_s5 + $0x5b4] sm:$0xf0] }
 0x231   : > { %10956 = vmatpush.bf16.msrb.mxu2 %v18917_v7  ;;  %v15125_v7 = vor.u32 %v19569_v27, %v15124_v23  ;;  %v4283_v23 = vunpack.c.l.b16 %v3772_v6  ;;  %v14884_v6 = vld [vmem:[%s30071_s5 + $0x570] sm:$0xf] }
 0x232   : > { %v20638_v24 = vpack.c.bf16 %v2433_v4, %v2432_v63  ;;  %v19431_v63 = vld [vmem:[%s30071_s5 + $0x314] sm:$0xf0]  ;;  %v18892_v4 = vld [vmem:[%s30071_s5 + $0x24c0] sm:$0xf] }
 0x233   : > { %v2318_v30 = vpop.f32.mrf.mxu2  ;;  %v14573_v50 = vor.u32 %v19431_v63, %v14572_v61  ;;  %v18893_v11 = vor.u32 %v20511_v3, %v18892_v4  ;;  %v14908_v61 = vld [vmem:[%s30071_s5 + $0x5a0] sm:$0xf]  ;;  %v3812_v4 = vld [vmem:[#allocation2 + $0x1c] sm:$0x1] }
 0x234   : > { %20665 = vst [vmem:[#allocation2 + $0x58] sm:$0xff] %v20638_v24   ;;  %v2366_v24 = vmul.f32 %v21311_v58, %v2318_v30  ;;  %v19617_v30 = vld [vmem:[%s30071_s5 + $0x8e4] sm:$0xf0]  ;;  %v15100_v63 = vld [vmem:[%s30071_s5 + $0x720] sm:$0xf]  ;;  %10694 = vmatpush.bf16.msrb.mxu1 %v15125_v7  ;;  %v15293_v7 = vor.u32 %v19611_v1, %v15292_v19  ;;  %v4346_v19 = vunpack.c.l.b16 %v21630_v56  ;;  %v4410_v56 = vunpack.c.l.b16 %v3787_v46 }
 0x235   : > { %10675 = vmatpush.bf16.msra.mxu3 %v14573_v50  ;;  %10957 = vmatpush.bf16.msrb.mxu2 %v18893_v11  ;;  %v15317_v57 = vor.u32 %v19617_v30, %v15316_v13  ;;  %v14909_v50 = vor.u32 %v19515_v59, %v14908_v61  ;;  %v19563_v11 = vld [vmem:[%s30071_s5 + $0x734] sm:$0xf0]  ;;  %v18844_v30 = vld [vmem:[%s30071_s5 + $0x2460] sm:$0xf] }
 0x236   : > { %v2402_v52 = vadd.f32 %v21317_v21, %v2366_v24  ;;  %v15101_v13 = vor.u32 %v19563_v11, %v15100_v63  ;;  %v18845_v61 = vor.u32 %v20499_v45, %v18844_v30  ;;  %v19509_v24 = vld [vmem:[%s30071_s5 + $0x584] sm:$0xf0]  ;;  %v4603_v30 = vunpack.c.l.b16 %v3812_v4  ;;  %v19551_v46 = vld [vmem:[%s30071_s5 + $0x6d4] sm:$0xf0] }
 0x237   : > { %10682 = vmatpush.bf16.msrb.mxu0 %v14909_v50  ;;  %v14885_v63 = vor.u32 %v19509_v24, %v14884_v6  ;;  %v19605_v11 = vld [vmem:[%s30071_s5 + $0x884] sm:$0xf0]  ;;  %v18821_v4 = vor.u32 %v20493_v31, %v18820_v43  ;;  %v15244_v31 = vld [vmem:[%s30071_s5 + $0x840] sm:$0xf]  ;;  %v19599_v43 = vld [vmem:[%s30071_s5 + $0x854] sm:$0xf0] }
 0x238   : > { %10695 = vmatpush.bf16.msrb.mxu1 %v15101_v13  ;;  %v2434_v45 = vmax.f32 %v2402_v52, 0.0  ;;  %v19503_v52 = vld [vmem:[%s30071_s5 + $0x554] sm:$0xf0]  ;;  %v15052_v13 = vld [vmem:[%s30071_s5 + $0x6c0] sm:$0xf] }
 0x239   : > { %10707 = vmatpush.bf16.msrb.mxu3 %v15317_v57  ;;  %10958 = vmatpush.bf16.msrb.mxu2 %v18869_v60  ;;  %v15076_v57 = vld [vmem:[%s30071_s5 + $0x6f0] sm:$0xf]  ;;  %v19557_v60 = vld [vmem:[%s30071_s5 + $0x704] sm:$0xf0]  ;;  %v14812_v50 = vld [vmem:[%s30071_s5 + $0x4e0] sm:$0xf] }
 0x23a   : > { %v15077_v1 = vor.u32 %v19557_v60, %v15076_v57  ;;  %v3811_v60 = vld [vmem:[#allocation2 + $0xc] sm:$0x1] }
 0x23b   : > { %v2320_v3 = vpop.f32.mrf.mxu2  ;;  %10683 = vmatpush.bf16.msrb.mxu0 %v14885_v63 }
 0x23c   : > { %v2367_v27 = vmul.f32 %v21311_v58, %v2320_v3  ;;  %v15268_v3 = vld [vmem:[%s30071_s5 + $0x870] sm:$0xf]  ;;  %10696 = vmatpush.bf16.msrb.mxu1 %v15077_v1 }
 0x23d   : > { %10708 = vmatpush.bf16.msrb.mxu3 %v15293_v7  ;;  %v15269_v24 = vor.u32 %v19605_v11, %v15268_v3  ;;  %10959 = vmatpush.bf16.msrb.mxu2 %v18845_v61  ;;  %v21705_v3 = vunpack.i.l.s16 %v4603_v30  ;;  %v21708_v11 = vunpack.i.l.s16 %v4346_v19  ;;  %v14836_v19 = vld [vmem:[%s30071_s5 + $0x510] sm:$0xf] }
 0x23e   : > { %v2403_v59 = vadd.f32 %v21317_v21, %v2367_v27  ;;  %v21679_v27 = vunpack.i.l.s16 %v4283_v23  ;;  %v14860_v23 = vld [vmem:[%s30071_s5 + $0x540] sm:$0xf] }
 0x23f   : > { %v14861_v57 = vor.u32 %v19503_v52, %v14860_v23  ;;  %v20487_v23 = vld [vmem:[%s30071_s5 + $0x2414] sm:$0xf0]  ;;  %v21717_v52 = vunpack.i.l.s16 %v4410_v56  ;;  %v19545_v56 = vld [vmem:[%s30071_s5 + $0x6a4] sm:$0xf0] }
 0x240   : > { %v2435_v6 = vmax.f32 %v2403_v59, 0.0  ;;  %v15053_v59 = vor.u32 %v19551_v46, %v15052_v13  ;;  %v15028_v13 = vld [vmem:[%s30071_s5 + $0x690] sm:$0xf]  ;;  %v19593_v46 = vld [vmem:[%s30071_s5 + $0x824] sm:$0xf0] }
 0x241   : > { %10709 = vmatpush.bf16.msrb.mxu3 %v15269_v24  ;;  %10960 = vmatpush.bf16.msrb.mxu2 %v18821_v4  ;;  %v19497_v24 = vld [vmem:[%s30071_s5 + $0x524] sm:$0xf0]  ;;  %v15220_v4 = vld [vmem:[%s30071_s5 + $0x810] sm:$0xf] }
 0x242   : > { %v20643_v7 = vpack.c.bf16 %v2435_v6, %v2434_v45  ;;  %v15245_v45 = vor.u32 %v19599_v43, %v15244_v31  ;;  %v18796_v6 = vld [vmem:[%s30071_s5 + $0x2400] sm:$0xf]  ;;  %10684 = vmatpush.bf16.msrb.mxu0 %v14861_v57  ;;  %10697 = vmatpush.bf16.msrb.mxu1 %v15053_v59  ;;  %v15029_v31 = vor.u32 %v19545_v56, %v15028_v13  ;;  %v19518_v43 = vld [vmem:[%s30071_s5 + $0x5d4] sm:$0xf]  ;;  %v14934_v57 = vld [vmem:[%s30071_s5 + $0x5e8] sm:$0xf0] }
 0x243   : > { %v2323_v61 = vpop.f32.mrf.mxu2  ;;  %v18797_v30 = vor.u32 %v20487_v23, %v18796_v6  ;;  %v4602_v6 = vunpack.c.l.b16 %v3811_v60  ;;  %v4626_v23 = vrot.slane %v21705_v3, 7  ;;  %v15221_v1 = vor.u32 %v19593_v46, %v15220_v4  ;;  %v3717_v59 = vld [vmem:[#allocation2 + $0x20] sm:$0x1]  ;;  %v21746_v13 = vld [vmem:[#allocation2 + $0x20] sm:$0x2] }
 0x244   : > { %20644 = vst [vmem:[#allocation2 + $0x60] sm:$0xff] %v20643_v7   ;;  %v14837_v7 = vor.u32 %v19497_v24, %v14836_v19  ;;  %v2368_v24 = vmul.f32 %v21311_v58, %v2323_v61  ;;  %v14937_v63 = vor.u32 %v19518_v43, %v14934_v57  ;;  %v19491_v60 = vld [vmem:[%s30071_s5 + $0x4f4] sm:$0xf0]  ;;  %v15004_v61 = vld [vmem:[%s30071_s5 + $0x660] sm:$0xf] }
 0x245   : > { %10710 = vmatpush.bf16.msrb.mxu3 %v15245_v45  ;;  %10961 = vmatpush.bf16.msrb.mxu2 %v18797_v30  ;;  %v14813_v45 = vor.u32 %v19491_v60, %v14812_v50  ;;  %v19539_v4 = vld [vmem:[%s30071_s5 + $0x674] sm:$0xf0]  ;;  %v15196_v30 = vld [vmem:[%s30071_s5 + $0x7e0] sm:$0xf]  ;;  %v14910_v50 = vld [vmem:[%s30071_s5 + $0x5b8] sm:$0xf0]  ;;  %v21777_v60 = vsel %vm3852_vm4, %v21479_v2, %v3874_v41  ;;  %v14178_v19 = vunpack.i.l.s16 %v4602_v6  ;;  %v3900_v6 = vunpack.c.l.b16 %v21746_v13 }
 0x246   : > { %10685 = vmatpush.bf16.msrb.mxu0 %v14837_v7  ;;  %v19587_v46 = vld [vmem:[%s30071_s5 + $0x7f4] sm:$0xf0]  ;;  %10698 = vmatpush.bf16.msrb.mxu1 %v15029_v31  ;;  %v15005_v57 = vor.u32 %v19539_v4, %v15004_v61  ;;  %v3829_v7 = vunpack.c.l.b16 %v3717_v59  ;;  %v3733_v56 = vld [vmem:[#allocation2 + $0x20] sm:$0x4]  ;;  %v2404_v31 = vadd.f32 %v21317_v21, %v2368_v24  ;;  %v14788_v59 = vld [vmem:[%s30071_s5 + $0x4b0] sm:$0xf]  ;;  %v21804_v24 = vsel %vm3852_vm4, %v3923_v53, %v3922_v34 }
 0x247   : > { %v15197_v4 = vor.u32 %v19587_v46, %v15196_v30  ;;  %v19485_v41 = vld [vmem:[%s30071_s5 + $0x4c4] sm:$0xf0]  ;;  %v21811_v30 = vsel %vm3852_vm4, %v3939_v18, %v3938_v5  ;;  %v15172_v34 = vld [vmem:[%s30071_s5 + $0x7b0] sm:$0xf]  ;;  %v3964_v12 = vunpack.c.l.b16 %v3733_v56  ;;  %v14886_v53 = vld [vmem:[%s30071_s5 + $0x588] sm:$0xf0]  ;;  %v4604_v56 = vunpack.c.l.b16 %v3813_v37 }
 0x248   : > { %v3718_v18 = vld [vmem:[#allocation2 + $0x30] sm:$0x1]  ;;  %v21836_v13 = vunpack.i.l.s16 %v3829_v7  ;;  %v2436_v46 = vmax.f32 %v2404_v31, 0.0  ;;  %v14956_v37 = vld [vmem:[%s30071_s5 + $0x600] sm:$0xf]  ;;  %v21852_v7 = vsel %vm3852_vm4, %v4003_v44, %v4002_v8  ;;  %v21857_v31 = vsel %vm3852_vm4, %v4626_v23, %v14178_v19 }
 0x249   : > { %11006 = vmatpush.bf16.msra.mxu2 %v14937_v63  ;;  %v19512_v63 = vld [vmem:[%s30071_s5 + $0x5a4] sm:$0xf]  ;;  %10711 = vmatpush.bf16.msrb.mxu3 %v15221_v1  ;;  %v21796_v1 = vsel %vm3852_vm4, %v3851_v16, %v21374_v26  ;;  %v14789_v26 = vor.u32 %v19485_v41, %v14788_v59  ;;  %v19533_v16 = vld [vmem:[%s30071_s5 + $0x644] sm:$0xf0]  ;;  %v15148_v8 = vld [vmem:[%s30071_s5 + $0x780] sm:$0xf]  ;;  %v3830_v44 = vunpack.c.l.b16 %v3718_v18  ;;  %v14100_v3 = vunpack.i.l.s16 %v3964_v12 }
 0x24a   : > { %v14913_v15 = vor.u32 %v19512_v63, %v14910_v50  ;;  %10686 = vmatpush.bf16.msrb.mxu0 %v14813_v45  ;;  %10699 = vmatpush.bf16.msrb.mxu1 %v15005_v57  ;;  %v4028_v45 = vunpack.c.l.b16 %v3741_v42  ;;  %v3726_v57 = vld [vmem:[#allocation2 + $0x30] sm:$0x2]  ;;  %v3734_v63 = vld [vmem:[#allocation2 + $0x30] sm:$0x4]  ;;  %v14764_v50 = vld [vmem:[%s30071_s5 + $0x480] sm:$0xf]  ;;  %v14092_v42 = vunpack.i.l.s16 %v3900_v6  ;;  %v14180_v6 = vunpack.i.l.s16 %v4604_v56 }
 0x24b   : > { %v2325_v43 = vpop.f32.mrf.mxu2  ;;  %v19500_v19 = vld [vmem:[%s30071_s5 + $0x544] sm:$0xf]  ;;  %v3742_v12 = vld [vmem:[#allocation2 + $0x30] sm:$0x8]  ;;  %v3750_v18 = vld [vmem:[#allocation2 + $0x34] sm:$0x1]  ;;  %v21882_v56 = vunpack.i.l.s16 %v3830_v44 }
 0x24c   : > { %v2369_v61 = vmul.f32 %v21311_v58, %v2325_v43  ;;  %v14980_v58 = vld [vmem:[%s30071_s5 + $0x630] sm:$0xf]  ;;  %v3719_v44 = vld [vmem:[#allocation2 + $0x40] sm:$0x1] }
 0x24d   : > { %11007 = vmatpush.bf16.msra.mxu2 %v14913_v15  ;;  %v14981_v5 = vor.u32 %v19533_v16, %v14980_v58  ;;  %v19506_v15 = vld [vmem:[%s30071_s5 + $0x574] sm:$0xf]  ;;  %10712 = vmatpush.bf16.msrb.mxu3 %v15197_v4  ;;  %v4092_v4 = vunpack.c.l.b16 %v21781_v40  ;;  %v14957_v40 = vor.u32 %v19527_v33, %v14956_v37  ;;  %v14862_v58 = vld [vmem:[%s30071_s5 + $0x558] sm:$0xf0]  ;;  %v15149_v16 = vor.u32 %v19575_v9, %v15148_v8  ;;  %v21898_v37 = vld [vmem:[%s30069_s3] ss:$0 sm:$0xff] }
 0x24e   : > { %v2405_v2 = vadd.f32 %v21317_v21, %v2369_v61  ;;  %v21828_v21 = vsel %vm3852_vm4, %v3987_v22, %v3986_v20  ;;  %v15173_v20 = vor.u32 %v19581_v35, %v15172_v34  ;;  %v14889_v22 = vor.u32 %v19506_v15, %v14886_v53  ;;  %v19479_v61 = vld [vmem:[%s30071_s5 + $0x494] sm:$0xf0]  ;;  %10687 = vmatpush.bf16.msrb.mxu0 %v14789_v26 }
 0x24f   : > { %v14765_v41 = vor.u32 %v19479_v61, %v14764_v50  ;;  %10700 = vmatpush.bf16.msrb.mxu1 %v14981_v5  ;;  %v14865_v34 = vor.u32 %v19500_v19, %v14862_v58  ;;  %v3854_v35 = vrot.slane %v21836_v13, 6  ;;  %v3876_v5 = vrot.slane %v21836_v13, 7  ;;  %v19494_v13 = vld [vmem:[%s30071_s5 + $0x514] sm:$0xf]  ;;  %v3727_v58 = vld [vmem:[#allocation2 + $0x40] sm:$0x2] }
 0x250   : > { %v2437_v43 = vmax.f32 %v2405_v2, 0.0  ;;  %v21875_v2 = vunpack.i.l.s16 %v4028_v45  ;;  %v3901_v15 = vunpack.c.l.b16 %v3726_v57  ;;  %v3965_v53 = vunpack.c.l.b16 %v3734_v63  ;;  %v14838_v57 = vld [vmem:[%s30071_s5 + $0x528] sm:$0xf0] }
 0x251   : > { %11008 = vmatpush.bf16.msra.mxu2 %v14889_v22  ;;  %10713 = vmatpush.bf16.msrb.mxu3 %v15173_v20  ;;  %v3941_v45 = vrot.slane %v14092_v42, 1  ;;  %v4005_v20 = vrot.slane %v14100_v3, 3  ;;  %v21886_v22 = vsel %vm3855_vm5, %v14092_v42, %v21804_v24  ;;  %v4628_v63 = vrot.slane %v14180_v6, 6  ;;  %v14814_v6 = vld [vmem:[%s30071_s5 + $0x4f8] sm:$0xf0] }
 0x252   : > { %v20648_v59 = vpack.c.bf16 %v2437_v43, %v2436_v46  ;;  %v21880_v46 = vunpack.i.l.s16 %v4092_v4  ;;  %10688 = vmatpush.bf16.msrb.mxu0 %v14765_v41  ;;  %v3989_v43 = vrot.slane %v14100_v3, 2  ;;  %v4029_v50 = vunpack.c.l.b16 %v3742_v12  ;;  %v21932_v12 = vld [vmem:[%s30070_s4] ss:$0 sm:$0xff] }
 0x253   : > { %v2328_v23 = vpop.f32.mrf.mxu2  ;;  %10701 = vmatpush.bf16.msrb.mxu1 %v14957_v40  ;;  %v3856_v42 = vsel %vm3855_vm5, %v3854_v35, %v21796_v1  ;;  %v14841_v4 = vor.u32 %v19494_v13, %v14838_v57  ;;  %v3877_v41 = vsel %vm3855_vm5, %v3876_v5, %v21777_v60  ;;  %v14093_v33 = vunpack.i.l.s16 %v3901_v15  ;;  %v19488_v60 = vld [vmem:[%s30071_s5 + $0x4e4] sm:$0xf] }
 0x254   : > { %20666 = vst [vmem:[#allocation2 + $0x68] sm:$0xff] %v20648_v59   ;;  %v2370_v24 = vmul.f32 %v21898_v37, %v2328_v23  ;;  %v4093_v59 = vunpack.c.l.b16 %v3750_v18  ;;  %v21905_v8 = vunpack.i.l.s16 %v3965_v53  ;;  %v3857_v3 = vrot.slane %v21882_v56, 5  ;;  %v3814_v18 = vld [vmem:[#allocation2 + $0x3c] sm:$0x1]  ;;  %v3751_v1 = vld [vmem:[#allocation2 + $0x44] sm:$0x1] }
 0x255   : > { %11009 = vmatpush.bf16.msra.mxu2 %v14865_v34  ;;  %10714 = vmatpush.bf16.msrb.mxu3 %v15149_v16  ;;  %v3942_v23 = vsel %vm3855_vm5, %v3941_v45, %v21811_v30  ;;  %v3990_v16 = vsel %vm3855_vm5, %v3989_v43, %v21828_v21  ;;  %v4006_v30 = vsel %vm3855_vm5, %v4005_v20, %v21852_v7  ;;  %v21927_v35 = vunpack.i.l.s16 %v4029_v50  ;;  %v3735_v21 = vld [vmem:[#allocation2 + $0x40] sm:$0x4]  ;;  %v3720_v7 = vld [vmem:[#allocation2 + $0x50] sm:$0x1]  ;;  %v3728_v50 = vld [vmem:[#allocation2 + $0x50] sm:$0x2] }
 0x256   : > { %v21925_v34 = vsel %vm3855_vm5, %v4628_v63, %v21857_v31  ;;  %v2406_v5 = vadd.f32 %v21932_v12, %v2370_v24  ;;  %v14817_v53 = vor.u32 %v19488_v60, %v14814_v6  ;;  %v21936_v45 = vunpack.i.l.s16 %v4093_v59 }
 0x257   : > { %v3878_v31 = vrot.slane %v21882_v56, 6  ;;  %v3926_v43 = vrot.slane %v14093_v33, 7  ;;  %v21940_v20 = vsel %vm3858_vm6, %v14093_v33, %v3942_v23  ;;  %v3991_v13 = vrot.slane %v21905_v8, 1  ;;  %v19482_v56 = vld [vmem:[%s30071_s5 + $0x4b4] sm:$0xf] }
 0x258   : > { %v3831_v63 = vunpack.c.l.b16 %v3719_v44  ;;  %v3902_v24 = vunpack.c.l.b16 %v3727_v58  ;;  %v3859_v59 = vsel %vm3858_vm6, %v3857_v3, %v3856_v42  ;;  %v14790_v33 = vld [vmem:[%s30071_s5 + $0x4c8] sm:$0xf0]  ;;  %v3966_v23 = vunpack.c.l.b16 %v3735_v21  ;;  %v3729_v21 = vld [vmem:[#allocation2 + $0x60] sm:$0x2] }
 0x259   : > { %11010 = vmatpush.bf16.msra.mxu2 %v14841_v4  ;;  %v4007_v4 = vrot.slane %v21905_v8, 2  ;;  %v4605_v60 = vunpack.c.l.b16 %v3814_v18  ;;  %v2438_v6 = vmax.f32 %v2406_v5, 0.0  ;;  %v14793_v8 = vor.u32 %v19482_v56, %v14790_v33 }
 0x25a   : > { %v3879_v42 = vsel %vm3858_vm6, %v3878_v31, %v3877_v41  ;;  %v3903_v3 = vunpack.c.l.b16 %v3728_v50  ;;  %v3927_v26 = vsel %vm3858_vm6, %v3926_v43, %v21886_v22  ;;  %v14086_v10 = vunpack.i.l.s16 %v3831_v63  ;;  %v19476_v41 = vld [vmem:[%s30071_s5 + $0x484] sm:$0xf]  ;;  %v14766_v22 = vld [vmem:[%s30071_s5 + $0x498] sm:$0xf0] }
 0x25b   : > { %v2330_v19 = vpop.f32.mrf.mxu2  ;;  %v21956_v18 = vunpack.i.l.s16 %v3902_v24  ;;  %v21959_v5 = vsel %vm3858_vm6, %v3991_v13, %v3990_v16  ;;  %v21968_v31 = vsel %vm3858_vm6, %v4007_v4, %v4006_v30  ;;  %v21970_v43 = vunpack.i.l.s16 %v4605_v60  ;;  %v3815_v24 = vld [vmem:[#allocation2 + $0x4c] sm:$0x1] }
 0x25c   : > { %v2371_v15 = vmul.f32 %v21898_v37, %v2330_v19  ;;  %v3743_v19 = vld [vmem:[#allocation2 + $0x40] sm:$0x8]  ;;  %v14769_v13 = vor.u32 %v19476_v41, %v14766_v22  ;;  %v21973_v50 = vunpack.i.l.s16 %v3966_v23  ;;  %v3904_v56 = vunpack.c.l.b16 %v3729_v21  ;;  %v3817_v28 = vld [vmem:[#allocation2 + $0x6c] sm:$0x1] }
 0x25d   : > { %11011 = vmatpush.bf16.msra.mxu2 %v14817_v53  ;;  %v3832_v53 = vunpack.c.l.b16 %v3720_v7  ;;  %v4030_v39 = vunpack.c.l.b16 %v3743_v19  ;;  %v4094_v19 = vunpack.c.l.b16 %v3751_v1  ;;  %v21975_v33 = vunpack.i.l.s16 %v3903_v3  ;;  %v21984_v3 = vld [vmem:[#allocation2 + $0x50] sm:$0x4] }
 0x25e   : > { %v2407_v57 = vadd.f32 %v21932_v12, %v2371_v15  ;;  %v3721_v15 = vld [vmem:[#allocation2 + $0x60] sm:$0x1]  ;;  %v3860_v4 = vrot.slane %v14086_v10, 4  ;;  %v3880_v60 = vrot.slane %v14086_v10, 5  ;;  %v4606_v23 = vunpack.c.l.b16 %v3815_v24 }
 0x25f   : > { %v14087_v16 = vunpack.i.l.s16 %v3832_v53  ;;  %v4630_v53 = vrot.slane %v21970_v43, 5  ;;  %v21987_v21 = vunpack.i.l.s16 %v4094_v19  ;;  %v21989_v41 = vunpack.i.l.s16 %v3904_v56 }
 0x260   : > { %v2439_v58 = vmax.f32 %v2407_v57, 0.0  ;;  %v3833_v57 = vunpack.c.l.b16 %v3721_v15  ;;  %v3928_v15 = vrot.slane %v21956_v18, 6  ;;  %v3930_v10 = vrot.slane %v21975_v33, 5 }
 0x261   : > { %11012 = vmatpush.bf16.msra.mxu2 %v14793_v8  ;;  %v3863_v1 = vrot.slane %v14087_v16, 3  ;;  %v3944_v8 = vrot.slane %v21956_v18, 7  ;;  %v3881_v24 = vsel %vm3861_vm7, %v3880_v60, %v3879_v42  ;;  %v21998_v56 = vunpack.i.l.s16 %v4606_v23  ;;  %v15508_v23 = vld [vmem:[%s30071_s5 + $0xa50] sm:$0xf]  ;;  %v15436_v18 = vld [vmem:[%s30071_s5 + $0x9c0] sm:$0xf] }
 0x262   : > { %v20653_v29 = vpack.c.bf16 %v2439_v58, %v2438_v6  ;;  %v21977_v6 = vunpack.i.l.s16 %v4030_v39  ;;  %v4009_v39 = vrot.slane %v21973_v50, 1  ;;  %v3929_v32 = vsel %vm3861_vm7, %v3928_v15, %v3927_v26 }
 0x263   : > { %v2333_v7 = vpop.f32.mrf.mxu2  ;;  %v3931_v60 = vsel %vm3864_vm8, %v3930_v10, %v3929_v32  ;;  %v3932_v15 = vrot.slane %v21989_v41, 4  ;;  %v15700_v32 = vld [vmem:[%s30071_s5 + $0xbd0] sm:$0xf]  ;;  %v3946_v43 = vrot.slane %v21975_v33, 6 }
 0x264   : > { %20654 = vst [vmem:[#allocation2 + $0x70] sm:$0xff] %v20653_v29   ;;  %v2372_v30 = vmul.f32 %v21898_v37, %v2333_v7  ;;  %v14088_v29 = vunpack.i.l.s16 %v3833_v57  ;;  %v3882_v7 = vrot.slane %v14087_v16, 4  ;;  %v3967_v16 = vunpack.c.l.b16 %v21984_v3  ;;  %v15892_v10 = vld [vmem:[%s30071_s5 + $0xd50] sm:$0xf] }
 0x265   : > { %11013 = vmatpush.bf16.msra.mxu2 %v14769_v13  ;;  %v3862_v13 = vsel %vm3861_vm7, %v3860_v4, %v3859_v59  ;;  %v3737_v59 = vld [vmem:[#allocation2 + $0x60] sm:$0x4]  ;;  %v3816_v4 = vld [vmem:[#allocation2 + $0x5c] sm:$0x1]  ;;  %v15652_v33 = vld [vmem:[%s30071_s5 + $0xb70] sm:$0xf] }
 0x266   : > { %v2408_v22 = vadd.f32 %v21932_v12, %v2372_v30  ;;  %v3866_v40 = vrot.slane %v14088_v29, 2  ;;  %v3865_v30 = vsel %vm3864_vm8, %v3863_v1, %v3862_v13  ;;  %v3883_v42 = vsel %vm3864_vm8, %v3882_v7, %v3881_v24  ;;  %v19761_v24 = vld [vmem:[%s30071_s5 + $0xd64] sm:$0xf0] }
 0x267   : > { %v3884_v26 = vrot.slane %v14088_v29, 3  ;;  %v19713_v29 = vld [vmem:[%s30071_s5 + $0xbe4] sm:$0xf0] }
 0x268   : > { %v3868_v7 = vsel %vm3867_vm9, %v3866_v40, %v3865_v30  ;;  %v3933_v40 = vsel %vm3867_vm9, %v3932_v15, %v3931_v60  ;;  %v15701_v9 = vor.u32 %v19713_v29, %v15700_v32  ;;  %v15893_v60 = vor.u32 %v19761_v24, %v15892_v10  ;;  %v19659_v15 = vld [vmem:[%s30071_s5 + $0xa34] sm:$0xf0] }
 0x269   : > { %v19755_v32 = vld [vmem:[%s30071_s5 + $0xd34] sm:$0xf0]  ;;  %v4031_v10 = vunpack.c.l.b16 %v3744_v14  ;;  %v4632_v14 = vrot.slane %v21998_v56, 4  ;;  %v3993_v56 = vsel %vm3861_vm7, %v21973_v50, %v21959_v5  ;;  %v4010_v5 = vsel %vm3861_vm7, %v4009_v39, %v21968_v31 }
 0x26b   : > { %v2335_v58 = vpop.f32.mrf.mxu2  ;;  %v3722_v63 = vld [vmem:[#allocation2 + $0x70] sm:$0x1]  ;;  %v3730_v19 = vld [vmem:[#allocation2 + $0x70] sm:$0x2]  ;;  %v3738_v61 = vld [vmem:[#allocation2 + $0x70] sm:$0x4] }
 0x26c   : > { %v2373_v44 = vmul.f32 %v21898_v37, %v2335_v58  ;;  %v3834_v57 = vunpack.c.l.b16 %v3722_v63  ;;  %v3905_v0 = vunpack.c.l.b16 %v3730_v19  ;;  %v19665_v37 = vld [vmem:[%s30071_s5 + $0xa64] sm:$0xf0]  ;;  %v2440_v63 = vmax.f32 %v2408_v22, 0.0 }
 0x26d   : > { %v3968_v22 = vunpack.c.l.b16 %v3737_v59  ;;  %v3885_v19 = vsel %vm3867_vm9, %v3884_v26, %v3883_v42  ;;  %v15509_v30 = vor.u32 %v19665_v37, %v15508_v23  ;;  %v15676_v23 = vld [vmem:[%s30071_s5 + $0xba0] sm:$0xf]  ;;  %v19707_v37 = vld [vmem:[%s30071_s5 + $0xbb4] sm:$0xf0]  ;;  %v3969_v29 = vunpack.c.l.b16 %v3738_v61 }
 0x26e   : > { %v2409_v58 = vadd.f32 %v21932_v12, %v2373_v44  ;;  %v14089_v1 = vunpack.i.l.s16 %v3834_v57  ;;  %v22012_v3 = vunpack.i.l.s16 %v3905_v0  ;;  %v4607_v12 = vunpack.c.l.b16 %v3816_v4 }
 0x26f   : > { %v22067_v24 = vunpack.i.l.s16 %v3968_v22  ;;  %v15844_v22 = vld [vmem:[%s30071_s5 + $0xcf0] sm:$0xf] }
 0x270   : > { %v2441_v44 = vmax.f32 %v2409_v58, 0.0  ;;  %v3869_v0 = vrot.slane %v14089_v1, 1  ;;  %v3886_v57 = vrot.slane %v14089_v1, 2  ;;  %v3934_v13 = vrot.slane %v22012_v3, 3  ;;  %v15484_v1 = vld [vmem:[%s30071_s5 + $0xa20] sm:$0xf] }
 0x271   : > { %v15485_v61 = vor.u32 %v19659_v15, %v15484_v1  ;;  %v3996_v50 = vrot.slane %v22067_v24, 6  ;;  %v4012_v31 = vrot.slane %v22067_v24, 7 }
 0x272   : > { %v20658_v55 = vpack.c.bf16 %v2441_v44, %v2440_v63  ;;  %v3871_v59 = vsel %vm3870_vm10, %v3869_v0, %v3868_v7  ;;  %v3887_v4 = vsel %vm3870_vm10, %v3886_v57, %v3885_v19  ;;  %v3935_v58 = vsel %vm3870_vm10, %v3934_v13, %v3933_v40  ;;  %v15868_v63 = vld [vmem:[%s30071_s5 + $0xd20] sm:$0xf]  ;;  %v19749_v19 = vld [vmem:[%s30071_s5 + $0xd04] sm:$0xf0] }
 0x273   : > { %v22036_v62 = vpack.c.b16 %v3871_v59, %v3871_v59  ;;  %v22038_v42 = vpack.c.b16 %v3887_v4, %v3887_v4  ;;  %v22040_v26 = vpack.c.b16 %v3935_v58, %v3935_v58  ;;  %v4631_v7 = vsel %vm3858_vm6, %v4630_v53, %v21925_v34  ;;  %v22070_v34 = vld [vmem:[#allocation2 + $0x54] sm:$0x1] }
 0x274   : > { %20667 = vst [vmem:[#allocation2 + $0x78] sm:$0xff] %v20658_v55   ;;  %v4073_v44 = vrot.slane %v21977_v6, 3  ;;  %v14103_v55 = vunpack.i.l.s16 %v3967_v16  ;;  %v4608_v0 = vunpack.c.l.b16 %v3817_v28  ;;  %v14183_v57 = vunpack.i.l.s16 %v4607_v12  ;;  %v15460_v28 = vld [vmem:[%s30071_s5 + $0x9f0] sm:$0xf]  ;;  %v19653_v12 = vld [vmem:[%s30071_s5 + $0xa04] sm:$0xf0] }
 0x275   : > { %10650 = vmatmul.bf16.vlgmr.msra.gmra.mxu0 %v22036_v62  ;;  %10663 = vmatmul.bf16.vlgmr.msra.gmra.mxu1 %v22038_v42  ;;  %v4120_v13 = vrot.slane %v21987_v21, 4  ;;  %v15677_v53 = vor.u32 %v19707_v37, %v15676_v23  ;;  %v15869_v16 = vor.u32 %v19755_v32, %v15868_v63  ;;  %v3945_v40 = vsel %vm3861_vm7, %v3944_v8, %v21940_v20  ;;  %v19647_v20 = vld [vmem:[%s30071_s5 + $0x9d4] sm:$0xf0]  ;;  %v15628_v23 = vld [vmem:[%s30071_s5 + $0xb40] sm:$0xf] }
 0x276   : > { %10676 = vmatmul.bf16.vlgmr.msra.gmra.mxu3 %v22040_v26  ;;  %10720 = vmatpush.bf16.msra.mxu0 %v15509_v30  ;;  %v14105_v30 = vunpack.i.l.s16 %v3969_v29  ;;  %v22101_v59 = vunpack.i.l.s16 %v4031_v10  ;;  %v3948_v4 = vrot.slane %v21989_v41, 5  ;;  %v3994_v58 = vrot.slane %v14103_v55, 7  ;;  %v19695_v37 = vld [vmem:[%s30071_s5 + $0xb54] sm:$0xf0] }
 0x277   : > { %10733 = vmatpush.bf16.msra.mxu1 %v15701_v9  ;;  %10746 = vmatpush.bf16.msra.mxu3 %v15893_v60  ;;  %v19701_v9 = vld [vmem:[%s30071_s5 + $0xb84] sm:$0xf0]  ;;  %v14184_v1 = vunpack.i.l.s16 %v4608_v0  ;;  %v4634_v60 = vrot.slane %v14183_v57, 3  ;;  %v15461_v15 = vor.u32 %v19653_v12, %v15460_v28  ;;  %v4633_v8 = vsel %vm3861_vm7, %v4632_v14, %v4631_v7  ;;  %v15820_v7 = vld [vmem:[%s30071_s5 + $0xcc0] sm:$0xf] }
 0x278   : > { %v15653_v39 = vor.u32 %v19701_v9, %v15652_v33  ;;  %v15845_v41 = vor.u32 %v19749_v19, %v15844_v22  ;;  %v4011_v63 = vsel %vm3864_vm8, %v14103_v55, %v4010_v5  ;;  %v4095_v29 = vunpack.c.l.b16 %v22070_v34  ;;  %v19743_v10 = vld [vmem:[%s30071_s5 + $0xcd4] sm:$0xf0]  ;;  %v15412_v12 = vld [vmem:[%s30071_s5 + $0x990] sm:$0xf]  ;;  %v3753_v9 = vld [vmem:[#allocation2 + $0x64] sm:$0x1] }
 0x279   : > { %v3947_v0 = vsel %vm3864_vm8, %v3946_v43, %v3945_v40  ;;  %v3950_v57 = vrot.slane %v22012_v3, 4  ;;  %v3995_v14 = vsel %vm3864_vm8, %v3994_v58, %v3993_v56  ;;  %v4014_v55 = vrot.slane %v14105_v30, 6  ;;  %v3745_v3 = vld [vmem:[#allocation2 + $0x60] sm:$0x8]  ;;  %v19641_v40 = vld [vmem:[%s30071_s5 + $0x9a4] sm:$0xf0] }
 0x27a   : > { %10721 = vmatpush.bf16.msra.mxu0 %v15485_v61  ;;  %v3998_v61 = vrot.slane %v14105_v30, 5  ;;  %v4059_v34 = vrot.slane %v22101_v59, 1  ;;  %v3949_v28 = vsel %vm3867_vm9, %v3948_v4, %v3947_v0  ;;  %v4635_v43 = vsel %vm3864_vm8, %v4634_v60, %v4633_v8  ;;  %v15604_v30 = vld [vmem:[%s30071_s5 + $0xb10] sm:$0xf]  ;;  %v19689_v5 = vld [vmem:[%s30071_s5 + $0xb24] sm:$0xf0] }
 0x27b   : > { %10734 = vmatpush.bf16.msra.mxu1 %v15677_v53  ;;  %10747 = vmatpush.bf16.msra.mxu3 %v15869_v16  ;;  %v3818_v32 = vld [vmem:[#allocation2 + $0x7c] sm:$0x1]  ;;  %v4636_v53 = vrot.slane %v14184_v1, 2  ;;  %v15437_v16 = vor.u32 %v19647_v20, %v15436_v18  ;;  %v15629_v56 = vor.u32 %v19695_v37, %v15628_v23  ;;  %v15821_v22 = vor.u32 %v19743_v10, %v15820_v7  ;;  %v15796_v60 = vld [vmem:[%s30071_s5 + $0xc90] sm:$0xf] }
 0x27c   : > { %v4609_v24 = vunpack.c.l.b16 %v3818_v32  ;;  %v3997_v19 = vsel %vm3867_vm9, %v3996_v50, %v3995_v14  ;;  %v3951_v4 = vsel %vm3870_vm10, %v3950_v57, %v3949_v28  ;;  %v4013_v1 = vsel %vm3867_vm9, %v4012_v31, %v4011_v63  ;;  %v19710_v8 = vld [vmem:[%s30071_s5 + $0xbd4] sm:$0xf]  ;;  %v15702_v63 = vld [vmem:[%s30071_s5 + $0xbe8] sm:$0xf0]  ;;  %v15388_v32 = vld [vmem:[%s30071_s5 + $0x960] sm:$0xf] }
 0x27d   : > { %v3999_v58 = vsel %vm3870_vm10, %v3998_v61, %v3997_v19  ;;  %v4015_v20 = vsel %vm3870_vm10, %v4014_v55, %v4013_v1  ;;  %v4637_v50 = vsel %vm3867_vm9, %v4636_v53, %v4635_v43  ;;  %v15413_v31 = vor.u32 %v19641_v40, %v15412_v12  ;;  %v3746_v7 = vld [vmem:[#allocation2 + $0x70] sm:$0x8]  ;;  %v22169_v0 = vld [vmem:[#allocation2 + $0x24] sm:$0x2]  ;;  %v19635_v14 = vld [vmem:[%s30071_s5 + $0x974] sm:$0xf0] }
 0x27e   : > { %10722 = vmatpush.bf16.msra.mxu0 %v15461_v15  ;;  %v14185_v33 = vunpack.i.l.s16 %v4609_v24  ;;  %v19737_v15 = vld [vmem:[%s30071_s5 + $0xca4] sm:$0xf0]  ;;  %v15605_v23 = vor.u32 %v19689_v5, %v15604_v30  ;;  %v22167_v10 = vunpack.i.l.s16 %v4095_v29  ;;  %v22171_v57 = vpack.c.b16 %v3951_v4, %v3951_v4  ;;  %v15580_v55 = vld [vmem:[%s30071_s5 + $0xae0] sm:$0xf]  ;;  %v3754_v53 = vld [vmem:[#allocation2 + $0x74] sm:$0x1] }
 0x27f   : > { %10735 = vmatpush.bf16.msra.mxu1 %v15653_v39  ;;  %10748 = vmatpush.bf16.msra.mxu3 %v15845_v41  ;;  %v4032_v39 = vunpack.c.l.b16 %v3745_v3  ;;  %v4096_v41 = vunpack.c.l.b16 %v3753_v9  ;;  %v22173_v61 = vpack.c.b16 %v3999_v58, %v3999_v58  ;;  %v15797_v24 = vor.u32 %v19737_v15, %v15796_v60  ;;  %v19683_v28 = vld [vmem:[%s30071_s5 + $0xaf4] sm:$0xf0]  ;;  %v15772_v12 = vld [vmem:[%s30071_s5 + $0xc60] sm:$0xf]  ;;  %v19704_v5 = vld [vmem:[%s30071_s5 + $0xba4] sm:$0xf] }
 0x280   : > { %v4638_v18 = vrot.slane %v14185_v33, 1  ;;  %v22181_v29 = vpack.c.b16 %v4015_v20, %v4015_v20  ;;  %v19731_v33 = vld [vmem:[%s30071_s5 + $0xc74] sm:$0xf0]  ;;  %v30091_v43 = vrot.slane %v21380_v36, 6  ;;  %v30092_v3 = vrot.slane %v21511_v54, 5 }
 0x281   : > { %v22201_v19 = vunpack.i.l.s16 %v4032_v39  ;;  %v22203_v40 = vunpack.i.l.s16 %v4096_v41  ;;  %v15389_v30 = vor.u32 %v19635_v14, %v15388_v32  ;;  %v15678_v4 = vld [vmem:[%s30071_s5 + $0xbb8] sm:$0xf0]  ;;  %v4075_v58 = vrot.slane %v22101_v59, 2  ;;  %v15364_v20 = vld [vmem:[%s30071_s5 + $0x930] sm:$0xf] }
 0x282   : > { %10723 = vmatpush.bf16.msra.mxu0 %v15437_v16  ;;  %v4639_v37 = vsel %vm3870_vm10, %v4638_v18, %v4637_v50  ;;  %v4052_v9 = vsel %vm3852_vm4, %v30092_v3, %v30091_v43  ;;  %v4097_v1 = vunpack.c.l.b16 %v3754_v53  ;;  %v4122_v60 = vrot.slane %v22167_v10, 3  ;;  %v19629_v50 = vld [vmem:[%s30071_s5 + $0x944] sm:$0xf0]  ;;  %v15748_v32 = vld [vmem:[%s30071_s5 + $0xc30] sm:$0xf] }
 0x283   : > { %10736 = vmatpush.bf16.msra.mxu1 %v15629_v56  ;;  %10749 = vmatpush.bf16.msra.mxu3 %v15821_v22  ;;  %v22183_v16 = vpack.c.b16 %v4639_v37, %v4639_v37  ;;  %v15705_v56 = vor.u32 %v19710_v8, %v15702_v63  ;;  %v4033_v22 = vunpack.c.l.b16 %v3746_v7  ;;  %v15581_v15 = vor.u32 %v19683_v28, %v15580_v55  ;;  %v15556_v8 = vld [vmem:[%s30071_s5 + $0xab0] sm:$0xf]  ;;  %v22229_v37 = vld [vmem:[#allocation2 + $0x24] sm:$0x4]  ;;  %v19677_v63 = vld [vmem:[%s30071_s5 + $0xac4] sm:$0xf0] }
 0x284   : > { %v15773_v18 = vor.u32 %v19731_v33, %v15772_v12  ;;  %v30093_v39 = vrot.slane %v21380_v36, 7  ;;  %v30094_v41 = vrot.slane %v21511_v54, 6  ;;  %v19725_v36 = vld [vmem:[%s30071_s5 + $0xc44] sm:$0xf0]  ;;  %v30095_v54 = vrot.slane %v21875_v2, 4 }
 0x285   : > { %10689 = vmatmul.bf16.vlgmr.msrb.gmra.mxu0 %v22171_v57  ;;  %10702 = vmatmul.bf16.vlgmr.msrb.gmra.mxu1 %v22173_v61  ;;  %v30097_v14 = vrot.slane %v21535_v38, 7  ;;  %v15681_v53 = vor.u32 %v19704_v5, %v15678_v4  ;;  %v19698_v28 = vld [vmem:[%s30071_s5 + $0xb74] sm:$0xf]  ;;  %v15654_v12 = vld [vmem:[%s30071_s5 + $0xb88] sm:$0xf0]  ;;  %v14113_v33 = vunpack.i.l.s16 %v4033_v22  ;;  %v4124_v43 = vrot.slane %v22203_v40, 2 }
 0x286   : > { %10715 = vmatmul.bf16.vlgmr.msrb.gmra.mxu3 %v22181_v29  ;;  %10724 = vmatpush.bf16.msra.mxu0 %v15413_v31  ;;  %v4068_v31 = vsel %vm3852_vm4, %v30094_v41, %v30093_v39  ;;  %v4054_v7 = vsel %vm3855_vm5, %v30095_v54, %v4052_v9  ;;  %v15365_v3 = vor.u32 %v19629_v50, %v15364_v20  ;;  %v15340_v9 = vld [vmem:[%s30071_s5 + $0x900] sm:$0xf]  ;;  %v30098_v22 = vrot.slane %v21927_v35, 3  ;;  %v22276_v50 = vld [vmem:[#allocation2 + $0x24] sm:$0x8] }
 0x287   : > { %10737 = vmatpush.bf16.msra.mxu1 %v15605_v23  ;;  %10750 = vmatpush.bf16.msra.mxu3 %v15797_v24  ;;  %v4156_v23 = vunpack.c.l.b16 %v22169_v0  ;;  %v30096_v0 = vrot.slane %v21875_v2, 5  ;;  %v4115_v55 = vsel %vm3852_vm4, %v30097_v14, %v21400_v47  ;;  %v4077_v2 = vrot.slane %v22201_v19, 1  ;;  %v15532_v5 = vld [vmem:[%s30071_s5 + $0xa80] sm:$0xf]  ;;  %v19671_v54 = vld [vmem:[%s30071_s5 + $0xa94] sm:$0xf0] }
 0x288   : > { %10962 = vmatmul.bf16.vlgmr.msrb.gmra.mxu2 %v22183_v16  ;;  %v4056_v4 = vsel %vm3858_vm6, %v30098_v22, %v4054_v7  ;;  %v22271_v39 = vunpack.i.l.s16 %v4097_v1  ;;  %v15557_v41 = vor.u32 %v19677_v63, %v15556_v8  ;;  %v15724_v7 = vld [vmem:[%s30071_s5 + $0xc00] sm:$0xf]  ;;  %v19719_v1 = vld [vmem:[%s30071_s5 + $0xc14] sm:$0xf0]  ;;  %v15630_v8 = vld [vmem:[%s30071_s5 + $0xb58] sm:$0xf0]  ;;  %v4220_v22 = vunpack.c.l.b16 %v22229_v37 }
 0x289   : > { %v4070_v24 = vsel %vm3855_vm5, %v30096_v0, %v4068_v31  ;;  %11058 = vmatpush.bf16.msrb.mxu2 %v15705_v56  ;;  %v19623_v56 = vld [vmem:[%s30071_s5 + $0x914] sm:$0xf0]  ;;  %v15749_v31 = vor.u32 %v19725_v36, %v15748_v32  ;;  %v30100_v0 = vrot.slane %v21927_v35, 4  ;;  %v16084_v63 = vld [vmem:[%s30071_s5 + $0xed0] sm:$0xf]  ;;  %v30101_v32 = vrot.slane %v21977_v6, 2 }
 0x28a   : > { %10725 = vmatpush.bf16.msra.mxu0 %v15389_v30  ;;  %v30099_v30 = vrot.slane %v21880_v46, 6  ;;  %v19809_v35 = vld [vmem:[%s30071_s5 + $0xee4] sm:$0xf0]  ;;  %v15341_v37 = vor.u32 %v19623_v56, %v15340_v9  ;;  %v15725_v9 = vor.u32 %v19719_v1, %v15724_v7  ;;  %v16444_v7 = vld [vmem:[%s30071_s5 + $0x11a0] sm:$0xf] }
 0x28b   : > { %10738 = vmatpush.bf16.msra.mxu1 %v15581_v15  ;;  %10751 = vmatpush.bf16.msra.mxu3 %v15773_v18  ;;  %v4072_v14 = vsel %vm3858_vm6, %v30100_v0, %v4070_v24  ;;  %v22290_v15 = vunpack.i.l.s16 %v4156_v23  ;;  %v19692_v18 = vld [vmem:[%s30071_s5 + $0xb44] sm:$0xf]  ;;  %v4058_v23 = vsel %vm3861_vm7, %v30101_v32, %v4056_v4  ;;  %v30102_v24 = vrot.slane %v21936_v45, 5  ;;  %v16276_v0 = vld [vmem:[%s30071_s5 + $0x1050] sm:$0xf] }
 0x28c   : > { %v4117_v20 = vsel %vm3855_vm5, %v30099_v30, %v4115_v55  ;;  %v4074_v36 = vsel %vm3861_vm7, %v4073_v44, %v4072_v14  ;;  %v15657_v30 = vor.u32 %v19698_v28, %v15654_v12  ;;  %v19857_v4 = vld [vmem:[%s30071_s5 + $0x1064] sm:$0xf0]  ;;  %v4060_v6 = vsel %vm3864_vm8, %v4059_v34, %v4058_v23  ;;  %v19899_v1 = vld [vmem:[%s30071_s5 + $0x11b4] sm:$0xf0] }
 0x28d   : > { %v4119_v55 = vsel %vm3858_vm6, %v30102_v24, %v4117_v20  ;;  %11059 = vmatpush.bf16.msrb.mxu2 %v15681_v53  ;;  %v4062_v44 = vrot.slane %v14113_v33, 7  ;;  %v16468_v53 = vld [vmem:[%s30071_s5 + $0x11d0] sm:$0xf]  ;;  %v19905_v28 = vld [vmem:[%s30071_s5 + $0x11e4] sm:$0xf0]  ;;  %v4076_v12 = vsel %vm3864_vm8, %v4075_v58, %v4074_v36  ;;  %v4061_v56 = vsel %vm3867_vm9, %v22201_v19, %v4060_v6 }
 0x28e   : > { %v4121_v20 = vsel %vm3861_vm7, %v4120_v13, %v4119_v55  ;;  %10726 = vmatpush.bf16.msra.mxu0 %v15365_v3  ;;  %v4126_v13 = vrot.slane %v22271_v39, 1  ;;  %v15533_v3 = vor.u32 %v19671_v54, %v15532_v5  ;;  %v4284_v14 = vunpack.c.l.b16 %v22276_v50  ;;  %v3758_v36 = vld [vmem:[#allocation2 + $0x34] sm:$0x2]  ;;  %v3759_v24 = vld [vmem:[#allocation2 + $0x44] sm:$0x2] }
 0x28f   : > { %v4123_v34 = vsel %vm3864_vm8, %v4122_v60, %v4121_v20  ;;  %10739 = vmatpush.bf16.msra.mxu1 %v15557_v41  ;;  %10752 = vmatpush.bf16.msra.mxu3 %v15749_v31  ;;  %v16085_v32 = vor.u32 %v19809_v35, %v16084_v63  ;;  %v16277_v23 = vor.u32 %v19857_v4, %v16276_v0  ;;  %v19686_v19 = vld [vmem:[%s30071_s5 + $0xb14] sm:$0xf]  ;;  %v16060_v50 = vld [vmem:[%s30071_s5 + $0xea0] sm:$0xf]  ;;  %v15606_v31 = vld [vmem:[%s30071_s5 + $0xb28] sm:$0xf0]  ;;  %v22372_v63 = vunpack.i.l.s16 %v4220_v22 }
 0x290   : > { %v4078_v59 = vsel %vm3867_vm9, %v4077_v2, %v4076_v12  ;;  %v4125_v58 = vsel %vm3867_vm9, %v4124_v43, %v4123_v34  ;;  %v15633_v60 = vor.u32 %v19692_v18, %v15630_v8  ;;  %v16469_v55 = vor.u32 %v19905_v28, %v16468_v53  ;;  %v19803_v2 = vld [vmem:[%s30071_s5 + $0xeb4] sm:$0xf0]  ;;  %v3760_v6 = vld [vmem:[#allocation2 + $0x54] sm:$0x2]  ;;  %v19680_v22 = vld [vmem:[%s30071_s5 + $0xae4] sm:$0xf] }
 0x291   : > { %11060 = vmatpush.bf16.msrb.mxu2 %v15657_v30  ;;  %v4063_v41 = vsel %vm3870_vm10, %v4062_v44, %v4061_v56  ;;  %v4079_v5 = vsel %vm3870_vm10, %v14113_v33, %v4078_v59  ;;  %v4127_v43 = vsel %vm3870_vm10, %v4126_v13, %v4125_v58  ;;  %v16252_v33 = vld [vmem:[%s30071_s5 + $0x1020] sm:$0xf]  ;;  %v19851_v54 = vld [vmem:[%s30071_s5 + $0x1034] sm:$0xf0]  ;;  %v4157_v18 = vunpack.c.l.b16 %v3758_v36  ;;  %v16036_v28 = vld [vmem:[%s30071_s5 + $0xe70] sm:$0xf] }
 0x292   : > { %10727 = vmatpush.bf16.msra.mxu0 %v15341_v37  ;;  %v4197_v8 = vrot.slane %v22290_v15, 1  ;;  %v22374_v35 = vunpack.i.l.s16 %v4284_v14  ;;  %v22376_v30 = vpack.c.b16 %v4063_v41, %v4063_v41  ;;  %v22378_v0 = vpack.c.b16 %v4079_v5, %v4079_v5  ;;  %v19797_v12 = vld [vmem:[%s30071_s5 + $0xe84] sm:$0xf0]  ;;  %v15582_v13 = vld [vmem:[%s30071_s5 + $0xaf8] sm:$0xf0] }
 0x293   : > { %10740 = vmatpush.bf16.msra.mxu1 %v15533_v3  ;;  %10753 = vmatpush.bf16.msra.mxu3 %v15725_v9  ;;  %v16061_v4 = vor.u32 %v19803_v2, %v16060_v50  ;;  %v4158_v44 = vunpack.c.l.b16 %v3759_v24  ;;  %v22380_v20 = vpack.c.b16 %v4127_v43, %v4127_v43  ;;  %v15609_v37 = vor.u32 %v19686_v19, %v15606_v31  ;;  %v16228_v3 = vld [vmem:[%s30071_s5 + $0xff0] sm:$0xf]  ;;  %v19845_v9 = vld [vmem:[%s30071_s5 + $0x1004] sm:$0xf0]  ;;  %v3761_v24 = vld [vmem:[#allocation2 + $0x64] sm:$0x2] }
 0x294   : > { %30103 = vst [vmem:[#allocation6_spill] sm:$0xff] %v22378_v0  ;;  %v16253_v53 = vor.u32 %v19851_v54, %v16252_v33  ;;  %v16445_v34 = vor.u32 %v19899_v1, %v16444_v7  ;;  %v16420_v56 = vld [vmem:[%s30071_s5 + $0x1170] sm:$0xf]  ;;  %v19893_v14 = vld [vmem:[%s30071_s5 + $0x1184] sm:$0xf0]  ;;  %v16037_v58 = vor.u32 %v19797_v12, %v16036_v28  ;;  %v4134_v36 = vrot.slane %v21936_v45, 6 }
 0x295   : > { %11061 = vmatpush.bf16.msrb.mxu2 %v15633_v60  ;;  %10728 = vmatmul.bf16.vlgmr.msra.gmra.mxu0 %v22376_v30  ;;  %v22415_v60 = vunpack.i.l.s16 %v4158_v44  ;;  %v15585_v41 = vor.u32 %v19680_v22, %v15582_v13  ;;  %v16229_v5 = vor.u32 %v19845_v9, %v16228_v3  ;;  %v19674_v19 = vld [vmem:[%s30071_s5 + $0xab4] sm:$0xf]  ;;  %v16012_v50 = vld [vmem:[%s30071_s5 + $0xe40] sm:$0xf]  ;;  %v19791_v2 = vld [vmem:[%s30071_s5 + $0xe54] sm:$0xf0]  ;;  %v4159_v43 = vunpack.c.l.b16 %v3760_v6 }
 0x296   : > { %10759 = vmatpush.bf16.msrb.mxu0 %v16085_v32  ;;  %10741 = vmatmul.bf16.vlgmr.msra.gmra.mxu1 %v22378_v0  ;;  %v22409_v32 = vunpack.i.l.s16 %v4157_v18  ;;  %v16421_v31 = vor.u32 %v19893_v14, %v16420_v56  ;;  %v15558_v33 = vld [vmem:[%s30071_s5 + $0xac8] sm:$0xf0]  ;;  %v16204_v54 = vld [vmem:[%s30071_s5 + $0xfc0] sm:$0xf]  ;;  %v19839_v7 = vld [vmem:[%s30071_s5 + $0xfd4] sm:$0xf0]  ;;  %v16013_v44 = vor.u32 %v19791_v2, %v16012_v50  ;;  %v4160_v22 = vunpack.c.l.b16 %v3761_v24 }
 0x297   : > { %10772 = vmatpush.bf16.msrb.mxu1 %v16277_v23  ;;  %10785 = vmatpush.bf16.msrb.mxu3 %v16469_v55  ;;  %v16396_v1 = vld [vmem:[%s30071_s5 + $0x1140] sm:$0xf]  ;;  %v19887_v18 = vld [vmem:[%s30071_s5 + $0x1154] sm:$0xf0]  ;;  %v4184_v28 = vrot.slane %v22415_v60, 6  ;;  %v4200_v12 = vrot.slane %v22415_v60, 7  ;;  %v16205_v13 = vor.u32 %v19839_v7, %v16204_v54  ;;  %v22458_v14 = vunpack.i.l.s16 %v4159_v43 }
 0x298   : > { %10754 = vmatmul.bf16.vlgmr.msra.gmra.mxu3 %v22380_v20  ;;  %11014 = vmatmul.bf16.vlgmr.msra.gmra.mxu2 %v22171_v57  ;;  %v4182_v6 = vrot.slane %v22409_v32, 7  ;;  %v15534_v3 = vld [vmem:[%s30071_s5 + $0xa98] sm:$0xf0]  ;;  %v15988_v9 = vld [vmem:[%s30071_s5 + $0xe10] sm:$0xf]  ;;  %v22479_v54 = vunpack.i.l.s16 %v4160_v22  ;;  %v30110_v60 = vrot.slane %v22167_v10, 4 }
 0x299   : > { %11062 = vmatpush.bf16.msrb.mxu2 %v15609_v37  ;;  %v19668_v37 = vld [vmem:[%s30071_s5 + $0xa84] sm:$0xf]  ;;  %v19785_v56 = vld [vmem:[%s30071_s5 + $0xe24] sm:$0xf0]  ;;  %v16180_v24 = vld [vmem:[%s30071_s5 + $0xf90] sm:$0xf] }
 0x29a   : > { %10760 = vmatpush.bf16.msrb.mxu0 %v16061_v4  ;;  %v4136_v4 = vrot.slane %v21987_v21, 5  ;;  %v19902_v50 = vld [vmem:[%s30071_s5 + $0x11d4] sm:$0xf]  ;;  %v16470_v2 = vld [vmem:[%s30071_s5 + $0x11e8] sm:$0xf0]  ;;  %v15989_v43 = vor.u32 %v19785_v56, %v15988_v9 }
 0x29b   : > { %10773 = vmatpush.bf16.msrb.mxu1 %v16253_v53  ;;  %10786 = vmatpush.bf16.msrb.mxu3 %v16445_v34  ;;  %v3762_v53 = vld [vmem:[#allocation2 + $0x74] sm:$0x2]  ;;  %v15561_v34 = vor.u32 %v19674_v19, %v15558_v33  ;;  %v19881_v19 = vld [vmem:[%s30071_s5 + $0x1124] sm:$0xf0]  ;;  %v22481_v7 = vld [vmem:[#allocation2 + $0x18] sm:$0x1] }
 0x29c   : > { %v4161_v33 = vunpack.c.l.b16 %v3762_v53  ;;  %v15964_v55 = vld [vmem:[%s30071_s5 + $0xde0] sm:$0xf]  ;;  %v22491_v22 = vld [vmem:[#allocation2 + $0x18] sm:$0x2]  ;;  %v3766_v53 = vld [vmem:[#allocation2 + $0x34] sm:$0x4] }
 0x29d   : > { %11063 = vmatpush.bf16.msrb.mxu2 %v15585_v41  ;;  %v19833_v41 = vld [vmem:[%s30071_s5 + $0xfa4] sm:$0xf0]  ;;  %v17044_v21 = vld [vmem:[%s30071_s5 + $0x1650] sm:$0xf] }
 0x29e   : > { %10761 = vmatpush.bf16.msrb.mxu0 %v16037_v58  ;;  %v16397_v58 = vor.u32 %v19887_v18, %v16396_v1  ;;  %v15537_v1 = vor.u32 %v19668_v37, %v15534_v3  ;;  %v16181_v18 = vor.u32 %v19833_v41, %v16180_v24  ;;  %v16156_v37 = vld [vmem:[%s30071_s5 + $0xf60] sm:$0xf]  ;;  %v19875_v24 = vld [vmem:[%s30071_s5 + $0x10f4] sm:$0xf0]  ;;  %v16446_v41 = vld [vmem:[%s30071_s5 + $0x11b8] sm:$0xf0]  ;;  %v22516_v59 = vunpack.i.l.s16 %v4161_v33 }
 0x29f   : > { %10774 = vmatpush.bf16.msrb.mxu1 %v16229_v5  ;;  %10787 = vmatpush.bf16.msrb.mxu3 %v16421_v31  ;;  %v16372_v5 = vld [vmem:[%s30071_s5 + $0x1110] sm:$0xf]  ;;  %v16348_v3 = vld [vmem:[%s30071_s5 + $0x10e0] sm:$0xf]  ;;  %v19953_v45 = vld [vmem:[%s30071_s5 + $0x1364] sm:$0xf0] }
 0x2a0   : > { %v16373_v56 = vor.u32 %v19881_v19, %v16372_v5  ;;  %v30104_v5 = vrot.slane %v21400_v47, 1  ;;  %v15940_v31 = vld [vmem:[%s30071_s5 + $0xdb0] sm:$0xf]  ;;  %v19773_v47 = vld [vmem:[%s30071_s5 + $0xdc4] sm:$0xf0]  ;;  %v16349_v33 = vor.u32 %v19875_v24, %v16348_v3 }
 0x2a1   : > { %11064 = vmatpush.bf16.msrb.mxu2 %v15561_v34  ;;  %v16473_v34 = vor.u32 %v19902_v50, %v16470_v2  ;;  %v4140_v2 = vrot.slane %v22203_v40, 3  ;;  %v19869_v3 = vld [vmem:[%s30071_s5 + $0x10c4] sm:$0xf0]  ;;  %v19890_v24 = vld [vmem:[%s30071_s5 + $0x1174] sm:$0xf]  ;;  %v15941_v23 = vor.u32 %v19773_v47, %v15940_v31 }
 0x2a2   : > { %10762 = vmatpush.bf16.msrb.mxu0 %v16013_v44  ;;  %v19779_v44 = vld [vmem:[%s30071_s5 + $0xdf4] sm:$0xf0]  ;;  %v4131_v19 = vsel %vm3852_vm4, %v21535_v38, %v30104_v5  ;;  %v16108_v31 = vld [vmem:[%s30071_s5 + $0xf00] sm:$0xf] }
 0x2a3   : > { %10775 = vmatpush.bf16.msrb.mxu1 %v16205_v13  ;;  %10788 = vmatpush.bf16.msrb.mxu3 %v16397_v58  ;;  %v19827_v13 = vld [vmem:[%s30071_s5 + $0xf74] sm:$0xf0]  ;;  %v19896_v58 = vld [vmem:[%s30071_s5 + $0x11a4] sm:$0xf]  ;;  %v15965_v50 = vor.u32 %v19779_v44, %v15964_v55  ;;  %v19821_v44 = vld [vmem:[%s30071_s5 + $0xf44] sm:$0xf0]  ;;  %v4221_v55 = vunpack.c.l.b16 %v3766_v53 }
 0x2a4   : > { %v16157_v9 = vor.u32 %v19827_v13, %v16156_v37  ;;  %v16324_v37 = vld [vmem:[%s30071_s5 + $0x10b0] sm:$0xf]  ;;  %v30105_v13 = vrot.slane %v21402_v48, 2  ;;  %v16300_v47 = vld [vmem:[%s30071_s5 + $0x1080] sm:$0xf] }
 0x2a5   : > { %11065 = vmatpush.bf16.msrb.mxu2 %v15537_v1  ;;  %v16449_v1 = vor.u32 %v19896_v58, %v16446_v41  ;;  %v16422_v58 = vld [vmem:[%s30071_s5 + $0x1188] sm:$0xf0]  ;;  %v30107_v41 = vrot.slane %v21880_v46, 7  ;;  %v15916_v46 = vld [vmem:[%s30071_s5 + $0xd80] sm:$0xf] }
 0x2a6   : > { %10763 = vmatpush.bf16.msrb.mxu0 %v15989_v43  ;;  %v4347_v43 = vunpack.c.l.b16 %v22481_v7  ;;  %v30106_v7 = vrot.slane %v21554_v25, 1  ;;  %v19947_v40 = vld [vmem:[%s30071_s5 + $0x1334] sm:$0xf0] }
 0x2a7   : > { %10776 = vmatpush.bf16.msrb.mxu1 %v16181_v18  ;;  %10789 = vmatpush.bf16.msrb.mxu3 %v16373_v56  ;;  %v16132_v18 = vld [vmem:[%s30071_s5 + $0xf30] sm:$0xf]  ;;  %v4133_v5 = vsel %vm3855_vm5, %v30107_v41, %v4131_v19  ;;  %v19767_v19 = vld [vmem:[%s30071_s5 + $0xd94] sm:$0xf0] }
 0x2a8   : > { %v4180_v56 = vsel %vm3852_vm4, %v30106_v7, %v30105_v13  ;;  %v30109_v7 = vrot.slane %v21554_v25, 2  ;;  %11066 = vmatmul.bf16.vlgmr.msrb.gmra.mxu2 %v22378_v0  ;;  %v4206_v25 = vrot.slane %v22516_v59, 4  ;;  %v16133_v53 = vor.u32 %v19821_v44, %v16132_v18  ;;  %v19863_v18 = vld [vmem:[%s30071_s5 + $0x1094] sm:$0xf0]  ;;  %v16660_v44 = vld [vmem:[%s30071_s5 + $0x1350] sm:$0xf] }
 0x2a9   : > { %11110 = vmatpush.bf16.msra.mxu2 %v16473_v34  ;;  %v4411_v34 = vunpack.c.l.b16 %v22491_v22  ;;  %v4181_v13 = vsel %vm3855_vm5, %v22290_v15, %v4180_v56  ;;  %v30108_v22 = vrot.slane %v21402_v48, 3  ;;  %v4190_v56 = vrot.slane %v22516_v59, 3 }
 0x2aa   : > { %10764 = vmatpush.bf16.msrb.mxu0 %v15965_v50  ;;  %v19815_v50 = vld [vmem:[%s30071_s5 + $0xf14] sm:$0xf0]  ;;  %v4135_v15 = vsel %vm3858_vm6, %v4134_v36, %v4133_v5  ;;  %v22588_v59 = vunpack.i.l.s16 %v4347_v43  ;;  %v4183_v36 = vsel %vm3858_vm6, %v4182_v6, %v4181_v13  ;;  %v16661_v13 = vor.u32 %v19953_v45, %v16660_v44 }
 0x2ab   : > { %v4196_v38 = vsel %vm3852_vm4, %v30109_v7, %v30108_v22  ;;  %10777 = vmatpush.bf16.msrb.mxu1 %v16157_v9  ;;  %10790 = vmatpush.bf16.msrb.mxu3 %v16349_v33  ;;  %v16325_v9 = vor.u32 %v19869_v3, %v16324_v37  ;;  %v22602_v43 = vunpack.i.l.s16 %v4411_v34  ;;  %v19884_v33 = vld [vmem:[%s30071_s5 + $0x1144] sm:$0xf]  ;;  %v16852_v37 = vld [vmem:[%s30071_s5 + $0x14d0] sm:$0xf]  ;;  %v4185_v6 = vsel %vm3861_vm7, %v4184_v28, %v4183_v36  ;;  %v20043_v44 = vld [vmem:[%s30071_s5 + $0x1634] sm:$0xf0] }
 0x2ac   : > { %v4198_v48 = vsel %vm3855_vm5, %v4197_v8, %v4196_v38  ;;  %v16425_v38 = vor.u32 %v19890_v24, %v16422_v58  ;;  %v22622_v3 = vunpack.i.l.s16 %v4221_v55  ;;  %v15917_v24 = vor.u32 %v19767_v19, %v15916_v46  ;;  %v20001_v58 = vld [vmem:[%s30071_s5 + $0x14e4] sm:$0xf0] }
 0x2ad   : > { %v4199_v8 = vsel %vm3858_vm6, %v22409_v32, %v4198_v48  ;;  %11111 = vmatpush.bf16.msra.mxu2 %v16449_v1  ;;  %v16398_v1 = vld [vmem:[%s30071_s5 + $0x1158] sm:$0xf0]  ;;  %v4137_v32 = vsel %vm3861_vm7, %v4136_v4, %v4135_v15  ;;  %v20049_v4 = vld [vmem:[%s30071_s5 + $0x1664] sm:$0xf0]  ;;  %v30112_v55 = vrot.slane %v22458_v14, 6  ;;  %v16109_v5 = vor.u32 %v19815_v50, %v16108_v31 }
 0x2ae   : > { %v4201_v34 = vsel %vm3861_vm7, %v4200_v12, %v4199_v8  ;;  %10765 = vmatpush.bf16.msrb.mxu0 %v15941_v23  ;;  %v4139_v28 = vsel %vm3864_vm8, %v30110_v60, %v4137_v32  ;;  %v30111_v12 = vrot.slane %v22458_v14, 5  ;;  %v30113_v7 = vrot.slane %v22479_v54, 4  ;;  %v19878_v8 = vld [vmem:[%s30071_s5 + $0x1114] sm:$0xf] }
 0x2af   : > { %v4203_v41 = vsel %vm3864_vm8, %v30112_v55, %v4201_v34  ;;  %10778 = vmatpush.bf16.msrb.mxu1 %v16133_v53  ;;  %v4141_v22 = vsel %vm3867_vm9, %v4140_v2, %v4139_v28  ;;  %10791 = vmatpush.bf16.msrb.mxu3 %v16325_v9  ;;  %v16301_v46 = vor.u32 %v19863_v18, %v16300_v47  ;;  %v30114_v48 = vrot.slane %v22479_v54, 5  ;;  %v16636_v53 = vld [vmem:[%s30071_s5 + $0x1320] sm:$0xf]  ;;  %v16374_v9 = vld [vmem:[%s30071_s5 + $0x1128] sm:$0xf0] }
 0x2b0   : > { %v4187_v23 = vsel %vm3864_vm8, %v30111_v12, %v4185_v6  ;;  %v16401_v19 = vor.u32 %v19884_v33, %v16398_v1  ;;  %v16853_v31 = vor.u32 %v20001_v58, %v16852_v37  ;;  %v17045_v50 = vor.u32 %v20049_v4, %v17044_v21  ;;  %v3774_v33 = vld [vmem:[#allocation2 + $0x34] sm:$0x8]  ;;  %v16612_v34 = vld [vmem:[%s30071_s5 + $0x12f0] sm:$0xf]  ;;  %v3767_v58 = vld [vmem:[#allocation2 + $0x44] sm:$0x4] }
 0x2b1   : > { %v4189_v10 = vsel %vm3867_vm9, %v30113_v7, %v4187_v23  ;;  %11112 = vmatpush.bf16.msra.mxu2 %v16425_v38  ;;  %v4205_v14 = vsel %vm3867_vm9, %v30114_v48, %v4203_v41  ;;  %v30115_v15 = vrot.slane %v22271_v39, 2  ;;  %v16828_v38 = vld [vmem:[%s30071_s5 + $0x14a0] sm:$0xf]  ;;  %v19995_v39 = vld [vmem:[%s30071_s5 + $0x14b4] sm:$0xf0]  ;;  %v16637_v45 = vor.u32 %v19947_v40, %v16636_v53 }
 0x2b2   : > { %v4191_v54 = vsel %vm3870_vm10, %v4190_v56, %v4189_v10  ;;  %10766 = vmatpush.bf16.msrb.mxu0 %v15917_v24  ;;  %v4207_v18 = vsel %vm3870_vm10, %v4206_v25, %v4205_v14  ;;  %v17020_v56 = vld [vmem:[%s30071_s5 + $0x1620] sm:$0xf]  ;;  %v4247_v36 = vrot.slane %v22622_v3, 1  ;;  %v16377_v6 = vor.u32 %v19878_v8, %v16374_v9  ;;  %v19941_v24 = vld [vmem:[%s30071_s5 + $0x1304] sm:$0xf0] }
 0x2b3   : > { %v4143_v47 = vsel %vm3870_vm10, %v30115_v15, %v4141_v22  ;;  %10779 = vmatpush.bf16.msrb.mxu1 %v16109_v5  ;;  %10792 = vmatpush.bf16.msrb.mxu3 %v16301_v46  ;;  %v22686_v32 = vpack.c.b16 %v4191_v54, %v4191_v54  ;;  %v22694_v21 = vpack.c.b16 %v4207_v18, %v4207_v18  ;;  %v19872_v28 = vld [vmem:[%s30071_s5 + $0x10e4] sm:$0xf]  ;;  %v16350_v12 = vld [vmem:[%s30071_s5 + $0x10f8] sm:$0xf0]  ;;  %v16804_v23 = vld [vmem:[%s30071_s5 + $0x1470] sm:$0xf]  ;;  %v4285_v40 = vunpack.c.l.b16 %v3774_v33 }
 0x2b4   : > { %v22684_v37 = vpack.c.b16 %v4143_v47, %v4143_v47  ;;  %v16829_v4 = vor.u32 %v19995_v39, %v16828_v38  ;;  %v17021_v60 = vor.u32 %v20043_v44, %v17020_v56  ;;  %v19989_v55 = vld [vmem:[%s30071_s5 + $0x1484] sm:$0xf0]  ;;  %v16996_v41 = vld [vmem:[%s30071_s5 + $0x15f0] sm:$0xf]  ;;  %v16613_v22 = vor.u32 %v19941_v24, %v16612_v34  ;;  %v3768_v7 = vld [vmem:[#allocation2 + $0x54] sm:$0x4] }
 0x2b5   : > { %11113 = vmatpush.bf16.msra.mxu2 %v16401_v19  ;;  %30116 = vst [vmem:[#allocation7_spill] sm:$0xff] %v22694_v21  ;;  %v20037_v5 = vld [vmem:[%s30071_s5 + $0x1604] sm:$0xf0]  ;;  %v3769_v10 = vld [vmem:[#allocation2 + $0x64] sm:$0x4]  ;;  %v16353_v19 = vor.u32 %v19872_v28, %v16350_v12  ;;  %v4222_v8 = vunpack.c.l.b16 %v3767_v58  ;;  %v4223_v56 = vunpack.c.l.b16 %v3768_v7  ;;  %v30122_v1 = vrot.slane %v21679_v27, 5 }
 0x2b6   : > { %10798 = vmatpush.bf16.msra.mxu0 %v16661_v13  ;;  %10780 = vmatmul.bf16.vlgmr.msrb.gmra.mxu1 %v22686_v32  ;;  %v3775_v13 = vld [vmem:[#allocation2 + $0x44] sm:$0x8]  ;;  %v3776_v46 = vld [vmem:[#allocation2 + $0x54] sm:$0x8]  ;;  %v16588_v48 = vld [vmem:[%s30071_s5 + $0x12c0] sm:$0xf]  ;;  %v4224_v24 = vunpack.c.l.b16 %v3769_v10 }
 0x2b7   : > { %10811 = vmatpush.bf16.msra.mxu1 %v16853_v31  ;;  %10824 = vmatpush.bf16.msra.mxu3 %v17045_v50  ;;  %v19935_v14 = vld [vmem:[%s30071_s5 + $0x12d4] sm:$0xf0]  ;;  %v3770_v53 = vld [vmem:[#allocation2 + $0x74] sm:$0x4]  ;;  %v16805_v31 = vor.u32 %v19989_v55, %v16804_v23  ;;  %v16997_v50 = vor.u32 %v20037_v5, %v16996_v41  ;;  %v16326_v47 = vld [vmem:[%s30071_s5 + $0x10c8] sm:$0xf0] }
 0x2b8   : > { %10767 = vmatmul.bf16.vlgmr.msrb.gmra.mxu0 %v22684_v37  ;;  %10793 = vmatmul.bf16.vlgmr.msrb.gmra.mxu3 %v22694_v21  ;;  %v19866_v15 = vld [vmem:[%s30071_s5 + $0x10b4] sm:$0xf]  ;;  %v16780_v54 = vld [vmem:[%s30071_s5 + $0x1440] sm:$0xf]  ;;  %v19983_v9 = vld [vmem:[%s30071_s5 + $0x1454] sm:$0xf0]  ;;  %v16589_v39 = vor.u32 %v19935_v14, %v16588_v48  ;;  %v4225_v5 = vunpack.c.l.b16 %v3770_v53  ;;  %v22776_v14 = vunpack.i.l.s16 %v4223_v56 }
 0x2b9   : > { %11114 = vmatpush.bf16.msra.mxu2 %v16377_v6  ;;  %v16972_v38 = vld [vmem:[%s30071_s5 + $0x15c0] sm:$0xf]  ;;  %v20031_v18 = vld [vmem:[%s30071_s5 + $0x15d4] sm:$0xf0]  ;;  %v16329_v33 = vor.u32 %v19866_v15, %v16326_v47  ;;  %v16564_v6 = vld [vmem:[%s30071_s5 + $0x1290] sm:$0xf]  ;;  %v16781_v28 = vor.u32 %v19983_v9, %v16780_v54  ;;  %v22786_v47 = vunpack.i.l.s16 %v4224_v24 }
 0x2ba   : > { %10799 = vmatpush.bf16.msra.mxu0 %v16637_v45  ;;  %v4286_v45 = vunpack.c.l.b16 %v3775_v13  ;;  %v19929_v34 = vld [vmem:[%s30071_s5 + $0x12a4] sm:$0xf0]  ;;  %v3778_v58 = vld [vmem:[#allocation2 + $0x74] sm:$0x8]  ;;  %v16973_v12 = vor.u32 %v20031_v18, %v16972_v38  ;;  %v19860_v23 = vld [vmem:[%s30071_s5 + $0x1084] sm:$0xf]  ;;  %v22759_v13 = vunpack.i.l.s16 %v4222_v8 }
 0x2bb   : > { %10812 = vmatpush.bf16.msra.mxu1 %v16829_v4  ;;  %10825 = vmatpush.bf16.msra.mxu3 %v17021_v60  ;;  %v4287_v4 = vunpack.c.l.b16 %v3776_v46  ;;  %v22748_v60 = vunpack.i.l.s16 %v4285_v40  ;;  %v16302_v55 = vld [vmem:[%s30071_s5 + $0x1098] sm:$0xf0]  ;;  %v16756_v41 = vld [vmem:[%s30071_s5 + $0x1410] sm:$0xf]  ;;  %v20025_v10 = vld [vmem:[%s30071_s5 + $0x15a4] sm:$0xf0]  ;;  %v16565_v46 = vor.u32 %v19929_v34, %v16564_v6  ;;  %v4289_v53 = vunpack.c.l.b16 %v3778_v58 }
 0x2bc   : > { %v16948_v7 = vld [vmem:[%s30071_s5 + $0x1590] sm:$0xf]  ;;  %v17238_v48 = vld [vmem:[%s30071_s5 + $0x17e8] sm:$0xf0]  ;;  %v22778_v40 = vunpack.i.l.s16 %v4286_v45  ;;  %v19923_v15 = vld [vmem:[%s30071_s5 + $0x1274] sm:$0xf0] }
 0x2bd   : > { %11115 = vmatpush.bf16.msra.mxu2 %v16353_v19  ;;  %v20094_v19 = vld [vmem:[%s30071_s5 + $0x17d4] sm:$0xf]  ;;  %v22788_v54 = vunpack.i.l.s16 %v4287_v4  ;;  %v4311_v8 = vrot.slane %v22748_v60, 3  ;;  %v16949_v38 = vor.u32 %v20025_v10, %v16948_v7  ;;  %v16732_v18 = vld [vmem:[%s30071_s5 + $0x13e0] sm:$0xf] }
 0x2be   : > { %10800 = vmatpush.bf16.msra.mxu0 %v16613_v22  ;;  %v19977_v22 = vld [vmem:[%s30071_s5 + $0x1424] sm:$0xf0]  ;;  %v3777_v45 = vld [vmem:[#allocation2 + $0x64] sm:$0x8]  ;;  %v19971_v6 = vld [vmem:[%s30071_s5 + $0x13f4] sm:$0xf0] }
 0x2bf   : > { %10813 = vmatpush.bf16.msra.mxu1 %v16805_v31  ;;  %10826 = vmatpush.bf16.msra.mxu3 %v16997_v50  ;;  %v16305_v31 = vor.u32 %v19860_v23, %v16302_v55  ;;  %v16540_v50 = vld [vmem:[%s30071_s5 + $0x1260] sm:$0xf]  ;;  %v16757_v9 = vor.u32 %v19977_v22, %v16756_v41  ;;  %v20019_v24 = vld [vmem:[%s30071_s5 + $0x1574] sm:$0xf0]  ;;  %v20088_v4 = vld [vmem:[%s30071_s5 + $0x17a4] sm:$0xf]  ;;  %v22813_v23 = vunpack.i.l.s16 %v4289_v53  ;;  %v4288_v7 = vunpack.c.l.b16 %v3777_v45 }
 0x2c0   : > { %v16924_v34 = vld [vmem:[%s30071_s5 + $0x1560] sm:$0xf]  ;;  %v16541_v58 = vor.u32 %v19923_v15, %v16540_v50  ;;  %v4313_v55 = vrot.slane %v22778_v40, 2  ;;  %v16516_v41 = vld [vmem:[%s30071_s5 + $0x1230] sm:$0xf]  ;;  %v4315_v10 = vrot.slane %v22788_v54, 1 }
 0x2c1   : > { %11116 = vmatpush.bf16.msra.mxu2 %v16329_v33  ;;  %v17241_v33 = vor.u32 %v20094_v19, %v17238_v48  ;;  %v16925_v19 = vor.u32 %v20019_v24, %v16924_v34  ;;  %v16708_v48 = vld [vmem:[%s30071_s5 + $0x13b0] sm:$0xf]  ;;  %v22829_v50 = vld [vmem:[#allocation2 + $0x28] sm:$0x1]  ;;  %v30120_v24 = vrot.slane %v21583_v51, 4  ;;  %v30125_v53 = vrot.slane %v22374_v35, 4 }
 0x2c2   : > { %10801 = vmatpush.bf16.msra.mxu0 %v16589_v39  ;;  %v22794_v39 = vunpack.i.l.s16 %v4225_v5  ;;  %v19917_v5 = vld [vmem:[%s30071_s5 + $0x1244] sm:$0xf0] }
 0x2c3   : > { %10814 = vmatpush.bf16.msra.mxu1 %v16781_v28  ;;  %10827 = vmatpush.bf16.msra.mxu3 %v16973_v12  ;;  %v17214_v28 = vld [vmem:[%s30071_s5 + $0x17b8] sm:$0xf0]  ;;  %v19965_v45 = vld [vmem:[%s30071_s5 + $0x13c4] sm:$0xf0]  ;;  %v16517_v2 = vor.u32 %v19917_v5, %v16516_v41  ;;  %v19911_v41 = vld [vmem:[%s30071_s5 + $0x1214] sm:$0xf0] }
 0x2c4   : > { %v17217_v15 = vor.u32 %v20088_v4, %v17214_v28  ;;  %v30121_v28 = vrot.slane %v21456_v17, 6  ;;  %v22876_v5 = vld [vmem:[%s30071_s5 + $0x1380] sm:$0xf]  ;;  %v22889_v56 = vld [vmem:[#allocation2 + $0x28] sm:$0x2]  ;;  %v16709_v12 = vor.u32 %v19965_v45, %v16708_v48 }
 0x2c5   : > { %11117 = vmatpush.bf16.msra.mxu2 %v16305_v31  ;;  %v4268_v31 = vrot.slane %v22786_v47, 7  ;;  %v16876_v48 = vld [vmem:[%s30071_s5 + $0x1500] sm:$0xf]  ;;  %v20076_v45 = vld [vmem:[%s30071_s5 + $0x1744] sm:$0xf] }
 0x2c6   : > { %10802 = vmatpush.bf16.msra.mxu0 %v16565_v46  ;;  %v16733_v46 = vor.u32 %v19971_v6, %v16732_v18  ;;  %v30117_v18 = vrot.slane %v21435_v49, 4  ;;  %v30118_v6 = vrot.slane %v21583_v51, 3  ;;  %v4308_v25 = vsel %vm3852_vm4, %v30122_v1, %v30121_v28 }
 0x2c7   : > { %10815 = vmatpush.bf16.msra.mxu1 %v16757_v9  ;;  %10828 = vmatpush.bf16.msra.mxu3 %v16949_v38  ;;  %v16900_v9 = vld [vmem:[%s30071_s5 + $0x1530] sm:$0xf]  ;;  %v20013_v38 = vld [vmem:[%s30071_s5 + $0x1544] sm:$0xf0]  ;;  %v30123_v51 = vrot.slane %v22372_v63, 2  ;;  %v4318_v1 = vrot.slane %v22813_v23, 7  ;;  %v4310_v22 = vsel %vm3855_vm5, %v30125_v53, %v4308_v25 }
 0x2c8   : > { %v4244_v34 = vsel %vm3852_vm4, %v30118_v6, %v30117_v18  ;;  %11118 = vmatmul.bf16.vlgmr.msra.gmra.mxu2 %v22694_v21  ;;  %v20082_v18 = vld [vmem:[%s30071_s5 + $0x1774] sm:$0xf]  ;;  %v16901_v44 = vor.u32 %v20013_v38, %v16900_v9  ;;  %v4312_v25 = vsel %vm3858_vm6, %v4311_v8, %v4310_v22  ;;  %v20007_v53 = vld [vmem:[%s30071_s5 + $0x1514] sm:$0xf0]  ;;  %v30126_v8 = vrot.slane %v22622_v3, 2 }
 0x2c9   : > { %11162 = vmatpush.bf16.msrb.mxu2 %v17241_v33  ;;  %v30119_v33 = vrot.slane %v21435_v49, 5  ;;  %v17190_v49 = vld [vmem:[%s30071_s5 + $0x1788] sm:$0xf0]  ;;  %v4246_v6 = vsel %vm3855_vm5, %v30123_v51, %v4244_v34  ;;  %v22884_v51 = vunpack.i.l.s16 %v4288_v7  ;;  %v20097_v7 = vld [vmem:[%s30071_s5 + $0x17e4] sm:$0xf0]  ;;  %v30127_v3 = vrot.slane %v22776_v14, 7 }
 0x2ca   : > { %10803 = vmatpush.bf16.msra.mxu0 %v16541_v58  ;;  %v16492_v58 = vld [vmem:[%s30071_s5 + $0x1200] sm:$0xf]  ;;  %v4248_v34 = vsel %vm3858_vm6, %v4247_v36, %v4246_v6  ;;  %v19959_v36 = vld [vmem:[%s30071_s5 + $0x1394] sm:$0xf0]  ;;  %v17166_v38 = vld [vmem:[%s30071_s5 + $0x1758] sm:$0xf0] }
 0x2cb   : > { %v4260_v4 = vsel %vm3852_vm4, %v30120_v24, %v30119_v33  ;;  %v4270_v33 = vrot.slane %v22794_v39, 6  ;;  %v30124_v24 = vrot.slane %v22372_v63, 3  ;;  %10816 = vmatpush.bf16.msra.mxu1 %v16733_v46  ;;  %10829 = vmatpush.bf16.msra.mxu3 %v16925_v19  ;;  %v17236_v63 = vld [vmem:[%s30071_s5 + $0x17d0] sm:$0xf]  ;;  %v4348_v46 = vunpack.c.l.b16 %v22829_v50 }
 0x2cc   : > { %v17193_v19 = vor.u32 %v20082_v18, %v17190_v49  ;;  %v4249_v9 = vsel %vm3861_vm7, %v22759_v13, %v4248_v34  ;;  %v4314_v50 = vsel %vm3861_vm7, %v4313_v55, %v4312_v25  ;;  %v20145_v18 = vld [vmem:[%s30071_s5 + $0x1964] sm:$0xf0]  ;;  %v30128_v55 = vrot.slane %v22759_v13, 1 }
 0x2cd   : > { %v4262_v28 = vsel %vm3855_vm5, %v30124_v24, %v4260_v4  ;;  %11163 = vmatpush.bf16.msrb.mxu2 %v17217_v15  ;;  %v16493_v15 = vor.u32 %v19911_v41, %v16492_v58  ;;  %v17428_v4 = vld [vmem:[%s30071_s5 + $0x1950] sm:$0xf]  ;;  %v4251_v49 = vsel %vm3864_vm8, %v30127_v3, %v4249_v9  ;;  %v4316_v6 = vsel %vm3864_vm8, %v4315_v10, %v4314_v50  ;;  %v20193_v34 = vld [vmem:[%s30071_s5 + $0x1ae4] sm:$0xf0]  ;;  %v3782_v9 = vld [vmem:[#allocation2 + $0x38] sm:$0x1] }
 0x2ce   : > { %v4264_v22 = vsel %vm3858_vm6, %v30126_v8, %v4262_v28  ;;  %10804 = vmatpush.bf16.msra.mxu0 %v16517_v2  ;;  %v17237_v58 = vor.u32 %v20097_v7, %v17236_v63  ;;  %v17620_v41 = vld [vmem:[%s30071_s5 + $0x1ad0] sm:$0xf]  ;;  %v30129_v24 = vrot.slane %v22786_v47, 6  ;;  %v4317_v25 = vsel %vm3867_vm9, %v22884_v51, %v4316_v6 }
 0x2cf   : > { %v4266_v2 = vsel %vm3861_vm7, %v30128_v55, %v4264_v22  ;;  %10817 = vmatpush.bf16.msra.mxu1 %v16709_v12  ;;  %10830 = vmatpush.bf16.msra.mxu3 %v16901_v44  ;;  %v16685_v10 = vor.u32 %v19959_v36, %v22876_v5  ;;  %v16877_v63 = vor.u32 %v20007_v53, %v16876_v48  ;;  %v4412_v8 = vunpack.c.l.b16 %v22889_v56  ;;  %v20070_v44 = vld [vmem:[%s30071_s5 + $0x1714] sm:$0xf]  ;;  %v17212_v12 = vld [vmem:[%s30071_s5 + $0x17a0] sm:$0xf]  ;;  %v20091_v56 = vld [vmem:[%s30071_s5 + $0x17b4] sm:$0xf0] }
 0x2d0   : > { %v4253_v28 = vsel %vm3867_vm9, %v30129_v24, %v4251_v49  ;;  %v4267_v13 = vsel %vm3864_vm8, %v22776_v14, %v4266_v2  ;;  %v17169_v47 = vor.u32 %v20076_v45, %v17166_v38  ;;  %v17429_v22 = vor.u32 %v20145_v18, %v17428_v4  ;;  %v17404_v5 = vld [vmem:[%s30071_s5 + $0x1920] sm:$0xf]  ;;  %v20139_v36 = vld [vmem:[%s30071_s5 + $0x1934] sm:$0xf0]  ;;  %v3783_v49 = vld [vmem:[#allocation2 + $0x48] sm:$0x1] }
 0x2d1   : > { %v4269_v7 = vsel %vm3867_vm9, %v4268_v31, %v4267_v13  ;;  %11164 = vmatpush.bf16.msrb.mxu2 %v17193_v19  ;;  %v30130_v50 = vrot.slane %v22794_v39, 5  ;;  %v17621_v31 = vor.u32 %v20193_v34, %v17620_v41  ;;  %v4319_v39 = vsel %vm3870_vm10, %v4318_v1, %v4317_v25  ;;  %v17596_v19 = vld [vmem:[%s30071_s5 + $0x1aa0] sm:$0xf]  ;;  %v20187_v1 = vld [vmem:[%s30071_s5 + $0x1ab4] sm:$0xf0] }
 0x2d2   : > { %v4271_v3 = vsel %vm3870_vm10, %v4270_v33, %v4269_v7  ;;  %10805 = vmatpush.bf16.msra.mxu0 %v16493_v15  ;;  %v17142_v33 = vld [vmem:[%s30071_s5 + $0x1728] sm:$0xf0]  ;;  %v4327_v48 = vrot.slane %v22748_v60, 4  ;;  %v4349_v53 = vunpack.c.l.b16 %v3782_v9  ;;  %v22981_v45 = vunpack.i.l.s16 %v4348_v46  ;;  %v22988_v55 = vld [vmem:[#allocation2 + $0x58] sm:$0x1] }
 0x2d3   : > { %v4255_v14 = vsel %vm3870_vm10, %v30130_v50, %v4253_v28  ;;  %10818 = vmatpush.bf16.msra.mxu1 %v16685_v10  ;;  %10831 = vmatpush.bf16.msra.mxu3 %v16877_v63  ;;  %v22986_v4 = vpack.c.b16 %v4271_v3, %v4271_v3  ;;  %v17213_v18 = vor.u32 %v20091_v56, %v17212_v12  ;;  %v22990_v2 = vunpack.i.l.s16 %v4412_v8  ;;  %v20064_v41 = vld [vmem:[%s30071_s5 + $0x16e4] sm:$0xf]  ;;  %v17188_v34 = vld [vmem:[%s30071_s5 + $0x1770] sm:$0xf]  ;;  %v20085_v24 = vld [vmem:[%s30071_s5 + $0x1784] sm:$0xf0] }
 0x2d4   : > { %v22984_v38 = vpack.c.b16 %v4255_v14, %v4255_v14  ;;  %v22992_v6 = vpack.c.b16 %v4319_v39, %v4319_v39  ;;  %v17145_v46 = vor.u32 %v20070_v44, %v17142_v33  ;;  %v17597_v28 = vor.u32 %v20187_v1, %v17596_v19  ;;  %v17118_v13 = vld [vmem:[%s30071_s5 + $0x16f8] sm:$0xf0]  ;;  %v17380_v25 = vld [vmem:[%s30071_s5 + $0x18f0] sm:$0xf]  ;;  %v20133_v10 = vld [vmem:[%s30071_s5 + $0x1904] sm:$0xf0] }
 0x2d5   : > { %11165 = vmatpush.bf16.msrb.mxu2 %v17169_v47  ;;  %v17572_v63 = vld [vmem:[%s30071_s5 + $0x1a70] sm:$0xf]  ;;  %v20181_v7 = vld [vmem:[%s30071_s5 + $0x1a84] sm:$0xf0]  ;;  %v23021_v9 = vunpack.i.l.s16 %v4349_v53  ;;  %v4372_v8 = vrot.slane %v22981_v45, 6  ;;  %v4388_v47 = vrot.slane %v22981_v45, 7  ;;  %v4350_v3 = vunpack.c.l.b16 %v3783_v49 }
 0x2d6   : > { %10837 = vmatpush.bf16.msrb.mxu0 %v17237_v58  ;;  %v17405_v58 = vor.u32 %v20139_v36, %v17404_v5  ;;  %10819 = vmatmul.bf16.vlgmr.msra.gmra.mxu1 %v22986_v4  ;;  %v4329_v50 = vrot.slane %v22778_v40, 3  ;;  %v3785_v14 = vld [vmem:[#allocation2 + $0x68] sm:$0x1]  ;;  %v4453_v44 = vrot.slane %v22990_v2, 1  ;;  %v17121_v12 = vor.u32 %v20064_v41, %v17118_v13  ;;  %v17164_v39 = vld [vmem:[%s30071_s5 + $0x1740] sm:$0xf] }
 0x2d7   : > { %10850 = vmatpush.bf16.msrb.mxu1 %v17429_v22  ;;  %10863 = vmatpush.bf16.msrb.mxu3 %v17621_v31  ;;  %v17189_v22 = vor.u32 %v20085_v24, %v17188_v34  ;;  %v17381_v56 = vor.u32 %v20133_v10, %v17380_v25  ;;  %v20058_v31 = vld [vmem:[%s30071_s5 + $0x16b4] sm:$0xf]  ;;  %v20079_v40 = vld [vmem:[%s30071_s5 + $0x1754] sm:$0xf0]  ;;  %v4351_v33 = vunpack.c.l.b16 %v22988_v55  ;;  %v17573_v5 = vor.u32 %v20181_v7, %v17572_v63  ;;  %v17094_v36 = vld [vmem:[%s30071_s5 + $0x16c8] sm:$0xf0] }
 0x2d8   : > { %10806 = vmatmul.bf16.vlgmr.msra.gmra.mxu0 %v22984_v38  ;;  %10832 = vmatmul.bf16.vlgmr.msra.gmra.mxu3 %v22992_v6  ;;  %v17356_v19 = vld [vmem:[%s30071_s5 + $0x18c0] sm:$0xf]  ;;  %v20127_v1 = vld [vmem:[%s30071_s5 + $0x18d4] sm:$0xf0]  ;;  %v30131_v53 = vrot.slane %v21456_v17, 7  ;;  %v4374_v34 = vrot.slane %v23021_v9, 5  ;;  %v23067_v10 = vunpack.i.l.s16 %v4350_v3 }
 0x2d9   : > { %11166 = vmatpush.bf16.msrb.mxu2 %v17145_v46  ;;  %v17548_v55 = vld [vmem:[%s30071_s5 + $0x1a40] sm:$0xf]  ;;  %v20175_v46 = vld [vmem:[%s30071_s5 + $0x1a54] sm:$0xf0]  ;;  %v4390_v17 = vrot.slane %v23021_v9, 6  ;;  %v4333_v13 = vrot.slane %v22884_v51, 1  ;;  %v17357_v63 = vor.u32 %v20127_v1, %v17356_v19  ;;  %v4352_v51 = vunpack.c.l.b16 %v3785_v14 }
 0x2da   : > { %10838 = vmatpush.bf16.msrb.mxu0 %v17213_v18  ;;  %v30132_v18 = vrot.slane %v21679_v27, 6  ;;  %v17165_v27 = vor.u32 %v20079_v40, %v17164_v39  ;;  %v20052_v24 = vld [vmem:[%s30071_s5 + $0x1684] sm:$0xf]  ;;  %v3786_v25 = vld [vmem:[#allocation2 + $0x78] sm:$0x1]  ;;  %v23078_v39 = vunpack.i.l.s16 %v4351_v33  ;;  %v17549_v3 = vor.u32 %v20175_v46, %v17548_v55 }
 0x2db   : > { %10851 = vmatpush.bf16.msrb.mxu1 %v17405_v58  ;;  %10864 = vmatpush.bf16.msrb.mxu3 %v17597_v28  ;;  %v30133_v58 = vrot.slane %v22374_v35, 5  ;;  %v4331_v28 = vrot.slane %v22788_v54, 2  ;;  %v17097_v35 = vor.u32 %v20058_v31, %v17094_v36  ;;  %v17070_v7 = vld [vmem:[%s30071_s5 + $0x1698] sm:$0xf0]  ;;  %v20073_v54 = vld [vmem:[%s30071_s5 + $0x1724] sm:$0xf0]  ;;  %v4353_v1 = vunpack.c.l.b16 %v3786_v25 }
 0x2dc   : > { %v4324_v49 = vsel %vm3852_vm4, %v30132_v18, %v30131_v53  ;;  %v17524_v31 = vld [vmem:[%s30071_s5 + $0x1a10] sm:$0xf]  ;;  %v20169_v40 = vld [vmem:[%s30071_s5 + $0x1a24] sm:$0xf0]  ;;  %v20286_v33 = vld [vmem:[%s30071_s5 + $0x1dd4] sm:$0xf]  ;;  %v17073_v53 = vor.u32 %v20052_v24, %v17070_v7 }
 0x2dd   : > { %v4326_v41 = vsel %vm3855_vm5, %v30133_v58, %v4324_v49  ;;  %11167 = vmatpush.bf16.msrb.mxu2 %v17121_v12  ;;  %v17332_v12 = vld [vmem:[%s30071_s5 + $0x1890] sm:$0xf]  ;;  %v17116_v49 = vld [vmem:[%s30071_s5 + $0x16e0] sm:$0xf]  ;;  %v20067_v55 = vld [vmem:[%s30071_s5 + $0x16f4] sm:$0xf0]  ;;  %v17525_v58 = vor.u32 %v20169_v40, %v17524_v31 }
 0x2de   : > { %10839 = vmatpush.bf16.msrb.mxu0 %v17189_v22  ;;  %v17140_v22 = vld [vmem:[%s30071_s5 + $0x1710] sm:$0xf]  ;;  %v4328_v14 = vsel %vm3858_vm6, %v4327_v48, %v4326_v41  ;;  %v4376_v48 = vrot.slane %v23067_v10, 4  ;;  %v4378_v46 = vrot.slane %v23078_v39, 3  ;;  %v17308_v24 = vld [vmem:[%s30071_s5 + $0x1860] sm:$0xf] }
 0x2df   : > { %10852 = vmatpush.bf16.msrb.mxu1 %v17381_v56  ;;  %10865 = vmatpush.bf16.msrb.mxu3 %v17573_v5  ;;  %v20121_v56 = vld [vmem:[%s30071_s5 + $0x18a4] sm:$0xf0]  ;;  %v18006_v5 = vld [vmem:[%s30071_s5 + $0x1de8] sm:$0xf0]  ;;  %v4330_v36 = vsel %vm3861_vm7, %v4329_v50, %v4328_v14  ;;  %v17141_v19 = vor.u32 %v20073_v54, %v17140_v22  ;;  %v23110_v50 = vunpack.i.l.s16 %v4352_v51  ;;  %v17500_v25 = vld [vmem:[%s30071_s5 + $0x19e0] sm:$0xf]  ;;  %v17117_v22 = vor.u32 %v20067_v55, %v17116_v49 }
 0x2e0   : > { %v4332_v60 = vsel %vm3864_vm8, %v4331_v28, %v4330_v36  ;;  %v17333_v18 = vor.u32 %v20121_v56, %v17332_v12  ;;  %v18009_v41 = vor.u32 %v20286_v33, %v18006_v5  ;;  %v20115_v28 = vld [vmem:[%s30071_s5 + $0x1874] sm:$0xf0]  ;;  %v17982_v7 = vld [vmem:[%s30071_s5 + $0x1db8] sm:$0xf0]  ;;  %v23134_v54 = vunpack.i.l.s16 %v4353_v1  ;;  %v17092_v12 = vld [vmem:[%s30071_s5 + $0x16b0] sm:$0xf] }
 0x2e1   : > { %11168 = vmatpush.bf16.msrb.mxu2 %v17097_v35  ;;  %v4392_v51 = vrot.slane %v23067_v10, 5  ;;  %v20061_v56 = vld [vmem:[%s30071_s5 + $0x16c4] sm:$0xf0]  ;;  %v4380_v31 = vrot.slane %v23110_v50, 2  ;;  %v4396_v14 = vrot.slane %v23110_v50, 3 }
 0x2e2   : > { %10840 = vmatpush.bf16.msrb.mxu0 %v17165_v27  ;;  %v4334_v27 = vsel %vm3867_vm9, %v4333_v13, %v4332_v60  ;;  %v20280_v13 = vld [vmem:[%s30071_s5 + $0x1da4] sm:$0xf]  ;;  %v17284_v36 = vld [vmem:[%s30071_s5 + $0x1830] sm:$0xf]  ;;  %v23157_v1 = vld [vmem:[#allocation2 + $0x8] sm:$0x4] }
 0x2e3   : > { %10853 = vmatpush.bf16.msrb.mxu1 %v17357_v63  ;;  %10866 = vmatpush.bf16.msrb.mxu3 %v17549_v3  ;;  %v4335_v35 = vsel %vm3870_vm10, %v22813_v23, %v4334_v27  ;;  %v20163_v63 = vld [vmem:[%s30071_s5 + $0x19f4] sm:$0xf0]  ;;  %v4394_v23 = vrot.slane %v23078_v39, 4  ;;  %v17309_v3 = vor.u32 %v20115_v28, %v17308_v24  ;;  %v17985_v5 = vor.u32 %v20280_v13, %v17982_v7  ;;  %v17476_v60 = vld [vmem:[%s30071_s5 + $0x19b0] sm:$0xf] }
 0x2e4   : > { %v23146_v40 = vpack.c.b16 %v4335_v35, %v4335_v35  ;;  %v17501_v33 = vor.u32 %v20163_v63, %v17500_v25  ;;  %v17958_v49 = vld [vmem:[%s30071_s5 + $0x1d88] sm:$0xf0]  ;;  %v23168_v55 = vld [vmem:[#allocation2 + $0x48] sm:$0x2]  ;;  %v20055_v27 = vld [vmem:[%s30071_s5 + $0x1694] sm:$0xf0] }
 0x2e5   : > { %11169 = vmatpush.bf16.msrb.mxu2 %v17073_v53  ;;  %v20157_v53 = vld [vmem:[%s30071_s5 + $0x19c4] sm:$0xf0]  ;;  %v30135_v24 = vrot.slane %v22588_v59, 7  ;;  %v4382_v25 = vrot.slane %v23134_v54, 1  ;;  %v4398_v35 = vrot.slane %v23134_v54, 2  ;;  %v30136_v54 = vrot.slane %v21708_v11, 1 }
 0x2e6   : > { %10841 = vmatpush.bf16.msrb.mxu0 %v17141_v19  ;;  %30134 = vst [vmem:[#allocation8_spill] sm:$0xff] %v23146_v40  ;;  %v20109_v19 = vld [vmem:[%s30071_s5 + $0x1844] sm:$0xf0]  ;;  %v17260_v13 = vld [vmem:[%s30071_s5 + $0x1800] sm:$0xf] }
 0x2e7   : > { %10854 = vmatpush.bf16.msrb.mxu1 %v17333_v18  ;;  %10867 = vmatpush.bf16.msrb.mxu3 %v17525_v58  ;;  %v20274_v18 = vld [vmem:[%s30071_s5 + $0x1d74] sm:$0xf]  ;;  %v17093_v58 = vor.u32 %v20061_v56, %v17092_v12  ;;  %v4371_v28 = vsel %vm3852_vm4, %v30135_v24, %v21708_v11  ;;  %v17285_v63 = vor.u32 %v20109_v19, %v17284_v36  ;;  %v20103_v7 = vld [vmem:[%s30071_s5 + $0x1814] sm:$0xf0]  ;;  %v17812_v15 = vld [vmem:[%s30071_s5 + $0x1c50] sm:$0xf] }
 0x2e8   : > { %11170 = vmatmul.bf16.vlgmr.msrb.gmra.mxu2 %v23146_v40  ;;  %v4373_v12 = vsel %vm3855_vm5, %v4372_v8, %v4371_v28  ;;  %v23201_v56 = vld [vmem:[#allocation2 + $0x58] sm:$0x2]  ;;  %v17477_v36 = vor.u32 %v20157_v53, %v17476_v60  ;;  %v17961_v19 = vor.u32 %v20274_v18, %v17958_v49  ;;  %v20241_v11 = vld [vmem:[%s30071_s5 + $0x1c64] sm:$0xf0]  ;;  %v20268_v8 = vld [vmem:[%s30071_s5 + $0x1d44] sm:$0xf] }
 0x2e9   : > { %11214 = vmatpush.bf16.msra.mxu2 %v18009_v41  ;;  %v17068_v41 = vld [vmem:[%s30071_s5 + $0x1680] sm:$0xf]  ;;  %v20151_v24 = vld [vmem:[%s30071_s5 + $0x1994] sm:$0xf0]  ;;  %v4375_v60 = vsel %vm3858_vm6, %v4374_v34, %v4373_v12  ;;  %v20289_v18 = vld [vmem:[%s30071_s5 + $0x1de4] sm:$0xf0] }
 0x2ea   : > { %10842 = vmatpush.bf16.msrb.mxu0 %v17117_v22  ;;  %v23192_v22 = vld [vmem:[%s30071_s5 + $0x1980] sm:$0xf]  ;;  %v17069_v53 = vor.u32 %v20055_v27, %v17068_v41  ;;  %v18196_v49 = vld [vmem:[%s30071_s5 + $0x1f50] sm:$0xf]  ;;  %v20337_v34 = vld [vmem:[%s30071_s5 + $0x1f64] sm:$0xf0]  ;;  %v4377_v9 = vsel %vm3861_vm7, %v4376_v48, %v4375_v60  ;;  %v17813_v41 = vor.u32 %v20241_v11, %v17812_v15 }
 0x2eb   : > { %10855 = vmatpush.bf16.msrb.mxu1 %v17309_v3  ;;  %v4387_v3 = vsel %vm3852_vm4, %v22588_v59, %v30136_v54  ;;  %10868 = vmatpush.bf16.msrb.mxu3 %v17501_v33  ;;  %v17934_v33 = vld [vmem:[%s30071_s5 + $0x1d58] sm:$0xf0]  ;;  %v4379_v27 = vsel %vm3864_vm8, %v4378_v46, %v4377_v9  ;;  %v3790_v12 = vld [vmem:[#allocation2 + $0x38] sm:$0x2]  ;;  %v3793_v54 = vld [vmem:[#allocation2 + $0x68] sm:$0x2]  ;;  %v17453_v48 = vor.u32 %v20151_v24, %v23192_v22 }
 0x2ec   : > { %v4389_v59 = vsel %vm3855_vm5, %v4388_v47, %v4387_v3  ;;  %v4474_v47 = vunpack.c.l.b16 %v23157_v1  ;;  %v4414_v1 = vunpack.c.l.b16 %v23168_v55  ;;  %v3796_v10 = vld [vmem:[#allocation2 + $0x18] sm:$0x4]  ;;  %v4381_v15 = vsel %vm3867_vm9, %v4380_v31, %v4379_v27  ;;  %v17788_v46 = vld [vmem:[%s30071_s5 + $0x1c20] sm:$0xf]  ;;  %v20262_v31 = vld [vmem:[%s30071_s5 + $0x1d14] sm:$0xf] }
 0x2ed   : > { %11215 = vmatpush.bf16.msra.mxu2 %v17985_v5  ;;  %v18004_v5 = vld [vmem:[%s30071_s5 + $0x1dd0] sm:$0xf]  ;;  %v4391_v45 = vsel %vm3858_vm6, %v4390_v17, %v4389_v59  ;;  %v20235_v39 = vld [vmem:[%s30071_s5 + $0x1c34] sm:$0xf0]  ;;  %v4415_v55 = vunpack.c.l.b16 %v23201_v56  ;;  %v17910_v3 = vld [vmem:[%s30071_s5 + $0x1d28] sm:$0xf0]  ;;  %v4416_v59 = vunpack.c.l.b16 %v3793_v54 }
 0x2ee   : > { %10843 = vmatpush.bf16.msrb.mxu0 %v17093_v58  ;;  %v4393_v17 = vsel %vm3861_vm7, %v4392_v51, %v4391_v45  ;;  %v17261_v58 = vor.u32 %v20103_v7, %v17260_v13  ;;  %v17937_v51 = vor.u32 %v20268_v8, %v17934_v33  ;;  %v18197_v13 = vor.u32 %v20337_v34, %v18196_v49  ;;  %v17980_v56 = vld [vmem:[%s30071_s5 + $0x1da0] sm:$0xf]  ;;  %v20283_v50 = vld [vmem:[%s30071_s5 + $0x1db4] sm:$0xf0]  ;;  %v17764_v60 = vld [vmem:[%s30071_s5 + $0x1bf0] sm:$0xf] }
 0x2ef   : > { %10856 = vmatpush.bf16.msrb.mxu1 %v17285_v63  ;;  %v4395_v28 = vsel %vm3864_vm8, %v4394_v23, %v4393_v17  ;;  %10869 = vmatpush.bf16.msrb.mxu3 %v17477_v36  ;;  %v3794_v23 = vld [vmem:[#allocation2 + $0x78] sm:$0x2]  ;;  %v18005_v63 = vor.u32 %v20289_v18, %v18004_v5  ;;  %v4383_v7 = vsel %vm3870_vm10, %v4382_v25, %v4381_v15  ;;  %v23285_v24 = vunpack.i.l.s16 %v4474_v47  ;;  %v20229_v45 = vld [vmem:[%s30071_s5 + $0x1c04] sm:$0xf0]  ;;  %v20256_v17 = vld [vmem:[%s30071_s5 + $0x1ce4] sm:$0xf] }
 0x2f0   : > { %v4397_v22 = vsel %vm3867_vm9, %v4396_v14, %v4395_v28  ;;  %v18172_v14 = vld [vmem:[%s30071_s5 + $0x1f20] sm:$0xf]  ;;  %v20331_v25 = vld [vmem:[%s30071_s5 + $0x1f34] sm:$0xf0]  ;;  %v17789_v11 = vor.u32 %v20235_v39, %v17788_v46  ;;  %v4475_v8 = vunpack.c.l.b16 %v3796_v10  ;;  %v23289_v33 = vpack.c.b16 %v4383_v7, %v4383_v7  ;;  %v23299_v18 = vld [vmem:[#allocation2 + $0x28] sm:$0x4] }
 0x2f1   : > { %11216 = vmatpush.bf16.msra.mxu2 %v17961_v19  ;;  %v4399_v36 = vsel %vm3870_vm10, %v4398_v35, %v4397_v22  ;;  %v4413_v19 = vunpack.c.l.b16 %v3790_v12  ;;  %v23287_v35 = vunpack.i.l.s16 %v4414_v1  ;;  %v17913_v5 = vor.u32 %v20262_v31, %v17910_v3  ;;  %v17886_v1 = vld [vmem:[%s30071_s5 + $0x1cf8] sm:$0xf0]  ;;  %v18148_v27 = vld [vmem:[%s30071_s5 + $0x1ef0] sm:$0xf]  ;;  %v20325_v28 = vld [vmem:[%s30071_s5 + $0x1f04] sm:$0xf0] }
 0x2f2   : > { %10844 = vmatpush.bf16.msrb.mxu0 %v17069_v53  ;;  %v4417_v47 = vunpack.c.l.b16 %v3794_v23  ;;  %v23297_v53 = vunpack.i.l.s16 %v4415_v55  ;;  %v23301_v49 = vpack.c.b16 %v4399_v36, %v4399_v36  ;;  %v17981_v34 = vor.u32 %v20283_v50, %v17980_v56  ;;  %v23333_v46 = vld [vmem:[#allocation2 + $0x38] sm:$0x4]  ;;  %v3803_v55 = vld [vmem:[#allocation2 + $0x8] sm:$0x8]  ;;  %v10651_v50 = vpop.f32.mrf.mxu0 }
 0x2f3   : > { %10857 = vmatpush.bf16.msrb.mxu1 %v17261_v58  ;;  %10870 = vmatpush.bf16.msrb.mxu3 %v17453_v48  ;;  %v18173_v9 = vor.u32 %v20331_v25, %v18172_v14  ;;  %v17956_v58 = vld [vmem:[%s30071_s5 + $0x1d70] sm:$0xf]  ;;  %v23323_v12 = vunpack.i.l.s16 %v4413_v19  ;;  %v30137_v54 = vrot.slane %v21717_v52, 3  ;;  %v30138_v10 = vrot.slane %v22602_v43, 2  ;;  %v20223_v7 = vld [vmem:[%s30071_s5 + $0x1bd4] sm:$0xf0]  ;;  %v10664_v14 = vpop.f32.mrf.mxu1 }
 0x2f4   : > { %v23331_v15 = vunpack.i.l.s16 %v4416_v59  ;;  %v23335_v39 = vunpack.i.l.s16 %v4475_v8  ;;  %v4498_v23 = vrot.slane %v23285_v24, 4  ;;  %v23344_v22 = vunpack.i.l.s16 %v4417_v47  ;;  %v20250_v25 = vld [vmem:[%s30071_s5 + $0x1cb4] sm:$0xf]  ;;  %v17862_v19 = vld [vmem:[%s30071_s5 + $0x1cc8] sm:$0xf0] }
 0x2f5   : > { %11217 = vmatpush.bf16.msra.mxu2 %v17937_v51  ;;  %10845 = vmatmul.bf16.vlgmr.msrb.gmra.mxu0 %v23146_v40  ;;  %v4452_v48 = vsel %vm3852_vm4, %v30138_v10, %v30137_v54  ;;  %v17765_v51 = vor.u32 %v20229_v45, %v17764_v60  ;;  %v4456_v31 = vrot.slane %v23287_v35, 7  ;;  %v4458_v3 = vrot.slane %v23297_v53, 6  ;;  %v20271_v60 = vld [vmem:[%s30071_s5 + $0x1d54] sm:$0xf0]  ;;  %v18124_v45 = vld [vmem:[%s30071_s5 + $0x1ec0] sm:$0xf] }
 0x2f6   : > { %10876 = vmatpush.bf16.msra.mxu0 %v17813_v41  ;;  %10858 = vmatmul.bf16.vlgmr.msrb.gmra.mxu1 %v23289_v33  ;;  %v20277_v41 = vld [vmem:[%s30071_s5 + $0x1d84] sm:$0xf0]  ;;  %v18149_v36 = vor.u32 %v20325_v28, %v18148_v27  ;;  %v4454_v59 = vsel %vm3855_vm5, %v4453_v44, %v4452_v48  ;;  %v4476_v8 = vunpack.c.l.b16 %v23299_v18  ;;  %v20319_v47 = vld [vmem:[%s30071_s5 + $0x1ed4] sm:$0xf0]  ;;  %v4460_v18 = vrot.slane %v23331_v15, 5 }
 0x2f7   : > { %10889 = vmatpush.bf16.msra.mxu1 %v18005_v63  ;;  %10902 = vmatpush.bf16.msra.mxu3 %v18197_v13  ;;  %v17889_v63 = vor.u32 %v20256_v17, %v17886_v1  ;;  %v17740_v13 = vld [vmem:[%s30071_s5 + $0x1bc0] sm:$0xf]  ;;  %v17957_v56 = vor.u32 %v20277_v41, %v17956_v58  ;;  %v4438_v17 = vrot.slane %v23323_v12, 7  ;;  %v4440_v1 = vrot.slane %v23287_v35, 6  ;;  %v23375_v58 = vld [vmem:[#allocation2 + $0x58] sm:$0x4] }
 0x2f8   : > { %10871 = vmatmul.bf16.vlgmr.msrb.gmra.mxu3 %v23301_v49  ;;  %v17741_v44 = vor.u32 %v20223_v7, %v17740_v13  ;;  %v17865_v41 = vor.u32 %v20250_v25, %v17862_v19  ;;  %v17716_v27 = vld [vmem:[%s30071_s5 + $0x1b90] sm:$0xf]  ;;  %v20217_v28 = vld [vmem:[%s30071_s5 + $0x1ba4] sm:$0xf0]  ;;  %v4462_v54 = vrot.slane %v23344_v22, 4  ;;  %v4477_v10 = vunpack.c.l.b16 %v23333_v46 }
 0x2f9   : > { %11218 = vmatpush.bf16.msra.mxu2 %v17913_v5  ;;  %v10665_v5 = vadd.f32 %v10664_v14, %v10651_v50  ;;  %v17838_v13 = vld [vmem:[%s30071_s5 + $0x1c98] sm:$0xf0]  ;;  %v17908_v7 = vld [vmem:[%s30071_s5 + $0x1d10] sm:$0xf]  ;;  %v23396_v50 = vunpack.i.l.s16 %v4476_v8  ;;  %v20313_v14 = vld [vmem:[%s30071_s5 + $0x1ea4] sm:$0xf0] }
 0x2fa   : > { %10877 = vmatpush.bf16.msra.mxu0 %v17789_v11  ;;  %v17932_v11 = vld [vmem:[%s30071_s5 + $0x1d40] sm:$0xf]  ;;  %v23408_v19 = vld [vmem:[#allocation2 + $0x48] sm:$0x4]  ;;  %v18388_v35 = vld [vmem:[%s30071_s5 + $0x20d0] sm:$0xf] }
 0x2fb   : > { %10890 = vmatpush.bf16.msra.mxu1 %v17981_v34  ;;  %10903 = vmatpush.bf16.msra.mxu3 %v18173_v9  ;;  %v4455_v34 = vsel %vm3858_vm6, %v23323_v12, %v4454_v59  ;;  %v4538_v9 = vunpack.c.l.b16 %v3803_v55  ;;  %v18125_v55 = vor.u32 %v20319_v47, %v18124_v45  ;;  %v18774_v59 = vld [vmem:[%s30071_s5 + $0x23e8] sm:$0xf0]  ;;  %v10677_v47 = vpop.f32.mrf.mxu3  ;;  %v23522_v12 = vld [vmem:[%s30071_s5 + $0x1e00] sm:$0xf] }
 0x2fc   : > { %v4457_v46 = vsel %vm3861_vm7, %v4456_v31, %v4455_v34  ;;  %v17717_v31 = vor.u32 %v20217_v28, %v17716_v27  ;;  %v20211_v27 = vld [vmem:[%s30071_s5 + $0x1b74] sm:$0xf0] }
 0x2fd   : > { %11219 = vmatpush.bf16.msra.mxu2 %v17889_v63  ;;  %v20244_v63 = vld [vmem:[%s30071_s5 + $0x1c84] sm:$0xf]  ;;  %v4459_v25 = vsel %vm3864_vm8, %v4458_v3, %v4457_v46  ;;  %v23417_v45 = vunpack.i.l.s16 %v4538_v9  ;;  %v3802_v28 = vld [vmem:[#allocation2 + $0x78] sm:$0x4]  ;;  %v4479_v46 = vunpack.c.l.b16 %v23375_v58  ;;  %v23429_v9 = vadd.f32 %v10677_v47, %v10665_v5  ;;  %v18076_v5 = vld [vmem:[%s30071_s5 + $0x1e60] sm:$0xf] }
 0x2fe   : > { %10878 = vmatpush.bf16.msra.mxu0 %v17765_v51  ;;  %v17933_v51 = vor.u32 %v20271_v60, %v17932_v11  ;;  %v20478_v11 = vld [vmem:[%s30071_s5 + $0x23d4] sm:$0xf]  ;;  %v4461_v8 = vsel %vm3867_vm9, %v4460_v18, %v4459_v25  ;;  %v3801_v60 = vld [vmem:[#allocation2 + $0x68] sm:$0x4]  ;;  %v17841_v3 = vor.u32 %v20244_v63, %v17838_v13  ;;  %v23427_v18 = vunpack.i.l.s16 %v4477_v10  ;;  %v10666_v13 = vpop.f32.mrf.mxu1  ;;  %v17884_v25 = vld [vmem:[%s30071_s5 + $0x1ce0] sm:$0xf] }
 0x2ff   : > { %10891 = vmatpush.bf16.msra.mxu1 %v17957_v56  ;;  %10904 = vmatpush.bf16.msra.mxu3 %v18149_v36  ;;  %v20265_v56 = vld [vmem:[%s30071_s5 + $0x1d24] sm:$0xf0]  ;;  %v18100_v36 = vld [vmem:[%s30071_s5 + $0x1e90] sm:$0xf]  ;;  %v4463_v34 = vsel %vm3870_vm10, %v4462_v54, %v4461_v8  ;;  %v10653_v54 = vpop.f32.mrf.mxu0  ;;  %v18777_v48 = vor.u32 %v20478_v11, %v18774_v59  ;;  %v20259_v58 = vld [vmem:[%s30071_s5 + $0x1cf4] sm:$0xf0]  ;;  %v4481_v47 = vunpack.c.l.b16 %v3802_v28 }
 0x300   : > { %v18101_v63 = vor.u32 %v20313_v14, %v18100_v36  ;;  %v20307_v10 = vld [vmem:[%s30071_s5 + $0x1e74] sm:$0xf0]  ;;  %v18750_v36 = vld [vmem:[%s30071_s5 + $0x23b8] sm:$0xf0]  ;;  %v30139_v14 = vrot.slane %v21717_v52, 2  ;;  %v30140_v11 = vrot.slane %v22602_v43, 1  ;;  %v17885_v28 = vor.u32 %v20259_v58, %v17884_v25 }
 0x301   : > { %11220 = vmatpush.bf16.msra.mxu2 %v17865_v41  ;;  %v17909_v41 = vor.u32 %v20265_v56, %v17908_v7  ;;  %v20472_v56 = vld [vmem:[%s30071_s5 + $0x23a4] sm:$0xf]  ;;  %v23458_v54 = vld [vmem:[#allocation2 + $0x28] sm:$0x8]  ;;  %v4442_v43 = vrot.slane %v23297_v53, 5  ;;  %v4503_v53 = vrot.slane %v23427_v18, 1 }
 0x302   : > { %10879 = vmatpush.bf16.msra.mxu0 %v17741_v44  ;;  %v17692_v44 = vld [vmem:[%s30071_s5 + $0x1b60] sm:$0xf]  ;;  %v4436_v59 = vsel %vm3852_vm4, %v30140_v11, %v30139_v14  ;;  %v20205_v52 = vld [vmem:[%s30071_s5 + $0x1b44] sm:$0xf0]  ;;  %v4444_v14 = vrot.slane %v23331_v15, 4 }
 0x303   : > { %10892 = vmatpush.bf16.msra.mxu1 %v17933_v51  ;;  %10905 = vmatpush.bf16.msra.mxu3 %v18125_v55  ;;  %v4480_v51 = vunpack.c.l.b16 %v3801_v60  ;;  %v23444_v55 = vld [vmem:[#allocation2 + $0x18] sm:$0x8]  ;;  %v17693_v7 = vor.u32 %v20211_v27, %v17692_v44  ;;  %v4478_v60 = vunpack.c.l.b16 %v23408_v19  ;;  %v17668_v44 = vld [vmem:[%s30071_s5 + $0x1b30] sm:$0xf]  ;;  %v23469_v27 = vunpack.i.l.s16 %v4479_v46  ;;  %v20253_v13 = vld [vmem:[%s30071_s5 + $0x1cc4] sm:$0xf0] }
 0x304   : > { %v18753_v46 = vor.u32 %v20472_v56, %v18750_v36  ;;  %v20466_v25 = vld [vmem:[%s30071_s5 + $0x2374] sm:$0xf]  ;;  %v4437_v58 = vsel %vm3855_vm5, %v22990_v2, %v4436_v59  ;;  %v20199_v56 = vld [vmem:[%s30071_s5 + $0x1b14] sm:$0xf0]  ;;  %v10679_v36 = vpop.f32.mrf.mxu3  ;;  %v23512_v11 = vld [vmem:[%s30071_s5 + $0x1c80] sm:$0xf] }
 0x305   : > { %11221 = vmatpush.bf16.msra.mxu2 %v17841_v3  ;;  %v18077_v3 = vor.u32 %v20307_v10, %v18076_v5  ;;  %v23491_v15 = vunpack.i.l.s16 %v4480_v51  ;;  %v18726_v5 = vld [vmem:[%s30071_s5 + $0x2388] sm:$0xf0]  ;;  %v17644_v10 = vld [vmem:[%s30071_s5 + $0x1b00] sm:$0xf]  ;;  %v4439_v2 = vsel %vm3858_vm6, %v4438_v17, %v4437_v58  ;;  %v23506_v51 = vunpack.i.l.s16 %v4481_v47  ;;  %v23517_v59 = vld [vmem:[%s30071_s5 + $0x1c94] sm:$0xf0] }
 0x306   : > { %10880 = vmatpush.bf16.msra.mxu0 %v17717_v31  ;;  %v23460_v31 = vpack.c.b16 %v4463_v34, %v4463_v34  ;;  %v17860_v34 = vld [vmem:[%s30071_s5 + $0x1cb0] sm:$0xf]  ;;  %v23527_v17 = vld [vmem:[%s30071_s5 + $0x1e14] sm:$0xf0]  ;;  %v23532_v47 = vunpack.i.l.s16 %v4478_v60  ;;  %v4540_v58 = vunpack.c.l.b16 %v23458_v54  ;;  %v10703_v40 = vpop.f32.mrf.mxu1  ;;  %v30143_v60 = vrot.slane %v23396_v50, 2 }
 0x307   : > { %10893 = vmatpush.bf16.msra.mxu1 %v17909_v41  ;;  %10906 = vmatpush.bf16.msra.mxu3 %v18101_v63  ;;  %v18052_v41 = vld [vmem:[%s30071_s5 + $0x1e30] sm:$0xf]  ;;  %v20301_v63 = vld [vmem:[%s30071_s5 + $0x1e44] sm:$0xf0]  ;;  %v17861_v36 = vor.u32 %v20253_v13, %v17860_v34  ;;  %v10690_v8 = vpop.f32.mrf.mxu0  ;;  %v4506_v54 = vrot.slane %v23469_v27, 7 }
 0x308   : > { %30141 = vst [vmem:[#allocation9_spill] sm:$0xff] %v23460_v31  ;;  %11222 = vmatmul.bf16.vlgmr.msra.gmra.mxu2 %v23460_v31  ;;  %v18053_v19 = vor.u32 %v20301_v63, %v18052_v41  ;;  %v20460_v34 = vld [vmem:[%s30071_s5 + $0x2344] sm:$0xf]  ;;  %v18702_v13 = vld [vmem:[%s30071_s5 + $0x2358] sm:$0xf0]  ;;  %v4446_v41 = vrot.slane %v23344_v22, 3 }
 0x309   : > { %11266 = vmatpush.bf16.msrb.mxu2 %v18777_v48  ;;  %v17669_v48 = vor.u32 %v20205_v52, %v17668_v44  ;;  %v30142_v44 = vrot.slane %v23335_v39, 3  ;;  %v4508_v63 = vrot.slane %v23491_v15, 6 }
 0x30a   : > { %10881 = vmatpush.bf16.msra.mxu0 %v17693_v7  ;;  %v4539_v7 = vunpack.c.l.b16 %v23444_v55  ;;  %v4441_v55 = vsel %vm3861_vm7, %v4440_v1, %v4439_v2  ;;  %v20385_v1 = vld [vmem:[%s30071_s5 + $0x20e4] sm:$0xf0]  ;;  %v17645_v2 = vor.u32 %v20199_v56, %v17644_v10 }
 0x30b   : > { %v4500_v52 = vsel %vm3852_vm4, %v30142_v44, %v4498_v23  ;;  %10894 = vmatpush.bf16.msra.mxu1 %v17885_v28  ;;  %10907 = vmatpush.bf16.msra.mxu3 %v18077_v3  ;;  %v18729_v28 = vor.u32 %v20466_v25, %v18726_v5  ;;  %v10691_v3 = vadd.f32 %v10690_v8, %v23429_v9  ;;  %v20433_v9 = vld [vmem:[%s30071_s5 + $0x2264] sm:$0xf0]  ;;  %v4510_v5 = vrot.slane %v23506_v51, 5 }
 0x30c   : > { %v4502_v23 = vsel %vm3855_vm5, %v30143_v60, %v4500_v52  ;;  %v4443_v8 = vsel %vm3864_vm8, %v4442_v43, %v4441_v55  ;;  %v18389_v22 = vor.u32 %v20385_v1, %v18388_v35  ;;  %v20481_v10 = vld [vmem:[%s30071_s5 + $0x23e4] sm:$0xf0]  ;;  %v17837_v43 = vor.u32 %v23517_v59, %v23512_v11  ;;  %v23585_v55 = vld [vmem:[%s30071_s5 + $0x2314] sm:$0xf]  ;;  %v3806_v35 = vld [vmem:[#allocation2 + $0x38] sm:$0x8] }
 0x30d   : > { %11267 = vmatpush.bf16.msrb.mxu2 %v18753_v46  ;;  %v18580_v46 = vld [vmem:[%s30071_s5 + $0x2250] sm:$0xf]  ;;  %v4504_v25 = vsel %vm3858_vm6, %v4503_v53, %v4502_v23  ;;  %v10704_v44 = vadd.f32 %v10703_v40, %v10691_v3  ;;  %v4445_v56 = vsel %vm3867_vm9, %v4444_v14, %v4443_v8  ;;  %v18029_v40 = vor.u32 %v23527_v17, %v23522_v12  ;;  %v3807_v14 = vld [vmem:[#allocation2 + $0x48] sm:$0x8]  ;;  %v18678_v59 = vld [vmem:[%s30071_s5 + $0x2328] sm:$0xf0] }
 0x30e   : > { %10882 = vmatpush.bf16.msra.mxu0 %v17669_v48  ;;  %v18772_v48 = vld [vmem:[%s30071_s5 + $0x23d0] sm:$0xf]  ;;  %v4505_v52 = vsel %vm3861_vm7, %v23532_v47, %v4504_v25  ;;  %v23587_v1 = vunpack.i.l.s16 %v4539_v7  ;;  %v4447_v60 = vsel %vm3870_vm10, %v4446_v41, %v4445_v56  ;;  %v18364_v12 = vld [vmem:[%s30071_s5 + $0x20a0] sm:$0xf]  ;;  %v20379_v7 = vld [vmem:[%s30071_s5 + $0x20b4] sm:$0xf0] }
 0x30f   : > { %10895 = vmatpush.bf16.msra.mxu1 %v17861_v36  ;;  %10908 = vmatpush.bf16.msra.mxu3 %v18053_v19  ;;  %v4507_v53 = vsel %vm3864_vm8, %v4506_v54, %v4505_v52  ;;  %v18705_v36 = vor.u32 %v20460_v34, %v18702_v13  ;;  %v18581_v19 = vor.u32 %v20433_v9, %v18580_v46  ;;  %v18556_v54 = vld [vmem:[%s30071_s5 + $0x2220] sm:$0xf]  ;;  %v3808_v3 = vld [vmem:[#allocation2 + $0x58] sm:$0x8]  ;;  %v10716_v34 = vpop.f32.mrf.mxu3  ;;  %v4542_v46 = vunpack.c.l.b16 %v3807_v14  ;;  %v23622_v52 = vpop.f32.mrf.mxu2 }
 0x310   : > { %v4509_v11 = vsel %vm3867_vm9, %v4508_v63, %v4507_v53  ;;  %v18773_v17 = vor.u32 %v20481_v10, %v18772_v48  ;;  %v18748_v13 = vld [vmem:[%s30071_s5 + $0x23a0] sm:$0xf]  ;;  %v20475_v41 = vld [vmem:[%s30071_s5 + $0x23b4] sm:$0xf0]  ;;  %v3809_v63 = vld [vmem:[#allocation2 + $0x68] sm:$0x8]  ;;  %v23613_v9 = vunpack.i.l.s16 %v4540_v58  ;;  %v23615_v8 = vadd.f32 %v10716_v34, %v10704_v44 }
 0x311   : > { %11268 = vmatpush.bf16.msrb.mxu2 %v18729_v28  ;;  %v4511_v23 = vsel %vm3870_vm10, %v4510_v5, %v4509_v11  ;;  %v20427_v28 = vld [vmem:[%s30071_s5 + $0x2234] sm:$0xf0]  ;;  %v23617_v25 = vpack.c.b16 %v4447_v60, %v4447_v60  ;;  %v10692_v5 = vpop.f32.mrf.mxu0  ;;  %v18365_v48 = vor.u32 %v20379_v7, %v18364_v12  ;;  %v4579_v10 = vrot.slane %v23587_v1, 6  ;;  %30144 = vst [vmem:[#allocation10_spill] sm:$0xff] %v23622_v52  ;;  %v20448_v44 = vld [vmem:[%s30071_s5 + $0x22e4] sm:$0xf] }
 0x312   : > { %10883 = vmatpush.bf16.msra.mxu0 %v17645_v2  ;;  %v4541_v2 = vunpack.c.l.b16 %v3806_v35  ;;  %v23620_v56 = vpack.c.b16 %v4511_v23, %v4511_v23  ;;  %v18681_v58 = vor.u32 %v23585_v55, %v18678_v59  ;;  %v18557_v53 = vor.u32 %v20427_v28, %v18556_v54  ;;  %v18654_v55 = vld [vmem:[%s30071_s5 + $0x22f8] sm:$0xf0]  ;;  %v18724_v11 = vld [vmem:[%s30071_s5 + $0x2370] sm:$0xf]  ;;  %v20469_v59 = vld [vmem:[%s30071_s5 + $0x2384] sm:$0xf0] }
 0x313   : > { %10896 = vmatpush.bf16.msra.mxu1 %v17837_v43  ;;  %10909 = vmatpush.bf16.msra.mxu3 %v18029_v40  ;;  %v18340_v43 = vld [vmem:[%s30071_s5 + $0x2070] sm:$0xf]  ;;  %v20373_v40 = vld [vmem:[%s30071_s5 + $0x2084] sm:$0xf0]  ;;  %v4543_v35 = vunpack.c.l.b16 %v3808_v3  ;;  %v18749_v14 = vor.u32 %v20475_v41, %v18748_v13  ;;  %v4544_v60 = vunpack.c.l.b16 %v3809_v63  ;;  %v23654_v7 = vunpack.i.l.s16 %v4542_v46  ;;  %v3810_v28 = vld [vmem:[#allocation2 + $0x78] sm:$0x8] }
 0x314   : > { %v23652_v12 = vunpack.i.l.s16 %v4541_v2  ;;  %v18341_v54 = vor.u32 %v20373_v40, %v18340_v43  ;;  %v4581_v3 = vrot.slane %v23613_v9, 5  ;;  %v18657_v41 = vor.u32 %v20448_v44, %v18654_v55  ;;  %v20442_v2 = vld [vmem:[%s30071_s5 + $0x22b4] sm:$0xf]  ;;  %v18316_v46 = vld [vmem:[%s30071_s5 + $0x2040] sm:$0xf] }
 0x315   : > { %11269 = vmatpush.bf16.msrb.mxu2 %v18705_v36  ;;  %10884 = vmatmul.bf16.vlgmr.msra.gmra.mxu0 %v23617_v25  ;;  %v18532_v36 = vld [vmem:[%s30071_s5 + $0x21f0] sm:$0xf]  ;;  %v20367_v5 = vld [vmem:[%s30071_s5 + $0x2054] sm:$0xf0]  ;;  %v23681_v43 = vunpack.i.l.s16 %v4544_v60  ;;  %v4545_v55 = vunpack.c.l.b16 %v3810_v28  ;;  %v20436_v60 = vld [vmem:[%s30071_s5 + $0x2284] sm:$0xf] }
 0x316   : > { %10915 = vmatpush.bf16.msrb.mxu0 %v18389_v22  ;;  %v10705_v22 = vpop.f32.mrf.mxu1  ;;  %10897 = vmatmul.bf16.vlgmr.msra.gmra.mxu1 %v23460_v31  ;;  %v20415_v44 = vld [vmem:[%s30071_s5 + $0x21d4] sm:$0xf0]  ;;  %v30145_v28 = vrot.slane %v23417_v45, 7  ;;  %v20361_v23 = vld [vmem:[%s30071_s5 + $0x2024] sm:$0xf0] }
 0x317   : > { %10928 = vmatpush.bf16.msrb.mxu1 %v18581_v19  ;;  %10941 = vmatpush.bf16.msrb.mxu3 %v18773_v17  ;;  %v20421_v19 = vld [vmem:[%s30071_s5 + $0x2204] sm:$0xf0]  ;;  %v23670_v22 = vunpack.i.l.s16 %v4543_v35  ;;  %v10718_v40 = vpop.f32.mrf.mxu3  ;;  %v18700_v35 = vld [vmem:[%s30071_s5 + $0x2340] sm:$0xf]  ;;  %v18484_v17 = vld [vmem:[%s30071_s5 + $0x2190] sm:$0xf] }
 0x318   : > { %10910 = vmatmul.bf16.vlgmr.msra.gmra.mxu3 %v23620_v56  ;;  %v18533_v63 = vor.u32 %v20421_v19, %v18532_v36  ;;  %v4583_v36 = vrot.slane %v23652_v12, 4  ;;  %v4585_v19 = vrot.slane %v23654_v7, 3  ;;  %v18292_v40 = vld [vmem:[%s30071_s5 + $0x2010] sm:$0xf]  ;;  %v4580_v13 = vsel %vm3852_vm4, %v4579_v10, %v30145_v28 }
 0x319   : > { %11270 = vmatpush.bf16.msrb.mxu2 %v18681_v58  ;;  %v18630_v58 = vld [vmem:[%s30071_s5 + $0x22c8] sm:$0xf0]  ;;  %v4582_v52 = vsel %vm3855_vm5, %v4581_v3, %v4580_v13  ;;  %v4587_v31 = vrot.slane %v23670_v22, 2  ;;  %v20457_v3 = vld [vmem:[%s30071_s5 + $0x2324] sm:$0xf0]  ;;  %v18293_v28 = vor.u32 %v20361_v23, %v18292_v40  ;;  %v4519_v23 = vrot.slane %v23427_v18, 2 }
 0x31a   : > { %10916 = vmatpush.bf16.msrb.mxu0 %v18365_v48  ;;  %v18725_v48 = vor.u32 %v20469_v59, %v18724_v11  ;;  %v18317_v11 = vor.u32 %v20367_v5, %v18316_v46  ;;  %v18606_v59 = vld [vmem:[%s30071_s5 + $0x2298] sm:$0xf0]  ;;  %v18633_v46 = vor.u32 %v20442_v2, %v18630_v58  ;;  %v10729_v5 = vpop.f32.mrf.mxu0  ;;  %v20409_v2 = vld [vmem:[%s30071_s5 + $0x21a4] sm:$0xf0]  ;;  %v18676_v58 = vld [vmem:[%s30071_s5 + $0x2310] sm:$0xf] }
 0x31b   : > { %10929 = vmatpush.bf16.msrb.mxu1 %v18557_v53  ;;  %10942 = vmatpush.bf16.msrb.mxu3 %v18749_v14  ;;  %v18508_v53 = vld [vmem:[%s30071_s5 + $0x21c0] sm:$0xf]  ;;  %v20463_v14 = vld [vmem:[%s30071_s5 + $0x2354] sm:$0xf0]  ;;  %v10730_v10 = vadd.f32 %v10729_v5, %v23615_v8  ;;  %v19474_v13 = vld [vmem:[%s30071_s5 + $0x46c] sm:$0xf0]  ;;  %v18485_v21 = vor.u32 %v20409_v2, %v18484_v17 }
 0x31c   : > { %v18509_v34 = vor.u32 %v20415_v44, %v18508_v53  ;;  %v4589_v53 = vrot.slane %v23681_v43, 1  ;;  %v14748_v8 = vld [vmem:[%s30071_s5 + $0x458] sm:$0xf]  ;;  %v4565_v5 = vrot.slane %v23613_v9, 4  ;;  %v18609_v44 = vor.u32 %v20436_v60, %v18606_v59  ;;  %v18460_v17 = vld [vmem:[%s30071_s5 + $0x2160] sm:$0xf] }
 0x31d   : > { %11271 = vmatpush.bf16.msrb.mxu2 %v18657_v41  ;;  %v20451_v59 = vld [vmem:[%s30071_s5 + $0x22f4] sm:$0xf0]  ;;  %v19468_v40 = vld [vmem:[%s30071_s5 + $0x43c] sm:$0xf0]  ;;  %v4567_v2 = vrot.slane %v23652_v12, 3 }
 0x31e   : > { %10917 = vmatpush.bf16.msrb.mxu0 %v18341_v54  ;;  %v10965_v54 = vpop.f32.mrf.mxu2  ;;  %v10742_v41 = vpop.f32.mrf.mxu1  ;;  %v20397_v12 = vld [vmem:[%s30071_s5 + $0x2144] sm:$0xf0]  ;;  %v19470_v18 = vld [vmem:[%s30071_s5 + $0x454] sm:$0xf] }
 0x31f   : > { %10930 = vmatpush.bf16.msrb.mxu1 %v18533_v63  ;;  %10943 = vmatpush.bf16.msrb.mxu3 %v18725_v48  ;;  %v18701_v63 = vor.u32 %v20463_v14, %v18700_v35  ;;  %v23729_v48 = vunpack.i.l.s16 %v4545_v55  ;;  %v4584_v35 = vsel %vm3858_vm6, %v4583_v36, %v4582_v52  ;;  %v10743_v14 = vadd.f32 %v10742_v41, %v10730_v10  ;;  %v18268_v55 = vld [vmem:[%s30071_s5 + $0x1fe0] sm:$0xf]  ;;  %v20355_v52 = vld [vmem:[%s30071_s5 + $0x1ff4] sm:$0xf0]  ;;  %v18244_v41 = vld [vmem:[%s30071_s5 + $0x1fb0] sm:$0xf] }
 0x320   : > { %v4586_v54 = vsel %vm3861_vm7, %v4585_v19, %v4584_v35  ;;  %v18677_v36 = vor.u32 %v20457_v3, %v18676_v58  ;;  %v14749_v19 = vor.u32 %v19474_v13, %v14748_v8  ;;  %v18269_v10 = vor.u32 %v20355_v52, %v18268_v55  ;;  %v20349_v35 = vld [vmem:[%s30071_s5 + $0x1fc4] sm:$0xf0]  ;;  %v14700_v55 = vld [vmem:[%s30071_s5 + $0x3f8] sm:$0xf]  ;;  %v19462_v52 = vld [vmem:[%s30071_s5 + $0x40c] sm:$0xf0] }
 0x321   : > { %11272 = vmatpush.bf16.msrb.mxu2 %v18633_v46  ;;  %v4588_v0 = vsel %vm3864_vm8, %v4587_v31, %v4586_v54  ;;  %v20403_v31 = vld [vmem:[%s30071_s5 + $0x2174] sm:$0xf0]  ;;  %v10755_v46 = vpop.f32.mrf.mxu3  ;;  %v4569_v58 = vrot.slane %v23654_v7, 2  ;;  %v20445_v54 = vld [vmem:[%s30071_s5 + $0x22c4] sm:$0xf0]  ;;  %v4574_v9 = vrot.slane %v23729_v48, 7 }
 0x322   : > { %10918 = vmatpush.bf16.msrb.mxu0 %v18317_v11  ;;  %v4590_v11 = vsel %vm3867_vm9, %v4589_v53, %v4588_v0  ;;  %v14724_v0 = vld [vmem:[%s30071_s5 + $0x428] sm:$0xf]  ;;  %v23769_v53 = vadd.f32 %v10755_v46, %v10743_v14  ;;  %v10731_v8 = vpop.f32.mrf.mxu0  ;;  %v18461_v13 = vor.u32 %v20403_v31, %v18460_v17  ;;  %v18412_v17 = vld [vmem:[%s30071_s5 + $0x2100] sm:$0xf]  ;;  %v20391_v31 = vld [vmem:[%s30071_s5 + $0x2114] sm:$0xf0] }
 0x323   : > { %10931 = vmatpush.bf16.msrb.mxu1 %v18509_v34  ;;  %10944 = vmatpush.bf16.msrb.mxu3 %v18701_v63  ;;  %v18652_v34 = vld [vmem:[%s30071_s5 + $0x22e0] sm:$0xf]  ;;  %v4591_v60 = vsel %vm3870_vm10, %v23729_v48, %v4590_v11  ;;  %v4521_v63 = vrot.slane %v23532_v47, 1  ;;  %v18436_v47 = vld [vmem:[%s30071_s5 + $0x2130] sm:$0xf]  ;;  %v14725_v14 = vor.u32 %v19468_v40, %v14724_v0  ;;  %v18245_v11 = vor.u32 %v20349_v35, %v18244_v41 }
 0x324   : > { %v18437_v40 = vor.u32 %v20397_v12, %v18436_v47  ;;  %v20439_v46 = vld [vmem:[%s30071_s5 + $0x2294] sm:$0xf0]  ;;  %v30148_v41 = vrot.slane %v23396_v50, 3  ;;  %v14701_v12 = vor.u32 %v19462_v52, %v14700_v55  ;;  %v14358_v50 = vld [vmem:[%s30071_s5 + $0x168] sm:$0xf0]  ;;  %v18413_v55 = vor.u32 %v20391_v31, %v18412_v17 }
 0x325   : > { %11273 = vmatpush.bf16.msrb.mxu2 %v18609_v44  ;;  %v18653_v44 = vor.u32 %v20451_v59, %v18652_v34  ;;  %v18604_v34 = vld [vmem:[%s30071_s5 + $0x2280] sm:$0xf]  ;;  %v30147_v59 = vrot.slane %v23335_v39, 4  ;;  %v30150_v39 = vrot.slane %v23587_v1, 5  ;;  %v14550_v52 = vld [vmem:[%s30071_s5 + $0x2e8] sm:$0xf0] }
 0x326   : > { %10919 = vmatpush.bf16.msrb.mxu0 %v18293_v28  ;;  %v23771_v3 = vpop.f32.mrf.mxu2  ;;  %v10744_v7 = vpop.f32.mrf.mxu1  ;;  %v18628_v28 = vld [vmem:[%s30071_s5 + $0x22b0] sm:$0xf] }
 0x327   : > { %10932 = vmatpush.bf16.msrb.mxu1 %v18485_v21  ;;  %10945 = vmatpush.bf16.msrb.mxu3 %v18677_v36  ;;  %v23782_v21 = vpack.c.b16 %v4591_v60, %v4591_v60  ;;  %v18220_v36 = vld [vmem:[%s30071_s5 + $0x1f80] sm:$0xf]  ;;  %v30146_v60 = vrot.slane %v23285_v24, 5  ;;  %v30149_v24 = vrot.slane %v23417_v45, 6  ;;  %v18629_v47 = vor.u32 %v20445_v54, %v18628_v28  ;;  %v19374_v7 = vld [vmem:[%s30071_s5 + $0x154] sm:$0xf] }
 0x328   : > { %v4524_v45 = vrot.slane %v23491_v15, 7  ;;  %v4526_v28 = vrot.slane %v23506_v51, 6  ;;  %v14742_v51 = vld [vmem:[%s30071_s5 + $0x468] sm:$0xf0] }
 0x329   : > { %11318 = vmatpush.bf16.msra.mxu2 %v14749_v19  ;;  %v20343_v19 = vld [vmem:[%s30071_s5 + $0x1f94] sm:$0xf0]  ;;  %v4516_v0 = vsel %vm3852_vm4, %v30147_v59, %v30146_v60  ;;  %v4564_v35 = vsel %vm3852_vm4, %v30150_v39, %v30149_v24  ;;  %v14718_v24 = vld [vmem:[%s30071_s5 + $0x438] sm:$0xf0] }
 0x32a   : > { %11274 = vmatmul.bf16.vlgmr.msrb.gmra.mxu2 %v23782_v21  ;;  %10920 = vmatpush.bf16.msrb.mxu0 %v18269_v10  ;;  %v14676_v10 = vld [vmem:[%s30071_s5 + $0x3c8] sm:$0xf]  ;;  %v4518_v8 = vsel %vm3855_vm5, %v30148_v41, %v4516_v0  ;;  %v4566_v1 = vsel %vm3855_vm5, %v4565_v5, %v4564_v35  ;;  %v10757_v5 = vpop.f32.mrf.mxu3  ;;  %v18221_v54 = vor.u32 %v20343_v19, %v18220_v36  ;;  %v14526_v41 = vld [vmem:[%s30071_s5 + $0x2b8] sm:$0xf0] }
 0x32b   : > { %10933 = vmatpush.bf16.msrb.mxu1 %v18461_v13  ;;  %v4571_v13 = vrot.slane %v23670_v22, 1  ;;  %10946 = vmatpush.bf16.msrb.mxu3 %v18653_v44  ;;  %v19456_v22 = vld [vmem:[%s30071_s5 + $0x3dc] sm:$0xf0]  ;;  %v19422_v44 = vld [vmem:[%s30071_s5 + $0x2d4] sm:$0xf]  ;;  %v4568_v15 = vsel %vm3858_vm6, %v4567_v2, %v4566_v1  ;;  %v18605_v36 = vor.u32 %v20439_v46, %v18604_v34  ;;  %v14361_v19 = vor.u32 %v19374_v7, %v14358_v50 }
 0x32c   : > { %v4570_v48 = vsel %vm3861_vm7, %v4569_v58, %v4568_v15  ;;  %v14677_v31 = vor.u32 %v19456_v22, %v14676_v10  ;;  %v14334_v58 = vld [vmem:[%s30071_s5 + $0x138] sm:$0xf0]  ;;  %v14553_v34 = vor.u32 %v19422_v44, %v14550_v52  ;;  %v14652_v46 = vld [vmem:[%s30071_s5 + $0x398] sm:$0xf]  ;;  %v19416_v10 = vld [vmem:[%s30071_s5 + $0x2a4] sm:$0xf] }
 0x32d   : > { %11319 = vmatpush.bf16.msra.mxu2 %v14725_v14  ;;  %v4520_v14 = vsel %vm3858_vm6, %v4519_v23, %v4518_v8  ;;  %v4572_v17 = vsel %vm3864_vm8, %v4571_v13, %v4570_v48  ;;  %v19464_v8 = vld [vmem:[%s30071_s5 + $0x424] sm:$0xf]  ;;  %v14310_v7 = vld [vmem:[%s30071_s5 + $0x108] sm:$0xf0]  ;;  %v14529_v50 = vor.u32 %v19416_v10, %v14526_v41  ;;  %v14628_v1 = vld [vmem:[%s30071_s5 + $0x368] sm:$0xf] }
 0x32e   : > { %10921 = vmatpush.bf16.msrb.mxu0 %v18245_v11  ;;  %v4522_v23 = vsel %vm3861_vm7, %v4521_v63, %v4520_v14  ;;  %v11017_v2 = vpop.f32.mrf.mxu2  ;;  %v4573_v59 = vsel %vm3867_vm9, %v23681_v43, %v4572_v17  ;;  %v19368_v63 = vld [vmem:[%s30071_s5 + $0x124] sm:$0xf]  ;;  %v19450_v43 = vld [vmem:[%s30071_s5 + $0x3ac] sm:$0xf0]  ;;  %v19444_v22 = vld [vmem:[%s30071_s5 + $0x37c] sm:$0xf0] }
 0x32f   : > { %10934 = vmatpush.bf16.msrb.mxu1 %v18437_v40  ;;  %v4523_v11 = vsel %vm3864_vm8, %v23469_v27, %v4522_v23  ;;  %10947 = vmatpush.bf16.msrb.mxu3 %v18629_v47  ;;  %v14745_v27 = vor.u32 %v19470_v18, %v14742_v51  ;;  %v4575_v40 = vsel %vm3870_vm10, %v4574_v9, %v4573_v59  ;;  %v19410_v44 = vld [vmem:[%s30071_s5 + $0x274] sm:$0xf]  ;;  %v14502_v14 = vld [vmem:[%s30071_s5 + $0x288] sm:$0xf0]  ;;  %v14286_v52 = vld [vmem:[%s30071_s5 + $0xd8] sm:$0xf0] }
 0x330   : > { %v4525_v60 = vsel %vm3867_vm9, %v4524_v45, %v4523_v11  ;;  %v14337_v39 = vor.u32 %v19368_v63, %v14334_v58  ;;  %v23899_v13 = vpack.c.b16 %v4575_v40, %v4575_v40  ;;  %v14653_v47 = vor.u32 %v19450_v43, %v14652_v46  ;;  %v14694_v15 = vld [vmem:[%s30071_s5 + $0x408] sm:$0xf0]  ;;  %v14604_v23 = vld [vmem:[%s30071_s5 + $0x338] sm:$0xf]  ;;  %v19438_v48 = vld [vmem:[%s30071_s5 + $0x34c] sm:$0xf0] }
 0x331   : > { %11320 = vmatpush.bf16.msra.mxu2 %v14701_v12  ;;  %v4527_v0 = vsel %vm3870_vm10, %v4526_v28, %v4525_v60  ;;  %v19362_v12 = vld [vmem:[%s30071_s5 + $0xf4] sm:$0xf]  ;;  %v14721_v45 = vor.u32 %v19464_v8, %v14718_v24  ;;  %v14505_v18 = vor.u32 %v19410_v44, %v14502_v14  ;;  %v19404_v2 = vld [vmem:[%s30071_s5 + $0x244] sm:$0xf]  ;;  %v14670_v11 = vld [vmem:[%s30071_s5 + $0x3d8] sm:$0xf0] }
 0x332   : > { %10922 = vmatpush.bf16.msrb.mxu0 %v18221_v54  ;;  %v23897_v35 = vpack.c.b16 %v4527_v0, %v4527_v0  ;;  %v19458_v28 = vld [vmem:[%s30071_s5 + $0x3f4] sm:$0xf]  ;;  %v14313_v5 = vor.u32 %v19362_v12, %v14310_v7  ;;  %v14629_v54 = vor.u32 %v19444_v22, %v14628_v1  ;;  %v14262_v59 = vld [vmem:[%s30071_s5 + $0xa8] sm:$0xf0]  ;;  %v14580_v0 = vld [vmem:[%s30071_s5 + $0x308] sm:$0xf] }
 0x333   : > { %10935 = vmatpush.bf16.msrb.mxu1 %v18413_v55  ;;  %10948 = vmatpush.bf16.msrb.mxu3 %v18605_v36  ;;  %v19356_v55 = vld [vmem:[%s30071_s5 + $0xc4] sm:$0xf]  ;;  %v14697_v51 = vor.u32 %v19458_v28, %v14694_v15  ;;  %v14478_v36 = vld [vmem:[%s30071_s5 + $0x258] sm:$0xf0]  ;;  %v19350_v60 = vld [vmem:[%s30071_s5 + $0x94] sm:$0xf]  ;;  %v10781_v58 = vpop.f32.mrf.mxu1 }
 0x334   : > { %v14289_v17 = vor.u32 %v19356_v55, %v14286_v52  ;;  %v19432_v40 = vld [vmem:[%s30071_s5 + $0x31c] sm:$0xf0]  ;;  %v19398_v46 = vld [vmem:[%s30071_s5 + $0x214] sm:$0xf]  ;;  %v14454_v10 = vld [vmem:[%s30071_s5 + $0x228] sm:$0xf0] }
 0x335   : > { %11321 = vmatpush.bf16.msra.mxu2 %v14677_v31  ;;  %10923 = vmatmul.bf16.vlgmr.msrb.gmra.mxu0 %v23897_v35  ;;  %v14605_v31 = vor.u32 %v19438_v48, %v14604_v23  ;;  %v10768_v63 = vpop.f32.mrf.mxu0  ;;  %v19446_v41 = vld [vmem:[%s30071_s5 + $0x394] sm:$0xf]  ;;  %v14646_v8 = vld [vmem:[%s30071_s5 + $0x3a8] sm:$0xf0]  ;;  %v14581_v7 = vor.u32 %v19432_v40, %v14580_v0  ;;  %v14457_v1 = vor.u32 %v19398_v46, %v14454_v10  ;;  %v19392_v44 = vld [vmem:[%s30071_s5 + $0x1e4] sm:$0xf] }
 0x336   : > { %10967 = vmatpush.bf16.msra.mxu0 %v14361_v19  ;;  %10936 = vmatmul.bf16.vlgmr.msrb.gmra.mxu1 %v23899_v13  ;;  %v23928_v9 = vpop.f32.mrf.mxu2  ;;  %v19452_v19 = vld [vmem:[%s30071_s5 + $0x3c4] sm:$0xf]  ;;  %v10769_v43 = vadd.f32 %v10768_v63, %v23769_v53  ;;  %v19666_v53 = vld [vmem:[%s30071_s5 + $0xa6c] sm:$0xf0]  ;;  %v14649_v22 = vor.u32 %v19446_v41, %v14646_v8  ;;  %v14430_v28 = vld [vmem:[%s30071_s5 + $0x1f8] sm:$0xf0] }
 0x337   : > { %10980 = vmatpush.bf16.msra.mxu1 %v14553_v34  ;;  %10993 = vmatpush.bf16.msra.mxu3 %v14745_v27  ;;  %v14481_v34 = vor.u32 %v19404_v2, %v14478_v36  ;;  %v14673_v27 = vor.u32 %v19452_v19, %v14670_v11  ;;  %v19440_v15 = vld [vmem:[%s30071_s5 + $0x364] sm:$0xf]  ;;  %v15492_v55 = vld [vmem:[%s30071_s5 + $0xa28] sm:$0xf]  ;;  %v19660_v52 = vld [vmem:[%s30071_s5 + $0xa3c] sm:$0xf0]  ;;  %v14433_v19 = vor.u32 %v19392_v44, %v14430_v28 }
 0x338   : > { %10949 = vmatmul.bf16.vlgmr.msrb.gmra.mxu3 %v23782_v21  ;;  %v10782_v12 = vadd.f32 %v10781_v58, %v10769_v43  ;;  %v14214_v23 = vld [vmem:[%s30071_s5 + $0x48] sm:$0xf0]  ;;  %v19332_v0 = vld [vmem:[%s30071_s5 + $0x4] sm:$0xf]  ;;  %v14190_v40 = vld [vmem:[%s30071_s5 + $0x18] sm:$0xf0] }
 0x339   : > { %11322 = vmatpush.bf16.msra.mxu2 %v14653_v47  ;;  %v15516_v47 = vld [vmem:[%s30071_s5 + $0xa58] sm:$0xf]  ;;  %v14598_v63 = vld [vmem:[%s30071_s5 + $0x348] sm:$0xf0]  ;;  %v19380_v46 = vld [vmem:[%s30071_s5 + $0x184] sm:$0xf] }
 0x33a   : > { %10968 = vmatpush.bf16.msra.mxu0 %v14337_v39  ;;  %v14265_v39 = vor.u32 %v19350_v60, %v14262_v59  ;;  %v15517_v14 = vor.u32 %v19666_v53, %v15516_v47  ;;  %v14406_v60 = vld [vmem:[%s30071_s5 + $0x1c8] sm:$0xf0]  ;;  %v19434_v59 = vld [vmem:[%s30071_s5 + $0x334] sm:$0xf]  ;;  %v14382_v41 = vld [vmem:[%s30071_s5 + $0x198] sm:$0xf0] }
 0x33b   : > { %10981 = vmatpush.bf16.msra.mxu1 %v14529_v50  ;;  %10994 = vmatpush.bf16.msra.mxu3 %v14721_v45  ;;  %v19344_v50 = vld [vmem:[%s30071_s5 + $0x64] sm:$0xf]  ;;  %v14238_v45 = vld [vmem:[%s30071_s5 + $0x78] sm:$0xf0]  ;;  %v10783_v36 = vpop.f32.mrf.mxu1  ;;  %v14601_v10 = vor.u32 %v19434_v59, %v14598_v63  ;;  %v19566_v8 = vld [vmem:[%s30071_s5 + $0x754] sm:$0xf] }
 0x33c   : > { %v19428_v47 = vld [vmem:[%s30071_s5 + $0x304] sm:$0xf]  ;;  %v14574_v53 = vld [vmem:[%s30071_s5 + $0x318] sm:$0xf0]  ;;  %v15510_v28 = vld [vmem:[%s30071_s5 + $0xa68] sm:$0xf0] }
 0x33d   : > { %11323 = vmatpush.bf16.msra.mxu2 %v14629_v54  ;;  %v14241_v54 = vor.u32 %v19344_v50, %v14238_v45  ;;  %v10770_v2 = vpop.f32.mrf.mxu0  ;;  %v19648_v50 = vld [vmem:[%s30071_s5 + $0x9dc] sm:$0xf0]  ;;  %v19614_v45 = vld [vmem:[%s30071_s5 + $0x8d4] sm:$0xf]  ;;  %v19608_v36 = vld [vmem:[%s30071_s5 + $0x8a4] sm:$0xf] }
 0x33e   : > { %10969 = vmatpush.bf16.msra.mxu0 %v14313_v5  ;;  %v11069_v24 = vpop.f32.mrf.mxu2  ;;  %v14622_v5 = vld [vmem:[%s30071_s5 + $0x378] sm:$0xf0]  ;;  %v19642_v2 = vld [vmem:[%s30071_s5 + $0x9ac] sm:$0xf0]  ;;  %v15396_v63 = vld [vmem:[%s30071_s5 + $0x968] sm:$0xf] }
 0x33f   : > { %10982 = vmatpush.bf16.msra.mxu1 %v14505_v18  ;;  %10995 = vmatpush.bf16.msra.mxu3 %v14697_v51  ;;  %v10794_v18 = vpop.f32.mrf.mxu3  ;;  %v19338_v51 = vld [vmem:[%s30071_s5 + $0x34] sm:$0xf]  ;;  %v14625_v11 = vor.u32 %v19440_v15, %v14622_v5  ;;  %v15126_v24 = vld [vmem:[%s30071_s5 + $0x768] sm:$0xf0]  ;;  %v14385_v15 = vor.u32 %v19380_v46, %v14382_v41  ;;  %v14577_v5 = vor.u32 %v19428_v47, %v14574_v53  ;;  %v15372_v47 = vld [vmem:[%s30071_s5 + $0x938] sm:$0xf] }
 0x340   : > { %v24015_v48 = vadd.f32 %v10794_v18, %v10782_v12  ;;  %v14217_v58 = vor.u32 %v19338_v51, %v14214_v23  ;;  %v15444_v12 = vld [vmem:[%s30071_s5 + $0x9c8] sm:$0xf]  ;;  %v15129_v44 = vor.u32 %v19566_v8, %v15126_v24  ;;  %v19560_v18 = vld [vmem:[%s30071_s5 + $0x724] sm:$0xf]  ;;  %v15102_v51 = vld [vmem:[%s30071_s5 + $0x738] sm:$0xf0] }
 0x341   : > { %11324 = vmatpush.bf16.msra.mxu2 %v14605_v31  ;;  %v15493_v31 = vor.u32 %v19660_v52, %v15492_v55  ;;  %v15420_v52 = vld [vmem:[%s30071_s5 + $0x998] sm:$0xf]  ;;  %v15270_v46 = vld [vmem:[%s30071_s5 + $0x888] sm:$0xf0]  ;;  %v19548_v53 = vld [vmem:[%s30071_s5 + $0x6c4] sm:$0xf] }
 0x342   : > { %10970 = vmatpush.bf16.msra.mxu0 %v14289_v17  ;;  %v19386_v17 = vld [vmem:[%s30071_s5 + $0x1b4] sm:$0xf]  ;;  %v15462_v41 = vld [vmem:[%s30071_s5 + $0xa08] sm:$0xf0] }
 0x343   : > { %10983 = vmatpush.bf16.msra.mxu1 %v14481_v34  ;;  %10996 = vmatpush.bf16.msra.mxu3 %v14673_v27  ;;  %v15468_v34 = vld [vmem:[%s30071_s5 + $0x9f8] sm:$0xf]  ;;  %v19654_v27 = vld [vmem:[%s30071_s5 + $0xa0c] sm:$0xf0]  ;;  %v14409_v43 = vor.u32 %v19386_v17, %v14406_v60  ;;  %v15486_v17 = vld [vmem:[%s30071_s5 + $0xa38] sm:$0xf0]  ;;  %v15421_v60 = vor.u32 %v19642_v2, %v15420_v52 }
 0x344   : > { %v19542_v52 = vld [vmem:[%s30071_s5 + $0x694] sm:$0xf] }
 0x345   : > { %11325 = vmatpush.bf16.msra.mxu2 %v14581_v7  ;;  %v14193_v7 = vor.u32 %v19332_v0, %v14190_v40  ;;  %v19636_v0 = vld [vmem:[%s30071_s5 + $0x97c] sm:$0xf0]  ;;  %v19602_v40 = vld [vmem:[%s30071_s5 + $0x874] sm:$0xf] }
 0x346   : > { %10971 = vmatpush.bf16.msra.mxu0 %v14265_v39  ;;  %v15469_v39 = vor.u32 %v19654_v27, %v15468_v34  ;;  %v15078_v34 = vld [vmem:[%s30071_s5 + $0x708] sm:$0xf0]  ;;  %v15397_v24 = vor.u32 %v19636_v0, %v15396_v63  ;;  %v15006_v0 = vld [vmem:[%s30071_s5 + $0x678] sm:$0xf0] }
 0x347   : > { %10984 = vmatpush.bf16.msra.mxu1 %v14457_v1  ;;  %10997 = vmatpush.bf16.msra.mxu3 %v14649_v22  ;;  %v15318_v1 = vld [vmem:[%s30071_s5 + $0x8e8] sm:$0xf0]  ;;  %v10796_v22 = vpop.f32.mrf.mxu3 }
 0x348   : > { %11326 = vmatmul.bf16.vlgmr.msra.gmra.mxu2 %v22040_v26  ;;  %v15321_v55 = vor.u32 %v19614_v45, %v15318_v1  ;;  %v19596_v45 = vld [vmem:[%s30071_s5 + $0x844] sm:$0xf]  ;;  %v15246_v1 = vld [vmem:[%s30071_s5 + $0x858] sm:$0xf0] }
 0x349   : > { %11370 = vmatpush.bf16.msrb.mxu2 %v15517_v14  ;;  %v19662_v14 = vld [vmem:[%s30071_s5 + $0xa54] sm:$0xf]  ;;  %v19644_v22 = vld [vmem:[%s30071_s5 + $0x9c4] sm:$0xf] }
 0x34a   : > { %10972 = vmatpush.bf16.msra.mxu0 %v14241_v54  ;;  %v15445_v54 = vor.u32 %v19648_v50, %v15444_v12  ;;  %v15513_v23 = vor.u32 %v19662_v14, %v15510_v28  ;;  %v15054_v12 = vld [vmem:[%s30071_s5 + $0x6d8] sm:$0xf0]  ;;  %v19630_v50 = vld [vmem:[%s30071_s5 + $0x94c] sm:$0xf0]  ;;  %v15348_v28 = vld [vmem:[%s30071_s5 + $0x908] sm:$0xf] }
 0x34b   : > { %10985 = vmatpush.bf16.msra.mxu1 %v14433_v19  ;;  %10998 = vmatpush.bf16.msra.mxu3 %v14625_v11  ;;  %v15294_v19 = vld [vmem:[%s30071_s5 + $0x8b8] sm:$0xf0]  ;;  %v19656_v11 = vld [vmem:[%s30071_s5 + $0xa24] sm:$0xf]  ;;  %v15057_v14 = vor.u32 %v19548_v53, %v15054_v12 }
 0x34c   : > { %v15297_v59 = vor.u32 %v19608_v36, %v15294_v19  ;;  %v15489_v27 = vor.u32 %v19656_v11, %v15486_v17  ;;  %v19590_v36 = vld [vmem:[%s30071_s5 + $0x814] sm:$0xf]  ;;  %v15222_v19 = vld [vmem:[%s30071_s5 + $0x828] sm:$0xf0] }
 0x34d   : > { %11371 = vmatpush.bf16.msrb.mxu2 %v15493_v31  ;;  %v15105_v31 = vor.u32 %v19560_v18, %v15102_v51  ;;  %v15030_v18 = vld [vmem:[%s30071_s5 + $0x6a8] sm:$0xf0]  ;;  %v19638_v11 = vld [vmem:[%s30071_s5 + $0x994] sm:$0xf] }
 0x34e   : > { %10973 = vmatpush.bf16.msra.mxu0 %v14217_v58  ;;  %v19554_v58 = vld [vmem:[%s30071_s5 + $0x6f4] sm:$0xf]  ;;  %v15033_v63 = vor.u32 %v19542_v52, %v15030_v18  ;;  %v16236_v52 = vld [vmem:[%s30071_s5 + $0xff8] sm:$0xf]  ;;  %v19846_v18 = vld [vmem:[%s30071_s5 + $0x100c] sm:$0xf0] }
 0x34f   : > { %10986 = vmatpush.bf16.msra.mxu1 %v14409_v43  ;;  %10999 = vmatpush.bf16.msra.mxu3 %v14601_v10  ;;  %v24123_v43 = vpop.f32.mrf.mxu2  ;;  %v19650_v10 = vld [vmem:[%s30071_s5 + $0x9f4] sm:$0xf]  ;;  %v15081_v8 = vor.u32 %v19554_v58, %v15078_v34  ;;  %v15225_v34 = vor.u32 %v19590_v36, %v15222_v19  ;;  %v19572_v19 = vld [vmem:[%s30071_s5 + $0x784] sm:$0xf] }
 0x351   : > { %11372 = vmatpush.bf16.msrb.mxu2 %v15469_v39  ;;  %v15273_v39 = vor.u32 %v19602_v40, %v15270_v46 }
 0x352   : > { %10974 = vmatpush.bf16.msra.mxu0 %v14193_v7  ;;  %v15465_v7 = vor.u32 %v19650_v10, %v15462_v41  ;;  %v19584_v10 = vld [vmem:[%s30071_s5 + $0x7e4] sm:$0xf]  ;;  %v15198_v41 = vld [vmem:[%s30071_s5 + $0x7f8] sm:$0xf0] }
 0x353   : > { %10987 = vmatpush.bf16.msra.mxu1 %v14385_v15  ;;  %11000 = vmatpush.bf16.msra.mxu3 %v14577_v5  ;;  %v15373_v5 = vor.u32 %v19630_v50, %v15372_v47  ;;  %v19852_v47 = vld [vmem:[%s30071_s5 + $0x103c] sm:$0xf0] }
 0x355   : > { %11373 = vmatpush.bf16.msrb.mxu2 %v15445_v54  ;;  %10975 = vmatmul.bf16.vlgmr.msra.gmra.mxu0 %v22036_v62  ;;  %v10807_v15 = vpop.f32.mrf.mxu0  ;;  %v15249_v54 = vor.u32 %v19596_v45, %v15246_v1  ;;  %v15201_v45 = vor.u32 %v19584_v10, %v15198_v41  ;;  %v19530_v1 = vld [vmem:[%s30071_s5 + $0x634] sm:$0xf]  ;;  %v16278_v41 = vld [vmem:[%s30071_s5 + $0x1068] sm:$0xf0] }
 0x356   : > { %11019 = vmatpush.bf16.msrb.mxu0 %v15129_v44  ;;  %10988 = vmatmul.bf16.vlgmr.msra.gmra.mxu1 %v22038_v42  ;;  %v15438_v44 = vld [vmem:[%s30071_s5 + $0x9d8] sm:$0xf0]  ;;  %v10808_v51 = vadd.f32 %v10807_v15, %v24015_v48  ;;  %v16284_v48 = vld [vmem:[%s30071_s5 + $0x1058] sm:$0xf]  ;;  %v19578_v15 = vld [vmem:[%s30071_s5 + $0x7b4] sm:$0xf] }
 0x357   : > { %11032 = vmatpush.bf16.msrb.mxu1 %v15321_v55  ;;  %11045 = vmatpush.bf16.msrb.mxu3 %v15513_v23  ;;  %v19624_v55 = vld [vmem:[%s30071_s5 + $0x91c] sm:$0xf0]  ;;  %v10820_v23 = vpop.f32.mrf.mxu1  ;;  %v15441_v2 = vor.u32 %v19644_v22, %v15438_v44  ;;  %v11121_v17 = vpop.f32.mrf.mxu2  ;;  %v14982_v22 = vld [vmem:[%s30071_s5 + $0x648] sm:$0xf0]  ;;  %v19854_v10 = vld [vmem:[%s30071_s5 + $0x1054] sm:$0xf] }
 0x358   : > { %11001 = vmatmul.bf16.vlgmr.msra.gmra.mxu3 %v22040_v26  ;;  %v15349_v58 = vor.u32 %v19624_v55, %v15348_v28  ;;  %v15366_v55 = vld [vmem:[%s30071_s5 + $0x948] sm:$0xf0]  ;;  %v19620_v17 = vld [vmem:[%s30071_s5 + $0x904] sm:$0xf] }
 0x359   : > { %11374 = vmatpush.bf16.msrb.mxu2 %v15421_v60  ;;  %v19858_v60 = vld [vmem:[%s30071_s5 + $0x106c] sm:$0xf0] }
 0x35a   : > { %11020 = vmatpush.bf16.msrb.mxu0 %v15105_v31  ;;  %v15414_v31 = vld [vmem:[%s30071_s5 + $0x9a8] sm:$0xf0]  ;;  %v16285_v46 = vor.u32 %v19858_v60, %v16284_v48  ;;  %v16237_v48 = vor.u32 %v19846_v18, %v16236_v52  ;;  %v15342_v60 = vld [vmem:[%s30071_s5 + $0x918] sm:$0xf0] }
 0x35b   : > { %11033 = vmatpush.bf16.msrb.mxu1 %v15297_v59  ;;  %11046 = vmatpush.bf16.msrb.mxu3 %v15489_v27  ;;  %v10821_v59 = vadd.f32 %v10820_v23, %v10808_v51  ;;  %v19536_v27 = vld [vmem:[%s30071_s5 + $0x664] sm:$0xf]  ;;  %v15417_v40 = vor.u32 %v19638_v11, %v15414_v31  ;;  %v10833_v53 = vpop.f32.mrf.mxu3  ;;  %v14985_v51 = vor.u32 %v19530_v1, %v14982_v22  ;;  %v15150_v11 = vld [vmem:[%s30071_s5 + $0x798] sm:$0xf0]  ;;  %v16188_v1 = vld [vmem:[%s30071_s5 + $0xf98] sm:$0xf] }
 0x35c   : > { %v15009_v12 = vor.u32 %v19536_v27, %v15006_v0  ;;  %v19524_v23 = vld [vmem:[%s30071_s5 + $0x604] sm:$0xf]  ;;  %v19806_v27 = vld [vmem:[%s30071_s5 + $0xed4] sm:$0xf]  ;;  %v19834_v22 = vld [vmem:[%s30071_s5 + $0xfac] sm:$0xf0] }
 0x35d   : > { %11375 = vmatpush.bf16.msrb.mxu2 %v15397_v24  ;;  %v15390_v24 = vld [vmem:[%s30071_s5 + $0x978] sm:$0xf0]  ;;  %v10809_v50 = vpop.f32.mrf.mxu0  ;;  %v15846_v52 = vld [vmem:[%s30071_s5 + $0xd08] sm:$0xf0] }
 0x35e   : > { %11021 = vmatpush.bf16.msrb.mxu0 %v15081_v8  ;;  %v19632_v8 = vld [vmem:[%s30071_s5 + $0x964] sm:$0xf] }
 0x35f   : > { %11034 = vmatpush.bf16.msrb.mxu1 %v15273_v39  ;;  %11047 = vmatpush.bf16.msrb.mxu3 %v15465_v7  ;;  %v16260_v39 = vld [vmem:[%s30071_s5 + $0x1028] sm:$0xf]  ;;  %v24210_v7 = vadd.f32 %v10833_v53, %v10821_v59  ;;  %v10822_v44 = vpop.f32.mrf.mxu1  ;;  %v19758_v59 = vld [vmem:[%s30071_s5 + $0xd54] sm:$0xf]  ;;  %v19752_v53 = vld [vmem:[%s30071_s5 + $0xd24] sm:$0xf] }
 0x360   : > { %v16261_v28 = vor.u32 %v19852_v47, %v16260_v39  ;;  %v15345_v39 = vor.u32 %v19620_v17, %v15342_v60  ;;  %v19800_v44 = vld [vmem:[%s30071_s5 + $0xea4] sm:$0xf]  ;;  %v16230_v17 = vld [vmem:[%s30071_s5 + $0x1008] sm:$0xf0] }
 0x361   : > { %11376 = vmatpush.bf16.msrb.mxu2 %v15373_v5  ;;  %v15174_v5 = vld [vmem:[%s30071_s5 + $0x7c8] sm:$0xf0] }
 0x362   : > { %11022 = vmatpush.bf16.msrb.mxu0 %v15057_v14  ;;  %v15393_v14 = vor.u32 %v19632_v8, %v15390_v24  ;;  %v15177_v36 = vor.u32 %v19578_v15, %v15174_v5  ;;  %v15153_v8 = vor.u32 %v19572_v19, %v15150_v11  ;;  %v16254_v15 = vld [vmem:[%s30071_s5 + $0x1038] sm:$0xf0]  ;;  %v16038_v19 = vld [vmem:[%s30071_s5 + $0xe88] sm:$0xf0]  ;;  %v19842_v11 = vld [vmem:[%s30071_s5 + $0xff4] sm:$0xf] }
 0x363   : > { %11035 = vmatpush.bf16.msrb.mxu1 %v15249_v54  ;;  %11048 = vmatpush.bf16.msrb.mxu3 %v15441_v2  ;;  %v19626_v54 = vld [vmem:[%s30071_s5 + $0x934] sm:$0xf]  ;;  %v14958_v2 = vld [vmem:[%s30071_s5 + $0x618] sm:$0xf0]  ;;  %v10835_v0 = vpop.f32.mrf.mxu3 }
 0x364   : > { %v15369_v31 = vor.u32 %v19626_v54, %v15366_v55  ;;  %v16189_v54 = vor.u32 %v19834_v22, %v16188_v1  ;;  %v19746_v55 = vld [vmem:[%s30071_s5 + $0xcf4] sm:$0xf]  ;;  %v19822_v0 = vld [vmem:[%s30071_s5 + $0xf4c] sm:$0xf0]  ;;  %v16116_v1 = vld [vmem:[%s30071_s5 + $0xf08] sm:$0xf] }
 0x365   : > { %11377 = vmatpush.bf16.msrb.mxu2 %v15349_v58  ;;  %v16212_v58 = vld [vmem:[%s30071_s5 + $0xfc8] sm:$0xf]  ;;  %v19816_v22 = vld [vmem:[%s30071_s5 + $0xf1c] sm:$0xf0] }
 0x366   : > { %11023 = vmatpush.bf16.msrb.mxu0 %v15033_v63  ;;  %v15894_v63 = vld [vmem:[%s30071_s5 + $0xd68] sm:$0xf0] }
 0x367   : > { %11036 = vmatpush.bf16.msrb.mxu1 %v15225_v34  ;;  %11049 = vmatpush.bf16.msrb.mxu3 %v15417_v40  ;;  %v19840_v34 = vld [vmem:[%s30071_s5 + $0xfdc] sm:$0xf0]  ;;  %v14961_v40 = vor.u32 %v19524_v23, %v14958_v2  ;;  %v15897_v24 = vor.u32 %v19758_v59, %v15894_v63  ;;  %v16164_v23 = vld [vmem:[%s30071_s5 + $0xf68] sm:$0xf]  ;;  %v19740_v59 = vld [vmem:[%s30071_s5 + $0xcc4] sm:$0xf] }
 0x368   : > { %11378 = vmatmul.bf16.vlgmr.msrb.gmra.mxu2 %v22376_v30  ;;  %v16213_v47 = vor.u32 %v19840_v34, %v16212_v58  ;;  %v19828_v2 = vld [vmem:[%s30071_s5 + $0xf7c] sm:$0xf0]  ;;  %v15822_v63 = vld [vmem:[%s30071_s5 + $0xcd8] sm:$0xf0]  ;;  %v16233_v34 = vor.u32 %v19842_v11, %v16230_v17  ;;  %v19776_v11 = vld [vmem:[%s30071_s5 + $0xde4] sm:$0xf] }
 0x369   : > { %11422 = vmatpush.bf16.msra.mxu2 %v16285_v46  ;;  %v16086_v46 = vld [vmem:[%s30071_s5 + $0xee8] sm:$0xf0]  ;;  %v16165_v60 = vor.u32 %v19828_v2, %v16164_v23  ;;  %v19728_v23 = vld [vmem:[%s30071_s5 + $0xc64] sm:$0xf]  ;;  %v15774_v2 = vld [vmem:[%s30071_s5 + $0xc78] sm:$0xf0] }
 0x36a   : > { %11024 = vmatpush.bf16.msrb.mxu0 %v15009_v12  ;;  %v15870_v12 = vld [vmem:[%s30071_s5 + $0xd38] sm:$0xf0]  ;;  %v16089_v50 = vor.u32 %v19806_v27, %v16086_v46  ;;  %v16140_v27 = vld [vmem:[%s30071_s5 + $0xf38] sm:$0xf] }
 0x36b   : > { %11037 = vmatpush.bf16.msrb.mxu1 %v15201_v45  ;;  %11050 = vmatpush.bf16.msrb.mxu3 %v15393_v14  ;;  %v16281_v45 = vor.u32 %v19854_v10, %v16278_v41  ;;  %v16062_v14 = vld [vmem:[%s30071_s5 + $0xeb8] sm:$0xf0]  ;;  %v15873_v5 = vor.u32 %v19752_v53, %v15870_v12  ;;  %v19836_v10 = vld [vmem:[%s30071_s5 + $0xfc4] sm:$0xf] }
 0x36c   : > { %v16065_v18 = vor.u32 %v19800_v44, %v16062_v14  ;;  %v16014_v46 = vld [vmem:[%s30071_s5 + $0xe58] sm:$0xf0]  ;;  %v19782_v44 = vld [vmem:[%s30071_s5 + $0xe14] sm:$0xf] }
 0x36d   : > { %11423 = vmatpush.bf16.msra.mxu2 %v16261_v28  ;;  %v19848_v28 = vld [vmem:[%s30071_s5 + $0x1024] sm:$0xf]  ;;  %v16206_v41 = vld [vmem:[%s30071_s5 + $0xfd8] sm:$0xf0] }
 0x36e   : > { %11025 = vmatpush.bf16.msrb.mxu0 %v14985_v51  ;;  %v16257_v51 = vor.u32 %v19848_v28, %v16254_v15  ;;  %v15990_v28 = vld [vmem:[%s30071_s5 + $0xe28] sm:$0xf0]  ;;  %v19830_v15 = vld [vmem:[%s30071_s5 + $0xf94] sm:$0xf] }
 0x36f   : > { %11038 = vmatpush.bf16.msrb.mxu1 %v15177_v36  ;;  %11051 = vmatpush.bf16.msrb.mxu3 %v15369_v31  ;;  %v19794_v36 = vld [vmem:[%s30071_s5 + $0xe74] sm:$0xf]  ;;  %v24330_v31 = vpop.f32.mrf.mxu2 }
 0x370   : > { %v16041_v58 = vor.u32 %v19794_v36, %v16038_v19  ;;  %v15993_v36 = vor.u32 %v19782_v44, %v15990_v28  ;;  %v19716_v44 = vld [vmem:[%s30071_s5 + $0xc04] sm:$0xf] }
 0x371   : > { %11424 = vmatpush.bf16.msra.mxu2 %v16237_v48  ;;  %v15849_v48 = vor.u32 %v19746_v55, %v15846_v52  ;;  %v17052_v52 = vld [vmem:[%s30071_s5 + $0x1658] sm:$0xf]  ;;  %v19764_v28 = vld [vmem:[%s30071_s5 + $0xd84] sm:$0xf] }
 0x372   : > { %11026 = vmatpush.bf16.msrb.mxu0 %v14961_v40  ;;  %v19788_v40 = vld [vmem:[%s30071_s5 + $0xe44] sm:$0xf]  ;;  %v10846_v53 = vpop.f32.mrf.mxu0 }
 0x373   : > { %11039 = vmatpush.bf16.msrb.mxu1 %v15153_v8  ;;  %11052 = vmatpush.bf16.msrb.mxu3 %v15345_v39  ;;  %v15825_v8 = vor.u32 %v19740_v59, %v15822_v63  ;;  %v19734_v39 = vld [vmem:[%s30071_s5 + $0xc94] sm:$0xf]  ;;  %v10859_v12 = vpop.f32.mrf.mxu1  ;;  %v10847_v14 = vadd.f32 %v10846_v53, %v24210_v7  ;;  %v20050_v7 = vld [vmem:[%s30071_s5 + $0x166c] sm:$0xf0]  ;;  %v16158_v59 = vld [vmem:[%s30071_s5 + $0xf78] sm:$0xf0]  ;;  %v15777_v63 = vor.u32 %v19728_v23, %v15774_v2 }
 0x374   : > { %v17053_v17 = vor.u32 %v20050_v7, %v17052_v52  ;;  %v15942_v53 = vld [vmem:[%s30071_s5 + $0xdc8] sm:$0xf0]  ;;  %v16980_v23 = vld [vmem:[%s30071_s5 + $0x15c8] sm:$0xf] }
 0x375   : > { %11425 = vmatpush.bf16.msra.mxu2 %v16213_v47  ;;  %11027 = vmatmul.bf16.vlgmr.msrb.gmra.mxu0 %v22173_v61  ;;  %v15798_v47 = vld [vmem:[%s30071_s5 + $0xca8] sm:$0xf0] }
 0x376   : > { %11071 = vmatpush.bf16.msra.mxu0 %v15897_v24  ;;  %11040 = vmatmul.bf16.vlgmr.msrb.gmra.mxu1 %v22181_v29  ;;  %v16141_v24 = vor.u32 %v19822_v0, %v16140_v27  ;;  %v15801_v55 = vor.u32 %v19734_v39, %v15798_v47  ;;  %v19722_v0 = vld [vmem:[%s30071_s5 + $0xc34] sm:$0xf]  ;;  %v16662_v52 = vld [vmem:[%s30071_s5 + $0x1368] sm:$0xf0] }
 0x377   : > { %11084 = vmatpush.bf16.msra.mxu1 %v16089_v50  ;;  %11097 = vmatpush.bf16.msra.mxu3 %v16281_v45  ;;  %v16017_v50 = vor.u32 %v19788_v40, %v16014_v46  ;;  %v16209_v45 = vor.u32 %v19836_v10, %v16206_v41  ;;  %v15750_v40 = vld [vmem:[%s30071_s5 + $0xc48] sm:$0xf0]  ;;  %v19770_v39 = vld [vmem:[%s30071_s5 + $0xdb4] sm:$0xf] }
 0x378   : > { %11053 = vmatmul.bf16.vlgmr.msrb.gmra.mxu3 %v22376_v30 }
 0x379   : > { %11426 = vmatpush.bf16.msra.mxu2 %v16189_v54  ;;  %v11173_v54 = vpop.f32.mrf.mxu2 }
 0x37a   : > { %11072 = vmatpush.bf16.msra.mxu0 %v15873_v5  ;;  %v16182_v5 = vld [vmem:[%s30071_s5 + $0xfa8] sm:$0xf0]  ;;  %v10848_v10 = vpop.f32.mrf.mxu0  ;;  %v15918_v54 = vld [vmem:[%s30071_s5 + $0xd98] sm:$0xf0] }
 0x37b   : > { %11085 = vmatpush.bf16.msra.mxu1 %v16065_v18  ;;  %11098 = vmatpush.bf16.msra.mxu3 %v16257_v51  ;;  %v10860_v18 = vadd.f32 %v10859_v12, %v10847_v14  ;;  %v16117_v51 = vor.u32 %v19816_v22, %v16116_v1  ;;  %v16185_v19 = vor.u32 %v19830_v15, %v16182_v5  ;;  %v10872_v27 = vpop.f32.mrf.mxu3  ;;  %v10861_v41 = vpop.f32.mrf.mxu1  ;;  %v19818_v12 = vld [vmem:[%s30071_s5 + $0xf34] sm:$0xf]  ;;  %v17004_v1 = vld [vmem:[%s30071_s5 + $0x15f8] sm:$0xf]  ;;  %v20038_v22 = vld [vmem:[%s30071_s5 + $0x160c] sm:$0xf0] }
 0x37c   : > { %v15726_v14 = vld [vmem:[%s30071_s5 + $0xc18] sm:$0xf0]  ;;  %v15945_v15 = vor.u32 %v19770_v39, %v15942_v53  ;;  %v17005_v7 = vor.u32 %v20038_v22, %v17004_v1  ;;  %v16932_v1 = vld [vmem:[%s30071_s5 + $0x1568] sm:$0xf]  ;;  %v19938_v22 = vld [vmem:[%s30071_s5 + $0x12f4] sm:$0xf] }
 0x37d   : > { %11427 = vmatpush.bf16.msra.mxu2 %v16165_v60  ;;  %v19824_v60 = vld [vmem:[%s30071_s5 + $0xf64] sm:$0xf]  ;;  %v24417_v46 = vadd.f32 %v10872_v27, %v10860_v18  ;;  %v15729_v2 = vor.u32 %v19716_v44, %v15726_v14  ;;  %v16638_v10 = vld [vmem:[%s30071_s5 + $0x1338] sm:$0xf0]  ;;  %v16614_v44 = vld [vmem:[%s30071_s5 + $0x1308] sm:$0xf0] }
 0x37e   : > { %11073 = vmatpush.bf16.msra.mxu0 %v15849_v48  ;;  %v15966_v48 = vld [vmem:[%s30071_s5 + $0xdf8] sm:$0xf0]  ;;  %v19812_v18 = vld [vmem:[%s30071_s5 + $0xf04] sm:$0xf] }
 0x37f   : > { %11086 = vmatpush.bf16.msra.mxu1 %v16041_v58  ;;  %11099 = vmatpush.bf16.msra.mxu3 %v16233_v34  ;;  %v17028_v58 = vld [vmem:[%s30071_s5 + $0x1628] sm:$0xf]  ;;  %v20044_v34 = vld [vmem:[%s30071_s5 + $0x163c] sm:$0xf0]  ;;  %v16830_v39 = vld [vmem:[%s30071_s5 + $0x14b8] sm:$0xf0] }
 0x380   : > { %v17029_v47 = vor.u32 %v20044_v34, %v17028_v58  ;;  %v17022_v53 = vld [vmem:[%s30071_s5 + $0x1638] sm:$0xf0] }
 0x381   : > { %11428 = vmatpush.bf16.msra.mxu2 %v16141_v24  ;;  %v16161_v24 = vor.u32 %v19824_v60, %v16158_v59  ;;  %v20046_v60 = vld [vmem:[%s30071_s5 + $0x1654] sm:$0xf]  ;;  %v17046_v59 = vld [vmem:[%s30071_s5 + $0x1668] sm:$0xf0] }
 0x382   : > { %11074 = vmatpush.bf16.msra.mxu0 %v15825_v8  ;;  %v15969_v8 = vor.u32 %v19776_v11, %v15966_v48  ;;  %v16854_v11 = vld [vmem:[%s30071_s5 + $0x14e8] sm:$0xf0]  ;;  %v17049_v41 = vor.u32 %v20046_v60, %v17046_v59  ;;  %v20028_v60 = vld [vmem:[%s30071_s5 + $0x15c4] sm:$0xf]  ;;  %v16974_v59 = vld [vmem:[%s30071_s5 + $0x15d8] sm:$0xf0] }
 0x383   : > { %11087 = vmatpush.bf16.msra.mxu1 %v16017_v50  ;;  %11100 = vmatpush.bf16.msra.mxu3 %v16209_v45  ;;  %v16134_v50 = vld [vmem:[%s30071_s5 + $0xf48] sm:$0xf0]  ;;  %v15753_v45 = vor.u32 %v19722_v0, %v15750_v40  ;;  %v16956_v0 = vld [vmem:[%s30071_s5 + $0x1598] sm:$0xf]  ;;  %v19944_v40 = vld [vmem:[%s30071_s5 + $0x1324] sm:$0xf] }
 0x384   : > { %v16137_v5 = vor.u32 %v19818_v12, %v16134_v50  ;;  %v16641_v12 = vor.u32 %v19944_v40, %v16638_v10  ;;  %v20008_v40 = vld [vmem:[%s30071_s5 + $0x151c] sm:$0xf0]  ;;  %v19926_v10 = vld [vmem:[%s30071_s5 + $0x1294] sm:$0xf] }
 0x385   : > { %11429 = vmatpush.bf16.msra.mxu2 %v16117_v51  ;;  %v16110_v51 = vld [vmem:[%s30071_s5 + $0xf18] sm:$0xf0] }
 0x386   : > { %11075 = vmatpush.bf16.msra.mxu0 %v15801_v55  ;;  %v19950_v55 = vld [vmem:[%s30071_s5 + $0x1354] sm:$0xf]  ;;  %v16113_v58 = vor.u32 %v19812_v18, %v16110_v51 }
 0x387   : > { %11088 = vmatpush.bf16.msra.mxu1 %v15993_v36  ;;  %11101 = vmatpush.bf16.msra.mxu3 %v16185_v19  ;;  %v20032_v36 = vld [vmem:[%s30071_s5 + $0x15dc] sm:$0xf0]  ;;  %v19998_v19 = vld [vmem:[%s30071_s5 + $0x14d4] sm:$0xf]  ;;  %v16665_v48 = vor.u32 %v19950_v55, %v16662_v52  ;;  %v16998_v52 = vld [vmem:[%s30071_s5 + $0x1608] sm:$0xf0] }
 0x388   : > { %11430 = vmatmul.bf16.vlgmr.msra.gmra.mxu2 %v22686_v32  ;;  %v16981_v34 = vor.u32 %v20032_v36, %v16980_v23  ;;  %v16857_v27 = vor.u32 %v19998_v19, %v16854_v11  ;;  %v20034_v55 = vld [vmem:[%s30071_s5 + $0x15f4] sm:$0xf]  ;;  %v16908_v23 = vld [vmem:[%s30071_s5 + $0x1538] sm:$0xf]  ;;  %v16590_v36 = vld [vmem:[%s30071_s5 + $0x12d8] sm:$0xf0] }
 0x389   : > { %11474 = vmatpush.bf16.msrb.mxu2 %v17053_v17  ;;  %v10874_v17 = vpop.f32.mrf.mxu3  ;;  %v17001_v19 = vor.u32 %v20034_v55, %v16998_v52  ;;  %v20014_v11 = vld [vmem:[%s30071_s5 + $0x154c] sm:$0xf0] }
 0x38a   : > { %11076 = vmatpush.bf16.msra.mxu0 %v15777_v63  ;;  %v15921_v63 = vor.u32 %v19764_v28, %v15918_v54  ;;  %v20020_v28 = vld [vmem:[%s30071_s5 + $0x157c] sm:$0xf0]  ;;  %v19980_v17 = vld [vmem:[%s30071_s5 + $0x1444] sm:$0xf] }
 0x38b   : > { %11089 = vmatpush.bf16.msra.mxu1 %v15969_v8  ;;  %11102 = vmatpush.bf16.msra.mxu3 %v16161_v24  ;;  %v20026_v8 = vld [vmem:[%s30071_s5 + $0x15ac] sm:$0xf0]  ;;  %v19992_v24 = vld [vmem:[%s30071_s5 + $0x14a4] sm:$0xf]  ;;  %v24525_v54 = vpop.f32.mrf.mxu2  ;;  %v16933_v18 = vor.u32 %v20020_v28, %v16932_v1 }
 0x38c   : > { %v16957_v50 = vor.u32 %v20026_v8, %v16956_v0  ;;  %v20242_v1 = vld [vmem:[%s30071_s5 + $0x1c6c] sm:$0xf0] }
 0x38d   : > { %11475 = vmatpush.bf16.msrb.mxu2 %v17029_v47  ;;  %v20040_v47 = vld [vmem:[%s30071_s5 + $0x1624] sm:$0xf] }
 0x38e   : > { %11077 = vmatpush.bf16.msra.mxu0 %v15753_v45  ;;  %v16833_v45 = vor.u32 %v19992_v24, %v16830_v39  ;;  %v17025_v14 = vor.u32 %v20040_v47, %v17022_v53  ;;  %v16977_v39 = vor.u32 %v20028_v60, %v16974_v59  ;;  %v19974_v47 = vld [vmem:[%s30071_s5 + $0x1414] sm:$0xf]  ;;  %v16758_v53 = vld [vmem:[%s30071_s5 + $0x1428] sm:$0xf0] }
 0x38f   : > { %11090 = vmatpush.bf16.msra.mxu1 %v15945_v15  ;;  %11103 = vmatpush.bf16.msra.mxu3 %v16137_v5  ;;  %v19986_v15 = vld [vmem:[%s30071_s5 + $0x1474] sm:$0xf]  ;;  %v16806_v5 = vld [vmem:[%s30071_s5 + $0x1488] sm:$0xf0]  ;;  %v16761_v28 = vor.u32 %v19974_v47, %v16758_v53  ;;  %v19908_v47 = vld [vmem:[%s30071_s5 + $0x1204] sm:$0xf] }
 0x390   : > { %v16809_v51 = vor.u32 %v19986_v15, %v16806_v5  ;;  %v19920_v15 = vld [vmem:[%s30071_s5 + $0x1264] sm:$0xf]  ;;  %v16542_v5 = vld [vmem:[%s30071_s5 + $0x1278] sm:$0xf0]  ;;  %v19914_v59 = vld [vmem:[%s30071_s5 + $0x1234] sm:$0xf] }
 0x391   : > { %11476 = vmatpush.bf16.msrb.mxu2 %v17005_v7  ;;  %v16617_v7 = vor.u32 %v19938_v22, %v16614_v44  ;;  %v16494_v53 = vld [vmem:[%s30071_s5 + $0x1218] sm:$0xf0] }
 0x392   : > { %11078 = vmatpush.bf16.msra.mxu0 %v15729_v2  ;;  %v19932_v2 = vld [vmem:[%s30071_s5 + $0x12c4] sm:$0xf] }
 0x393   : > { %11091 = vmatpush.bf16.msra.mxu1 %v15921_v63  ;;  %11104 = vmatpush.bf16.msra.mxu3 %v16113_v58  ;;  %v16593_v63 = vor.u32 %v19932_v2, %v16590_v36  ;;  %v16884_v58 = vld [vmem:[%s30071_s5 + $0x1508] sm:$0xf]  ;;  %v10898_v24 = vpop.f32.mrf.mxu1  ;;  %v20236_v36 = vld [vmem:[%s30071_s5 + $0x1c3c] sm:$0xf0] }
 0x394   : > { %v17796_v2 = vld [vmem:[%s30071_s5 + $0x1c28] sm:$0xf] }
 0x395   : > { %11477 = vmatpush.bf16.msrb.mxu2 %v16981_v34  ;;  %11079 = vmatmul.bf16.vlgmr.msra.gmra.mxu0 %v22380_v20  ;;  %v10885_v34 = vpop.f32.mrf.mxu0 }
 0x396   : > { %11123 = vmatpush.bf16.msrb.mxu0 %v16665_v48  ;;  %11092 = vmatmul.bf16.vlgmr.msra.gmra.mxu1 %v22684_v37  ;;  %v16782_v48 = vld [vmem:[%s30071_s5 + $0x1458] sm:$0xf0]  ;;  %v10886_v8 = vadd.f32 %v10885_v34, %v24417_v46  ;;  %v17820_v46 = vld [vmem:[%s30071_s5 + $0x1c58] sm:$0xf] }
 0x397   : > { %11136 = vmatpush.bf16.msrb.mxu1 %v16857_v27  ;;  %11149 = vmatpush.bf16.msrb.mxu3 %v17049_v41  ;;  %v16909_v27 = vor.u32 %v20014_v11, %v16908_v23  ;;  %v16785_v0 = vor.u32 %v19980_v17, %v16782_v48  ;;  %v16566_v41 = vld [vmem:[%s30071_s5 + $0x12a8] sm:$0xf0]  ;;  %v17821_v52 = vor.u32 %v20242_v1, %v17820_v46  ;;  %v16926_v23 = vld [vmem:[%s30071_s5 + $0x1578] sm:$0xf0]  ;;  %v20004_v46 = vld [vmem:[%s30071_s5 + $0x1504] sm:$0xf] }
 0x398   : > { %11105 = vmatmul.bf16.vlgmr.msra.gmra.mxu3 %v22686_v32  ;;  %v10899_v22 = vadd.f32 %v10898_v24, %v10886_v8  ;;  %v16569_v44 = vor.u32 %v19926_v10, %v16566_v41  ;;  %v16545_v11 = vor.u32 %v19920_v15, %v16542_v5  ;;  %v20010_v10 = vld [vmem:[%s30071_s5 + $0x1534] sm:$0xf]  ;;  %v16902_v41 = vld [vmem:[%s30071_s5 + $0x1548] sm:$0xf0]  ;;  %v17772_v8 = vld [vmem:[%s30071_s5 + $0x1bf8] sm:$0xf] }
 0x399   : > { %11478 = vmatpush.bf16.msrb.mxu2 %v16957_v50  ;;  %v11225_v50 = vpop.f32.mrf.mxu2  ;;  %v20230_v24 = vld [vmem:[%s30071_s5 + $0x1c0c] sm:$0xf0]  ;;  %v16905_v1 = vor.u32 %v20010_v10, %v16902_v41  ;;  %v17748_v15 = vld [vmem:[%s30071_s5 + $0x1bc8] sm:$0xf]  ;;  %v20224_v5 = vld [vmem:[%s30071_s5 + $0x1bdc] sm:$0xf0] }
 0x39a   : > { %11124 = vmatpush.bf16.msrb.mxu0 %v16641_v12  ;;  %v20022_v12 = vld [vmem:[%s30071_s5 + $0x1594] sm:$0xf]  ;;  %v19956_v50 = vld [vmem:[%s30071_s5 + $0x1384] sm:$0xf]  ;;  %v17790_v10 = vld [vmem:[%s30071_s5 + $0x1c38] sm:$0xf0] }
 0x39b   : > { %11137 = vmatpush.bf16.msrb.mxu1 %v16833_v45  ;;  %11150 = vmatpush.bf16.msrb.mxu3 %v17025_v14  ;;  %v16950_v45 = vld [vmem:[%s30071_s5 + $0x15a8] sm:$0xf0]  ;;  %v16885_v14 = vor.u32 %v20008_v40, %v16884_v58  ;;  %v10900_v58 = vpop.f32.mrf.mxu1 }
 0x39c   : > { %v16953_v55 = vor.u32 %v20022_v12, %v16950_v45  ;;  %v16710_v40 = vld [vmem:[%s30071_s5 + $0x13c8] sm:$0xf0]  ;;  %v16686_v45 = vld [vmem:[%s30071_s5 + $0x1398] sm:$0xf0]  ;;  %v17724_v58 = vld [vmem:[%s30071_s5 + $0x1b98] sm:$0xf] }
 0x39d   : > { %11479 = vmatpush.bf16.msrb.mxu2 %v16933_v18  ;;  %v16734_v18 = vld [vmem:[%s30071_s5 + $0x13f8] sm:$0xf0]  ;;  %v10887_v48 = vpop.f32.mrf.mxu0 }
 0x39e   : > { %11125 = vmatpush.bf16.msrb.mxu0 %v16617_v7  ;;  %v19968_v7 = vld [vmem:[%s30071_s5 + $0x13e4] sm:$0xf] }
 0x39f   : > { %11138 = vmatpush.bf16.msrb.mxu1 %v16809_v51  ;;  %11151 = vmatpush.bf16.msrb.mxu3 %v17001_v19  ;;  %v20016_v51 = vld [vmem:[%s30071_s5 + $0x1564] sm:$0xf]  ;;  %v10911_v19 = vpop.f32.mrf.mxu3  ;;  %v16737_v60 = vor.u32 %v19968_v7, %v16734_v18  ;;  %v16497_v7 = vor.u32 %v19908_v47, %v16494_v53  ;;  %v17622_v18 = vld [vmem:[%s30071_s5 + $0x1ae8] sm:$0xf0] }
 0x3a0   : > { %v24612_v17 = vadd.f32 %v10911_v19, %v10899_v22  ;;  %v16929_v34 = vor.u32 %v20016_v51, %v16926_v23  ;;  %v17773_v22 = vor.u32 %v20230_v24, %v17772_v8  ;;  %v20238_v51 = vld [vmem:[%s30071_s5 + $0x1c54] sm:$0xf]  ;;  %v17814_v23 = vld [vmem:[%s30071_s5 + $0x1c68] sm:$0xf0]  ;;  %v20136_v48 = vld [vmem:[%s30071_s5 + $0x1924] sm:$0xf] }
 0x3a1   : > { %11480 = vmatpush.bf16.msrb.mxu2 %v16909_v27  ;;  %v17797_v27 = vor.u32 %v20236_v36, %v17796_v2  ;;  %v16689_v2 = vor.u32 %v19956_v50, %v16686_v45  ;;  %v20130_v24 = vld [vmem:[%s30071_s5 + $0x18f4] sm:$0xf]  ;;  %v20212_v50 = vld [vmem:[%s30071_s5 + $0x1b7c] sm:$0xf0] }
 0x3a2   : > { %11126 = vmatpush.bf16.msrb.mxu0 %v16593_v63  ;;  %v16518_v63 = vld [vmem:[%s30071_s5 + $0x1248] sm:$0xf0]  ;;  %v20178_v45 = vld [vmem:[%s30071_s5 + $0x1a74] sm:$0xf] }
 0x3a3   : > { %11139 = vmatpush.bf16.msrb.mxu1 %v16785_v0  ;;  %11152 = vmatpush.bf16.msrb.mxu3 %v16977_v39  ;;  %v19962_v0 = vld [vmem:[%s30071_s5 + $0x13b4] sm:$0xf]  ;;  %v16521_v39 = vor.u32 %v19914_v59, %v16518_v63  ;;  %v17817_v63 = vor.u32 %v20238_v51, %v17814_v23  ;;  %v20172_v51 = vld [vmem:[%s30071_s5 + $0x1a44] sm:$0xf]  ;;  %v17550_v23 = vld [vmem:[%s30071_s5 + $0x1a58] sm:$0xf0] }
 0x3a4   : > { %v16713_v12 = vor.u32 %v19962_v0, %v16710_v40  ;;  %v17598_v0 = vld [vmem:[%s30071_s5 + $0x1ab8] sm:$0xf0]  ;;  %v20232_v40 = vld [vmem:[%s30071_s5 + $0x1c24] sm:$0xf] }
 0x3a5   : > { %11481 = vmatpush.bf16.msrb.mxu2 %v16885_v14  ;;  %v20142_v14 = vld [vmem:[%s30071_s5 + $0x1954] sm:$0xf]  ;;  %v17793_v53 = vor.u32 %v20232_v40, %v17790_v10 }
 0x3a6   : > { %11127 = vmatpush.bf16.msrb.mxu0 %v16569_v44  ;;  %v16878_v44 = vld [vmem:[%s30071_s5 + $0x1518] sm:$0xf0]  ;;  %v20166_v40 = vld [vmem:[%s30071_s5 + $0x1a14] sm:$0xf] }
 0x3a7   : > { %11140 = vmatpush.bf16.msrb.mxu1 %v16761_v28  ;;  %11153 = vmatpush.bf16.msrb.mxu3 %v16953_v55  ;;  %v17430_v28 = vld [vmem:[%s30071_s5 + $0x1968] sm:$0xf0]  ;;  %v20190_v55 = vld [vmem:[%s30071_s5 + $0x1ad4] sm:$0xf]  ;;  %v16881_v19 = vor.u32 %v20004_v46, %v16878_v44 }
 0x3a8   : > { %11482 = vmatmul.bf16.vlgmr.msrb.gmra.mxu2 %v22992_v6  ;;  %v17433_v36 = vor.u32 %v20142_v14, %v17430_v28  ;;  %v17625_v59 = vor.u32 %v20190_v55, %v17622_v18  ;;  %v17574_v46 = vld [vmem:[%s30071_s5 + $0x1a88] sm:$0xf0]  ;;  %v20206_v18 = vld [vmem:[%s30071_s5 + $0x1b4c] sm:$0xf0] }
 0x3a9   : > { %11526 = vmatpush.bf16.msra.mxu2 %v17821_v52  ;;  %v10913_v52 = vpop.f32.mrf.mxu3  ;;  %v17577_v55 = vor.u32 %v20178_v45, %v17574_v46  ;;  %v20112_v45 = vld [vmem:[%s30071_s5 + $0x1864] sm:$0xf]  ;;  %v17310_v46 = vld [vmem:[%s30071_s5 + $0x1878] sm:$0xf0] }
 0x3aa   : > { %11128 = vmatpush.bf16.msrb.mxu0 %v16545_v11  ;;  %v17749_v11 = vor.u32 %v20224_v5, %v17748_v15  ;;  %v20124_v15 = vld [vmem:[%s30071_s5 + $0x18c4] sm:$0xf]  ;;  %v17358_v5 = vld [vmem:[%s30071_s5 + $0x18d8] sm:$0xf0] }
 0x3ab   : > { %11141 = vmatpush.bf16.msrb.mxu1 %v16737_v60  ;;  %11154 = vmatpush.bf16.msrb.mxu3 %v16929_v34  ;;  %v17406_v60 = vld [vmem:[%s30071_s5 + $0x1938] sm:$0xf0]  ;;  %v20218_v34 = vld [vmem:[%s30071_s5 + $0x1bac] sm:$0xf0] }
 0x3ac   : > { %v17409_v41 = vor.u32 %v20136_v48, %v17406_v60  ;;  %v17725_v8 = vor.u32 %v20218_v34, %v17724_v58  ;;  %v20118_v48 = vld [vmem:[%s30071_s5 + $0x1894] sm:$0xf]  ;;  %v17334_v60 = vld [vmem:[%s30071_s5 + $0x18a8] sm:$0xf0]  ;;  %v17553_v58 = vor.u32 %v20172_v51, %v17550_v23 }
 0x3ad   : > { %11527 = vmatpush.bf16.msra.mxu2 %v17797_v27  ;;  %v20184_v27 = vld [vmem:[%s30071_s5 + $0x1aa4] sm:$0xf]  ;;  %v24732_v44 = vpop.f32.mrf.mxu2  ;;  %v20106_v23 = vld [vmem:[%s30071_s5 + $0x1834] sm:$0xf] }
 0x3ae   : > { %11129 = vmatpush.bf16.msrb.mxu0 %v16521_v39  ;;  %v17382_v39 = vld [vmem:[%s30071_s5 + $0x1908] sm:$0xf0]  ;;  %v17601_v47 = vor.u32 %v20184_v27, %v17598_v0  ;;  %v17652_v27 = vld [vmem:[%s30071_s5 + $0x1b08] sm:$0xf]  ;;  %v20200_v0 = vld [vmem:[%s30071_s5 + $0x1b1c] sm:$0xf0] }
 0x3af   : > { %11142 = vmatpush.bf16.msrb.mxu1 %v16713_v12  ;;  %11155 = vmatpush.bf16.msrb.mxu3 %v16905_v1  ;;  %v17700_v12 = vld [vmem:[%s30071_s5 + $0x1b68] sm:$0xf]  ;;  %v20226_v1 = vld [vmem:[%s30071_s5 + $0x1bf4] sm:$0xf]  ;;  %v17385_v14 = vor.u32 %v20130_v24, %v17382_v39  ;;  %v17718_v24 = vld [vmem:[%s30071_s5 + $0x1ba8] sm:$0xf0] }
 0x3b0   : > { %v17701_v28 = vor.u32 %v20212_v50, %v17700_v12  ;;  %v17653_v50 = vor.u32 %v20200_v0, %v17652_v27  ;;  %v17670_v27 = vld [vmem:[%s30071_s5 + $0x1b48] sm:$0xf0] }
 0x3b1   : > { %11528 = vmatpush.bf16.msra.mxu2 %v17773_v22  ;;  %v17766_v22 = vld [vmem:[%s30071_s5 + $0x1c08] sm:$0xf0] }
 0x3b2   : > { %11130 = vmatpush.bf16.msrb.mxu0 %v16497_v7  ;;  %v17769_v52 = vor.u32 %v20226_v1, %v17766_v22  ;;  %v17676_v7 = vld [vmem:[%s30071_s5 + $0x1b38] sm:$0xf] }
 0x3b3   : > { %11143 = vmatpush.bf16.msrb.mxu1 %v16689_v2  ;;  %11156 = vmatpush.bf16.msrb.mxu3 %v16881_v19  ;;  %v20220_v2 = vld [vmem:[%s30071_s5 + $0x1bc4] sm:$0xf]  ;;  %v17361_v19 = vor.u32 %v20124_v15, %v17358_v5  ;;  %v17502_v15 = vld [vmem:[%s30071_s5 + $0x19f8] sm:$0xf0] }
 0x3b4   : > { %v20208_v5 = vld [vmem:[%s30071_s5 + $0x1b64] sm:$0xf] }
 0x3b5   : > { %11529 = vmatpush.bf16.msra.mxu2 %v17749_v11  ;;  %11131 = vmatmul.bf16.vlgmr.msrb.gmra.mxu0 %v22984_v38  ;;  %v17677_v11 = vor.u32 %v20206_v18, %v17676_v7  ;;  %v11277_v39 = vpop.f32.mrf.mxu2  ;;  %v18564_v7 = vld [vmem:[%s30071_s5 + $0x2228] sm:$0xf]  ;;  %v20428_v18 = vld [vmem:[%s30071_s5 + $0x223c] sm:$0xf0] }
 0x3b6   : > { %11175 = vmatpush.bf16.msra.mxu0 %v17433_v36  ;;  %11144 = vmatmul.bf16.vlgmr.msrb.gmra.mxu1 %v22986_v4  ;;  %v17742_v36 = vld [vmem:[%s30071_s5 + $0x1bd8] sm:$0xf0] }
 0x3b7   : > { %11188 = vmatpush.bf16.msra.mxu1 %v17625_v59  ;;  %11201 = vmatpush.bf16.msra.mxu3 %v17817_v63  ;;  %v10924_v59 = vpop.f32.mrf.mxu0  ;;  %v10937_v63 = vpop.f32.mrf.mxu1  ;;  %v17745_v34 = vor.u32 %v20220_v2, %v17742_v36  ;;  %v17286_v2 = vld [vmem:[%s30071_s5 + $0x1848] sm:$0xf0] }
 0x3b8   : > { %11157 = vmatmul.bf16.vlgmr.msrb.gmra.mxu3 %v22992_v6  ;;  %v10925_v10 = vadd.f32 %v10924_v59, %v24612_v17  ;;  %v20434_v17 = vld [vmem:[%s30071_s5 + $0x226c] sm:$0xf0]  ;;  %v20154_v59 = vld [vmem:[%s30071_s5 + $0x19b4] sm:$0xf]  ;;  %v17289_v0 = vor.u32 %v20106_v23, %v17286_v2 }
 0x3b9   : > { %11530 = vmatpush.bf16.msra.mxu2 %v17725_v8  ;;  %v20214_v8 = vld [vmem:[%s30071_s5 + $0x1b94] sm:$0xf] }
 0x3ba   : > { %11176 = vmatpush.bf16.msra.mxu0 %v17409_v41  ;;  %v17526_v41 = vld [vmem:[%s30071_s5 + $0x1a28] sm:$0xf0]  ;;  %v10938_v12 = vadd.f32 %v10937_v63, %v10925_v10  ;;  %v17721_v22 = vor.u32 %v20214_v8, %v17718_v24  ;;  %v18565_v63 = vor.u32 %v20428_v18, %v18564_v7  ;;  %v20422_v10 = vld [vmem:[%s30071_s5 + $0x220c] sm:$0xf0]  ;;  %v17262_v8 = vld [vmem:[%s30071_s5 + $0x1818] sm:$0xf0] }
 0x3bb   : > { %11189 = vmatpush.bf16.msra.mxu1 %v17601_v47  ;;  %11202 = vmatpush.bf16.msra.mxu3 %v17793_v53  ;;  %v17337_v47 = vor.u32 %v20118_v48, %v17334_v60  ;;  %v18588_v53 = vld [vmem:[%s30071_s5 + $0x2258] sm:$0xf]  ;;  %v17529_v1 = vor.u32 %v20166_v40, %v17526_v41  ;;  %v10950_v51 = vpop.f32.mrf.mxu3  ;;  %v20100_v41 = vld [vmem:[%s30071_s5 + $0x1804] sm:$0xf]  ;;  %v18582_v7 = vld [vmem:[%s30071_s5 + $0x2268] sm:$0xf0] }
 0x3bc   : > { %v24819_v36 = vadd.f32 %v10950_v51, %v10938_v12  ;;  %v18540_v40 = vld [vmem:[%s30071_s5 + $0x21f8] sm:$0xf]  ;;  %v20148_v24 = vld [vmem:[%s30071_s5 + $0x1984] sm:$0xf]  ;;  %v18198_v12 = vld [vmem:[%s30071_s5 + $0x1f68] sm:$0xf0] }
 0x3bd   : > { %11531 = vmatpush.bf16.msra.mxu2 %v17701_v28  ;;  %v18589_v28 = vor.u32 %v20434_v17, %v18588_v53  ;;  %v17454_v53 = vld [vmem:[%s30071_s5 + $0x1998] sm:$0xf0]  ;;  %v20334_v17 = vld [vmem:[%s30071_s5 + $0x1f54] sm:$0xf] }
 0x3be   : > { %11177 = vmatpush.bf16.msra.mxu0 %v17385_v14  ;;  %v20160_v14 = vld [vmem:[%s30071_s5 + $0x19e4] sm:$0xf]  ;;  %v17457_v18 = vor.u32 %v20148_v24, %v17454_v53  ;;  %v18150_v24 = vld [vmem:[%s30071_s5 + $0x1f08] sm:$0xf0]  ;;  %v20370_v53 = vld [vmem:[%s30071_s5 + $0x2074] sm:$0xf] }
 0x3bf   : > { %11190 = vmatpush.bf16.msra.mxu1 %v17577_v55  ;;  %11203 = vmatpush.bf16.msra.mxu3 %v17769_v52  ;;  %v17694_v55 = vld [vmem:[%s30071_s5 + $0x1b78] sm:$0xf0]  ;;  %v17313_v52 = vor.u32 %v20112_v45, %v17310_v46  ;;  %v17505_v48 = vor.u32 %v20160_v14, %v17502_v15  ;;  %v20196_v45 = vld [vmem:[%s30071_s5 + $0x1b04] sm:$0xf]  ;;  %v20416_v14 = vld [vmem:[%s30071_s5 + $0x21dc] sm:$0xf0] }
 0x3c0   : > { %v17697_v60 = vor.u32 %v20208_v5, %v17694_v55  ;;  %v17646_v46 = vld [vmem:[%s30071_s5 + $0x1b18] sm:$0xf0]  ;;  %v18390_v15 = vld [vmem:[%s30071_s5 + $0x20e8] sm:$0xf0]  ;;  %v18201_v55 = vor.u32 %v20334_v17, %v18198_v12 }
 0x3c1   : > { %11532 = vmatpush.bf16.msra.mxu2 %v17677_v11  ;;  %v10939_v11 = vpop.f32.mrf.mxu1  ;;  %v17649_v51 = vor.u32 %v20196_v45, %v17646_v46  ;;  %v18342_v17 = vld [vmem:[%s30071_s5 + $0x2088] sm:$0xf0] }
 0x3c2   : > { %11178 = vmatpush.bf16.msra.mxu0 %v17361_v19  ;;  %v10926_v19 = vpop.f32.mrf.mxu0  ;;  %v20328_v11 = vld [vmem:[%s30071_s5 + $0x1f24] sm:$0xf]  ;;  %v18534_v45 = vld [vmem:[%s30071_s5 + $0x2208] sm:$0xf0] }
 0x3c3   : > { %11191 = vmatpush.bf16.msra.mxu1 %v17553_v58  ;;  %11204 = vmatpush.bf16.msra.mxu3 %v17745_v34  ;;  %v17478_v58 = vld [vmem:[%s30071_s5 + $0x19c8] sm:$0xf0]  ;;  %v20202_v34 = vld [vmem:[%s30071_s5 + $0x1b34] sm:$0xf]  ;;  %v10952_v5 = vpop.f32.mrf.mxu3  ;;  %v18492_v19 = vld [vmem:[%s30071_s5 + $0x2198] sm:$0xf] }
 0x3c4   : > { %v17481_v39 = vor.u32 %v20154_v59, %v17478_v58  ;;  %v20410_v59 = vld [vmem:[%s30071_s5 + $0x21ac] sm:$0xf0]  ;;  %v18366_v58 = vld [vmem:[%s30071_s5 + $0x20b8] sm:$0xf0] }
 0x3c5   : > { %11533 = vmatpush.bf16.msra.mxu2 %v17653_v50  ;;  %v18541_v50 = vor.u32 %v20422_v10, %v18540_v40  ;;  %v18493_v40 = vor.u32 %v20410_v59, %v18492_v19  ;;  %v20310_v59 = vld [vmem:[%s30071_s5 + $0x1e94] sm:$0xf] }
 0x3c6   : > { %11179 = vmatpush.bf16.msra.mxu0 %v17337_v47  ;;  %v17673_v47 = vor.u32 %v20202_v34, %v17670_v27  ;;  %v20424_v34 = vld [vmem:[%s30071_s5 + $0x2224] sm:$0xf]  ;;  %v18558_v27 = vld [vmem:[%s30071_s5 + $0x2238] sm:$0xf0] }
 0x3c7   : > { %11192 = vmatpush.bf16.msra.mxu1 %v17529_v1  ;;  %11205 = vmatpush.bf16.msra.mxu3 %v17721_v22  ;;  %v18516_v1 = vld [vmem:[%s30071_s5 + $0x21c8] sm:$0xf]  ;;  %v17265_v22 = vor.u32 %v20100_v41, %v17262_v8  ;;  %v20322_v8 = vld [vmem:[%s30071_s5 + $0x1ef4] sm:$0xf] }
 0x3c8   : > { %11534 = vmatmul.bf16.vlgmr.msra.gmra.mxu2 %v23617_v25  ;;  %v18517_v23 = vor.u32 %v20416_v14, %v18516_v1  ;;  %v18468_v41 = vld [vmem:[%s30071_s5 + $0x2168] sm:$0xf]  ;;  %v18153_v46 = vor.u32 %v20322_v8, %v18150_v24  ;;  %v18444_v14 = vld [vmem:[%s30071_s5 + $0x2138] sm:$0xf]  ;;  %v18486_v8 = vld [vmem:[%s30071_s5 + $0x21a8] sm:$0xf0] }
 0x3c9   : > { %11578 = vmatpush.bf16.msrb.mxu2 %v18589_v28  ;;  %v20382_v28 = vld [vmem:[%s30071_s5 + $0x20d4] sm:$0xf]  ;;  %v19423_v24 = vld [vmem:[%s30071_s5 + $0x2dc] sm:$0xf] }
 0x3ca   : > { %11180 = vmatpush.bf16.msra.mxu0 %v17313_v52  ;;  %v20430_v52 = vld [vmem:[%s30071_s5 + $0x2254] sm:$0xf]  ;;  %v18393_v2 = vor.u32 %v20382_v28, %v18390_v15  ;;  %v20316_v28 = vld [vmem:[%s30071_s5 + $0x1ec4] sm:$0xf]  ;;  %v18126_v15 = vld [vmem:[%s30071_s5 + $0x1ed8] sm:$0xf0] }
 0x3cb   : > { %11193 = vmatpush.bf16.msra.mxu1 %v17505_v48  ;;  %11206 = vmatpush.bf16.msra.mxu3 %v17697_v60  ;;  %v18174_v48 = vld [vmem:[%s30071_s5 + $0x1f38] sm:$0xf0]  ;;  %v18585_v60 = vor.u32 %v20430_v52, %v18582_v7  ;;  %v24927_v12 = vpop.f32.mrf.mxu2  ;;  %v20364_v52 = vld [vmem:[%s30071_s5 + $0x2044] sm:$0xf] }
 0x3cc   : > { %v18318_v7 = vld [vmem:[%s30071_s5 + $0x2058] sm:$0xf0] }
 0x3cd   : > { %11579 = vmatpush.bf16.msrb.mxu2 %v18565_v63  ;;  %v20376_v63 = vld [vmem:[%s30071_s5 + $0x20a4] sm:$0xf] }
 0x3ce   : > { %11181 = vmatpush.bf16.msra.mxu0 %v17289_v0  ;;  %v18177_v0 = vor.u32 %v20328_v11, %v18174_v48  ;;  %v18369_v10 = vor.u32 %v20376_v63, %v18366_v58  ;;  %v18321_v48 = vor.u32 %v20364_v52, %v18318_v7  ;;  %v18102_v63 = vld [vmem:[%s30071_s5 + $0x1ea8] sm:$0xf0] }
 0x3cf   : > { %11194 = vmatpush.bf16.msra.mxu1 %v17481_v39  ;;  %11207 = vmatpush.bf16.msra.mxu3 %v17673_v47  ;;  %v18561_v39 = vor.u32 %v20424_v34, %v18558_v27  ;;  %v20404_v47 = vld [vmem:[%s30071_s5 + $0x217c] sm:$0xf0]  ;;  %v20358_v27 = vld [vmem:[%s30071_s5 + $0x2014] sm:$0xf] }
 0x3d0   : > { %v18469_v1 = vor.u32 %v20404_v47, %v18468_v41  ;;  %v18105_v47 = vor.u32 %v20310_v59, %v18102_v63  ;;  %v20346_v59 = vld [vmem:[%s30071_s5 + $0x1fb4] sm:$0xf]  ;;  %v18246_v63 = vld [vmem:[%s30071_s5 + $0x1fc8] sm:$0xf0] }
 0x3d1   : > { %11580 = vmatpush.bf16.msrb.mxu2 %v18541_v50  ;;  %v20418_v50 = vld [vmem:[%s30071_s5 + $0x21f4] sm:$0xf] }
 0x3d2   : > { %11182 = vmatpush.bf16.msra.mxu0 %v17265_v22  ;;  %v18345_v22 = vor.u32 %v20370_v53, %v18342_v17  ;;  %v18537_v5 = vor.u32 %v20418_v50, %v18534_v45  ;;  %v10976_v19 = vpop.f32.mrf.mxu0  ;;  %v20304_v50 = vld [vmem:[%s30071_s5 + $0x1e64] sm:$0xf]  ;;  %v18078_v45 = vld [vmem:[%s30071_s5 + $0x1e78] sm:$0xf0] }
 0x3d3   : > { %11195 = vmatpush.bf16.msra.mxu1 %v17457_v18  ;;  %11208 = vmatpush.bf16.msra.mxu3 %v17649_v51  ;;  %v20412_v18 = vld [vmem:[%s30071_s5 + $0x21c4] sm:$0xf]  ;;  %v18510_v51 = vld [vmem:[%s30071_s5 + $0x21d8] sm:$0xf0]  ;;  %v10989_v58 = vpop.f32.mrf.mxu1  ;;  %v11329_v41 = vpop.f32.mrf.mxu2  ;;  %v18081_v7 = vor.u32 %v20304_v50, %v18078_v45  ;;  %v20526_v45 = vld [vmem:[%s30071_s5 + $0x2554] sm:$0xf] }
 0x3d4   : > { %v18513_v34 = vor.u32 %v20412_v18, %v18510_v51  ;;  %v18030_v41 = vld [vmem:[%s30071_s5 + $0x1e18] sm:$0xf0] }
 0x3d5   : > { %11581 = vmatpush.bf16.msrb.mxu2 %v18517_v23  ;;  %11183 = vmatmul.bf16.vlgmr.msra.gmra.mxu0 %v23289_v33  ;;  %v18129_v23 = vor.u32 %v20316_v28, %v18126_v15  ;;  %v20400_v28 = vld [vmem:[%s30071_s5 + $0x2164] sm:$0xf]  ;;  %v18462_v15 = vld [vmem:[%s30071_s5 + $0x2178] sm:$0xf0] }
 0x3d6   : > { %11227 = vmatpush.bf16.msrb.mxu0 %v18201_v55  ;;  %11196 = vmatmul.bf16.vlgmr.msra.gmra.mxu1 %v23301_v49  ;;  %v20398_v55 = vld [vmem:[%s30071_s5 + $0x214c] sm:$0xf0]  ;;  %v18414_v50 = vld [vmem:[%s30071_s5 + $0x2118] sm:$0xf0] }
 0x3d7   : > { %11240 = vmatpush.bf16.msrb.mxu1 %v18393_v2  ;;  %11253 = vmatpush.bf16.msrb.mxu3 %v18585_v60  ;;  %v18420_v2 = vld [vmem:[%s30071_s5 + $0x2108] sm:$0xf]  ;;  %v18445_v11 = vor.u32 %v20398_v55, %v18444_v14  ;;  %v20392_v60 = vld [vmem:[%s30071_s5 + $0x211c] sm:$0xf0]  ;;  %v18270_v14 = vld [vmem:[%s30071_s5 + $0x1ff8] sm:$0xf0] }
 0x3d8   : > { %11209 = vmatmul.bf16.vlgmr.msra.gmra.mxu3 %v23617_v25  ;;  %v18421_v53 = vor.u32 %v20392_v60, %v18420_v2  ;;  %v14534_v55 = vld [vmem:[%s30071_s5 + $0x2c0] sm:$0xf0]  ;;  %v20298_v2 = vld [vmem:[%s30071_s5 + $0x1e34] sm:$0xf] }
 0x3d9   : > { %11582 = vmatpush.bf16.msrb.mxu2 %v18493_v40  ;;  %v20406_v40 = vld [vmem:[%s30071_s5 + $0x2194] sm:$0xf] }
 0x3da   : > { %11228 = vmatpush.bf16.msrb.mxu0 %v18177_v0  ;;  %v18294_v0 = vld [vmem:[%s30071_s5 + $0x2028] sm:$0xf0]  ;;  %v10978_v51 = vpop.f32.mrf.mxu0 }
 0x3db   : > { %11241 = vmatpush.bf16.msrb.mxu1 %v18369_v10  ;;  %11254 = vmatpush.bf16.msrb.mxu3 %v18561_v39  ;;  %v10990_v10 = vadd.f32 %v10989_v58, %v10976_v19  ;;  %v14558_v39 = vld [vmem:[%s30071_s5 + $0x2f0] sm:$0xf0]  ;;  %v18297_v17 = vor.u32 %v20358_v27, %v18294_v0  ;;  %v11002_v52 = vpop.f32.mrf.mxu3  ;;  %v18054_v19 = vld [vmem:[%s30071_s5 + $0x1e48] sm:$0xf0]  ;;  %v19411_v27 = vld [vmem:[%s30071_s5 + $0x27c] sm:$0xf] }
 0x3dc   : > { %v20394_v58 = vld [vmem:[%s30071_s5 + $0x2134] sm:$0xf] }
 0x3dd   : > { %11583 = vmatpush.bf16.msrb.mxu2 %v18469_v1  ;;  %v14561_v1 = vor.u32 %v19423_v24, %v14558_v39  ;;  %v25013_v18 = vadd.f32 %v11002_v52, %v10990_v10  ;;  %v14510_v0 = vld [vmem:[%s30071_s5 + $0x290] sm:$0xf0]  ;;  %v20292_v10 = vld [vmem:[%s30071_s5 + $0x1e04] sm:$0xf]  ;;  %v18222_v39 = vld [vmem:[%s30071_s5 + $0x1f98] sm:$0xf0] }
 0x3de   : > { %11229 = vmatpush.bf16.msrb.mxu0 %v18153_v46  ;;  %v18489_v46 = vor.u32 %v20406_v40, %v18486_v8  ;;  %v18057_v40 = vor.u32 %v20298_v2, %v18054_v19  ;;  %v18249_v8 = vor.u32 %v20346_v59, %v18246_v63  ;;  %v20340_v24 = vld [vmem:[%s30071_s5 + $0x1f84] sm:$0xf]  ;;  %v19426_v52 = vld [vmem:[%s30071_s5 + $0x2ec] sm:$0xf0]  ;;  %v19399_v59 = vld [vmem:[%s30071_s5 + $0x21c] sm:$0xf] }
 0x3df   : > { %11242 = vmatpush.bf16.msrb.mxu1 %v18345_v22  ;;  %11255 = vmatpush.bf16.msrb.mxu3 %v18537_v5  ;;  %v20352_v22 = vld [vmem:[%s30071_s5 + $0x1fe4] sm:$0xf]  ;;  %v19417_v5 = vld [vmem:[%s30071_s5 + $0x2ac] sm:$0xf]  ;;  %v14462_v63 = vld [vmem:[%s30071_s5 + $0x230] sm:$0xf0] }
 0x3e0   : > { %v14537_v60 = vor.u32 %v19417_v5, %v14534_v55  ;;  %v19378_v5 = vld [vmem:[%s30071_s5 + $0x16c] sm:$0xf0]  ;;  %v14556_v55 = vld [vmem:[%s30071_s5 + $0x2d8] sm:$0xf]  ;;  %v20520_v19 = vld [vmem:[%s30071_s5 + $0x2524] sm:$0xf] }
 0x3e1   : > { %11584 = vmatpush.bf16.msrb.mxu2 %v18445_v11  ;;  %v10991_v11 = vpop.f32.mrf.mxu1 }
 0x3e2   : > { %11230 = vmatpush.bf16.msrb.mxu0 %v18129_v23  ;;  %v18273_v23 = vor.u32 %v20352_v22, %v18270_v14  ;;  %v14486_v22 = vld [vmem:[%s30071_s5 + $0x260] sm:$0xf0]  ;;  %v14364_v14 = vld [vmem:[%s30071_s5 + $0x158] sm:$0xf]  ;;  %v18942_v11 = vld [vmem:[%s30071_s5 + $0x2538] sm:$0xf0] }
 0x3e3   : > { %11243 = vmatpush.bf16.msrb.mxu1 %v18321_v48  ;;  %11256 = vmatpush.bf16.msrb.mxu3 %v18513_v34  ;;  %v18465_v48 = vor.u32 %v20400_v28, %v18462_v15  ;;  %v18438_v34 = vld [vmem:[%s30071_s5 + $0x2148] sm:$0xf0]  ;;  %v11004_v28 = vpop.f32.mrf.mxu3  ;;  %v18033_v15 = vor.u32 %v20292_v10, %v18030_v41  ;;  %v14465_v10 = vor.u32 %v19399_v59, %v14462_v63  ;;  %v20514_v41 = vld [vmem:[%s30071_s5 + $0x24f4] sm:$0xf] }
 0x3e4   : > { %v20508_v28 = vld [vmem:[%s30071_s5 + $0x24c4] sm:$0xf]  ;;  %v20502_v59 = vld [vmem:[%s30071_s5 + $0x2494] sm:$0xf]  ;;  %v18870_v63 = vld [vmem:[%s30071_s5 + $0x24a8] sm:$0xf0] }
 0x3e5   : > { %11585 = vmatpush.bf16.msrb.mxu2 %v18421_v53  ;;  %v18441_v53 = vor.u32 %v20394_v58, %v18438_v34  ;;  %v14340_v58 = vld [vmem:[%s30071_s5 + $0x128] sm:$0xf]  ;;  %v19372_v34 = vld [vmem:[%s30071_s5 + $0x13c] sm:$0xf0] }
 0x3e6   : > { %11231 = vmatpush.bf16.msrb.mxu0 %v18105_v47  ;;  %v20388_v47 = vld [vmem:[%s30071_s5 + $0x2104] sm:$0xf] }
 0x3e7   : > { %11244 = vmatpush.bf16.msrb.mxu1 %v18297_v17  ;;  %11257 = vmatpush.bf16.msrb.mxu3 %v18489_v46  ;;  %v14513_v17 = vor.u32 %v19411_v27, %v14510_v0  ;;  %v18966_v46 = vld [vmem:[%s30071_s5 + $0x2568] sm:$0xf0]  ;;  %v14532_v27 = vld [vmem:[%s30071_s5 + $0x2a8] sm:$0xf]  ;;  %v19420_v0 = vld [vmem:[%s30071_s5 + $0x2bc] sm:$0xf0] }
 0x3e8   : > { %11586 = vmatmul.bf16.vlgmr.msrb.gmra.mxu2 %v23899_v13  ;;  %v18969_v51 = vor.u32 %v20526_v45, %v18966_v46  ;;  %v14508_v45 = vld [vmem:[%s30071_s5 + $0x278] sm:$0xf]  ;;  %v19414_v46 = vld [vmem:[%s30071_s5 + $0x28c] sm:$0xf0] }
 0x3e9   : > { %11630 = vmatpush.bf16.msra.mxu2 %v14561_v1  ;;  %v19405_v1 = vld [vmem:[%s30071_s5 + $0x24c] sm:$0xf] }
 0x3ea   : > { %11232 = vmatpush.bf16.msrb.mxu0 %v18081_v7  ;;  %v18225_v7 = vor.u32 %v20340_v24, %v18222_v39  ;;  %v14489_v2 = vor.u32 %v19405_v1, %v14486_v22  ;;  %v14341_v24 = vor.u32 %v19372_v34, %v14340_v58  ;;  %v14533_v39 = vor.u32 %v19420_v0, %v14532_v27 }
 0x3eb   : > { %11245 = vmatpush.bf16.msrb.mxu1 %v18273_v23  ;;  %11258 = vmatpush.bf16.msrb.mxu3 %v18465_v48  ;;  %v18417_v23 = vor.u32 %v20388_v47, %v18414_v50  ;;  %v14365_v48 = vor.u32 %v19378_v5, %v14364_v14  ;;  %v19393_v47 = vld [vmem:[%s30071_s5 + $0x1ec] sm:$0xf]  ;;  %v19366_v50 = vld [vmem:[%s30071_s5 + $0x10c] sm:$0xf0]  ;;  %v25133_v1 = vpop.f32.mrf.mxu2 }
 0x3ed   : > { %11631 = vmatpush.bf16.msra.mxu2 %v14537_v60  ;;  %v14557_v60 = vor.u32 %v19426_v52, %v14556_v55  ;;  %v14509_v55 = vor.u32 %v19414_v46, %v14508_v45  ;;  %v19387_v52 = vld [vmem:[%s30071_s5 + $0x1bc] sm:$0xf]  ;;  %v20496_v46 = vld [vmem:[%s30071_s5 + $0x2464] sm:$0xf] }
 0x3ee   : > { %11233 = vmatpush.bf16.msrb.mxu0 %v18057_v40  ;;  %v18945_v40 = vor.u32 %v20520_v19, %v18942_v11  ;;  %v19408_v19 = vld [vmem:[%s30071_s5 + $0x25c] sm:$0xf0] }
 0x3ef   : > { %11246 = vmatpush.bf16.msrb.mxu1 %v18249_v8  ;;  %11259 = vmatpush.bf16.msrb.mxu3 %v18441_v53  ;;  %v18918_v8 = vld [vmem:[%s30071_s5 + $0x2508] sm:$0xf0]  ;;  %v14438_v53 = vld [vmem:[%s30071_s5 + $0x200] sm:$0xf0] }
 0x3f0   : > { %v18921_v22 = vor.u32 %v20514_v41, %v18918_v8  ;;  %v14441_v14 = vor.u32 %v19393_v47, %v14438_v53  ;;  %v19354_v41 = vld [vmem:[%s30071_s5 + $0xac] sm:$0xf0]  ;;  %v14460_v8 = vld [vmem:[%s30071_s5 + $0x218] sm:$0xf]  ;;  %v18873_v47 = vor.u32 %v20502_v59, %v18870_v63  ;;  %v19615_v53 = vld [vmem:[%s30071_s5 + $0x8dc] sm:$0xf] }
 0x3f1   : > { %11632 = vmatpush.bf16.msra.mxu2 %v14513_v17  ;;  %v14316_v17 = vld [vmem:[%s30071_s5 + $0xf8] sm:$0xf] }
 0x3f2   : > { %11234 = vmatpush.bf16.msrb.mxu0 %v18033_v15  ;;  %v18894_v15 = vld [vmem:[%s30071_s5 + $0x24d8] sm:$0xf0]  ;;  %v14317_v5 = vor.u32 %v19366_v50, %v14316_v17  ;;  %v11028_v58 = vpop.f32.mrf.mxu0  ;;  %v15326_v17 = vld [vmem:[%s30071_s5 + $0x8f0] sm:$0xf0] }
 0x3f3   : > { %11247 = vmatpush.bf16.msrb.mxu1 %v18225_v7  ;;  %11260 = vmatpush.bf16.msrb.mxu3 %v18417_v23  ;;  %v14414_v7 = vld [vmem:[%s30071_s5 + $0x1d0] sm:$0xf0]  ;;  %v19360_v23 = vld [vmem:[%s30071_s5 + $0xdc] sm:$0xf0]  ;;  %v18897_v11 = vor.u32 %v20508_v28, %v18894_v15  ;;  %v11041_v34 = vpop.f32.mrf.mxu1  ;;  %v14244_v15 = vld [vmem:[%s30071_s5 + $0x68] sm:$0xf] }
 0x3f5   : > { %11633 = vmatpush.bf16.msra.mxu2 %v14489_v2  ;;  %11235 = vmatmul.bf16.vlgmr.msrb.gmra.mxu0 %v23620_v56  ;;  %v14484_v2 = vld [vmem:[%s30071_s5 + $0x248] sm:$0xf] }
 0x3f6   : > { %11279 = vmatpush.bf16.msra.mxu0 %v18969_v51  ;;  %11248 = vmatmul.bf16.vlgmr.msrb.gmra.mxu1 %v23897_v35  ;;  %v14292_v51 = vld [vmem:[%s30071_s5 + $0xc8] sm:$0xf]  ;;  %v14485_v0 = vor.u32 %v19408_v19, %v14484_v2  ;;  %v15302_v2 = vld [vmem:[%s30071_s5 + $0x8c0] sm:$0xf0] }
 0x3f7   : > { %11292 = vmatpush.bf16.msra.mxu1 %v14365_v48  ;;  %11305 = vmatpush.bf16.msra.mxu3 %v14557_v60  ;;  %v11016_v48 = vadd.f32 %v23771_v3, %v25013_v18  ;;  %v14417_v60 = vor.u32 %v19387_v52, %v14414_v7  ;;  %v14293_v27 = vor.u32 %v19360_v23, %v14292_v51  ;;  %v14390_v3 = vld [vmem:[%s30071_s5 + $0x1a0] sm:$0xf0]  ;;  %v14268_v18 = vld [vmem:[%s30071_s5 + $0x98] sm:$0xf]  ;;  %v14436_v52 = vld [vmem:[%s30071_s5 + $0x1e8] sm:$0xf] }
 0x3f8   : > { %11261 = vmatmul.bf16.vlgmr.msrb.gmra.mxu3 %v23899_v13  ;;  %v19396_v7 = vld [vmem:[%s30071_s5 + $0x1fc] sm:$0xf0]  ;;  %v19609_v23 = vld [vmem:[%s30071_s5 + $0x8ac] sm:$0xf] }
 0x3f9   : > { %11634 = vmatpush.bf16.msra.mxu2 %v14465_v10  ;;  %v11029_v10 = vadd.f32 %v11028_v58, %v11016_v48  ;;  %v18822_v48 = vld [vmem:[%s30071_s5 + $0x2448] sm:$0xf0] }
 0x3fa   : > { %11280 = vmatpush.bf16.msra.mxu0 %v18945_v40  ;;  %v19381_v40 = vld [vmem:[%s30071_s5 + $0x18c] sm:$0xf]  ;;  %v11030_v59 = vpop.f32.mrf.mxu0 }
 0x3fb   : > { %11293 = vmatpush.bf16.msra.mxu1 %v14341_v24  ;;  %11306 = vmatpush.bf16.msra.mxu3 %v14533_v39  ;;  %v19402_v24 = vld [vmem:[%s30071_s5 + $0x22c] sm:$0xf0]  ;;  %v11381_v39 = vpop.f32.mrf.mxu2  ;;  %v11042_v50 = vadd.f32 %v11041_v34, %v11029_v10  ;;  %v14393_v45 = vor.u32 %v19381_v40, %v14390_v3  ;;  %v11054_v19 = vpop.f32.mrf.mxu3  ;;  %v14437_v34 = vor.u32 %v19396_v7, %v14436_v52  ;;  %v14412_v3 = vld [vmem:[%s30071_s5 + $0x1b8] sm:$0xf] }
 0x3fc   : > { %v14461_v28 = vor.u32 %v19402_v24, %v14460_v8  ;;  %v11043_v63 = vpop.f32.mrf.mxu1  ;;  %v19342_v40 = vld [vmem:[%s30071_s5 + $0x4c] sm:$0xf0]  ;;  %v15278_v8 = vld [vmem:[%s30071_s5 + $0x890] sm:$0xf0]  ;;  %v20484_v24 = vld [vmem:[%s30071_s5 + $0x2404] sm:$0xf] }
 0x3fd   : > { %11635 = vmatpush.bf16.msra.mxu2 %v14441_v14  ;;  %v14269_v14 = vor.u32 %v19354_v41, %v14268_v18  ;;  %v19390_v18 = vld [vmem:[%s30071_s5 + $0x1cc] sm:$0xf0]  ;;  %v19603_v41 = vld [vmem:[%s30071_s5 + $0x87c] sm:$0xf]  ;;  %v15132_v52 = vld [vmem:[%s30071_s5 + $0x758] sm:$0xf] }
 0x3fe   : > { %11281 = vmatpush.bf16.msra.mxu0 %v18921_v22  ;;  %v18846_v22 = vld [vmem:[%s30071_s5 + $0x2478] sm:$0xf0]  ;;  %v19570_v7 = vld [vmem:[%s30071_s5 + $0x76c] sm:$0xf0] }
 0x3ff   : > { %11294 = vmatpush.bf16.msra.mxu1 %v14317_v5  ;;  %11307 = vmatpush.bf16.msra.mxu3 %v14509_v55  ;;  %v15329_v5 = vor.u32 %v19615_v53, %v15326_v17  ;;  %v19348_v55 = vld [vmem:[%s30071_s5 + $0x7c] sm:$0xf0]  ;;  %v18849_v51 = vor.u32 %v20496_v46, %v18846_v22  ;;  %v18798_v39 = vld [vmem:[%s30071_s5 + $0x2418] sm:$0xf0]  ;;  %v14413_v17 = vor.u32 %v19390_v18, %v14412_v3  ;;  %v19522_v46 = vld [vmem:[%s30071_s5 + $0x5ec] sm:$0xf0] }
 0x400   : > { %v14245_v58 = vor.u32 %v19348_v55, %v14244_v15  ;;  %v15281_v22 = vor.u32 %v19603_v41, %v15278_v8  ;;  %v19597_v15 = vld [vmem:[%s30071_s5 + $0x84c] sm:$0xf]  ;;  %v15254_v55 = vld [vmem:[%s30071_s5 + $0x860] sm:$0xf0]  ;;  %v15133_v63 = vor.u32 %v19570_v7, %v15132_v52  ;;  %v15108_v3 = vld [vmem:[%s30071_s5 + $0x728] sm:$0xf] }
 0x401   : > { %11636 = vmatpush.bf16.msra.mxu2 %v14417_v60  ;;  %v25221_v60 = vadd.f32 %v11054_v19, %v11042_v50  ;;  %v19336_v50 = vld [vmem:[%s30071_s5 + $0x1c] sm:$0xf0]  ;;  %v19618_v19 = vld [vmem:[%s30071_s5 + $0x8ec] sm:$0xf0]  ;;  %v15257_v59 = vor.u32 %v19597_v15, %v15254_v55  ;;  %v19579_v7 = vld [vmem:[%s30071_s5 + $0x7bc] sm:$0xf] }
 0x402   : > { %11282 = vmatpush.bf16.msra.mxu0 %v18897_v11  ;;  %v20490_v11 = vld [vmem:[%s30071_s5 + $0x2434] sm:$0xf]  ;;  %v19564_v18 = vld [vmem:[%s30071_s5 + $0x73c] sm:$0xf0]  ;;  %v19606_v15 = vld [vmem:[%s30071_s5 + $0x88c] sm:$0xf0] }
 0x403   : > { %11295 = vmatpush.bf16.msra.mxu1 %v14293_v27  ;;  %11308 = vmatpush.bf16.msra.mxu3 %v14485_v0  ;;  %v14220_v27 = vld [vmem:[%s30071_s5 + $0x38] sm:$0xf]  ;;  %v15305_v0 = vor.u32 %v19609_v23, %v15302_v2  ;;  %v18825_v10 = vor.u32 %v20490_v11, %v18822_v48  ;;  %v19612_v41 = vld [vmem:[%s30071_s5 + $0x8bc] sm:$0xf0] }
 0x404   : > { %v14221_v53 = vor.u32 %v19342_v40, %v14220_v27  ;;  %v15324_v2 = vld [vmem:[%s30071_s5 + $0x8d8] sm:$0xf]  ;;  %v19516_v27 = vld [vmem:[%s30071_s5 + $0x5bc] sm:$0xf0]  ;;  %v15230_v40 = vld [vmem:[%s30071_s5 + $0x830] sm:$0xf0] }
 0x405   : > { %11637 = vmatpush.bf16.msra.mxu2 %v14393_v45  ;;  %v14940_v45 = vld [vmem:[%s30071_s5 + $0x5d8] sm:$0xf] }
 0x406   : > { %11283 = vmatpush.bf16.msra.mxu0 %v18873_v47  ;;  %v14196_v47 = vld [vmem:[%s30071_s5 + $0x8] sm:$0xf]  ;;  %v14941_v23 = vor.u32 %v19522_v46, %v14940_v45  ;;  %v15206_v45 = vld [vmem:[%s30071_s5 + $0x800] sm:$0xf0]  ;;  %v15084_v46 = vld [vmem:[%s30071_s5 + $0x6f8] sm:$0xf] }
 0x407   : > { %11296 = vmatpush.bf16.msra.mxu1 %v14269_v14  ;;  %11309 = vmatpush.bf16.msra.mxu3 %v14461_v28  ;;  %v14388_v14 = vld [vmem:[%s30071_s5 + $0x188] sm:$0xf]  ;;  %v19384_v28 = vld [vmem:[%s30071_s5 + $0x19c] sm:$0xf0]  ;;  %v14197_v11 = vor.u32 %v19336_v50, %v14196_v47  ;;  %v19585_v47 = vld [vmem:[%s30071_s5 + $0x7ec] sm:$0xf] }
 0x408   : > { %11638 = vmatmul.bf16.vlgmr.msra.gmra.mxu2 %v22038_v42  ;;  %v14389_v48 = vor.u32 %v19384_v28, %v14388_v14  ;;  %v15276_v28 = vld [vmem:[%s30071_s5 + $0x878] sm:$0xf]  ;;  %v15209_v55 = vor.u32 %v19585_v47, %v15206_v45  ;;  %v16094_v45 = vld [vmem:[%s30071_s5 + $0xef0] sm:$0xf0] }
 0x409   : > { %11682 = vmatpush.bf16.msrb.mxu2 %v15329_v5  ;;  %v18801_v5 = vor.u32 %v20484_v24, %v18798_v39  ;;  %v15109_v39 = vor.u32 %v19564_v18, %v15108_v3  ;;  %v15158_v18 = vld [vmem:[%s30071_s5 + $0x7a0] sm:$0xf0]  ;;  %v15228_v47 = vld [vmem:[%s30071_s5 + $0x818] sm:$0xf] }
 0x40a   : > { %11284 = vmatpush.bf16.msra.mxu0 %v18849_v51  ;;  %v11056_v51 = vpop.f32.mrf.mxu3 }
 0x40b   : > { %11297 = vmatpush.bf16.msra.mxu1 %v14245_v58  ;;  %11310 = vmatpush.bf16.msra.mxu3 %v14437_v34  ;;  %v19591_v58 = vld [vmem:[%s30071_s5 + $0x81c] sm:$0xf]  ;;  %v14916_v34 = vld [vmem:[%s30071_s5 + $0x5a8] sm:$0xf]  ;;  %v25329_v14 = vpop.f32.mrf.mxu2 }
 0x40c   : > { %v14917_v8 = vor.u32 %v19516_v27, %v14916_v34  ;;  %v15233_v24 = vor.u32 %v19591_v58, %v15230_v40  ;;  %v14868_v51 = vld [vmem:[%s30071_s5 + $0x548] sm:$0xf]  ;;  %v11068_v58 = vadd.f32 %v23928_v9, %v25221_v60  ;;  %v19573_v27 = vld [vmem:[%s30071_s5 + $0x78c] sm:$0xf]  ;;  %v19498_v9 = vld [vmem:[%s30071_s5 + $0x52c] sm:$0xf0] }
 0x40d   : > { %11683 = vmatpush.bf16.msrb.mxu2 %v15305_v0  ;;  %v15325_v0 = vor.u32 %v19618_v19, %v15324_v2  ;;  %v15277_v2 = vor.u32 %v19606_v15, %v15276_v28  ;;  %v15182_v19 = vld [vmem:[%s30071_s5 + $0x7d0] sm:$0xf0]  ;;  %v15161_v28 = vor.u32 %v19573_v27, %v15158_v18 }
 0x40e   : > { %11285 = vmatpush.bf16.msra.mxu0 %v18825_v10  ;;  %v15300_v10 = vld [vmem:[%s30071_s5 + $0x8a8] sm:$0xf]  ;;  %v15185_v40 = vor.u32 %v19579_v7, %v15182_v19  ;;  %v19588_v19 = vld [vmem:[%s30071_s5 + $0x7fc] sm:$0xf0] }
 0x40f   : > { %11298 = vmatpush.bf16.msra.mxu1 %v14221_v53  ;;  %11311 = vmatpush.bf16.msra.mxu3 %v14413_v17  ;;  %v14892_v53 = vld [vmem:[%s30071_s5 + $0x578] sm:$0xf]  ;;  %v19510_v17 = vld [vmem:[%s30071_s5 + $0x58c] sm:$0xf0]  ;;  %v15301_v50 = vor.u32 %v19612_v41, %v15300_v10 }
 0x410   : > { %v14844_v10 = vld [vmem:[%s30071_s5 + $0x518] sm:$0xf] }
 0x411   : > { %11684 = vmatpush.bf16.msrb.mxu2 %v15281_v22  ;;  %v19558_v22 = vld [vmem:[%s30071_s5 + $0x70c] sm:$0xf0] }
 0x412   : > { %11286 = vmatpush.bf16.msra.mxu0 %v18801_v5  ;;  %v14893_v5 = vor.u32 %v19510_v17, %v14892_v53  ;;  %v15085_v52 = vor.u32 %v19558_v22, %v15084_v46  ;;  %v19594_v17 = vld [vmem:[%s30071_s5 + $0x82c] sm:$0xf0]  ;;  %v14845_v22 = vor.u32 %v19498_v9, %v14844_v10  ;;  %v14988_v9 = vld [vmem:[%s30071_s5 + $0x638] sm:$0xf] }
 0x413   : > { %11299 = vmatpush.bf16.msra.mxu1 %v14197_v11  ;;  %11312 = vmatpush.bf16.msra.mxu3 %v14389_v48  ;;  %v15060_v11 = vld [vmem:[%s30071_s5 + $0x6c8] sm:$0xf]  ;;  %v19552_v48 = vld [vmem:[%s30071_s5 + $0x6dc] sm:$0xf0]  ;;  %v11093_v41 = vpop.f32.mrf.mxu1  ;;  %v11433_v53 = vpop.f32.mrf.mxu2 }
 0x414   : > { %v15061_v3 = vor.u32 %v19552_v48, %v15060_v11  ;;  %v19801_v11 = vld [vmem:[%s30071_s5 + $0xeac] sm:$0xf]  ;;  %v16070_v48 = vld [vmem:[%s30071_s5 + $0xec0] sm:$0xf0]  ;;  %v14772_v53 = vld [vmem:[%s30071_s5 + $0x488] sm:$0xf] }
 0x415   : > { %11685 = vmatpush.bf16.msrb.mxu2 %v15257_v59  ;;  %11287 = vmatmul.bf16.vlgmr.msra.gmra.mxu0 %v22183_v16  ;;  %v15252_v59 = vld [vmem:[%s30071_s5 + $0x848] sm:$0xf]  ;;  %v16073_v10 = vor.u32 %v19801_v11, %v16070_v48  ;;  %v19762_v11 = vld [vmem:[%s30071_s5 + $0xd6c] sm:$0xf0]  ;;  %v16092_v48 = vld [vmem:[%s30071_s5 + $0xed8] sm:$0xf] }
 0x416   : > { %11331 = vmatpush.bf16.msrb.mxu0 %v14941_v23  ;;  %11300 = vmatmul.bf16.vlgmr.msra.gmra.mxu1 %v22036_v62  ;;  %v19504_v23 = vld [vmem:[%s30071_s5 + $0x55c] sm:$0xf0] }
 0x417   : > { %11344 = vmatpush.bf16.msrb.mxu1 %v15133_v63  ;;  %11357 = vmatpush.bf16.msrb.mxu3 %v15325_v0  ;;  %v19600_v63 = vld [vmem:[%s30071_s5 + $0x85c] sm:$0xf0]  ;;  %v14869_v34 = vor.u32 %v19504_v23, %v14868_v51  ;;  %v11080_v0 = vpop.f32.mrf.mxu0  ;;  %v15012_v51 = vld [vmem:[%s30071_s5 + $0x668] sm:$0xf] }
 0x418   : > { %11313 = vmatmul.bf16.vlgmr.msra.gmra.mxu3 %v22038_v42  ;;  %v11081_v60 = vadd.f32 %v11080_v0, %v11068_v58  ;;  %v19540_v23 = vld [vmem:[%s30071_s5 + $0x67c] sm:$0xf0]  ;;  %v14796_v0 = vld [vmem:[%s30071_s5 + $0x4b8] sm:$0xf] }
 0x419   : > { %11686 = vmatpush.bf16.msrb.mxu2 %v15233_v24  ;;  %v15036_v24 = vld [vmem:[%s30071_s5 + $0x698] sm:$0xf]  ;;  %v15013_v27 = vor.u32 %v19540_v23, %v15012_v51  ;;  %v16022_v51 = vld [vmem:[%s30071_s5 + $0xe60] sm:$0xf0] }
 0x41a   : > { %11332 = vmatpush.bf16.msrb.mxu0 %v14917_v8  ;;  %v15253_v8 = vor.u32 %v19600_v63, %v15252_v59  ;;  %v11094_v46 = vadd.f32 %v11093_v41, %v11081_v60  ;;  %v19534_v60 = vld [vmem:[%s30071_s5 + $0x64c] sm:$0xf0]  ;;  %v15180_v41 = vld [vmem:[%s30071_s5 + $0x7b8] sm:$0xf] }
 0x41b   : > { %11345 = vmatpush.bf16.msrb.mxu1 %v15109_v39  ;;  %11358 = vmatpush.bf16.msrb.mxu3 %v15301_v50  ;;  %v19546_v39 = vld [vmem:[%s30071_s5 + $0x6ac] sm:$0xf0]  ;;  %v19807_v50 = vld [vmem:[%s30071_s5 + $0xedc] sm:$0xf]  ;;  %v11106_v59 = vpop.f32.mrf.mxu3  ;;  %v15900_v23 = vld [vmem:[%s30071_s5 + $0xd58] sm:$0xf] }
 0x41c   : > { %v15037_v15 = vor.u32 %v19546_v39, %v15036_v24  ;;  %v16097_v7 = vor.u32 %v19807_v50, %v16094_v45  ;;  %v25417_v58 = vadd.f32 %v11106_v59, %v11094_v46  ;;  %v19795_v24 = vld [vmem:[%s30071_s5 + $0xe7c] sm:$0xf]  ;;  %v16046_v39 = vld [vmem:[%s30071_s5 + $0xe90] sm:$0xf0]  ;;  %v14989_v50 = vor.u32 %v19534_v60, %v14988_v9  ;;  %v14964_v45 = vld [vmem:[%s30071_s5 + $0x608] sm:$0xf] }
 0x41d   : > { %11687 = vmatpush.bf16.msrb.mxu2 %v15209_v55  ;;  %v19492_v55 = vld [vmem:[%s30071_s5 + $0x4fc] sm:$0xf0]  ;;  %v19810_v59 = vld [vmem:[%s30071_s5 + $0xeec] sm:$0xf0]  ;;  %v19783_v9 = vld [vmem:[%s30071_s5 + $0xe1c] sm:$0xf] }
 0x41e   : > { %11333 = vmatpush.bf16.msrb.mxu0 %v14893_v5  ;;  %v14820_v5 = vld [vmem:[%s30071_s5 + $0x4e8] sm:$0xf]  ;;  %v19528_v46 = vld [vmem:[%s30071_s5 + $0x61c] sm:$0xf0]  ;;  %v15998_v60 = vld [vmem:[%s30071_s5 + $0xe30] sm:$0xf0] }
 0x41f   : > { %11346 = vmatpush.bf16.msrb.mxu1 %v15085_v52  ;;  %11359 = vmatpush.bf16.msrb.mxu3 %v15277_v2  ;;  %v15229_v52 = vor.u32 %v19594_v17, %v15228_v47  ;;  %v15204_v2 = vld [vmem:[%s30071_s5 + $0x7e8] sm:$0xf]  ;;  %v14821_v63 = vor.u32 %v19492_v55, %v14820_v5  ;;  %v19480_v17 = vld [vmem:[%s30071_s5 + $0x49c] sm:$0xf0]  ;;  %v15708_v55 = vld [vmem:[%s30071_s5 + $0xbd8] sm:$0xf] }
 0x420   : > { %v15205_v18 = vor.u32 %v19588_v19, %v15204_v2  ;;  %v19576_v5 = vld [vmem:[%s30071_s5 + $0x79c] sm:$0xf0]  ;;  %v14773_v19 = vor.u32 %v19480_v17, %v14772_v53  ;;  %v16001_v53 = vor.u32 %v19783_v9, %v15998_v60  ;;  %v15660_v17 = vld [vmem:[%s30071_s5 + $0xb78] sm:$0xf]  ;;  %v19690_v60 = vld [vmem:[%s30071_s5 + $0xb2c] sm:$0xf0] }
 0x421   : > { %11688 = vmatpush.bf16.msrb.mxu2 %v15185_v40  ;;  %v19486_v40 = vld [vmem:[%s30071_s5 + $0x4cc] sm:$0xf0]  ;;  %v15612_v9 = vld [vmem:[%s30071_s5 + $0xb18] sm:$0xf] }
 0x422   : > { %11334 = vmatpush.bf16.msrb.mxu0 %v14869_v34  ;;  %v11082_v34 = vpop.f32.mrf.mxu0  ;;  %v14797_v47 = vor.u32 %v19486_v40, %v14796_v0  ;;  %v15684_v40 = vld [vmem:[%s30071_s5 + $0xba8] sm:$0xf] }
 0x423   : > { %11347 = vmatpush.bf16.msrb.mxu1 %v15061_v3  ;;  %11360 = vmatpush.bf16.msrb.mxu3 %v15253_v8  ;;  %v11095_v3 = vpop.f32.mrf.mxu1  ;;  %v19582_v8 = vld [vmem:[%s30071_s5 + $0x7cc] sm:$0xf0]  ;;  %v11108_v2 = vpop.f32.mrf.mxu3 }
 0x424   : > { %v19708_v3 = vld [vmem:[%s30071_s5 + $0xbbc] sm:$0xf0]  ;;  %v15636_v2 = vld [vmem:[%s30071_s5 + $0xb48] sm:$0xf] }
 0x425   : > { %11689 = vmatpush.bf16.msrb.mxu2 %v15161_v28  ;;  %v15181_v28 = vor.u32 %v19582_v8, %v15180_v41  ;;  %v15876_v41 = vld [vmem:[%s30071_s5 + $0xd28] sm:$0xf]  ;;  %v19756_v8 = vld [vmem:[%s30071_s5 + $0xd3c] sm:$0xf0] }
 0x426   : > { %11335 = vmatpush.bf16.msrb.mxu0 %v14845_v22  ;;  %v15156_v22 = vld [vmem:[%s30071_s5 + $0x788] sm:$0xf] }
 0x427   : > { %11348 = vmatpush.bf16.msrb.mxu1 %v15037_v15  ;;  %11361 = vmatpush.bf16.msrb.mxu3 %v15229_v52  ;;  %v16049_v15 = vor.u32 %v19795_v24, %v16046_v39  ;;  %v19714_v52 = vld [vmem:[%s30071_s5 + $0xbec] sm:$0xf0]  ;;  %v16068_v24 = vld [vmem:[%s30071_s5 + $0xea8] sm:$0xf]  ;;  %v19804_v39 = vld [vmem:[%s30071_s5 + $0xebc] sm:$0xf0] }
 0x428   : > { %11690 = vmatmul.bf16.vlgmr.msrb.gmra.mxu2 %v22181_v29  ;;  %v15709_v34 = vor.u32 %v19714_v52, %v15708_v55  ;;  %v16044_v55 = vld [vmem:[%s30071_s5 + $0xe78] sm:$0xf]  ;;  %v19798_v52 = vld [vmem:[%s30071_s5 + $0xe8c] sm:$0xf0] }
 0x429   : > { %11734 = vmatpush.bf16.msra.mxu2 %v16097_v7  ;;  %v19789_v7 = vld [vmem:[%s30071_s5 + $0xe4c] sm:$0xf] }
 0x42a   : > { %11336 = vmatpush.bf16.msrb.mxu0 %v14821_v63  ;;  %v14965_v63 = vor.u32 %v19528_v46, %v14964_v45  ;;  %v16025_v0 = vor.u32 %v19789_v7, %v16022_v51  ;;  %v15877_v45 = vor.u32 %v19756_v8, %v15876_v41  ;;  %v16069_v46 = vor.u32 %v19804_v39, %v16068_v24 }
 0x42b   : > { %11349 = vmatpush.bf16.msrb.mxu1 %v15013_v27  ;;  %11362 = vmatpush.bf16.msrb.mxu3 %v15205_v18  ;;  %v15157_v27 = vor.u32 %v19576_v5, %v15156_v22  ;;  %v15901_v18 = vor.u32 %v19762_v11, %v15900_v23  ;;  %v19777_v22 = vld [vmem:[%s30071_s5 + $0xdec] sm:$0xf]  ;;  %v19750_v5 = vld [vmem:[%s30071_s5 + $0xd0c] sm:$0xf0]  ;;  %v25537_v7 = vpop.f32.mrf.mxu2 }
 0x42d   : > { %11735 = vmatpush.bf16.msra.mxu2 %v16073_v10  ;;  %v16093_v10 = vor.u32 %v19810_v59, %v16092_v48  ;;  %v16045_v48 = vor.u32 %v19798_v52, %v16044_v55  ;;  %v19771_v59 = vld [vmem:[%s30071_s5 + $0xdbc] sm:$0xf]  ;;  %v15588_v52 = vld [vmem:[%s30071_s5 + $0xae8] sm:$0xf] }
 0x42e   : > { %11337 = vmatpush.bf16.msrb.mxu0 %v14797_v47  ;;  %v15685_v47 = vor.u32 %v19708_v3, %v15684_v40  ;;  %v19792_v40 = vld [vmem:[%s30071_s5 + $0xe5c] sm:$0xf0] }
 0x42f   : > { %11350 = vmatpush.bf16.msrb.mxu1 %v14989_v50  ;;  %11363 = vmatpush.bf16.msrb.mxu3 %v15181_v28  ;;  %v19702_v50 = vld [vmem:[%s30071_s5 + $0xb8c] sm:$0xf0]  ;;  %v15974_v28 = vld [vmem:[%s30071_s5 + $0xe00] sm:$0xf0] }
 0x430   : > { %v15661_v51 = vor.u32 %v19702_v50, %v15660_v17  ;;  %v15977_v23 = vor.u32 %v19777_v22, %v15974_v28  ;;  %v19738_v17 = vld [vmem:[%s30071_s5 + $0xcac] sm:$0xf0]  ;;  %v15996_v50 = vld [vmem:[%s30071_s5 + $0xe18] sm:$0xf]  ;;  %v15613_v22 = vor.u32 %v19690_v60, %v15612_v9  ;;  %v19999_v28 = vld [vmem:[%s30071_s5 + $0x14dc] sm:$0xf] }
 0x431   : > { %11736 = vmatpush.bf16.msra.mxu2 %v16049_v15  ;;  %v15852_v15 = vld [vmem:[%s30071_s5 + $0xcf8] sm:$0xf] }
 0x432   : > { %11338 = vmatpush.bf16.msrb.mxu0 %v14773_v19  ;;  %v19696_v19 = vld [vmem:[%s30071_s5 + $0xb5c] sm:$0xf0]  ;;  %v15853_v11 = vor.u32 %v19750_v5, %v15852_v15  ;;  %v11132_v41 = vpop.f32.mrf.mxu0  ;;  %v16862_v15 = vld [vmem:[%s30071_s5 + $0x14f0] sm:$0xf0] }
 0x433   : > { %11351 = vmatpush.bf16.msrb.mxu1 %v14965_v63  ;;  %11364 = vmatpush.bf16.msrb.mxu3 %v15157_v27  ;;  %v15950_v63 = vld [vmem:[%s30071_s5 + $0xdd0] sm:$0xf0]  ;;  %v19744_v27 = vld [vmem:[%s30071_s5 + $0xcdc] sm:$0xf0]  ;;  %v15637_v3 = vor.u32 %v19696_v19, %v15636_v2  ;;  %v11145_v8 = vpop.f32.mrf.mxu1  ;;  %v15780_v19 = vld [vmem:[%s30071_s5 + $0xc68] sm:$0xf] }
 0x435   : > { %11737 = vmatpush.bf16.msra.mxu2 %v16025_v0  ;;  %11339 = vmatmul.bf16.vlgmr.msrb.gmra.mxu0 %v22171_v57  ;;  %v16020_v0 = vld [vmem:[%s30071_s5 + $0xe48] sm:$0xf] }
 0x436   : > { %11383 = vmatpush.bf16.msra.mxu0 %v15709_v34  ;;  %11352 = vmatmul.bf16.vlgmr.msrb.gmra.mxu1 %v22173_v61  ;;  %v15828_v34 = vld [vmem:[%s30071_s5 + $0xcc8] sm:$0xf]  ;;  %v16021_v39 = vor.u32 %v19792_v40, %v16020_v0  ;;  %v16838_v0 = vld [vmem:[%s30071_s5 + $0x14c0] sm:$0xf0] }
 0x437   : > { %11396 = vmatpush.bf16.msra.mxu1 %v15901_v18  ;;  %11409 = vmatpush.bf16.msra.mxu3 %v16093_v10  ;;  %v11120_v18 = vadd.f32 %v24123_v43, %v25417_v58  ;;  %v15953_v10 = vor.u32 %v19771_v59, %v15950_v63  ;;  %v15829_v24 = vor.u32 %v19744_v27, %v15828_v34  ;;  %v15926_v43 = vld [vmem:[%s30071_s5 + $0xda0] sm:$0xf0]  ;;  %v15804_v58 = vld [vmem:[%s30071_s5 + $0xc98] sm:$0xf]  ;;  %v15972_v59 = vld [vmem:[%s30071_s5 + $0xde8] sm:$0xf] }
 0x438   : > { %11365 = vmatmul.bf16.vlgmr.msrb.gmra.mxu3 %v22181_v29  ;;  %v19780_v63 = vld [vmem:[%s30071_s5 + $0xdfc] sm:$0xf0]  ;;  %v19993_v27 = vld [vmem:[%s30071_s5 + $0x14ac] sm:$0xf] }
 0x439   : > { %11738 = vmatpush.bf16.msra.mxu2 %v16001_v53  ;;  %v11133_v53 = vadd.f32 %v11132_v41, %v11120_v18  ;;  %v19678_v18 = vld [vmem:[%s30071_s5 + $0xacc] sm:$0xf0] }
 0x43a   : > { %11384 = vmatpush.bf16.msra.mxu0 %v15685_v47  ;;  %v19765_v47 = vld [vmem:[%s30071_s5 + $0xd8c] sm:$0xf]  ;;  %v11134_v9 = vpop.f32.mrf.mxu0 }
 0x43b   : > { %11397 = vmatpush.bf16.msra.mxu1 %v15877_v45  ;;  %11410 = vmatpush.bf16.msra.mxu3 %v16069_v46  ;;  %v19786_v45 = vld [vmem:[%s30071_s5 + $0xe2c] sm:$0xf0]  ;;  %v11485_v46 = vpop.f32.mrf.mxu2  ;;  %v11146_v5 = vadd.f32 %v11145_v8, %v11133_v53  ;;  %v15929_v55 = vor.u32 %v19765_v47, %v15926_v43  ;;  %v11158_v40 = vpop.f32.mrf.mxu3  ;;  %v15973_v8 = vor.u32 %v19780_v63, %v15972_v59  ;;  %v15948_v43 = vld [vmem:[%s30071_s5 + $0xdb8] sm:$0xf] }
 0x43c   : > { %v15997_v2 = vor.u32 %v19786_v45, %v15996_v50  ;;  %v11147_v60 = vpop.f32.mrf.mxu1  ;;  %v19726_v47 = vld [vmem:[%s30071_s5 + $0xc4c] sm:$0xf0]  ;;  %v16814_v50 = vld [vmem:[%s30071_s5 + $0x1490] sm:$0xf0]  ;;  %v15540_v45 = vld [vmem:[%s30071_s5 + $0xa88] sm:$0xf] }
 0x43d   : > { %11739 = vmatpush.bf16.msra.mxu2 %v15977_v23  ;;  %v15805_v23 = vor.u32 %v19738_v17, %v15804_v58  ;;  %v19774_v58 = vld [vmem:[%s30071_s5 + $0xdcc] sm:$0xf0]  ;;  %v19987_v17 = vld [vmem:[%s30071_s5 + $0x147c] sm:$0xf]  ;;  %v19672_v46 = vld [vmem:[%s30071_s5 + $0xa9c] sm:$0xf0] }
 0x43e   : > { %11385 = vmatpush.bf16.msra.mxu0 %v15661_v51  ;;  %v19684_v51 = vld [vmem:[%s30071_s5 + $0xafc] sm:$0xf0]  ;;  %v16668_v59 = vld [vmem:[%s30071_s5 + $0x1358] sm:$0xf]  ;;  %v19954_v63 = vld [vmem:[%s30071_s5 + $0x136c] sm:$0xf0] }
 0x43f   : > { %11398 = vmatpush.bf16.msra.mxu1 %v15853_v11  ;;  %11411 = vmatpush.bf16.msra.mxu3 %v16045_v48  ;;  %v16865_v11 = vor.u32 %v19999_v28, %v16862_v15  ;;  %v19732_v48 = vld [vmem:[%s30071_s5 + $0xc7c] sm:$0xf0]  ;;  %v15589_v34 = vor.u32 %v19684_v51, %v15588_v52  ;;  %v15949_v15 = vor.u32 %v19774_v58, %v15948_v43  ;;  %v19906_v52 = vld [vmem:[%s30071_s5 + $0x11ec] sm:$0xf0]  ;;  %v16644_v43 = vld [vmem:[%s30071_s5 + $0x1328] sm:$0xf] }
 0x440   : > { %v15781_v41 = vor.u32 %v19732_v48, %v15780_v19  ;;  %v16817_v51 = vor.u32 %v19987_v17, %v16814_v50  ;;  %v19981_v19 = vld [vmem:[%s30071_s5 + $0x144c] sm:$0xf]  ;;  %v16790_v48 = vld [vmem:[%s30071_s5 + $0x1460] sm:$0xf0]  ;;  %v16669_v60 = vor.u32 %v19954_v63, %v16668_v59  ;;  %v19948_v58 = vld [vmem:[%s30071_s5 + $0x133c] sm:$0xf0] }
 0x441   : > { %11740 = vmatpush.bf16.msra.mxu2 %v15953_v10  ;;  %v25625_v10 = vadd.f32 %v11158_v40, %v11146_v5  ;;  %v19720_v5 = vld [vmem:[%s30071_s5 + $0xc1c] sm:$0xf0]  ;;  %v20002_v40 = vld [vmem:[%s30071_s5 + $0x14ec] sm:$0xf0]  ;;  %v16793_v9 = vor.u32 %v19981_v19, %v16790_v48  ;;  %v16812_v19 = vld [vmem:[%s30071_s5 + $0x1478] sm:$0xf] }
 0x442   : > { %11386 = vmatpush.bf16.msra.mxu0 %v15637_v3  ;;  %v15564_v3 = vld [vmem:[%s30071_s5 + $0xab8] sm:$0xf]  ;;  %v19996_v17 = vld [vmem:[%s30071_s5 + $0x14bc] sm:$0xf0] }
 0x443   : > { %11399 = vmatpush.bf16.msra.mxu1 %v15829_v24  ;;  %11412 = vmatpush.bf16.msra.mxu3 %v16021_v39  ;;  %v15756_v24 = vld [vmem:[%s30071_s5 + $0xc38] sm:$0xf]  ;;  %v16841_v39 = vor.u32 %v19993_v27, %v16838_v0  ;;  %v15565_v53 = vor.u32 %v19678_v18, %v15564_v3 }
 0x444   : > { %v15757_v28 = vor.u32 %v19726_v47, %v15756_v24  ;;  %v16860_v0 = vld [vmem:[%s30071_s5 + $0x14d8] sm:$0xf]  ;;  %v19900_v24 = vld [vmem:[%s30071_s5 + $0x11bc] sm:$0xf0]  ;;  %v16766_v47 = vld [vmem:[%s30071_s5 + $0x1430] sm:$0xf0] }
 0x445   : > { %11741 = vmatpush.bf16.msra.mxu2 %v15929_v55  ;;  %v16476_v55 = vld [vmem:[%s30071_s5 + $0x11d8] sm:$0xf] }
 0x446   : > { %11387 = vmatpush.bf16.msra.mxu0 %v15613_v22  ;;  %v15732_v22 = vld [vmem:[%s30071_s5 + $0xc08] sm:$0xf]  ;;  %v16477_v27 = vor.u32 %v19906_v52, %v16476_v55  ;;  %v16742_v52 = vld [vmem:[%s30071_s5 + $0x1400] sm:$0xf0] }
 0x447   : > { %11400 = vmatpush.bf16.msra.mxu1 %v15805_v23  ;;  %11413 = vmatpush.bf16.msra.mxu3 %v15997_v2  ;;  %v15924_v23 = vld [vmem:[%s30071_s5 + $0xd88] sm:$0xf]  ;;  %v19768_v2 = vld [vmem:[%s30071_s5 + $0xd9c] sm:$0xf0]  ;;  %v15733_v3 = vor.u32 %v19720_v5, %v15732_v22  ;;  %v19969_v22 = vld [vmem:[%s30071_s5 + $0x13ec] sm:$0xf] }
 0x448   : > { %11742 = vmatmul.bf16.vlgmr.msra.gmra.mxu2 %v22684_v37  ;;  %v15925_v18 = vor.u32 %v19768_v2, %v15924_v23  ;;  %v30151_v5 = vld [vmem:[#allocation6_spill] sm:$0xff]  ;;  %v16745_v59 = vor.u32 %v19969_v22, %v16742_v52  ;;  %v20191_v52 = vld [vmem:[%s30071_s5 + $0x1adc] sm:$0xf] }
 0x449   : > { %11786 = vmatpush.bf16.msrb.mxu2 %v16865_v11  ;;  %v15541_v11 = vor.u32 %v19672_v46, %v15540_v45  ;;  %v16645_v46 = vor.u32 %v19948_v58, %v16644_v43  ;;  %v19942_v23 = vld [vmem:[%s30071_s5 + $0x130c] sm:$0xf0] }
 0x44a   : > { %11388 = vmatpush.bf16.msra.mxu0 %v15589_v34  ;;  %v11160_v34 = vpop.f32.mrf.mxu3  ;;  %v19930_v22 = vld [vmem:[%s30071_s5 + $0x12ac] sm:$0xf0] }
 0x44b   : > { %11401 = vmatpush.bf16.msra.mxu1 %v15781_v41  ;;  %11414 = vmatpush.bf16.msra.mxu3 %v15973_v8  ;;  %v19975_v41 = vld [vmem:[%s30071_s5 + $0x141c] sm:$0xf]  ;;  %v16452_v8 = vld [vmem:[%s30071_s5 + $0x11a8] sm:$0xf]  ;;  %v25733_v2 = vpop.f32.mrf.mxu2 }
 0x44c   : > { %v16453_v50 = vor.u32 %v19900_v24, %v16452_v8  ;;  %v16769_v45 = vor.u32 %v19975_v41, %v16766_v47  ;;  %v19963_v34 = vld [vmem:[%s30071_s5 + $0x13bc] sm:$0xf]  ;;  %v19984_v41 = vld [vmem:[%s30071_s5 + $0x145c] sm:$0xf0]  ;;  %v11172_v8 = vadd.f32 %v24330_v31, %v25625_v10  ;;  %v19882_v31 = vld [vmem:[%s30071_s5 + $0x112c] sm:$0xf0] }
 0x44d   : > { %11787 = vmatpush.bf16.msrb.mxu2 %v16841_v39  ;;  %v16861_v39 = vor.u32 %v20002_v40, %v16860_v0  ;;  %v19888_v0 = vld [vmem:[%s30071_s5 + $0x115c] sm:$0xf0] }
 0x44e   : > { %11389 = vmatpush.bf16.msra.mxu0 %v15565_v53  ;;  %v16836_v53 = vld [vmem:[%s30071_s5 + $0x14a8] sm:$0xf] }
 0x44f   : > { %11402 = vmatpush.bf16.msra.mxu1 %v15757_v28  ;;  %11415 = vmatpush.bf16.msra.mxu3 %v15949_v15  ;;  %v16428_v28 = vld [vmem:[%s30071_s5 + $0x1178] sm:$0xf]  ;;  %v19894_v15 = vld [vmem:[%s30071_s5 + $0x118c] sm:$0xf0]  ;;  %v16837_v55 = vor.u32 %v19996_v17, %v16836_v53  ;;  %v16694_v53 = vld [vmem:[%s30071_s5 + $0x13a0] sm:$0xf0] }
 0x450   : > { %v16429_v48 = vor.u32 %v19894_v15, %v16428_v28  ;;  %v16380_v17 = vld [vmem:[%s30071_s5 + $0x1118] sm:$0xf] }
 0x451   : > { %11788 = vmatpush.bf16.msrb.mxu2 %v16817_v51  ;;  %v16620_v51 = vld [vmem:[%s30071_s5 + $0x12f8] sm:$0xf] }
 0x452   : > { %11390 = vmatpush.bf16.msra.mxu0 %v15541_v11  ;;  %v19990_v11 = vld [vmem:[%s30071_s5 + $0x148c] sm:$0xf0]  ;;  %v16621_v63 = vor.u32 %v19942_v23, %v16620_v51  ;;  %v11184_v47 = vpop.f32.mrf.mxu0  ;;  %v16764_v28 = vld [vmem:[%s30071_s5 + $0x1418] sm:$0xf]  ;;  %v17630_v51 = vld [vmem:[%s30071_s5 + $0x1af0] sm:$0xf0] }
 0x453   : > { %11403 = vmatpush.bf16.msra.mxu1 %v15733_v3  ;;  %11416 = vmatpush.bf16.msra.mxu3 %v15925_v18  ;;  %v16813_v40 = vor.u32 %v19990_v11, %v16812_v19  ;;  %v16718_v3 = vld [vmem:[%s30071_s5 + $0x13d0] sm:$0xf0]  ;;  %v16596_v18 = vld [vmem:[%s30071_s5 + $0x12c8] sm:$0xf]  ;;  %v11185_v10 = vadd.f32 %v11184_v47, %v11172_v8  ;;  %v11537_v15 = vpop.f32.mrf.mxu2  ;;  %v16381_v19 = vor.u32 %v19882_v31, %v16380_v17 }
 0x454   : > { %v16721_v43 = vor.u32 %v19963_v34, %v16718_v3  ;;  %v16740_v3 = vld [vmem:[%s30071_s5 + $0x13e8] sm:$0xf] }
 0x455   : > { %11789 = vmatpush.bf16.msrb.mxu2 %v16793_v9  ;;  %11391 = vmatmul.bf16.vlgmr.msra.gmra.mxu0 %v30151_v5  ;;  %v19936_v9 = vld [vmem:[%s30071_s5 + $0x12dc] sm:$0xf0] }
 0x456   : > { %11435 = vmatpush.bf16.msrb.mxu0 %v16477_v27  ;;  %11404 = vmatmul.bf16.vlgmr.msra.gmra.mxu1 %v22380_v20  ;;  %v16404_v27 = vld [vmem:[%s30071_s5 + $0x1148] sm:$0xf]  ;;  %v16597_v58 = vor.u32 %v19936_v9, %v16596_v18  ;;  %v19972_v18 = vld [vmem:[%s30071_s5 + $0x13fc] sm:$0xf0]  ;;  %v20185_v9 = vld [vmem:[%s30071_s5 + $0x1aac] sm:$0xf] }
 0x457   : > { %11448 = vmatpush.bf16.msrb.mxu1 %v16669_v60  ;;  %11461 = vmatpush.bf16.msrb.mxu3 %v16861_v39  ;;  %v16788_v60 = vld [vmem:[%s30071_s5 + $0x1448] sm:$0xf]  ;;  %v16405_v24 = vor.u32 %v19888_v0, %v16404_v27  ;;  %v19957_v39 = vld [vmem:[%s30071_s5 + $0x138c] sm:$0xf]  ;;  %v17633_v27 = vor.u32 %v20191_v52, %v17630_v51  ;;  %v16741_v17 = vor.u32 %v19972_v18, %v16740_v3  ;;  %v19864_v52 = vld [vmem:[%s30071_s5 + $0x109c] sm:$0xf0] }
 0x458   : > { %11417 = vmatmul.bf16.vlgmr.msra.gmra.mxu3 %v22684_v37  ;;  %v16697_v11 = vor.u32 %v19957_v39, %v16694_v53  ;;  %v16548_v0 = vld [vmem:[%s30071_s5 + $0x1268] sm:$0xf]  ;;  %v17436_v3 = vld [vmem:[%s30071_s5 + $0x1958] sm:$0xf] }
 0x459   : > { %11790 = vmatpush.bf16.msrb.mxu2 %v16769_v45  ;;  %v16789_v45 = vor.u32 %v19984_v41, %v16788_v60  ;;  %v17606_v60 = vld [vmem:[%s30071_s5 + $0x1ac0] sm:$0xf0] }
 0x45a   : > { %11436 = vmatpush.bf16.msrb.mxu0 %v16453_v50  ;;  %v11197_v50 = vpop.f32.mrf.mxu1  ;;  %v11186_v39 = vpop.f32.mrf.mxu0  ;;  %v17609_v31 = vor.u32 %v20185_v9, %v17606_v60  ;;  %v20146_v60 = vld [vmem:[%s30071_s5 + $0x196c] sm:$0xf0] }
 0x45b   : > { %11449 = vmatpush.bf16.msrb.mxu1 %v16645_v46  ;;  %11462 = vmatpush.bf16.msrb.mxu3 %v16837_v55  ;;  %v16572_v46 = vld [vmem:[%s30071_s5 + $0x1298] sm:$0xf]  ;;  %v19978_v55 = vld [vmem:[%s30071_s5 + $0x142c] sm:$0xf0]  ;;  %v11198_v23 = vadd.f32 %v11197_v50, %v11185_v10  ;;  %v11210_v41 = vpop.f32.mrf.mxu3 }
 0x45c   : > { %v16765_v34 = vor.u32 %v19978_v55, %v16764_v28  ;;  %v16524_v10 = vld [vmem:[%s30071_s5 + $0x1238] sm:$0xf]  ;;  %v19918_v50 = vld [vmem:[%s30071_s5 + $0x124c] sm:$0xf0]  ;;  %v17582_v28 = vld [vmem:[%s30071_s5 + $0x1a90] sm:$0xf0] }
 0x45d   : > { %11791 = vmatpush.bf16.msrb.mxu2 %v16745_v59  ;;  %v16356_v59 = vld [vmem:[%s30071_s5 + $0x10e8] sm:$0xf]  ;;  %v16525_v51 = vor.u32 %v19918_v50, %v16524_v10  ;;  %v20167_v50 = vld [vmem:[%s30071_s5 + $0x1a1c] sm:$0xf] }
 0x45e   : > { %11437 = vmatpush.bf16.msrb.mxu0 %v16429_v48  ;;  %v16573_v48 = vor.u32 %v19930_v22, %v16572_v46  ;;  %v19966_v46 = vld [vmem:[%s30071_s5 + $0x13cc] sm:$0xf0]  ;;  %v20179_v22 = vld [vmem:[%s30071_s5 + $0x1a7c] sm:$0xf]  ;;  %v16308_v55 = vld [vmem:[%s30071_s5 + $0x1088] sm:$0xf] }
 0x45f   : > { %11450 = vmatpush.bf16.msrb.mxu1 %v16621_v63  ;;  %11463 = vmatpush.bf16.msrb.mxu3 %v16813_v40  ;;  %v19876_v63 = vld [vmem:[%s30071_s5 + $0x10fc] sm:$0xf0]  ;;  %v16309_v9 = vor.u32 %v19864_v52, %v16308_v55 }
 0x460   : > { %v19924_v40 = vld [vmem:[%s30071_s5 + $0x127c] sm:$0xf0]  ;;  %v16357_v8 = vor.u32 %v19876_v63, %v16356_v59  ;;  %v17585_v59 = vor.u32 %v20179_v22, %v17582_v28  ;;  %v17604_v28 = vld [vmem:[%s30071_s5 + $0x1aa8] sm:$0xf] }
 0x461   : > { %11792 = vmatpush.bf16.msrb.mxu2 %v16721_v43  ;;  %v16549_v47 = vor.u32 %v19924_v40, %v16548_v0  ;;  %v16332_v43 = vld [vmem:[%s30071_s5 + $0x10b8] sm:$0xf]  ;;  %v19960_v63 = vld [vmem:[%s30071_s5 + $0x139c] sm:$0xf0]  ;;  %v20173_v0 = vld [vmem:[%s30071_s5 + $0x1a4c] sm:$0xf] }
 0x462   : > { %11438 = vmatpush.bf16.msrb.mxu0 %v16405_v24  ;;  %v25821_v24 = vadd.f32 %v11210_v41, %v11198_v23  ;;  %v11199_v53 = vpop.f32.mrf.mxu1  ;;  %v16500_v23 = vld [vmem:[%s30071_s5 + $0x1208] sm:$0xf]  ;;  %v17558_v40 = vld [vmem:[%s30071_s5 + $0x1a60] sm:$0xf0]  ;;  %v17628_v41 = vld [vmem:[%s30071_s5 + $0x1ad8] sm:$0xf] }
 0x463   : > { %11451 = vmatpush.bf16.msrb.mxu1 %v16597_v58  ;;  %11464 = vmatpush.bf16.msrb.mxu3 %v16789_v45  ;;  %v19870_v58 = vld [vmem:[%s30071_s5 + $0x10cc] sm:$0xf0]  ;;  %v16716_v45 = vld [vmem:[%s30071_s5 + $0x13b8] sm:$0xf]  ;;  %v11212_v18 = vpop.f32.mrf.mxu3  ;;  %v17220_v53 = vld [vmem:[%s30071_s5 + $0x17a8] sm:$0xf] }
 0x464   : > { %v16333_v15 = vor.u32 %v19870_v58, %v16332_v43  ;;  %v17561_v58 = vor.u32 %v20173_v0, %v17558_v40  ;;  %v20140_v22 = vld [vmem:[%s30071_s5 + $0x193c] sm:$0xf0]  ;;  %v17580_v0 = vld [vmem:[%s30071_s5 + $0x1a78] sm:$0xf]  ;;  %v20182_v40 = vld [vmem:[%s30071_s5 + $0x1a8c] sm:$0xf0] }
 0x465   : > { %11793 = vmatpush.bf16.msrb.mxu2 %v16697_v11  ;;  %v16692_v11 = vld [vmem:[%s30071_s5 + $0x1388] sm:$0xf] }
 0x466   : > { %11439 = vmatpush.bf16.msrb.mxu0 %v16381_v19  ;;  %v19912_v19 = vld [vmem:[%s30071_s5 + $0x121c] sm:$0xf0]  ;;  %v16693_v43 = vor.u32 %v19960_v63, %v16692_v11  ;;  %v17388_v63 = vld [vmem:[%s30071_s5 + $0x18f8] sm:$0xf] }
 0x467   : > { %11452 = vmatpush.bf16.msrb.mxu1 %v16573_v48  ;;  %11465 = vmatpush.bf16.msrb.mxu3 %v16765_v34  ;;  %v16717_v48 = vor.u32 %v19966_v46, %v16716_v45  ;;  %v17244_v34 = vld [vmem:[%s30071_s5 + $0x17d8] sm:$0xf]  ;;  %v16501_v39 = vor.u32 %v19912_v19, %v16500_v23  ;;  %v17534_v45 = vld [vmem:[%s30071_s5 + $0x1a30] sm:$0xf0]  ;;  %v17412_v46 = vld [vmem:[%s30071_s5 + $0x1928] sm:$0xf] }
 0x468   : > { %11794 = vmatmul.bf16.vlgmr.msrb.gmra.mxu2 %v22986_v4  ;;  %v17537_v52 = vor.u32 %v20167_v50, %v17534_v45  ;;  %v20086_v23 = vld [vmem:[%s30071_s5 + $0x178c] sm:$0xf0]  ;;  %v17413_v19 = vor.u32 %v20140_v22, %v17412_v46  ;;  %v11224_v50 = vadd.f32 %v24525_v54, %v25821_v24  ;;  %v17148_v46 = vld [vmem:[%s30071_s5 + $0x1718] sm:$0xf]  ;;  %v17462_v54 = vld [vmem:[%s30071_s5 + $0x19a0] sm:$0xf0] }
 0x469   : > { %11838 = vmatpush.bf16.msra.mxu2 %v17633_v27  ;;  %v20098_v27 = vld [vmem:[%s30071_s5 + $0x17ec] sm:$0xf0]  ;;  %v17340_v24 = vld [vmem:[%s30071_s5 + $0x1898] sm:$0xf] }
 0x46a   : > { %11440 = vmatpush.bf16.msrb.mxu0 %v16357_v8  ;;  %v20194_v8 = vld [vmem:[%s30071_s5 + $0x1aec] sm:$0xf0] }
 0x46b   : > { %11453 = vmatpush.bf16.msrb.mxu1 %v16549_v47  ;;  %11466 = vmatpush.bf16.msrb.mxu3 %v16741_v17  ;;  %v17245_v47 = vor.u32 %v20098_v27, %v17244_v34  ;;  %v20092_v17 = vld [vmem:[%s30071_s5 + $0x17bc] sm:$0xf0]  ;;  %v17629_v10 = vor.u32 %v20194_v8, %v17628_v41  ;;  %v30152_v34 = vld [vmem:[#allocation7_spill] sm:$0xff]  ;;  %v20134_v27 = vld [vmem:[%s30071_s5 + $0x190c] sm:$0xf0] }
 0x46c   : > { %v17221_v55 = vor.u32 %v20092_v17, %v17220_v53  ;;  %v20080_v41 = vld [vmem:[%s30071_s5 + $0x175c] sm:$0xf0]  ;;  %v17389_v8 = vor.u32 %v20134_v27, %v17388_v63  ;;  %v17556_v17 = vld [vmem:[%s30071_s5 + $0x1a48] sm:$0xf]  ;;  %v20074_v22 = vld [vmem:[%s30071_s5 + $0x172c] sm:$0xf0] }
 0x46d   : > { %11839 = vmatpush.bf16.msra.mxu2 %v17609_v31  ;;  %v17437_v31 = vor.u32 %v20146_v60, %v17436_v3  ;;  %v25941_v3 = vpop.f32.mrf.mxu2  ;;  %v17172_v60 = vld [vmem:[%s30071_s5 + $0x1748] sm:$0xf]  ;;  %v20128_v53 = vld [vmem:[%s30071_s5 + $0x18dc] sm:$0xf0]  ;;  %v17149_v63 = vor.u32 %v20074_v22, %v17148_v46  ;;  %v20383_v27 = vld [vmem:[%s30071_s5 + $0x20dc] sm:$0xf] }
 0x46e   : > { %11441 = vmatpush.bf16.msrb.mxu0 %v16333_v15  ;;  %v20188_v15 = vld [vmem:[%s30071_s5 + $0x1abc] sm:$0xf0]  ;;  %v20062_v46 = vld [vmem:[%s30071_s5 + $0x16cc] sm:$0xf0] }
 0x46f   : > { %11454 = vmatpush.bf16.msrb.mxu1 %v16525_v51  ;;  %11467 = vmatpush.bf16.msrb.mxu3 %v16717_v48  ;;  %v17196_v51 = vld [vmem:[%s30071_s5 + $0x1778] sm:$0xf]  ;;  %v17605_v11 = vor.u32 %v20188_v15, %v17604_v28  ;;  %v20161_v48 = vld [vmem:[%s30071_s5 + $0x19ec] sm:$0xf] }
 0x470   : > { %v17197_v18 = vor.u32 %v20086_v23, %v17196_v51  ;;  %v20149_v51 = vld [vmem:[%s30071_s5 + $0x198c] sm:$0xf] }
 0x471   : > { %11840 = vmatpush.bf16.msra.mxu2 %v17585_v59  ;;  %v17510_v59 = vld [vmem:[%s30071_s5 + $0x1a00] sm:$0xf0] }
 0x472   : > { %11442 = vmatpush.bf16.msrb.mxu0 %v16309_v9  ;;  %v17513_v9 = vor.u32 %v20161_v48, %v17510_v59  ;;  %v11236_v28 = vpop.f32.mrf.mxu0  ;;  %v20170_v48 = vld [vmem:[%s30071_s5 + $0x1a2c] sm:$0xf0] }
 0x473   : > { %11455 = vmatpush.bf16.msrb.mxu1 %v16501_v39  ;;  %11468 = vmatpush.bf16.msrb.mxu3 %v16693_v43  ;;  %v17581_v39 = vor.u32 %v20182_v40, %v17580_v0  ;;  %v17486_v43 = vld [vmem:[%s30071_s5 + $0x19d0] sm:$0xf0]  ;;  %v11249_v15 = vpop.f32.mrf.mxu1  ;;  %v11237_v23 = vadd.f32 %v11236_v28, %v11224_v50 }
 0x474   : > { %v18398_v0 = vld [vmem:[%s30071_s5 + $0x20f0] sm:$0xf0] }
 0x475   : > { %11841 = vmatpush.bf16.msra.mxu2 %v17561_v58  ;;  %11443 = vmatmul.bf16.vlgmr.msrb.gmra.mxu0 %v30152_v34  ;;  %v17364_v58 = vld [vmem:[%s30071_s5 + $0x18c8] sm:$0xf]  ;;  %v11589_v59 = vpop.f32.mrf.mxu2  ;;  %v11250_v40 = vadd.f32 %v11249_v15, %v11237_v23  ;;  %v17484_v23 = vld [vmem:[%s30071_s5 + $0x19b8] sm:$0xf] }
 0x476   : > { %11487 = vmatpush.bf16.msra.mxu0 %v17245_v47  ;;  %11456 = vmatmul.bf16.vlgmr.msrb.gmra.mxu1 %v22984_v38  ;;  %v20155_v47 = vld [vmem:[%s30071_s5 + $0x19bc] sm:$0xf]  ;;  %v18350_v59 = vld [vmem:[%s30071_s5 + $0x2090] sm:$0xf0] }
 0x477   : > { %11500 = vmatpush.bf16.msra.mxu1 %v17437_v31  ;;  %11513 = vmatpush.bf16.msra.mxu3 %v17629_v10  ;;  %v20176_v31 = vld [vmem:[%s30071_s5 + $0x1a5c] sm:$0xf0]  ;;  %v17173_v10 = vor.u32 %v20080_v41, %v17172_v60  ;;  %v17489_v45 = vor.u32 %v20155_v47, %v17486_v43  ;;  %v18401_v47 = vor.u32 %v20383_v27, %v18398_v0  ;;  %v17268_v0 = vld [vmem:[%s30071_s5 + $0x1808] sm:$0xf] }
 0x478   : > { %11469 = vmatmul.bf16.vlgmr.msrb.gmra.mxu3 %v22986_v4  ;;  %v20068_v60 = vld [vmem:[%s30071_s5 + $0x16fc] sm:$0xf0] }
 0x479   : > { %11842 = vmatpush.bf16.msra.mxu2 %v17537_v52  ;;  %v17557_v52 = vor.u32 %v20176_v31, %v17556_v17  ;;  %v20116_v43 = vld [vmem:[%s30071_s5 + $0x187c] sm:$0xf0]  ;;  %v20377_v31 = vld [vmem:[%s30071_s5 + $0x20ac] sm:$0xf] }
 0x47a   : > { %11488 = vmatpush.bf16.msra.mxu0 %v17221_v55  ;;  %v17365_v55 = vor.u32 %v20128_v53, %v17364_v58  ;;  %v17508_v58 = vld [vmem:[%s30071_s5 + $0x19e8] sm:$0xf]  ;;  %v20164_v53 = vld [vmem:[%s30071_s5 + $0x19fc] sm:$0xf0]  ;;  %v11238_v28 = vpop.f32.mrf.mxu0 }
 0x47b   : > { %11501 = vmatpush.bf16.msra.mxu1 %v17413_v19  ;;  %11514 = vmatpush.bf16.msra.mxu3 %v17605_v11  ;;  %v20122_v19 = vld [vmem:[%s30071_s5 + $0x18ac] sm:$0xf0]  ;;  %v17532_v11 = vld [vmem:[%s30071_s5 + $0x1a18] sm:$0xf]  ;;  %v11262_v50 = vpop.f32.mrf.mxu3  ;;  %v11251_v15 = vpop.f32.mrf.mxu1  ;;  %v20056_v27 = vld [vmem:[%s30071_s5 + $0x169c] sm:$0xf0] }
 0x47c   : > { %v17341_v41 = vor.u32 %v20122_v19, %v17340_v24  ;;  %v26029_v22 = vadd.f32 %v11262_v50, %v11250_v40  ;;  %v20110_v24 = vld [vmem:[%s30071_s5 + $0x184c] sm:$0xf0] }
 0x47d   : > { %11843 = vmatpush.bf16.msra.mxu2 %v17513_v9  ;;  %v17124_v9 = vld [vmem:[%s30071_s5 + $0x16e8] sm:$0xf]  ;;  %v20158_v19 = vld [vmem:[%s30071_s5 + $0x19cc] sm:$0xf0] }
 0x47e   : > { %11489 = vmatpush.bf16.msra.mxu0 %v17197_v18  ;;  %v17465_v18 = vor.u32 %v20149_v51, %v17462_v54  ;;  %v17125_v17 = vor.u32 %v20068_v60, %v17124_v9  ;;  %v17292_v51 = vld [vmem:[%s30071_s5 + $0x1838] sm:$0xf]  ;;  %v20104_v9 = vld [vmem:[%s30071_s5 + $0x181c] sm:$0xf0] }
 0x47f   : > { %11502 = vmatpush.bf16.msra.mxu1 %v17389_v8  ;;  %11515 = vmatpush.bf16.msra.mxu3 %v17581_v39  ;;  %v17533_v8 = vor.u32 %v20170_v48, %v17532_v11  ;;  %v17316_v39 = vld [vmem:[%s30071_s5 + $0x1868] sm:$0xf]  ;;  %v20371_v48 = vld [vmem:[%s30071_s5 + $0x207c] sm:$0xf]  ;;  %v17293_v40 = vor.u32 %v20110_v24, %v17292_v51  ;;  %v18012_v60 = vld [vmem:[%s30071_s5 + $0x1dd8] sm:$0xf]  ;;  %v17269_v28 = vor.u32 %v20104_v9, %v17268_v0 }
 0x480   : > { %v20359_v51 = vld [vmem:[%s30071_s5 + $0x201c] sm:$0xf]  ;;  %v20284_v24 = vld [vmem:[%s30071_s5 + $0x1dbc] sm:$0xf0]  ;;  %v17964_v9 = vld [vmem:[%s30071_s5 + $0x1d78] sm:$0xf] }
 0x481   : > { %11844 = vmatpush.bf16.msra.mxu2 %v17489_v45  ;;  %v17100_v45 = vld [vmem:[%s30071_s5 + $0x16b8] sm:$0xf] }
 0x482   : > { %11490 = vmatpush.bf16.msra.mxu0 %v17173_v10  ;;  %v18374_v10 = vld [vmem:[%s30071_s5 + $0x20c0] sm:$0xf0]  ;;  %v17101_v11 = vor.u32 %v20062_v46, %v17100_v45  ;;  %v18396_v45 = vld [vmem:[%s30071_s5 + $0x20d8] sm:$0xf]  ;;  %v20386_v46 = vld [vmem:[%s30071_s5 + $0x20ec] sm:$0xf0] }
 0x483   : > { %11503 = vmatpush.bf16.msra.mxu1 %v17365_v55  ;;  %11516 = vmatpush.bf16.msra.mxu3 %v17557_v52  ;;  %v17317_v55 = vor.u32 %v20116_v43, %v17316_v39  ;;  %v17509_v52 = vor.u32 %v20164_v53, %v17508_v58  ;;  %v18377_v54 = vor.u32 %v20377_v31, %v18374_v10  ;;  %v17460_v39 = vld [vmem:[%s30071_s5 + $0x1988] sm:$0xf]  ;;  %v20365_v43 = vld [vmem:[%s30071_s5 + $0x204c] sm:$0xf]  ;;  %v18326_v53 = vld [vmem:[%s30071_s5 + $0x2060] sm:$0xf0]  ;;  %v11264_v10 = vpop.f32.mrf.mxu3 }
 0x484   : > { %v20338_v31 = vld [vmem:[%s30071_s5 + $0x1f6c] sm:$0xf0] }
 0x485   : > { %11845 = vmatpush.bf16.msra.mxu2 %v17465_v18  ;;  %v17485_v18 = vor.u32 %v20158_v19, %v17484_v23  ;;  %v18397_v23 = vor.u32 %v20386_v46, %v18396_v45  ;;  %v18302_v19 = vld [vmem:[%s30071_s5 + $0x2030] sm:$0xf0]  ;;  %v20347_v45 = vld [vmem:[%s30071_s5 + $0x1fbc] sm:$0xf]  ;;  %v17940_v46 = vld [vmem:[%s30071_s5 + $0x1d48] sm:$0xf] }
 0x486   : > { %11491 = vmatpush.bf16.msra.mxu0 %v17149_v63  ;;  %v17076_v63 = vld [vmem:[%s30071_s5 + $0x1688] sm:$0xf]  ;;  %v18305_v0 = vor.u32 %v20359_v51, %v18302_v19  ;;  %v20320_v51 = vld [vmem:[%s30071_s5 + $0x1edc] sm:$0xf0] }
 0x487   : > { %11504 = vmatpush.bf16.msra.mxu1 %v17341_v41  ;;  %11517 = vmatpush.bf16.msra.mxu3 %v17533_v8  ;;  %v20290_v41 = vld [vmem:[%s30071_s5 + $0x1dec] sm:$0xf0]  ;;  %v18353_v8 = vor.u32 %v20371_v48, %v18350_v59  ;;  %v17077_v58 = vor.u32 %v20056_v27, %v17076_v63  ;;  %v20332_v48 = vld [vmem:[%s30071_s5 + $0x1f3c] sm:$0xf0]  ;;  %v18372_v59 = vld [vmem:[%s30071_s5 + $0x20a8] sm:$0xf] }
 0x488   : > { %11846 = vmatmul.bf16.vlgmr.msra.gmra.mxu2 %v23301_v49  ;;  %v18013_v50 = vor.u32 %v20290_v41, %v18012_v60  ;;  %v20380_v63 = vld [vmem:[%s30071_s5 + $0x20bc] sm:$0xf0]  ;;  %v20278_v60 = vld [vmem:[%s30071_s5 + $0x1d8c] sm:$0xf0] }
 0x489   : > { %11890 = vmatpush.bf16.msrb.mxu2 %v18401_v47  ;;  %v20152_v47 = vld [vmem:[%s30071_s5 + $0x199c] sm:$0xf0] }
 0x48a   : > { %11492 = vmatpush.bf16.msra.mxu0 %v17125_v17  ;;  %v18204_v17 = vld [vmem:[%s30071_s5 + $0x1f58] sm:$0xf]  ;;  %v17461_v15 = vor.u32 %v20152_v47, %v17460_v39  ;;  %v30153_v41 = vld [vmem:[#allocation8_spill] sm:$0xff] }
 0x48b   : > { %11505 = vmatpush.bf16.msra.mxu1 %v17317_v55  ;;  %11518 = vmatpush.bf16.msra.mxu3 %v17509_v52  ;;  %v18329_v55 = vor.u32 %v20365_v43, %v18326_v53  ;;  %v18205_v52 = vor.u32 %v20338_v31, %v18204_v17  ;;  %v18278_v39 = vld [vmem:[%s30071_s5 + $0x2000] sm:$0xf0]  ;;  %v18156_v47 = vld [vmem:[%s30071_s5 + $0x1ef8] sm:$0xf]  ;;  %v20326_v43 = vld [vmem:[%s30071_s5 + $0x1f0c] sm:$0xf0]  ;;  %v17965_v31 = vor.u32 %v20278_v60, %v17964_v9 }
 0x48c   : > { %v18348_v53 = vld [vmem:[%s30071_s5 + $0x2078] sm:$0xf]  ;;  %v20374_v17 = vld [vmem:[%s30071_s5 + $0x208c] sm:$0xf0] }
 0x48d   : > { %11891 = vmatpush.bf16.msrb.mxu2 %v18377_v54  ;;  %v17988_v54 = vld [vmem:[%s30071_s5 + $0x1da8] sm:$0xf]  ;;  %v18108_v9 = vld [vmem:[%s30071_s5 + $0x1e98] sm:$0xf]  ;;  %v20314_v60 = vld [vmem:[%s30071_s5 + $0x1eac] sm:$0xf0] }
 0x48e   : > { %11493 = vmatpush.bf16.msra.mxu0 %v17101_v11  ;;  %v18180_v11 = vld [vmem:[%s30071_s5 + $0x1f28] sm:$0xf]  ;;  %v17989_v27 = vor.u32 %v20284_v24, %v17988_v54  ;;  %v20368_v24 = vld [vmem:[%s30071_s5 + $0x205c] sm:$0xf0] }
 0x48f   : > { %11506 = vmatpush.bf16.msra.mxu1 %v17293_v40  ;;  %11519 = vmatpush.bf16.msra.mxu3 %v17485_v18  ;;  %v18181_v40 = vor.u32 %v20332_v48, %v18180_v11  ;;  %v20353_v18 = vld [vmem:[%s30071_s5 + $0x1fec] sm:$0xf]  ;;  %v18324_v54 = vld [vmem:[%s30071_s5 + $0x2048] sm:$0xf] }
 0x490   : > { %v18281_v10 = vor.u32 %v20353_v18, %v18278_v39  ;;  %v20341_v11 = vld [vmem:[%s30071_s5 + $0x1f8c] sm:$0xf]  ;;  %v18325_v18 = vor.u32 %v20368_v24, %v18324_v54  ;;  %v14348_v54 = vld [vmem:[%s30071_s5 + $0x130] sm:$0xf]  ;;  %v19373_v24 = vld [vmem:[%s30071_s5 + $0x144] sm:$0xf0] }
 0x491   : > { %11892 = vmatpush.bf16.msrb.mxu2 %v18353_v8  ;;  %v18373_v8 = vor.u32 %v20380_v63, %v18372_v59 }
 0x492   : > { %11494 = vmatpush.bf16.msra.mxu0 %v17077_v58  ;;  %v26137_v58 = vpop.f32.mrf.mxu2  ;;  %v11288_v48 = vpop.f32.mrf.mxu0 }
 0x493   : > { %11507 = vmatpush.bf16.msra.mxu1 %v17269_v28  ;;  %11520 = vmatpush.bf16.msra.mxu3 %v17461_v15  ;;  %v20272_v28 = vld [vmem:[%s30071_s5 + $0x1d5c] sm:$0xf0]  ;;  %v18349_v15 = vor.u32 %v20374_v17, %v18348_v53  ;;  %v19379_v53 = vld [vmem:[%s30071_s5 + $0x174] sm:$0xf0] }
 0x494   : > { %v17941_v19 = vor.u32 %v20272_v28, %v17940_v46 }
 0x495   : > { %11893 = vmatpush.bf16.msrb.mxu2 %v18329_v55  ;;  %11495 = vmatmul.bf16.vlgmr.msra.gmra.mxu0 %v30153_v41  ;;  %v18254_v55 = vld [vmem:[%s30071_s5 + $0x1fd0] sm:$0xf0] }
 0x496   : > { %11539 = vmatpush.bf16.msrb.mxu0 %v18013_v50  ;;  %11508 = vmatmul.bf16.vlgmr.msra.gmra.mxu1 %v23289_v33  ;;  %v18157_v50 = vor.u32 %v20326_v43, %v18156_v47  ;;  %v18257_v59 = vor.u32 %v20347_v45, %v18254_v55  ;;  %v20362_v47 = vld [vmem:[%s30071_s5 + $0x202c] sm:$0xf0]  ;;  %v14372_v43 = vld [vmem:[%s30071_s5 + $0x160] sm:$0xf] }
 0x497   : > { %11552 = vmatpush.bf16.msrb.mxu1 %v18205_v52  ;;  %11565 = vmatpush.bf16.msrb.mxu3 %v18397_v23  ;;  %v18132_v52 = vld [vmem:[%s30071_s5 + $0x1ec8] sm:$0xf]  ;;  %v11276_v23 = vadd.f32 %v24732_v44, %v26029_v22  ;;  %v20266_v44 = vld [vmem:[%s30071_s5 + $0x1d2c] sm:$0xf0]  ;;  %v20260_v45 = vld [vmem:[%s30071_s5 + $0x1cfc] sm:$0xf0]  ;;  %v14373_v28 = vor.u32 %v19379_v53, %v14372_v43 }
 0x498   : > { %11521 = vmatmul.bf16.vlgmr.msra.gmra.mxu3 %v23301_v49  ;;  %v18133_v63 = vor.u32 %v20320_v51, %v18132_v52  ;;  %v20308_v55 = vld [vmem:[%s30071_s5 + $0x1e7c] sm:$0xf0]  ;;  %v18276_v52 = vld [vmem:[%s30071_s5 + $0x1fe8] sm:$0xf] }
 0x499   : > { %11894 = vmatpush.bf16.msrb.mxu2 %v18305_v0  ;;  %v17916_v0 = vld [vmem:[%s30071_s5 + $0x1d18] sm:$0xf]  ;;  %v26183_v22 = vadd.f32 %v11288_v48, %v11276_v23  ;;  %v20356_v51 = vld [vmem:[%s30071_s5 + $0x1ffc] sm:$0xf0]  ;;  %v17844_v53 = vld [vmem:[%s30071_s5 + $0x1c88] sm:$0xf] }
 0x49a   : > { %11540 = vmatpush.bf16.msrb.mxu0 %v17989_v27  ;;  %v18230_v27 = vld [vmem:[%s30071_s5 + $0x1fa0] sm:$0xf0]  ;;  %v11641_v39 = vpop.f32.mrf.mxu2  ;;  %v17917_v17 = vor.u32 %v20266_v44, %v17916_v0  ;;  %v11290_v48 = vpop.f32.mrf.mxu0  ;;  %v18277_v44 = vor.u32 %v20356_v51, %v18276_v52  ;;  %v20482_v52 = vld [vmem:[%s30071_s5 + $0x23ec] sm:$0xf0] }
 0x49b   : > { %11553 = vmatpush.bf16.msrb.mxu1 %v18181_v40  ;;  %11566 = vmatpush.bf16.msrb.mxu3 %v18373_v8  ;;  %v11301_v40 = vpop.f32.mrf.mxu1  ;;  %v18300_v8 = vld [vmem:[%s30071_s5 + $0x2018] sm:$0xf]  ;;  %v11314_v23 = vpop.f32.mrf.mxu3  ;;  %v14324_v39 = vld [vmem:[%s30071_s5 + $0x100] sm:$0xf]  ;;  %v14300_v51 = vld [vmem:[%s30071_s5 + $0xd0] sm:$0xf] }
 0x49c   : > { %v18301_v46 = vor.u32 %v20362_v47, %v18300_v8  ;;  %v20350_v8 = vld [vmem:[%s30071_s5 + $0x1fcc] sm:$0xf0]  ;;  %v19367_v47 = vld [vmem:[%s30071_s5 + $0x114] sm:$0xf0] }
 0x49d   : > { %11895 = vmatpush.bf16.msrb.mxu2 %v18281_v10  ;;  %v18109_v10 = vor.u32 %v20314_v60, %v18108_v9  ;;  %v20302_v9 = vld [vmem:[%s30071_s5 + $0x1e4c] sm:$0xf0]  ;;  %v18252_v60 = vld [vmem:[%s30071_s5 + $0x1fb8] sm:$0xf] }
 0x49e   : > { %11541 = vmatpush.bf16.msrb.mxu0 %v17965_v31  ;;  %v18233_v31 = vor.u32 %v20341_v11, %v18230_v27  ;;  %v26227_v11 = vadd.f32 %v11314_v23, %v11301_v40  ;;  %v20254_v27 = vld [vmem:[%s30071_s5 + $0x1ccc] sm:$0xf0]  ;;  %v18060_v40 = vld [vmem:[%s30071_s5 + $0x1e38] sm:$0xf] }
 0x49f   : > { %11554 = vmatpush.bf16.msrb.mxu1 %v18157_v50  ;;  %11567 = vmatpush.bf16.msrb.mxu3 %v18349_v15  ;;  %v17892_v50 = vld [vmem:[%s30071_s5 + $0x1ce8] sm:$0xf]  ;;  %v20530_v48 = vld [vmem:[%s30071_s5 + $0x256c] sm:$0xf0] }
 0x4a0   : > { %v18084_v15 = vld [vmem:[%s30071_s5 + $0x1e68] sm:$0xf] }
 0x4a1   : > { %11896 = vmatpush.bf16.msrb.mxu2 %v18257_v59  ;;  %v18085_v59 = vor.u32 %v20308_v55, %v18084_v15  ;;  %v20344_v15 = vld [vmem:[%s30071_s5 + $0x1f9c] sm:$0xf0]  ;;  %v18780_v55 = vld [vmem:[%s30071_s5 + $0x23d8] sm:$0xf] }
 0x4a2   : > { %11542 = vmatpush.bf16.msrb.mxu0 %v17941_v19  ;;  %v17893_v19 = vor.u32 %v20260_v45, %v17892_v50  ;;  %v20296_v50 = vld [vmem:[%s30071_s5 + $0x1e1c] sm:$0xf0]  ;;  %v18228_v45 = vld [vmem:[%s30071_s5 + $0x1f88] sm:$0xf] }
 0x4a3   : > { %11555 = vmatpush.bf16.msrb.mxu1 %v18133_v63  ;;  %11568 = vmatpush.bf16.msrb.mxu3 %v18325_v18  ;;  %v17868_v63 = vld [vmem:[%s30071_s5 + $0x1cb8] sm:$0xf]  ;;  %v11303_v0 = vpop.f32.mrf.mxu1  ;;  %v14349_v18 = vor.u32 %v19373_v24, %v14348_v54  ;;  %v19361_v54 = vld [vmem:[%s30071_s5 + $0xe4] sm:$0xf0]  ;;  %v11316_v23 = vpop.f32.mrf.mxu3 }
 0x4a4   : > { %v17869_v43 = vor.u32 %v20254_v27, %v17868_v63  ;;  %v18972_v24 = vld [vmem:[%s30071_s5 + $0x2558] sm:$0xf]  ;;  %v14366_v63 = vld [vmem:[%s30071_s5 + $0x170] sm:$0xf0]  ;;  %v18781_v0 = vor.u32 %v20482_v52, %v18780_v55  ;;  %v14252_v55 = vld [vmem:[%s30071_s5 + $0x70] sm:$0xf] }
 0x4a5   : > { %11897 = vmatpush.bf16.msrb.mxu2 %v18233_v31  ;;  %v18061_v31 = vor.u32 %v20302_v9, %v18060_v40  ;;  %v18756_v40 = vld [vmem:[%s30071_s5 + $0x23a8] sm:$0xf]  ;;  %v20476_v9 = vld [vmem:[%s30071_s5 + $0x23bc] sm:$0xf0]  ;;  %v19363_v23 = vld [vmem:[%s30071_s5 + $0xfc] sm:$0xf] }
 0x4a6   : > { %11543 = vmatpush.bf16.msrb.mxu0 %v17917_v17  ;;  %v20248_v17 = vld [vmem:[%s30071_s5 + $0x1c9c] sm:$0xf0]  ;;  %v19349_v52 = vld [vmem:[%s30071_s5 + $0x84] sm:$0xf0] }
 0x4a7   : > { %11556 = vmatpush.bf16.msrb.mxu1 %v18109_v10  ;;  %11569 = vmatpush.bf16.msrb.mxu3 %v18301_v46  ;;  %v18036_v10 = vld [vmem:[%s30071_s5 + $0x1e08] sm:$0xf]  ;;  %v18253_v46 = vor.u32 %v20350_v8, %v18252_v60  ;;  %v18973_v60 = vor.u32 %v20530_v48, %v18972_v24  ;;  %v20518_v24 = vld [vmem:[%s30071_s5 + $0x250c] sm:$0xf0] }
 0x4a8   : > { %11898 = vmatmul.bf16.vlgmr.msrb.gmra.mxu2 %v23897_v35  ;;  %v18037_v27 = vor.u32 %v20296_v50, %v18036_v10  ;;  %v18757_v10 = vor.u32 %v20476_v9, %v18756_v40  ;;  %v14228_v40 = vld [vmem:[%s30071_s5 + $0x40] sm:$0xf]  ;;  %v19343_v9 = vld [vmem:[%s30071_s5 + $0x54] sm:$0xf0] }
 0x4a9   : > { %11942 = vmatpush.bf16.msra.mxu2 %v14373_v28  ;;  %v14325_v28 = vor.u32 %v19367_v47, %v14324_v39  ;;  %v14276_v39 = vld [vmem:[%s30071_s5 + $0xa0] sm:$0xf]  ;;  %v19355_v47 = vld [vmem:[%s30071_s5 + $0xb4] sm:$0xf0] }
 0x4aa   : > { %11544 = vmatpush.bf16.msrb.mxu0 %v17893_v19  ;;  %v17845_v19 = vor.u32 %v20248_v17, %v17844_v53  ;;  %v20524_v53 = vld [vmem:[%s30071_s5 + $0x253c] sm:$0xf0]  ;;  %v19369_v17 = vld [vmem:[%s30071_s5 + $0x12c] sm:$0xf]  ;;  %v14277_v50 = vor.u32 %v19355_v47, %v14276_v39  ;;  %v14294_v47 = vld [vmem:[%s30071_s5 + $0xe0] sm:$0xf0] }
 0x4ab   : > { %11557 = vmatpush.bf16.msrb.mxu1 %v18085_v59  ;;  %11570 = vmatpush.bf16.msrb.mxu3 %v18277_v44  ;;  %v19375_v59 = vld [vmem:[%s30071_s5 + $0x15c] sm:$0xf]  ;;  %v18229_v44 = vor.u32 %v20344_v15, %v18228_v45  ;;  %v18732_v45 = vld [vmem:[%s30071_s5 + $0x2378] sm:$0xf]  ;;  %v26347_v48 = vpop.f32.mrf.mxu2  ;;  %v19357_v39 = vld [vmem:[%s30071_s5 + $0xcc] sm:$0xf] }
 0x4ac   : > { %v14369_v8 = vor.u32 %v19375_v59, %v14366_v63  ;;  %v14253_v63 = vor.u32 %v19349_v52, %v14252_v55  ;;  %v20506_v52 = vld [vmem:[%s30071_s5 + $0x24ac] sm:$0xf0] }
 0x4ad   : > { %11943 = vmatpush.bf16.msra.mxu2 %v14349_v18  ;;  %v14301_v18 = vor.u32 %v19361_v54, %v14300_v51  ;;  %v18924_v51 = vld [vmem:[%s30071_s5 + $0x24f8] sm:$0xf]  ;;  %v30154_v54 = vld [vmem:[#allocation9_spill] sm:$0xff] }
 0x4ae   : > { %11545 = vmatpush.bf16.msrb.mxu0 %v17869_v43  ;;  %v18948_v43 = vld [vmem:[%s30071_s5 + $0x2528] sm:$0xf] }
 0x4af   : > { %11558 = vmatpush.bf16.msrb.mxu1 %v18061_v31  ;;  %11571 = vmatpush.bf16.msrb.mxu3 %v18253_v46  ;;  %v14342_v31 = vld [vmem:[%s30071_s5 + $0x140] sm:$0xf0]  ;;  %v20470_v46 = vld [vmem:[%s30071_s5 + $0x238c] sm:$0xf0] }
 0x4b0   : > { %v14345_v15 = vor.u32 %v19369_v17, %v14342_v31  ;;  %v18733_v59 = vor.u32 %v20470_v46, %v18732_v45  ;;  %v14229_v17 = vor.u32 %v19343_v9, %v14228_v40  ;;  %v18684_v31 = vld [vmem:[%s30071_s5 + $0x2318] sm:$0xf] }
 0x4b1   : > { %11944 = vmatpush.bf16.msra.mxu2 %v14325_v28  ;;  %v18949_v28 = vor.u32 %v20524_v53, %v18948_v43  ;;  %v11328_v53 = vadd.f32 %v24927_v12, %v26227_v11  ;;  %v19337_v12 = vld [vmem:[%s30071_s5 + $0x24] sm:$0xf0]  ;;  %v18876_v11 = vld [vmem:[%s30071_s5 + $0x2498] sm:$0xf] }
 0x4b2   : > { %11546 = vmatpush.bf16.msrb.mxu0 %v17845_v19  ;;  %v14318_v19 = vld [vmem:[%s30071_s5 + $0x110] sm:$0xf0]  ;;  %v18877_v40 = vor.u32 %v20506_v52, %v18876_v11 }
 0x4b3   : > { %11559 = vmatpush.bf16.msrb.mxu1 %v18037_v27  ;;  %11572 = vmatpush.bf16.msrb.mxu3 %v18229_v44  ;;  %v18708_v27 = vld [vmem:[%s30071_s5 + $0x2348] sm:$0xf]  ;;  %v18925_v44 = vor.u32 %v20518_v24, %v18924_v51  ;;  %v11353_v45 = vpop.f32.mrf.mxu1  ;;  %v19351_v51 = vld [vmem:[%s30071_s5 + $0x9c] sm:$0xf]  ;;  %v14270_v24 = vld [vmem:[%s30071_s5 + $0xb0] sm:$0xf0] }
 0x4b4   : > { %v14273_v9 = vor.u32 %v19351_v51, %v14270_v24  ;;  %v20494_v51 = vld [vmem:[%s30071_s5 + $0x244c] sm:$0xf0]  ;;  %v19339_v24 = vld [vmem:[%s30071_s5 + $0x3c] sm:$0xf] }
 0x4b5   : > { %11945 = vmatpush.bf16.msra.mxu2 %v14301_v18  ;;  %11547 = vmatmul.bf16.vlgmr.msrb.gmra.mxu0 %v30154_v54  ;;  %v14321_v18 = vor.u32 %v19363_v23, %v14318_v19  ;;  %v11693_v23 = vpop.f32.mrf.mxu2 }
 0x4b6   : > { %11591 = vmatpush.bf16.msra.mxu0 %v18781_v0  ;;  %11560 = vmatmul.bf16.vlgmr.msrb.gmra.mxu1 %v23620_v56  ;;  %v20464_v0 = vld [vmem:[%s30071_s5 + $0x235c] sm:$0xf0]  ;;  %v14222_v23 = vld [vmem:[%s30071_s5 + $0x50] sm:$0xf0] }
 0x4b7   : > { %11604 = vmatpush.bf16.msra.mxu1 %v18973_v60  ;;  %11617 = vmatpush.bf16.msra.mxu3 %v14369_v8  ;;  %v18900_v60 = vld [vmem:[%s30071_s5 + $0x24c8] sm:$0xf]  ;;  %v20512_v8 = vld [vmem:[%s30071_s5 + $0x24dc] sm:$0xf0]  ;;  %v18709_v43 = vor.u32 %v20464_v0, %v18708_v27 }
 0x4b8   : > { %11573 = vmatmul.bf16.vlgmr.msrb.gmra.mxu3 %v23897_v35  ;;  %v18901_v46 = vor.u32 %v20512_v8, %v18900_v60  ;;  %v18852_v60 = vld [vmem:[%s30071_s5 + $0x2468] sm:$0xf] }
 0x4b9   : > { %11946 = vmatpush.bf16.msra.mxu2 %v14277_v50  ;;  %v11340_v50 = vpop.f32.mrf.mxu0 }
 0x4ba   : > { %11592 = vmatpush.bf16.msra.mxu0 %v18757_v10  ;;  %v20458_v10 = vld [vmem:[%s30071_s5 + $0x232c] sm:$0xf0]  ;;  %v11341_v55 = vadd.f32 %v11340_v50, %v11328_v53  ;;  %v18636_v50 = vld [vmem:[%s30071_s5 + $0x22b8] sm:$0xf] }
 0x4bb   : > { %11605 = vmatpush.bf16.msra.mxu1 %v18949_v28  ;;  %11618 = vmatpush.bf16.msra.mxu3 %v14345_v15  ;;  %v14297_v28 = vor.u32 %v19357_v39, %v14294_v47  ;;  %v14204_v15 = vld [vmem:[%s30071_s5 + $0x10] sm:$0xf]  ;;  %v18685_v19 = vor.u32 %v20458_v10, %v18684_v31  ;;  %v20500_v39 = vld [vmem:[%s30071_s5 + $0x247c] sm:$0xf0]  ;;  %v19345_v47 = vld [vmem:[%s30071_s5 + $0x6c] sm:$0xf]  ;;  %v11366_v10 = vpop.f32.mrf.mxu3 }
 0x4bc   : > { %v11354_v27 = vadd.f32 %v11353_v45, %v11341_v55  ;;  %v14205_v0 = vor.u32 %v19337_v12, %v14204_v15  ;;  %v19565_v31 = vld [vmem:[%s30071_s5 + $0x744] sm:$0xf0]  ;;  %v20446_v45 = vld [vmem:[%s30071_s5 + $0x22cc] sm:$0xf0]  ;;  %v11355_v15 = vpop.f32.mrf.mxu1  ;;  %v18853_v12 = vor.u32 %v20500_v39, %v18852_v60  ;;  %v18828_v55 = vld [vmem:[%s30071_s5 + $0x2438] sm:$0xf] }
 0x4bd   : > { %11947 = vmatpush.bf16.msra.mxu2 %v14253_v63  ;;  %v19571_v63 = vld [vmem:[%s30071_s5 + $0x774] sm:$0xf0]  ;;  %v19471_v60 = vld [vmem:[%s30071_s5 + $0x45c] sm:$0xf] }
 0x4be   : > { %11593 = vmatpush.bf16.msra.mxu0 %v18733_v59  ;;  %v15140_v59 = vld [vmem:[%s30071_s5 + $0x760] sm:$0xf]  ;;  %v19567_v15 = vld [vmem:[%s30071_s5 + $0x75c] sm:$0xf] }
 0x4bf   : > { %11606 = vmatpush.bf16.msra.mxu1 %v18925_v44  ;;  %11619 = vmatpush.bf16.msra.mxu3 %v14321_v18  ;;  %v18660_v44 = vld [vmem:[%s30071_s5 + $0x22e8] sm:$0xf]  ;;  %v20452_v18 = vld [vmem:[%s30071_s5 + $0x22fc] sm:$0xf0]  ;;  %v15141_v8 = vor.u32 %v19571_v63, %v15140_v59  ;;  %v19559_v63 = vld [vmem:[%s30071_s5 + $0x714] sm:$0xf0] }
 0x4c0   : > { %v18661_v53 = vor.u32 %v20452_v18, %v18660_v44  ;;  %v15092_v59 = vld [vmem:[%s30071_s5 + $0x700] sm:$0xf]  ;;  %v18804_v44 = vld [vmem:[%s30071_s5 + $0x2408] sm:$0xf]  ;;  %v18829_v18 = vor.u32 %v20494_v51, %v18828_v55 }
 0x4c1   : > { %11948 = vmatpush.bf16.msra.mxu2 %v14229_v17  ;;  %v15116_v17 = vld [vmem:[%s30071_s5 + $0x730] sm:$0xf]  ;;  %v15093_v39 = vor.u32 %v19559_v63, %v15092_v59  ;;  %v19547_v63 = vld [vmem:[%s30071_s5 + $0x6b4] sm:$0xf0] }
 0x4c2   : > { %11594 = vmatpush.bf16.msra.mxu0 %v18709_v43  ;;  %v14246_v43 = vld [vmem:[%s30071_s5 + $0x80] sm:$0xf0]  ;;  %v15117_v52 = vor.u32 %v19565_v31, %v15116_v17  ;;  %v19553_v31 = vld [vmem:[%s30071_s5 + $0x6e4] sm:$0xf0] }
 0x4c3   : > { %11607 = vmatpush.bf16.msra.mxu1 %v18901_v46  ;;  %11620 = vmatpush.bf16.msra.mxu3 %v14297_v28  ;;  %v26435_v46 = vadd.f32 %v11366_v10, %v11354_v27  ;;  %v11342_v28 = vpop.f32.mrf.mxu0  ;;  %v14249_v11 = vor.u32 %v19345_v47, %v14246_v43  ;;  %v18612_v27 = vld [vmem:[%s30071_s5 + $0x2288] sm:$0xf]  ;;  %v19333_v47 = vld [vmem:[%s30071_s5 + $0xc] sm:$0xf]  ;;  %v14198_v43 = vld [vmem:[%s30071_s5 + $0x20] sm:$0xf0] }
 0x4c4   : > { %v19519_v10 = vld [vmem:[%s30071_s5 + $0x5dc] sm:$0xf]  ;;  %v14201_v55 = vor.u32 %v19333_v47, %v14198_v43  ;;  %v14702_v47 = vld [vmem:[%s30071_s5 + $0x410] sm:$0xf0] }
 0x4c5   : > { %11949 = vmatpush.bf16.msra.mxu2 %v14205_v0  ;;  %v20440_v0 = vld [vmem:[%s30071_s5 + $0x229c] sm:$0xf0] }
 0x4c6   : > { %11595 = vmatpush.bf16.msra.mxu0 %v18685_v19  ;;  %v18637_v19 = vor.u32 %v20446_v45, %v18636_v50  ;;  %v18613_v17 = vor.u32 %v20440_v0, %v18612_v27  ;;  %v14942_v50 = vld [vmem:[%s30071_s5 + $0x5f0] sm:$0xf0]  ;;  %v11368_v45 = vpop.f32.mrf.mxu3  ;;  %v19513_v27 = vld [vmem:[%s30071_s5 + $0x5ac] sm:$0xf]  ;;  %v14918_v0 = vld [vmem:[%s30071_s5 + $0x5c0] sm:$0xf0] }
 0x4c7   : > { %11608 = vmatpush.bf16.msra.mxu1 %v18877_v40  ;;  %11621 = vmatpush.bf16.msra.mxu3 %v14273_v9  ;;  %v14225_v40 = vor.u32 %v19339_v24, %v14222_v23  ;;  %v20488_v9 = vld [vmem:[%s30071_s5 + $0x241c] sm:$0xf0]  ;;  %v14945_v51 = vor.u32 %v19519_v10, %v14942_v50  ;;  %v19465_v23 = vld [vmem:[%s30071_s5 + $0x42c] sm:$0xf]  ;;  %v19555_v50 = vld [vmem:[%s30071_s5 + $0x6fc] sm:$0xf] }
 0x4c8   : > { %11950 = vmatmul.bf16.vlgmr.msra.gmra.mxu2 %v22036_v62  ;;  %v15044_v24 = vld [vmem:[%s30071_s5 + $0x6a0] sm:$0xf]  ;;  %v15086_v45 = vld [vmem:[%s30071_s5 + $0x710] sm:$0xf0] }
 0x4c9   : > { %11994 = vmatpush.bf16.msrb.mxu2 %v15141_v8  ;;  %v14750_v8 = vld [vmem:[%s30071_s5 + $0x470] sm:$0xf0] }
 0x4ca   : > { %11596 = vmatpush.bf16.msra.mxu0 %v18661_v53  ;;  %v15068_v53 = vld [vmem:[%s30071_s5 + $0x6d0] sm:$0xf]  ;;  %v14753_v28 = vor.u32 %v19471_v60, %v14750_v8  ;;  %v14921_v60 = vor.u32 %v19513_v27, %v14918_v0  ;;  %v11380_v27 = vadd.f32 %v25133_v1, %v26435_v46  ;;  %v14654_v1 = vld [vmem:[%s30071_s5 + $0x3b0] sm:$0xf0] }
 0x4cb   : > { %11609 = vmatpush.bf16.msra.mxu1 %v18853_v12  ;;  %11622 = vmatpush.bf16.msra.mxu3 %v14249_v11  ;;  %v15134_v12 = vld [vmem:[%s30071_s5 + $0x770] sm:$0xf0]  ;;  %v18805_v11 = vor.u32 %v20488_v9, %v18804_v44  ;;  %v19561_v44 = vld [vmem:[%s30071_s5 + $0x72c] sm:$0xf]  ;;  %v15045_v9 = vor.u32 %v19547_v63, %v15044_v24  ;;  %v15020_v8 = vld [vmem:[%s30071_s5 + $0x670] sm:$0xf]  ;;  %v26543_v10 = vpop.f32.mrf.mxu2 }
 0x4cc   : > { %v15137_v59 = vor.u32 %v19567_v15, %v15134_v12  ;;  %v19535_v24 = vld [vmem:[%s30071_s5 + $0x654] sm:$0xf0]  ;;  %v15062_v63 = vld [vmem:[%s30071_s5 + $0x6e0] sm:$0xf0] }
 0x4cd   : > { %11995 = vmatpush.bf16.msrb.mxu2 %v15117_v52  ;;  %v15069_v52 = vor.u32 %v19553_v31, %v15068_v53  ;;  %v19541_v53 = vld [vmem:[%s30071_s5 + $0x684] sm:$0xf0]  ;;  %v14894_v31 = vld [vmem:[%s30071_s5 + $0x590] sm:$0xf0] }
 0x4ce   : > { %11597 = vmatpush.bf16.msra.mxu0 %v18637_v19  ;;  %v14726_v19 = vld [vmem:[%s30071_s5 + $0x440] sm:$0xf0]  ;;  %v15021_v15 = vor.u32 %v19541_v53, %v15020_v8  ;;  %v19447_v8 = vld [vmem:[%s30071_s5 + $0x39c] sm:$0xf]  ;;  %v14846_v53 = vld [vmem:[%s30071_s5 + $0x530] sm:$0xf0] }
 0x4cf   : > { %11610 = vmatpush.bf16.msra.mxu1 %v18829_v18  ;;  %11623 = vmatpush.bf16.msra.mxu3 %v14225_v40  ;;  %v15110_v18 = vld [vmem:[%s30071_s5 + $0x740] sm:$0xf0]  ;;  %v14729_v40 = vor.u32 %v19465_v23, %v14726_v19  ;;  %v19501_v23 = vld [vmem:[%s30071_s5 + $0x54c] sm:$0xf] }
 0x4d0   : > { %v15113_v43 = vor.u32 %v19561_v44, %v15110_v18  ;;  %v14870_v19 = vld [vmem:[%s30071_s5 + $0x560] sm:$0xf0]  ;;  %v14972_v44 = vld [vmem:[%s30071_s5 + $0x610] sm:$0xf] }
 0x4d1   : > { %11996 = vmatpush.bf16.msrb.mxu2 %v15093_v39  ;;  %v19459_v39 = vld [vmem:[%s30071_s5 + $0x3fc] sm:$0xf] }
 0x4d2   : > { %11598 = vmatpush.bf16.msra.mxu0 %v18613_v17  ;;  %v19507_v17 = vld [vmem:[%s30071_s5 + $0x57c] sm:$0xf]  ;;  %v11392_v18 = vpop.f32.mrf.mxu0 }
 0x4d3   : > { %11611 = vmatpush.bf16.msra.mxu1 %v18805_v11  ;;  %11624 = vmatpush.bf16.msra.mxu3 %v14201_v55  ;;  %v14897_v12 = vor.u32 %v19507_v17, %v14894_v31  ;;  %v14996_v11 = vld [vmem:[%s30071_s5 + $0x640] sm:$0xf]  ;;  %v19453_v55 = vld [vmem:[%s30071_s5 + $0x3cc] sm:$0xf]  ;;  %v11393_v46 = vadd.f32 %v11392_v18, %v11380_v27  ;;  %v19543_v17 = vld [vmem:[%s30071_s5 + $0x69c] sm:$0xf]  ;;  %v11745_v31 = vpop.f32.mrf.mxu2 }
 0x4d4   : > { %v15014_v27 = vld [vmem:[%s30071_s5 + $0x680] sm:$0xf0]  ;;  %v19531_v31 = vld [vmem:[%s30071_s5 + $0x63c] sm:$0xf] }
 0x4d5   : > { %11997 = vmatpush.bf16.msrb.mxu2 %v15069_v52  ;;  %11599 = vmatmul.bf16.vlgmr.msra.gmra.mxu0 %v23782_v21  ;;  %v14678_v52 = vld [vmem:[%s30071_s5 + $0x3e0] sm:$0xf0] }
 0x4d6   : > { %11643 = vmatpush.bf16.msrb.mxu0 %v14753_v28  ;;  %11612 = vmatmul.bf16.vlgmr.msra.gmra.mxu1 %v22183_v16  ;;  %v14705_v28 = vor.u32 %v19459_v39, %v14702_v47  ;;  %v14681_v0 = vor.u32 %v19453_v55, %v14678_v52  ;;  %v11405_v39 = vpop.f32.mrf.mxu1  ;;  %v19441_v52 = vld [vmem:[%s30071_s5 + $0x36c] sm:$0xf] }
 0x4d7   : > { %11656 = vmatpush.bf16.msrb.mxu1 %v14945_v51  ;;  %11669 = vmatpush.bf16.msrb.mxu3 %v15137_v59  ;;  %v15089_v51 = vor.u32 %v19555_v50, %v15086_v45  ;;  %v19549_v59 = vld [vmem:[%s30071_s5 + $0x6cc] sm:$0xf]  ;;  %v15038_v50 = vld [vmem:[%s30071_s5 + $0x6b0] sm:$0xf0]  ;;  %v15908_v45 = vld [vmem:[%s30071_s5 + $0xd60] sm:$0xf] }
 0x4d8   : > { %11625 = vmatmul.bf16.vlgmr.msra.gmra.mxu3 %v22036_v62  ;;  %v15065_v47 = vor.u32 %v19549_v59, %v15062_v63  ;;  %v14822_v59 = vld [vmem:[%s30071_s5 + $0x500] sm:$0xf0]  ;;  %v19537_v63 = vld [vmem:[%s30071_s5 + $0x66c] sm:$0xf] }
 0x4d9   : > { %11998 = vmatpush.bf16.msrb.mxu2 %v15045_v9  ;;  %v14873_v9 = vor.u32 %v19501_v23, %v14870_v19  ;;  %v19489_v19 = vld [vmem:[%s30071_s5 + $0x4ec] sm:$0xf] }
 0x4da   : > { %11644 = vmatpush.bf16.msrb.mxu0 %v14729_v40  ;;  %v14997_v40 = vor.u32 %v19535_v24, %v14996_v11  ;;  %v15041_v24 = vor.u32 %v19543_v17, %v15038_v50  ;;  %v14798_v17 = vld [vmem:[%s30071_s5 + $0x4d0] sm:$0xf0] }
 0x4db   : > { %11657 = vmatpush.bf16.msrb.mxu1 %v14921_v60  ;;  %11670 = vmatpush.bf16.msrb.mxu3 %v15113_v43  ;;  %v19529_v60 = vld [vmem:[%s30071_s5 + $0x624] sm:$0xf0]  ;;  %v19495_v43 = vld [vmem:[%s30071_s5 + $0x51c] sm:$0xf]  ;;  %v11418_v18 = vpop.f32.mrf.mxu3  ;;  %v14990_v50 = vld [vmem:[%s30071_s5 + $0x650] sm:$0xf0] }
 0x4dc   : > { %v14973_v11 = vor.u32 %v19529_v60, %v14972_v44  ;;  %v14849_v55 = vor.u32 %v19495_v43, %v14846_v53  ;;  %v19757_v44 = vld [vmem:[%s30071_s5 + $0xd44] sm:$0xf0]  ;;  %v11394_v60 = vpop.f32.mrf.mxu0  ;;  %v19483_v53 = vld [vmem:[%s30071_s5 + $0x4bc] sm:$0xf] }
 0x4dd   : > { %11999 = vmatpush.bf16.msrb.mxu2 %v15021_v15  ;;  %v11406_v15 = vadd.f32 %v11405_v39, %v11393_v46  ;;  %v14606_v46 = vld [vmem:[%s30071_s5 + $0x350] sm:$0xf0] }
 0x4de   : > { %11645 = vmatpush.bf16.msrb.mxu0 %v14705_v28  ;;  %v19763_v28 = vld [vmem:[%s30071_s5 + $0xd74] sm:$0xf0]  ;;  %v11407_v39 = vpop.f32.mrf.mxu1 }
 0x4df   : > { %11658 = vmatpush.bf16.msrb.mxu1 %v14897_v12  ;;  %11671 = vmatpush.bf16.msrb.mxu3 %v15089_v51  ;;  %v14657_v12 = vor.u32 %v19447_v8, %v14654_v1  ;;  %v14630_v51 = vld [vmem:[%s30071_s5 + $0x380] sm:$0xf0]  ;;  %v15909_v23 = vor.u32 %v19763_v28, %v15908_v45  ;;  %v14825_v8 = vor.u32 %v19489_v19, %v14822_v59  ;;  %v19435_v1 = vld [vmem:[%s30071_s5 + $0x33c] sm:$0xf]  ;;  %v15860_v45 = vld [vmem:[%s30071_s5 + $0xd00] sm:$0xf] }
 0x4e0   : > { %v19751_v28 = vld [vmem:[%s30071_s5 + $0xd14] sm:$0xf0]  ;;  %v14966_v59 = vld [vmem:[%s30071_s5 + $0x620] sm:$0xf0] }
 0x4e1   : > { %12000 = vmatpush.bf16.msrb.mxu2 %v14997_v40  ;;  %v14633_v40 = vor.u32 %v19441_v52, %v14630_v51  ;;  %v19477_v52 = vld [vmem:[%s30071_s5 + $0x48c] sm:$0xf]  ;;  %v14774_v51 = vld [vmem:[%s30071_s5 + $0x4a0] sm:$0xf0]  ;;  %v15861_v19 = vor.u32 %v19751_v28, %v15860_v45  ;;  %v15812_v28 = vld [vmem:[%s30071_s5 + $0xca0] sm:$0xf] }
 0x4e2   : > { %11646 = vmatpush.bf16.msrb.mxu0 %v14681_v0  ;;  %v15884_v0 = vld [vmem:[%s30071_s5 + $0xd30] sm:$0xf]  ;;  %v14777_v39 = vor.u32 %v19477_v52, %v14774_v51  ;;  %v15878_v52 = vld [vmem:[%s30071_s5 + $0xd40] sm:$0xf0] }
 0x4e3   : > { %11659 = vmatpush.bf16.msrb.mxu1 %v14873_v9  ;;  %11672 = vmatpush.bf16.msrb.mxu3 %v15065_v47  ;;  %v26631_v9 = vadd.f32 %v11418_v18, %v11406_v15  ;;  %v15017_v47 = vor.u32 %v19537_v63, %v15014_v27  ;;  %v15885_v43 = vor.u32 %v19757_v44, %v15884_v0  ;;  %v19663_v63 = vld [vmem:[%s30071_s5 + $0xa5c] sm:$0xf]  ;;  %v15518_v27 = vld [vmem:[%s30071_s5 + $0xa70] sm:$0xf0]  ;;  %v15836_v0 = vld [vmem:[%s30071_s5 + $0xcd0] sm:$0xf] }
 0x4e4   : > { %v14609_v15 = vor.u32 %v19435_v1, %v14606_v46  ;;  %v19745_v44 = vld [vmem:[%s30071_s5 + $0xce4] sm:$0xf0]  ;;  %v19711_v18 = vld [vmem:[%s30071_s5 + $0xbdc] sm:$0xf]  ;;  %v15902_v46 = vld [vmem:[%s30071_s5 + $0xd70] sm:$0xf0] }
 0x4e5   : > { %12001 = vmatpush.bf16.msrb.mxu2 %v14973_v11  ;;  %v14582_v11 = vld [vmem:[%s30071_s5 + $0x320] sm:$0xf0]  ;;  %v19759_v1 = vld [vmem:[%s30071_s5 + $0xd5c] sm:$0xf] }
 0x4e6   : > { %11647 = vmatpush.bf16.msrb.mxu0 %v14657_v12  ;;  %v19429_v12 = vld [vmem:[%s30071_s5 + $0x30c] sm:$0xf]  ;;  %v15905_v45 = vor.u32 %v19759_v1, %v15902_v46 }
 0x4e7   : > { %11660 = vmatpush.bf16.msrb.mxu1 %v14849_v55  ;;  %11673 = vmatpush.bf16.msrb.mxu3 %v15041_v24  ;;  %v14801_v55 = vor.u32 %v19483_v53, %v14798_v17  ;;  %v19525_v24 = vld [vmem:[%s30071_s5 + $0x60c] sm:$0xf]  ;;  %v14585_v60 = vor.u32 %v19429_v12, %v14582_v11  ;;  %v15837_v53 = vor.u32 %v19745_v44, %v15836_v0  ;;  %v15686_v11 = vld [vmem:[%s30071_s5 + $0xbc0] sm:$0xf0]  ;;  %v19733_v0 = vld [vmem:[%s30071_s5 + $0xc84] sm:$0xf0] }
 0x4e8   : > { %12002 = vmatmul.bf16.vlgmr.msrb.gmra.mxu2 %v22173_v61  ;;  %v19657_v17 = vld [vmem:[%s30071_s5 + $0xa2c] sm:$0xf]  ;;  %v19699_v44 = vld [vmem:[%s30071_s5 + $0xb7c] sm:$0xf] }
 0x4e9   : > { %12046 = vmatpush.bf16.msra.mxu2 %v15909_v23  ;;  %v14993_v23 = vor.u32 %v19531_v31, %v14990_v50  ;;  %v15494_v31 = vld [vmem:[%s30071_s5 + $0xa40] sm:$0xf0]  ;;  %v19705_v12 = vld [vmem:[%s30071_s5 + $0xbac] sm:$0xf] }
 0x4ea   : > { %11648 = vmatpush.bf16.msrb.mxu0 %v14633_v40  ;;  %v11420_v40 = vpop.f32.mrf.mxu3  ;;  %v15497_v51 = vor.u32 %v19657_v17, %v15494_v31  ;;  %v15764_v17 = vld [vmem:[%s30071_s5 + $0xc40] sm:$0xf]  ;;  %v19727_v31 = vld [vmem:[%s30071_s5 + $0xc54] sm:$0xf0] }
 0x4eb   : > { %11661 = vmatpush.bf16.msrb.mxu1 %v14825_v8  ;;  %11674 = vmatpush.bf16.msrb.mxu3 %v15017_v47  ;;  %v15710_v8 = vld [vmem:[%s30071_s5 + $0xbf0] sm:$0xf0]  ;;  %v15521_v47 = vor.u32 %v19663_v63, %v15518_v27  ;;  %v15788_v27 = vld [vmem:[%s30071_s5 + $0xc70] sm:$0xf]  ;;  %v19747_v40 = vld [vmem:[%s30071_s5 + $0xcfc] sm:$0xf] }
 0x4ec   : > { %v15713_v50 = vor.u32 %v19711_v18, %v15710_v8  ;;  %v15662_v18 = vld [vmem:[%s30071_s5 + $0xb90] sm:$0xf0]  ;;  %v26751_v8 = vpop.f32.mrf.mxu2  ;;  %v15789_v46 = vor.u32 %v19733_v0, %v15788_v27 }
 0x4ed   : > { %12047 = vmatpush.bf16.msra.mxu2 %v15885_v43  ;;  %v14969_v43 = vor.u32 %v19525_v24, %v14966_v59  ;;  %v15689_v59 = vor.u32 %v19705_v12, %v15686_v11  ;;  %v11432_v11 = vadd.f32 %v25329_v14, %v26631_v9  ;;  %v19721_v14 = vld [vmem:[%s30071_s5 + $0xc24] sm:$0xf0]  ;;  %v19687_v9 = vld [vmem:[%s30071_s5 + $0xb1c] sm:$0xf]  ;;  %v15614_v0 = vld [vmem:[%s30071_s5 + $0xb30] sm:$0xf0] }
 0x4ee   : > { %11649 = vmatpush.bf16.msrb.mxu0 %v14609_v15  ;;  %v19739_v15 = vld [vmem:[%s30071_s5 + $0xcb4] sm:$0xf0] }
 0x4ef   : > { %11662 = vmatpush.bf16.msrb.mxu1 %v14801_v55  ;;  %11675 = vmatpush.bf16.msrb.mxu3 %v14993_v23  ;;  %v19753_v55 = vld [vmem:[%s30071_s5 + $0xd2c] sm:$0xf]  ;;  %v15813_v24 = vor.u32 %v19739_v15, %v15812_v28  ;;  %v19651_v23 = vld [vmem:[%s30071_s5 + $0x9fc] sm:$0xf]  ;;  %v15830_v15 = vld [vmem:[%s30071_s5 + $0xce0] sm:$0xf0] }
 0x4f0   : > { %v15881_v63 = vor.u32 %v19753_v55, %v15878_v52  ;;  %v19741_v28 = vld [vmem:[%s30071_s5 + $0xccc] sm:$0xf]  ;;  %v15765_v55 = vor.u32 %v19727_v31, %v15764_v17  ;;  %v19639_v52 = vld [vmem:[%s30071_s5 + $0x99c] sm:$0xf]  ;;  %v15617_v17 = vor.u32 %v19687_v9, %v15614_v0 }
 0x4f1   : > { %12048 = vmatpush.bf16.msra.mxu2 %v15861_v19  ;;  %v15470_v19 = vld [vmem:[%s30071_s5 + $0xa10] sm:$0xf0] }
 0x4f2   : > { %11650 = vmatpush.bf16.msrb.mxu0 %v14585_v60  ;;  %v15854_v60 = vld [vmem:[%s30071_s5 + $0xd10] sm:$0xf0]  ;;  %v15473_v1 = vor.u32 %v19651_v23, %v15470_v19 }
 0x4f3   : > { %11663 = vmatpush.bf16.msrb.mxu1 %v14777_v39  ;;  %11676 = vmatpush.bf16.msrb.mxu3 %v14969_v43  ;;  %v19645_v39 = vld [vmem:[%s30071_s5 + $0x9cc] sm:$0xf]  ;;  %v15665_v43 = vor.u32 %v19699_v44, %v15662_v18  ;;  %v11457_v23 = vpop.f32.mrf.mxu1  ;;  %v19735_v44 = vld [vmem:[%s30071_s5 + $0xc9c] sm:$0xf]  ;;  %v15806_v18 = vld [vmem:[%s30071_s5 + $0xcb0] sm:$0xf0] }
 0x4f4   : > { %v15809_v31 = vor.u32 %v19735_v44, %v15806_v18  ;;  %v15566_v44 = vld [vmem:[%s30071_s5 + $0xad0] sm:$0xf0]  ;;  %v19723_v18 = vld [vmem:[%s30071_s5 + $0xc3c] sm:$0xf] }
 0x4f5   : > { %12049 = vmatpush.bf16.msra.mxu2 %v15837_v53  ;;  %11651 = vmatmul.bf16.vlgmr.msrb.gmra.mxu0 %v22040_v26  ;;  %v15857_v53 = vor.u32 %v19747_v40, %v15854_v60  ;;  %v11797_v40 = vpop.f32.mrf.mxu2 }
 0x4f6   : > { %11695 = vmatpush.bf16.msra.mxu0 %v15521_v47  ;;  %11664 = vmatmul.bf16.vlgmr.msrb.gmra.mxu1 %v22171_v57  ;;  %v15446_v47 = vld [vmem:[%s30071_s5 + $0x9e0] sm:$0xf0]  ;;  %v15758_v40 = vld [vmem:[%s30071_s5 + $0xc50] sm:$0xf0] }
 0x4f7   : > { %11708 = vmatpush.bf16.msra.mxu1 %v15713_v50  ;;  %11721 = vmatpush.bf16.msra.mxu3 %v15905_v45  ;;  %v19693_v50 = vld [vmem:[%s30071_s5 + $0xb4c] sm:$0xf]  ;;  %v15638_v45 = vld [vmem:[%s30071_s5 + $0xb60] sm:$0xf0]  ;;  %v15449_v12 = vor.u32 %v19645_v39, %v15446_v47 }
 0x4f8   : > { %11677 = vmatmul.bf16.vlgmr.msrb.gmra.mxu3 %v22173_v61  ;;  %v15641_v19 = vor.u32 %v19693_v50, %v15638_v45  ;;  %v19681_v50 = vld [vmem:[%s30071_s5 + $0xaec] sm:$0xf] }
 0x4f9   : > { %12050 = vmatpush.bf16.msra.mxu2 %v15813_v24  ;;  %v11444_v24 = vpop.f32.mrf.mxu0 }
 0x4fa   : > { %11696 = vmatpush.bf16.msra.mxu0 %v15497_v51  ;;  %v15422_v51 = vld [vmem:[%s30071_s5 + $0x9b0] sm:$0xf0]  ;;  %v11445_v27 = vadd.f32 %v11444_v24, %v11432_v11  ;;  %v19627_v24 = vld [vmem:[%s30071_s5 + $0x93c] sm:$0xf] }
 0x4fb   : > { %11709 = vmatpush.bf16.msra.mxu1 %v15689_v59  ;;  %11722 = vmatpush.bf16.msra.mxu3 %v15881_v63  ;;  %v15833_v59 = vor.u32 %v19741_v28, %v15830_v15  ;;  %v15740_v63 = vld [vmem:[%s30071_s5 + $0xc10] sm:$0xf]  ;;  %v15425_v60 = vor.u32 %v19639_v52, %v15422_v51  ;;  %v15590_v28 = vld [vmem:[%s30071_s5 + $0xb00] sm:$0xf0]  ;;  %v19729_v15 = vld [vmem:[%s30071_s5 + $0xc6c] sm:$0xf]  ;;  %v11470_v51 = vpop.f32.mrf.mxu3 }
 0x4fc   : > { %v11458_v39 = vadd.f32 %v11457_v23, %v11445_v27  ;;  %v15741_v47 = vor.u32 %v19721_v14, %v15740_v63  ;;  %v19949_v52 = vld [vmem:[%s30071_s5 + $0x1344] sm:$0xf0]  ;;  %v15374_v23 = vld [vmem:[%s30071_s5 + $0x950] sm:$0xf0]  ;;  %v11459_v63 = vpop.f32.mrf.mxu1  ;;  %v15593_v14 = vor.u32 %v19681_v50, %v15590_v28  ;;  %v19675_v27 = vld [vmem:[%s30071_s5 + $0xabc] sm:$0xf] }
 0x4fd   : > { %12051 = vmatpush.bf16.msra.mxu2 %v15789_v46  ;;  %v19955_v46 = vld [vmem:[%s30071_s5 + $0x1374] sm:$0xf0]  ;;  %v19855_v50 = vld [vmem:[%s30071_s5 + $0x105c] sm:$0xf] }
 0x4fe   : > { %11697 = vmatpush.bf16.msra.mxu0 %v15473_v1  ;;  %v16676_v1 = vld [vmem:[%s30071_s5 + $0x1360] sm:$0xf]  ;;  %v19951_v63 = vld [vmem:[%s30071_s5 + $0x135c] sm:$0xf] }
 0x4ff   : > { %11710 = vmatpush.bf16.msra.mxu1 %v15665_v43  ;;  %11723 = vmatpush.bf16.msra.mxu3 %v15857_v53  ;;  %v19633_v43 = vld [vmem:[%s30071_s5 + $0x96c] sm:$0xf]  ;;  %v15398_v53 = vld [vmem:[%s30071_s5 + $0x980] sm:$0xf0]  ;;  %v16677_v45 = vor.u32 %v19955_v46, %v16676_v1  ;;  %v16628_v1 = vld [vmem:[%s30071_s5 + $0x1300] sm:$0xf] }
 0x500   : > { %v15401_v11 = vor.u32 %v19633_v43, %v15398_v53  ;;  %v19943_v46 = vld [vmem:[%s30071_s5 + $0x1314] sm:$0xf0]  ;;  %v19669_v43 = vld [vmem:[%s30071_s5 + $0xa8c] sm:$0xf]  ;;  %v15569_v53 = vor.u32 %v19675_v27, %v15566_v44 }
 0x501   : > { %12052 = vmatpush.bf16.msra.mxu2 %v15765_v55  ;;  %v16652_v55 = vld [vmem:[%s30071_s5 + $0x1330] sm:$0xf]  ;;  %v16629_v28 = vor.u32 %v19943_v46, %v16628_v1  ;;  %v19931_v46 = vld [vmem:[%s30071_s5 + $0x12b4] sm:$0xf0] }
 0x502   : > { %11698 = vmatpush.bf16.msra.mxu0 %v15449_v12  ;;  %v15782_v12 = vld [vmem:[%s30071_s5 + $0xc80] sm:$0xf0]  ;;  %v16653_v0 = vor.u32 %v19949_v52, %v16652_v55  ;;  %v19937_v52 = vld [vmem:[%s30071_s5 + $0x12e4] sm:$0xf0] }
 0x503   : > { %11711 = vmatpush.bf16.msra.mxu1 %v15641_v19  ;;  %11724 = vmatpush.bf16.msra.mxu3 %v15833_v59  ;;  %v26839_v19 = vadd.f32 %v11470_v51, %v11458_v39  ;;  %v11446_v59 = vpop.f32.mrf.mxu0  ;;  %v15785_v9 = vor.u32 %v19729_v15, %v15782_v12  ;;  %v19621_v39 = vld [vmem:[%s30071_s5 + $0x90c] sm:$0xf]  ;;  %v15734_v12 = vld [vmem:[%s30071_s5 + $0xc20] sm:$0xf0]  ;;  %v19903_v51 = vld [vmem:[%s30071_s5 + $0x11dc] sm:$0xf] }
 0x504   : > { %v19717_v15 = vld [vmem:[%s30071_s5 + $0xc0c] sm:$0xf] }
 0x505   : > { %12053 = vmatpush.bf16.msra.mxu2 %v15741_v47  ;;  %v15350_v47 = vld [vmem:[%s30071_s5 + $0x920] sm:$0xf0]  ;;  %v15737_v27 = vor.u32 %v19717_v15, %v15734_v12  ;;  %v16238_v15 = vld [vmem:[%s30071_s5 + $0x1010] sm:$0xf0] }
 0x506   : > { %11699 = vmatpush.bf16.msra.mxu0 %v15425_v60  ;;  %v15377_v60 = vor.u32 %v19627_v24, %v15374_v23  ;;  %v15353_v55 = vor.u32 %v19621_v39, %v15350_v47  ;;  %v16478_v24 = vld [vmem:[%s30071_s5 + $0x11f0] sm:$0xf0]  ;;  %v11472_v23 = vpop.f32.mrf.mxu3  ;;  %v19897_v39 = vld [vmem:[%s30071_s5 + $0x11ac] sm:$0xf]  ;;  %v16454_v47 = vld [vmem:[%s30071_s5 + $0x11c0] sm:$0xf0] }
 0x507   : > { %11712 = vmatpush.bf16.msra.mxu1 %v15617_v17  ;;  %11725 = vmatpush.bf16.msra.mxu3 %v15809_v31  ;;  %v15761_v17 = vor.u32 %v19723_v18, %v15758_v40  ;;  %v15542_v31 = vld [vmem:[%s30071_s5 + $0xaa0] sm:$0xf0]  ;;  %v16481_v44 = vor.u32 %v19903_v51, %v16478_v24  ;;  %v16580_v18 = vld [vmem:[%s30071_s5 + $0x12a0] sm:$0xf]  ;;  %v19849_v40 = vld [vmem:[%s30071_s5 + $0x102c] sm:$0xf] }
 0x508   : > { %12054 = vmatmul.bf16.vlgmr.msra.gmra.mxu2 %v22380_v20  ;;  %v19939_v24 = vld [vmem:[%s30071_s5 + $0x12fc] sm:$0xf]  ;;  %v16622_v23 = vld [vmem:[%s30071_s5 + $0x1310] sm:$0xf0] }
 0x509   : > { %12098 = vmatpush.bf16.msrb.mxu2 %v16677_v45  ;;  %v16286_v45 = vld [vmem:[%s30071_s5 + $0x1070] sm:$0xf0] }
 0x50a   : > { %11700 = vmatpush.bf16.msra.mxu0 %v15401_v11  ;;  %v16604_v11 = vld [vmem:[%s30071_s5 + $0x12d0] sm:$0xf]  ;;  %v16289_v59 = vor.u32 %v19855_v50, %v16286_v45  ;;  %v16457_v50 = vor.u32 %v19897_v39, %v16454_v47  ;;  %v11484_v39 = vadd.f32 %v25537_v7, %v26839_v19  ;;  %v16190_v7 = vld [vmem:[%s30071_s5 + $0xfb0] sm:$0xf0] }
 0x50b   : > { %11713 = vmatpush.bf16.msra.mxu1 %v15593_v14  ;;  %11726 = vmatpush.bf16.msra.mxu3 %v15785_v9  ;;  %v16670_v14 = vld [vmem:[%s30071_s5 + $0x1370] sm:$0xf0]  ;;  %v15545_v9 = vor.u32 %v19669_v43, %v15542_v31  ;;  %v19945_v43 = vld [vmem:[%s30071_s5 + $0x132c] sm:$0xf]  ;;  %v16581_v31 = vor.u32 %v19931_v46, %v16580_v18  ;;  %v16556_v45 = vld [vmem:[%s30071_s5 + $0x1270] sm:$0xf]  ;;  %v26947_v51 = vpop.f32.mrf.mxu2 }
 0x50c   : > { %v16673_v1 = vor.u32 %v19951_v63, %v16670_v14  ;;  %v19919_v18 = vld [vmem:[%s30071_s5 + $0x1254] sm:$0xf0]  ;;  %v16598_v46 = vld [vmem:[%s30071_s5 + $0x12e0] sm:$0xf0] }
 0x50d   : > { %12099 = vmatpush.bf16.msrb.mxu2 %v16653_v0  ;;  %v16605_v0 = vor.u32 %v19937_v52, %v16604_v11  ;;  %v19925_v11 = vld [vmem:[%s30071_s5 + $0x1284] sm:$0xf0]  ;;  %v16430_v52 = vld [vmem:[%s30071_s5 + $0x1190] sm:$0xf0] }
 0x50e   : > { %11701 = vmatpush.bf16.msra.mxu0 %v15377_v60  ;;  %v16262_v60 = vld [vmem:[%s30071_s5 + $0x1040] sm:$0xf0]  ;;  %v16557_v63 = vor.u32 %v19925_v11, %v16556_v45  ;;  %v19831_v45 = vld [vmem:[%s30071_s5 + $0xf9c] sm:$0xf]  ;;  %v16382_v11 = vld [vmem:[%s30071_s5 + $0x1130] sm:$0xf0] }
 0x50f   : > { %11714 = vmatpush.bf16.msra.mxu1 %v15569_v53  ;;  %11727 = vmatpush.bf16.msra.mxu3 %v15761_v17  ;;  %v16646_v53 = vld [vmem:[%s30071_s5 + $0x1340] sm:$0xf0]  ;;  %v16265_v17 = vor.u32 %v19849_v40, %v16262_v60  ;;  %v19885_v40 = vld [vmem:[%s30071_s5 + $0x114c] sm:$0xf] }
 0x510   : > { %v16649_v12 = vor.u32 %v19945_v43, %v16646_v53  ;;  %v16406_v60 = vld [vmem:[%s30071_s5 + $0x1160] sm:$0xf0]  ;;  %v16508_v43 = vld [vmem:[%s30071_s5 + $0x1210] sm:$0xf] }
 0x511   : > { %12100 = vmatpush.bf16.msrb.mxu2 %v16629_v28  ;;  %v19843_v28 = vld [vmem:[%s30071_s5 + $0xffc] sm:$0xf] }
 0x512   : > { %11702 = vmatpush.bf16.msra.mxu0 %v15353_v55  ;;  %v19891_v55 = vld [vmem:[%s30071_s5 + $0x117c] sm:$0xf]  ;;  %v11496_v53 = vpop.f32.mrf.mxu0 }
 0x513   : > { %11715 = vmatpush.bf16.msra.mxu1 %v15545_v9  ;;  %11728 = vmatpush.bf16.msra.mxu3 %v15737_v27  ;;  %v16433_v14 = vor.u32 %v19891_v55, %v16430_v52  ;;  %v16532_v9 = vld [vmem:[%s30071_s5 + $0x1240] sm:$0xf]  ;;  %v19837_v27 = vld [vmem:[%s30071_s5 + $0xfcc] sm:$0xf]  ;;  %v11497_v19 = vadd.f32 %v11496_v53, %v11484_v39  ;;  %v19927_v55 = vld [vmem:[%s30071_s5 + $0x129c] sm:$0xf]  ;;  %v11849_v52 = vpop.f32.mrf.mxu2 }
 0x514   : > { %v16550_v39 = vld [vmem:[%s30071_s5 + $0x1280] sm:$0xf0]  ;;  %v19915_v52 = vld [vmem:[%s30071_s5 + $0x123c] sm:$0xf] }
 0x515   : > { %12101 = vmatpush.bf16.msrb.mxu2 %v16605_v0  ;;  %11703 = vmatmul.bf16.vlgmr.msra.gmra.mxu0 %v22376_v30  ;;  %v16214_v0 = vld [vmem:[%s30071_s5 + $0xfe0] sm:$0xf0] }
 0x516   : > { %11747 = vmatpush.bf16.msrb.mxu0 %v16289_v59  ;;  %11716 = vmatmul.bf16.vlgmr.msra.gmra.mxu1 %v30151_v5  ;;  %v16241_v59 = vor.u32 %v19843_v28, %v16238_v15  ;;  %v16217_v47 = vor.u32 %v19837_v27, %v16214_v0  ;;  %v11509_v28 = vpop.f32.mrf.mxu1  ;;  %v19825_v0 = vld [vmem:[%s30071_s5 + $0xf6c] sm:$0xf] }
 0x517   : > { %11760 = vmatpush.bf16.msrb.mxu1 %v16481_v44  ;;  %11773 = vmatpush.bf16.msrb.mxu3 %v16673_v1  ;;  %v16625_v44 = vor.u32 %v19939_v24, %v16622_v23  ;;  %v19933_v1 = vld [vmem:[%s30071_s5 + $0x12cc] sm:$0xf]  ;;  %v16574_v24 = vld [vmem:[%s30071_s5 + $0x12b0] sm:$0xf0]  ;;  %v17444_v23 = vld [vmem:[%s30071_s5 + $0x1960] sm:$0xf] }
 0x518   : > { %11729 = vmatmul.bf16.vlgmr.msra.gmra.mxu3 %v22380_v20  ;;  %v16601_v15 = vor.u32 %v19933_v1, %v16598_v46  ;;  %v16358_v1 = vld [vmem:[%s30071_s5 + $0x1100] sm:$0xf0]  ;;  %v19921_v46 = vld [vmem:[%s30071_s5 + $0x126c] sm:$0xf] }
 0x519   : > { %12102 = vmatpush.bf16.msrb.mxu2 %v16581_v31  ;;  %v16409_v31 = vor.u32 %v19885_v40, %v16406_v60  ;;  %v19873_v60 = vld [vmem:[%s30071_s5 + $0x10ec] sm:$0xf] }
 0x51a   : > { %11748 = vmatpush.bf16.msrb.mxu0 %v16265_v17  ;;  %v16533_v17 = vor.u32 %v19919_v18, %v16532_v9  ;;  %v16577_v18 = vor.u32 %v19927_v55, %v16574_v24  ;;  %v16334_v55 = vld [vmem:[%s30071_s5 + $0x10d0] sm:$0xf0] }
 0x51b   : > { %11761 = vmatpush.bf16.msrb.mxu1 %v16457_v50  ;;  %11774 = vmatpush.bf16.msrb.mxu3 %v16649_v12  ;;  %v19913_v50 = vld [vmem:[%s30071_s5 + $0x1224] sm:$0xf0]  ;;  %v19879_v12 = vld [vmem:[%s30071_s5 + $0x111c] sm:$0xf]  ;;  %v11522_v53 = vpop.f32.mrf.mxu3  ;;  %v16526_v24 = vld [vmem:[%s30071_s5 + $0x1250] sm:$0xf0] }
 0x51c   : > { %v16509_v9 = vor.u32 %v19913_v50, %v16508_v43  ;;  %v16385_v27 = vor.u32 %v19879_v12, %v16382_v11  ;;  %v20141_v43 = vld [vmem:[%s30071_s5 + $0x1944] sm:$0xf0]  ;;  %v11498_v50 = vpop.f32.mrf.mxu0  ;;  %v19867_v11 = vld [vmem:[%s30071_s5 + $0x10bc] sm:$0xf] }
 0x51d   : > { %12103 = vmatpush.bf16.msrb.mxu2 %v16557_v63  ;;  %v11510_v63 = vadd.f32 %v11509_v28, %v11497_v19  ;;  %v16142_v19 = vld [vmem:[%s30071_s5 + $0xf50] sm:$0xf0] }
 0x51e   : > { %11749 = vmatpush.bf16.msrb.mxu0 %v16241_v59  ;;  %v20147_v59 = vld [vmem:[%s30071_s5 + $0x1974] sm:$0xf0]  ;;  %v11511_v28 = vpop.f32.mrf.mxu1 }
 0x51f   : > { %11762 = vmatpush.bf16.msrb.mxu1 %v16433_v14  ;;  %11775 = vmatpush.bf16.msrb.mxu3 %v16625_v44  ;;  %v16193_v14 = vor.u32 %v19831_v45, %v16190_v7  ;;  %v16166_v44 = vld [vmem:[%s30071_s5 + $0xf80] sm:$0xf0]  ;;  %v17445_v40 = vor.u32 %v20147_v59, %v17444_v23  ;;  %v16361_v45 = vor.u32 %v19873_v60, %v16358_v1  ;;  %v19819_v7 = vld [vmem:[%s30071_s5 + $0xf3c] sm:$0xf]  ;;  %v17396_v23 = vld [vmem:[%s30071_s5 + $0x1900] sm:$0xf] }
 0x520   : > { %v20135_v59 = vld [vmem:[%s30071_s5 + $0x1914] sm:$0xf0]  ;;  %v16502_v1 = vld [vmem:[%s30071_s5 + $0x1220] sm:$0xf0] }
 0x521   : > { %12104 = vmatpush.bf16.msrb.mxu2 %v16533_v17  ;;  %v16169_v17 = vor.u32 %v19825_v0, %v16166_v44  ;;  %v19861_v0 = vld [vmem:[%s30071_s5 + $0x108c] sm:$0xf]  ;;  %v16310_v44 = vld [vmem:[%s30071_s5 + $0x10a0] sm:$0xf0]  ;;  %v17397_v60 = vor.u32 %v20135_v59, %v17396_v23  ;;  %v17348_v59 = vld [vmem:[%s30071_s5 + $0x18a0] sm:$0xf] }
 0x522   : > { %11750 = vmatpush.bf16.msrb.mxu0 %v16217_v47  ;;  %v17420_v47 = vld [vmem:[%s30071_s5 + $0x1930] sm:$0xf]  ;;  %v16313_v28 = vor.u32 %v19861_v0, %v16310_v44  ;;  %v17414_v0 = vld [vmem:[%s30071_s5 + $0x1940] sm:$0xf0] }
 0x523   : > { %11763 = vmatpush.bf16.msrb.mxu1 %v16409_v31  ;;  %11776 = vmatpush.bf16.msrb.mxu3 %v16601_v15  ;;  %v27035_v31 = vadd.f32 %v11522_v53, %v11510_v63  ;;  %v16553_v15 = vor.u32 %v19921_v46, %v16550_v39  ;;  %v17421_v12 = vor.u32 %v20141_v43, %v17420_v47  ;;  %v20047_v46 = vld [vmem:[%s30071_s5 + $0x165c] sm:$0xf]  ;;  %v17054_v39 = vld [vmem:[%s30071_s5 + $0x1670] sm:$0xf0]  ;;  %v17372_v47 = vld [vmem:[%s30071_s5 + $0x18d0] sm:$0xf] }
 0x524   : > { %v16145_v63 = vor.u32 %v19819_v7, %v16142_v19  ;;  %v20129_v43 = vld [vmem:[%s30071_s5 + $0x18e4] sm:$0xf0]  ;;  %v20095_v53 = vld [vmem:[%s30071_s5 + $0x17dc] sm:$0xf]  ;;  %v17438_v19 = vld [vmem:[%s30071_s5 + $0x1970] sm:$0xf0] }
 0x525   : > { %12105 = vmatpush.bf16.msrb.mxu2 %v16509_v9  ;;  %v16118_v9 = vld [vmem:[%s30071_s5 + $0xf20] sm:$0xf0]  ;;  %v20143_v7 = vld [vmem:[%s30071_s5 + $0x195c] sm:$0xf] }
 0x526   : > { %11751 = vmatpush.bf16.msrb.mxu0 %v16193_v14  ;;  %v19813_v14 = vld [vmem:[%s30071_s5 + $0xf0c] sm:$0xf]  ;;  %v17441_v23 = vor.u32 %v20143_v7, %v17438_v19 }
 0x527   : > { %11764 = vmatpush.bf16.msrb.mxu1 %v16385_v27  ;;  %11777 = vmatpush.bf16.msrb.mxu3 %v16577_v18  ;;  %v16337_v27 = vor.u32 %v19867_v11, %v16334_v55  ;;  %v19909_v18 = vld [vmem:[%s30071_s5 + $0x120c] sm:$0xf]  ;;  %v16121_v50 = vor.u32 %v19813_v14, %v16118_v9  ;;  %v17373_v11 = vor.u32 %v20129_v43, %v17372_v47  ;;  %v17222_v9 = vld [vmem:[%s30071_s5 + $0x17c0] sm:$0xf0]  ;;  %v20117_v47 = vld [vmem:[%s30071_s5 + $0x1884] sm:$0xf0] }
 0x528   : > { %12106 = vmatmul.bf16.vlgmr.msrb.gmra.mxu2 %v22984_v38  ;;  %v20041_v55 = vld [vmem:[%s30071_s5 + $0x162c] sm:$0xf]  ;;  %v20083_v43 = vld [vmem:[%s30071_s5 + $0x177c] sm:$0xf] }
 0x529   : > { %12150 = vmatpush.bf16.msra.mxu2 %v17445_v40  ;;  %v16529_v40 = vor.u32 %v19915_v52, %v16526_v24  ;;  %v17030_v52 = vld [vmem:[%s30071_s5 + $0x1640] sm:$0xf0]  ;;  %v20089_v14 = vld [vmem:[%s30071_s5 + $0x17ac] sm:$0xf] }
 0x52a   : > { %11752 = vmatpush.bf16.msrb.mxu0 %v16169_v17  ;;  %v11524_v17 = vpop.f32.mrf.mxu3  ;;  %v17033_v44 = vor.u32 %v20041_v55, %v17030_v52  ;;  %v17300_v55 = vld [vmem:[%s30071_s5 + $0x1840] sm:$0xf]  ;;  %v20111_v52 = vld [vmem:[%s30071_s5 + $0x1854] sm:$0xf0] }
 0x52b   : > { %11765 = vmatpush.bf16.msrb.mxu1 %v16361_v45  ;;  %11778 = vmatpush.bf16.msrb.mxu3 %v16553_v15  ;;  %v17246_v45 = vld [vmem:[%s30071_s5 + $0x17f0] sm:$0xf0]  ;;  %v17057_v15 = vor.u32 %v20047_v46, %v17054_v39  ;;  %v17324_v39 = vld [vmem:[%s30071_s5 + $0x1870] sm:$0xf]  ;;  %v20131_v17 = vld [vmem:[%s30071_s5 + $0x18fc] sm:$0xf] }
 0x52c   : > { %v17249_v24 = vor.u32 %v20095_v53, %v17246_v45  ;;  %v17198_v53 = vld [vmem:[%s30071_s5 + $0x1790] sm:$0xf0]  ;;  %v27155_v45 = vpop.f32.mrf.mxu2  ;;  %v17325_v19 = vor.u32 %v20117_v47, %v17324_v39 }
 0x52d   : > { %12151 = vmatpush.bf16.msra.mxu2 %v17421_v12  ;;  %v16505_v12 = vor.u32 %v19909_v18, %v16502_v1  ;;  %v17225_v1 = vor.u32 %v20089_v14, %v17222_v9  ;;  %v11536_v9 = vadd.f32 %v25733_v2, %v27035_v31  ;;  %v20105_v2 = vld [vmem:[%s30071_s5 + $0x1824] sm:$0xf0]  ;;  %v20071_v31 = vld [vmem:[%s30071_s5 + $0x171c] sm:$0xf]  ;;  %v17150_v47 = vld [vmem:[%s30071_s5 + $0x1730] sm:$0xf0] }
 0x52e   : > { %11753 = vmatpush.bf16.msrb.mxu0 %v16145_v63  ;;  %v20123_v63 = vld [vmem:[%s30071_s5 + $0x18b4] sm:$0xf0] }
 0x52f   : > { %11766 = vmatpush.bf16.msrb.mxu1 %v16337_v27  ;;  %11779 = vmatpush.bf16.msrb.mxu3 %v16529_v40  ;;  %v20137_v27 = vld [vmem:[%s30071_s5 + $0x192c] sm:$0xf]  ;;  %v17349_v18 = vor.u32 %v20123_v63, %v17348_v59  ;;  %v20035_v40 = vld [vmem:[%s30071_s5 + $0x15fc] sm:$0xf]  ;;  %v17366_v63 = vld [vmem:[%s30071_s5 + $0x18e0] sm:$0xf0] }
 0x530   : > { %v17417_v46 = vor.u32 %v20137_v27, %v17414_v0  ;;  %v20125_v59 = vld [vmem:[%s30071_s5 + $0x18cc] sm:$0xf]  ;;  %v17301_v27 = vor.u32 %v20111_v52, %v17300_v55  ;;  %v20023_v0 = vld [vmem:[%s30071_s5 + $0x159c] sm:$0xf]  ;;  %v17153_v55 = vor.u32 %v20071_v31, %v17150_v47 }
 0x531   : > { %12152 = vmatpush.bf16.msra.mxu2 %v17397_v60  ;;  %v17006_v60 = vld [vmem:[%s30071_s5 + $0x1610] sm:$0xf0] }
 0x532   : > { %11754 = vmatpush.bf16.msrb.mxu0 %v16121_v50  ;;  %v17390_v50 = vld [vmem:[%s30071_s5 + $0x1910] sm:$0xf0]  ;;  %v17009_v7 = vor.u32 %v20035_v40, %v17006_v60 }
 0x533   : > { %11767 = vmatpush.bf16.msrb.mxu1 %v16313_v28  ;;  %11780 = vmatpush.bf16.msrb.mxu3 %v16505_v12  ;;  %v20029_v28 = vld [vmem:[%s30071_s5 + $0x15cc] sm:$0xf]  ;;  %v17201_v12 = vor.u32 %v20083_v43, %v17198_v53  ;;  %v11561_v40 = vpop.f32.mrf.mxu1  ;;  %v20119_v43 = vld [vmem:[%s30071_s5 + $0x189c] sm:$0xf]  ;;  %v17342_v53 = vld [vmem:[%s30071_s5 + $0x18b0] sm:$0xf0] }
 0x534   : > { %v17345_v52 = vor.u32 %v20119_v43, %v17342_v53  ;;  %v17102_v43 = vld [vmem:[%s30071_s5 + $0x16d0] sm:$0xf0]  ;;  %v20107_v53 = vld [vmem:[%s30071_s5 + $0x183c] sm:$0xf] }
 0x535   : > { %12153 = vmatpush.bf16.msra.mxu2 %v17373_v11  ;;  %11755 = vmatmul.bf16.vlgmr.msrb.gmra.mxu0 %v22686_v32  ;;  %v17393_v11 = vor.u32 %v20131_v17, %v17390_v50  ;;  %v11901_v17 = vpop.f32.mrf.mxu2 }
 0x536   : > { %11799 = vmatpush.bf16.msra.mxu0 %v17057_v15  ;;  %11768 = vmatmul.bf16.vlgmr.msrb.gmra.mxu1 %v30152_v34  ;;  %v16982_v15 = vld [vmem:[%s30071_s5 + $0x15e0] sm:$0xf0]  ;;  %v17294_v17 = vld [vmem:[%s30071_s5 + $0x1850] sm:$0xf0] }
 0x537   : > { %11812 = vmatpush.bf16.msra.mxu1 %v17249_v24  ;;  %11825 = vmatpush.bf16.msra.mxu3 %v17441_v23  ;;  %v20077_v24 = vld [vmem:[%s30071_s5 + $0x174c] sm:$0xf]  ;;  %v17174_v23 = vld [vmem:[%s30071_s5 + $0x1760] sm:$0xf0]  ;;  %v16985_v14 = vor.u32 %v20029_v28, %v16982_v15 }
 0x538   : > { %11781 = vmatmul.bf16.vlgmr.msrb.gmra.mxu3 %v22984_v38  ;;  %v17177_v60 = vor.u32 %v20077_v24, %v17174_v23  ;;  %v20065_v24 = vld [vmem:[%s30071_s5 + $0x16ec] sm:$0xf] }
 0x539   : > { %12154 = vmatpush.bf16.msra.mxu2 %v17349_v18  ;;  %v11548_v18 = vpop.f32.mrf.mxu0 }
 0x53a   : > { %11800 = vmatpush.bf16.msra.mxu0 %v17033_v44  ;;  %v16958_v44 = vld [vmem:[%s30071_s5 + $0x15b0] sm:$0xf0]  ;;  %v11549_v39 = vadd.f32 %v11548_v18, %v11536_v9  ;;  %v20011_v18 = vld [vmem:[%s30071_s5 + $0x153c] sm:$0xf] }
 0x53b   : > { %11813 = vmatpush.bf16.msra.mxu1 %v17225_v1  ;;  %11826 = vmatpush.bf16.msra.mxu3 %v17417_v46  ;;  %v17369_v1 = vor.u32 %v20125_v59, %v17366_v63  ;;  %v17276_v46 = vld [vmem:[%s30071_s5 + $0x1810] sm:$0xf]  ;;  %v16961_v50 = vor.u32 %v20023_v0, %v16958_v44  ;;  %v17126_v59 = vld [vmem:[%s30071_s5 + $0x1700] sm:$0xf0]  ;;  %v20113_v63 = vld [vmem:[%s30071_s5 + $0x186c] sm:$0xf]  ;;  %v11574_v44 = vpop.f32.mrf.mxu3 }
 0x53c   : > { %v11562_v28 = vadd.f32 %v11561_v40, %v11549_v39  ;;  %v17277_v15 = vor.u32 %v20105_v2, %v17276_v46  ;;  %v20333_v0 = vld [vmem:[%s30071_s5 + $0x1f44] sm:$0xf0]  ;;  %v16910_v40 = vld [vmem:[%s30071_s5 + $0x1550] sm:$0xf0]  ;;  %v11563_v46 = vpop.f32.mrf.mxu1  ;;  %v17129_v2 = vor.u32 %v20065_v24, %v17126_v59  ;;  %v20059_v39 = vld [vmem:[%s30071_s5 + $0x16bc] sm:$0xf] }
 0x53d   : > { %12155 = vmatpush.bf16.msra.mxu2 %v17325_v19  ;;  %v20339_v19 = vld [vmem:[%s30071_s5 + $0x1f74] sm:$0xf0]  ;;  %v20239_v24 = vld [vmem:[%s30071_s5 + $0x1c5c] sm:$0xf] }
 0x53e   : > { %11801 = vmatpush.bf16.msra.mxu0 %v17009_v7  ;;  %v18212_v7 = vld [vmem:[%s30071_s5 + $0x1f60] sm:$0xf]  ;;  %v20335_v46 = vld [vmem:[%s30071_s5 + $0x1f5c] sm:$0xf] }
 0x53f   : > { %11814 = vmatpush.bf16.msra.mxu1 %v17201_v12  ;;  %11827 = vmatpush.bf16.msra.mxu3 %v17393_v11  ;;  %v20017_v12 = vld [vmem:[%s30071_s5 + $0x156c] sm:$0xf]  ;;  %v16934_v11 = vld [vmem:[%s30071_s5 + $0x1580] sm:$0xf0]  ;;  %v18213_v23 = vor.u32 %v20339_v19, %v18212_v7  ;;  %v18164_v7 = vld [vmem:[%s30071_s5 + $0x1f00] sm:$0xf] }
 0x540   : > { %v16937_v9 = vor.u32 %v20017_v12, %v16934_v11  ;;  %v20327_v19 = vld [vmem:[%s30071_s5 + $0x1f14] sm:$0xf0]  ;;  %v20053_v12 = vld [vmem:[%s30071_s5 + $0x168c] sm:$0xf]  ;;  %v17105_v11 = vor.u32 %v20059_v39, %v17102_v43 }
 0x541   : > { %12156 = vmatpush.bf16.msra.mxu2 %v17301_v27  ;;  %v18188_v27 = vld [vmem:[%s30071_s5 + $0x1f30] sm:$0xf]  ;;  %v18165_v59 = vor.u32 %v20327_v19, %v18164_v7  ;;  %v20315_v19 = vld [vmem:[%s30071_s5 + $0x1eb4] sm:$0xf0] }
 0x542   : > { %11802 = vmatpush.bf16.msra.mxu0 %v16985_v14  ;;  %v17318_v14 = vld [vmem:[%s30071_s5 + $0x1880] sm:$0xf0]  ;;  %v18189_v47 = vor.u32 %v20333_v0, %v18188_v27  ;;  %v20321_v0 = vld [vmem:[%s30071_s5 + $0x1ee4] sm:$0xf0] }
 0x543   : > { %11815 = vmatpush.bf16.msra.mxu1 %v17177_v60  ;;  %11828 = vmatpush.bf16.msra.mxu3 %v17369_v1  ;;  %v27243_v60 = vadd.f32 %v11574_v44, %v11562_v28  ;;  %v11550_v1 = vpop.f32.mrf.mxu0  ;;  %v17321_v31 = vor.u32 %v20113_v63, %v17318_v14  ;;  %v20005_v28 = vld [vmem:[%s30071_s5 + $0x150c] sm:$0xf]  ;;  %v17270_v14 = vld [vmem:[%s30071_s5 + $0x1820] sm:$0xf0]  ;;  %v20287_v44 = vld [vmem:[%s30071_s5 + $0x1ddc] sm:$0xf] }
 0x544   : > { %v20101_v63 = vld [vmem:[%s30071_s5 + $0x180c] sm:$0xf] }
 0x545   : > { %12157 = vmatpush.bf16.msra.mxu2 %v17277_v15  ;;  %v16886_v15 = vld [vmem:[%s30071_s5 + $0x1520] sm:$0xf0]  ;;  %v17273_v39 = vor.u32 %v20101_v63, %v17270_v14  ;;  %v17774_v63 = vld [vmem:[%s30071_s5 + $0x1c10] sm:$0xf0] }
 0x546   : > { %11803 = vmatpush.bf16.msra.mxu0 %v16961_v50  ;;  %v16913_v50 = vor.u32 %v20011_v18, %v16910_v40  ;;  %v16889_v27 = vor.u32 %v20005_v28, %v16886_v15  ;;  %v18014_v18 = vld [vmem:[%s30071_s5 + $0x1df0] sm:$0xf0]  ;;  %v11576_v40 = vpop.f32.mrf.mxu3  ;;  %v20281_v28 = vld [vmem:[%s30071_s5 + $0x1dac] sm:$0xf]  ;;  %v17990_v15 = vld [vmem:[%s30071_s5 + $0x1dc0] sm:$0xf0] }
 0x547   : > { %11816 = vmatpush.bf16.msra.mxu1 %v17153_v55  ;;  %11829 = vmatpush.bf16.msra.mxu3 %v17345_v52  ;;  %v17297_v55 = vor.u32 %v20107_v53, %v17294_v17  ;;  %v17078_v52 = vld [vmem:[%s30071_s5 + $0x16a0] sm:$0xf0]  ;;  %v18017_v43 = vor.u32 %v20287_v44, %v18014_v18  ;;  %v18116_v53 = vld [vmem:[%s30071_s5 + $0x1ea0] sm:$0xf]  ;;  %v20233_v17 = vld [vmem:[%s30071_s5 + $0x1c2c] sm:$0xf] }
 0x548   : > { %12158 = vmatmul.bf16.vlgmr.msra.gmra.mxu2 %v23289_v33  ;;  %v20323_v18 = vld [vmem:[%s30071_s5 + $0x1efc] sm:$0xf]  ;;  %v18158_v40 = vld [vmem:[%s30071_s5 + $0x1f10] sm:$0xf0] }
 0x549   : > { %12202 = vmatpush.bf16.msrb.mxu2 %v18213_v23  ;;  %v17822_v23 = vld [vmem:[%s30071_s5 + $0x1c70] sm:$0xf0] }
 0x54a   : > { %11804 = vmatpush.bf16.msra.mxu0 %v16937_v9  ;;  %v18140_v9 = vld [vmem:[%s30071_s5 + $0x1ed0] sm:$0xf]  ;;  %v17825_v1 = vor.u32 %v20239_v24, %v17822_v23  ;;  %v17993_v24 = vor.u32 %v20281_v28, %v17990_v15  ;;  %v11588_v28 = vadd.f32 %v25941_v3, %v27243_v60  ;;  %v17726_v3 = vld [vmem:[%s30071_s5 + $0x1bb0] sm:$0xf0] }
 0x54b   : > { %11817 = vmatpush.bf16.msra.mxu1 %v17129_v2  ;;  %11830 = vmatpush.bf16.msra.mxu3 %v17321_v31  ;;  %v18206_v2 = vld [vmem:[%s30071_s5 + $0x1f70] sm:$0xf0]  ;;  %v17081_v31 = vor.u32 %v20053_v12, %v17078_v52  ;;  %v20329_v12 = vld [vmem:[%s30071_s5 + $0x1f2c] sm:$0xf]  ;;  %v18117_v52 = vor.u32 %v20315_v19, %v18116_v53  ;;  %v18092_v23 = vld [vmem:[%s30071_s5 + $0x1e70] sm:$0xf]  ;;  %v27351_v44 = vpop.f32.mrf.mxu2 }
 0x54c   : > { %v18209_v7 = vor.u32 %v20335_v46, %v18206_v2  ;;  %v20303_v53 = vld [vmem:[%s30071_s5 + $0x1e54] sm:$0xf0]  ;;  %v18134_v19 = vld [vmem:[%s30071_s5 + $0x1ee0] sm:$0xf0] }
 0x54d   : > { %12203 = vmatpush.bf16.msrb.mxu2 %v18189_v47  ;;  %v18141_v47 = vor.u32 %v20321_v0, %v18140_v9  ;;  %v20309_v9 = vld [vmem:[%s30071_s5 + $0x1e84] sm:$0xf0]  ;;  %v17966_v0 = vld [vmem:[%s30071_s5 + $0x1d90] sm:$0xf0] }
 0x54e   : > { %11805 = vmatpush.bf16.msra.mxu0 %v16913_v50  ;;  %v17798_v50 = vld [vmem:[%s30071_s5 + $0x1c40] sm:$0xf0]  ;;  %v18093_v46 = vor.u32 %v20309_v9, %v18092_v23  ;;  %v20215_v23 = vld [vmem:[%s30071_s5 + $0x1b9c] sm:$0xf]  ;;  %v17918_v9 = vld [vmem:[%s30071_s5 + $0x1d30] sm:$0xf0] }
 0x54f   : > { %11818 = vmatpush.bf16.msra.mxu1 %v17105_v11  ;;  %11831 = vmatpush.bf16.msra.mxu3 %v17297_v55  ;;  %v18182_v11 = vld [vmem:[%s30071_s5 + $0x1f40] sm:$0xf0]  ;;  %v17801_v55 = vor.u32 %v20233_v17, %v17798_v50  ;;  %v20269_v17 = vld [vmem:[%s30071_s5 + $0x1d4c] sm:$0xf] }
 0x550   : > { %v18185_v14 = vor.u32 %v20329_v12, %v18182_v11  ;;  %v17942_v50 = vld [vmem:[%s30071_s5 + $0x1d60] sm:$0xf0]  ;;  %v18044_v12 = vld [vmem:[%s30071_s5 + $0x1e10] sm:$0xf] }
 0x551   : > { %12204 = vmatpush.bf16.msrb.mxu2 %v18165_v59  ;;  %v20227_v59 = vld [vmem:[%s30071_s5 + $0x1bfc] sm:$0xf] }
 0x552   : > { %11806 = vmatpush.bf16.msra.mxu0 %v16889_v27  ;;  %v20275_v27 = vld [vmem:[%s30071_s5 + $0x1d7c] sm:$0xf]  ;;  %v11600_v11 = vpop.f32.mrf.mxu0 }
 0x553   : > { %11819 = vmatpush.bf16.msra.mxu1 %v17081_v31  ;;  %11832 = vmatpush.bf16.msra.mxu3 %v17273_v39  ;;  %v17969_v2 = vor.u32 %v20275_v27, %v17966_v0  ;;  %v18068_v31 = vld [vmem:[%s30071_s5 + $0x1e40] sm:$0xf]  ;;  %v20221_v39 = vld [vmem:[%s30071_s5 + $0x1bcc] sm:$0xf]  ;;  %v11601_v60 = vadd.f32 %v11600_v11, %v11588_v28  ;;  %v20311_v27 = vld [vmem:[%s30071_s5 + $0x1e9c] sm:$0xf]  ;;  %v11953_v0 = vpop.f32.mrf.mxu2 }
 0x554   : > { %v18086_v28 = vld [vmem:[%s30071_s5 + $0x1e80] sm:$0xf0]  ;;  %v18062_v0 = vld [vmem:[%s30071_s5 + $0x1e50] sm:$0xf0] }
 0x555   : > { %12205 = vmatpush.bf16.msrb.mxu2 %v18141_v47  ;;  %11807 = vmatmul.bf16.vlgmr.msra.gmra.mxu0 %v22992_v6  ;;  %v17750_v47 = vld [vmem:[%s30071_s5 + $0x1be0] sm:$0xf0] }
 0x556   : > { %11851 = vmatpush.bf16.msrb.mxu0 %v17825_v1  ;;  %11820 = vmatmul.bf16.vlgmr.msra.gmra.mxu1 %v30153_v41  ;;  %v17777_v1 = vor.u32 %v20227_v59, %v17774_v63  ;;  %v17753_v15 = vor.u32 %v20221_v39, %v17750_v47  ;;  %v11613_v59 = vpop.f32.mrf.mxu1  ;;  %v20209_v47 = vld [vmem:[%s30071_s5 + $0x1b6c] sm:$0xf] }
 0x557   : > { %11864 = vmatpush.bf16.msrb.mxu1 %v18017_v43  ;;  %11877 = vmatpush.bf16.msrb.mxu3 %v18209_v7  ;;  %v18161_v43 = vor.u32 %v20323_v18, %v18158_v40  ;;  %v20317_v7 = vld [vmem:[%s30071_s5 + $0x1ecc] sm:$0xf]  ;;  %v18110_v18 = vld [vmem:[%s30071_s5 + $0x1eb0] sm:$0xf0]  ;;  %v18980_v40 = vld [vmem:[%s30071_s5 + $0x2560] sm:$0xf] }
 0x558   : > { %11833 = vmatmul.bf16.vlgmr.msra.gmra.mxu3 %v23289_v33  ;;  %v18137_v63 = vor.u32 %v20317_v7, %v18134_v19  ;;  %v17894_v7 = vld [vmem:[%s30071_s5 + $0x1d00] sm:$0xf0]  ;;  %v20305_v19 = vld [vmem:[%s30071_s5 + $0x1e6c] sm:$0xf] }
 0x559   : > { %12206 = vmatpush.bf16.msrb.mxu2 %v18117_v52  ;;  %v17945_v52 = vor.u32 %v20269_v17, %v17942_v50  ;;  %v20257_v50 = vld [vmem:[%s30071_s5 + $0x1cec] sm:$0xf] }
 0x55a   : > { %11852 = vmatpush.bf16.msrb.mxu0 %v17801_v55  ;;  %v18069_v55 = vor.u32 %v20303_v53, %v18068_v31  ;;  %v18113_v53 = vor.u32 %v20311_v27, %v18110_v18  ;;  %v20299_v27 = vld [vmem:[%s30071_s5 + $0x1e3c] sm:$0xf]  ;;  %v18932_v18 = vld [vmem:[%s30071_s5 + $0x2500] sm:$0xf] }
 0x55b   : > { %11865 = vmatpush.bf16.msrb.mxu1 %v17993_v24  ;;  %11878 = vmatpush.bf16.msrb.mxu3 %v18185_v14  ;;  %v20297_v24 = vld [vmem:[%s30071_s5 + $0x1e24] sm:$0xf0]  ;;  %v20263_v14 = vld [vmem:[%s30071_s5 + $0x1d1c] sm:$0xf]  ;;  %v27441_v11 = vpop.f32.mrf.mxu3 }
 0x55c   : > { %v18045_v31 = vor.u32 %v20297_v24, %v18044_v12  ;;  %v17921_v39 = vor.u32 %v20263_v14, %v17918_v9  ;;  %v20525_v12 = vld [vmem:[%s30071_s5 + $0x2544] sm:$0xf0]  ;;  %v17897_v24 = vor.u32 %v20257_v50, %v17894_v7  ;;  %v20251_v14 = vld [vmem:[%s30071_s5 + $0x1cbc] sm:$0xf]  ;;  %v17870_v9 = vld [vmem:[%s30071_s5 + $0x1cd0] sm:$0xf0] }
 0x55d   : > { %12207 = vmatpush.bf16.msrb.mxu2 %v18093_v46  ;;  %v27415_v46 = vadd.f32 %v11613_v59, %v11601_v60  ;;  %v18089_v59 = vor.u32 %v20305_v19, %v18086_v28  ;;  %v18038_v7 = vld [vmem:[%s30071_s5 + $0x1e20] sm:$0xf0]  ;;  %v20431_v19 = vld [vmem:[%s30071_s5 + $0x225c] sm:$0xf]  ;;  %v18590_v28 = vld [vmem:[%s30071_s5 + $0x2270] sm:$0xf0] }
 0x55e   : > { %11853 = vmatpush.bf16.msrb.mxu0 %v17777_v1  ;;  %v20531_v1 = vld [vmem:[%s30071_s5 + $0x2574] sm:$0xf0]  ;;  %v11615_v60 = vpop.f32.mrf.mxu1 }
 0x55f   : > { %11866 = vmatpush.bf16.msrb.mxu1 %v17969_v2  ;;  %11879 = vmatpush.bf16.msrb.mxu3 %v18161_v43  ;;  %v17729_v2 = vor.u32 %v20215_v23, %v17726_v3  ;;  %v17702_v43 = vld [vmem:[%s30071_s5 + $0x1b80] sm:$0xf0]  ;;  %v18981_v17 = vor.u32 %v20531_v1, %v18980_v40  ;;  %v20203_v23 = vld [vmem:[%s30071_s5 + $0x1b3c] sm:$0xf]  ;;  %v17678_v3 = vld [vmem:[%s30071_s5 + $0x1b50] sm:$0xf0] }
 0x560   : > { %v20519_v40 = vld [vmem:[%s30071_s5 + $0x2514] sm:$0xf0]  ;;  %v17681_v1 = vor.u32 %v20203_v23, %v17678_v3  ;;  %v18782_v23 = vld [vmem:[%s30071_s5 + $0x23f0] sm:$0xf0]  ;;  %v20527_v3 = vld [vmem:[%s30071_s5 + $0x255c] sm:$0xf] }
 0x561   : > { %12208 = vmatpush.bf16.msrb.mxu2 %v18069_v55  ;;  %v17705_v55 = vor.u32 %v20209_v47, %v17702_v43  ;;  %v20245_v47 = vld [vmem:[%s30071_s5 + $0x1c8c] sm:$0xf]  ;;  %v17846_v43 = vld [vmem:[%s30071_s5 + $0x1ca0] sm:$0xf0]  ;;  %v18933_v50 = vor.u32 %v20519_v40, %v18932_v18  ;;  %v18974_v60 = vld [vmem:[%s30071_s5 + $0x2570] sm:$0xf0] }
 0x562   : > { %11854 = vmatpush.bf16.msrb.mxu0 %v17753_v15  ;;  %v18956_v15 = vld [vmem:[%s30071_s5 + $0x2530] sm:$0xf]  ;;  %v18977_v40 = vor.u32 %v20527_v3, %v18974_v60 }
 0x563   : > { %11867 = vmatpush.bf16.msrb.mxu1 %v17945_v52  ;;  %11880 = vmatpush.bf16.msrb.mxu3 %v18137_v63  ;;  %v11602_v52 = vpop.f32.mrf.mxu0  ;;  %v18957_v63 = vor.u32 %v20525_v12, %v18956_v15  ;;  %v18908_v15 = vld [vmem:[%s30071_s5 + $0x24d0] sm:$0xf]  ;;  %v20513_v12 = vld [vmem:[%s30071_s5 + $0x24e4] sm:$0xf0] }
 0x564   : > { %v11628_v52 = vpop.f32.mrf.mxu3 }
 0x565   : > { %12209 = vmatpush.bf16.msrb.mxu2 %v18045_v31  ;;  %v17654_v31 = vld [vmem:[%s30071_s5 + $0x1b20] sm:$0xf0]  ;;  %v18734_v52 = vld [vmem:[%s30071_s5 + $0x2390] sm:$0xf0] }
 0x566   : > { %11855 = vmatpush.bf16.msrb.mxu0 %v17729_v2  ;;  %v20197_v2 = vld [vmem:[%s30071_s5 + $0x1b0c] sm:$0xf] }
 0x567   : > { %11868 = vmatpush.bf16.msrb.mxu1 %v17921_v39  ;;  %11881 = vmatpush.bf16.msrb.mxu3 %v18113_v53  ;;  %v17873_v39 = vor.u32 %v20251_v14, %v17870_v9  ;;  %v20293_v53 = vld [vmem:[%s30071_s5 + $0x1e0c] sm:$0xf]  ;;  %v18909_v9 = vor.u32 %v20513_v12, %v18908_v15  ;;  %v18860_v15 = vld [vmem:[%s30071_s5 + $0x2470] sm:$0xf]  ;;  %v20501_v12 = vld [vmem:[%s30071_s5 + $0x2484] sm:$0xf0] }
 0x568   : > { %12210 = vmatmul.bf16.vlgmr.msrb.gmra.mxu2 %v23620_v56  ;;  %v18041_v14 = vor.u32 %v20293_v53, %v18038_v7  ;;  %v18542_v7 = vld [vmem:[%s30071_s5 + $0x2210] sm:$0xf0] }
 0x569   : > { %12254 = vmatpush.bf16.msra.mxu2 %v18981_v17  ;;  %v18065_v17 = vor.u32 %v20299_v27, %v18062_v0  ;;  %v20425_v27 = vld [vmem:[%s30071_s5 + $0x222c] sm:$0xf]  ;;  %v18566_v0 = vld [vmem:[%s30071_s5 + $0x2240] sm:$0xf0] }
 0x56a   : > { %11856 = vmatpush.bf16.msrb.mxu0 %v17705_v55  ;;  %v20479_v55 = vld [vmem:[%s30071_s5 + $0x23dc] sm:$0xf]  ;;  %v18569_v53 = vor.u32 %v20425_v27, %v18566_v0  ;;  %v18836_v0 = vld [vmem:[%s30071_s5 + $0x2440] sm:$0xf] }
 0x56b   : > { %11869 = vmatpush.bf16.msrb.mxu1 %v17897_v24  ;;  %11882 = vmatpush.bf16.msrb.mxu3 %v18089_v59  ;;  %v17657_v24 = vor.u32 %v20197_v2, %v17654_v31  ;;  %v17849_v59 = vor.u32 %v20245_v47, %v17846_v43  ;;  %v18785_v18 = vor.u32 %v20479_v55, %v18782_v23  ;;  %v20507_v2 = vld [vmem:[%s30071_s5 + $0x24b4] sm:$0xf0]  ;;  %v20473_v31 = vld [vmem:[%s30071_s5 + $0x23ac] sm:$0xf]  ;;  %v18950_v43 = vld [vmem:[%s30071_s5 + $0x2540] sm:$0xf0]  ;;  %v27561_v3 = vpop.f32.mrf.mxu2 }
 0x56c   : > { %v20521_v47 = vld [vmem:[%s30071_s5 + $0x252c] sm:$0xf]  ;;  %v20467_v55 = vld [vmem:[%s30071_s5 + $0x237c] sm:$0xf]  ;;  %v18926_v23 = vld [vmem:[%s30071_s5 + $0x2510] sm:$0xf0] }
 0x56d   : > { %12255 = vmatpush.bf16.msra.mxu2 %v18957_v63  ;;  %v18593_v63 = vor.u32 %v20431_v19, %v18590_v28  ;;  %v18953_v28 = vor.u32 %v20521_v47, %v18950_v43  ;;  %v11640_v47 = vadd.f32 %v26137_v58, %v27441_v11  ;;  %v18812_v58 = vld [vmem:[%s30071_s5 + $0x2410] sm:$0xf]  ;;  %v20489_v11 = vld [vmem:[%s30071_s5 + $0x2424] sm:$0xf0] }
 0x56e   : > { %11857 = vmatpush.bf16.msrb.mxu0 %v17681_v1  ;;  %v18884_v1 = vld [vmem:[%s30071_s5 + $0x24a0] sm:$0xf] }
 0x56f   : > { %11870 = vmatpush.bf16.msrb.mxu1 %v17873_v39  ;;  %11883 = vmatpush.bf16.msrb.mxu3 %v18065_v17  ;;  %v18758_v39 = vld [vmem:[%s30071_s5 + $0x23c0] sm:$0xf0]  ;;  %v18885_v17 = vor.u32 %v20507_v2, %v18884_v1  ;;  %v20509_v2 = vld [vmem:[%s30071_s5 + $0x24cc] sm:$0xf] }
 0x570   : > { %v18761_v19 = vor.u32 %v20473_v31, %v18758_v39  ;;  %v18710_v1 = vld [vmem:[%s30071_s5 + $0x2360] sm:$0xf0] }
 0x571   : > { %12256 = vmatpush.bf16.msra.mxu2 %v18933_v50  ;;  %v20419_v50 = vld [vmem:[%s30071_s5 + $0x21fc] sm:$0xf]  ;;  %v18902_v31 = vld [vmem:[%s30071_s5 + $0x24e0] sm:$0xf0] }
 0x572   : > { %11858 = vmatpush.bf16.msrb.mxu0 %v17657_v24  ;;  %v20515_v24 = vld [vmem:[%s30071_s5 + $0x24fc] sm:$0xf]  ;;  %v18545_v60 = vor.u32 %v20419_v50, %v18542_v7  ;;  %v11652_v50 = vpop.f32.mrf.mxu0 }
 0x573   : > { %11871 = vmatpush.bf16.msrb.mxu1 %v17849_v59  ;;  %11884 = vmatpush.bf16.msrb.mxu3 %v18041_v14  ;;  %v18861_v59 = vor.u32 %v20501_v12, %v18860_v15  ;;  %v18518_v14 = vld [vmem:[%s30071_s5 + $0x21e0] sm:$0xf0]  ;;  %v18929_v27 = vor.u32 %v20515_v24, %v18926_v23  ;;  %v11665_v7 = vpop.f32.mrf.mxu1  ;;  %v20455_v15 = vld [vmem:[%s30071_s5 + $0x231c] sm:$0xf]  ;;  %v11653_v12 = vadd.f32 %v11652_v50, %v11640_v47  ;;  %v18878_v24 = vld [vmem:[%s30071_s5 + $0x24b0] sm:$0xf0]  ;;  %v12005_v23 = vpop.f32.mrf.mxu2 }
 0x574   : > { %v18854_v47 = vld [vmem:[%s30071_s5 + $0x2480] sm:$0xf0]  ;;  %v20491_v23 = vld [vmem:[%s30071_s5 + $0x243c] sm:$0xf] }
 0x575   : > { %12257 = vmatpush.bf16.msra.mxu2 %v18909_v9  ;;  %11859 = vmatmul.bf16.vlgmr.msrb.gmra.mxu0 %v23617_v25  ;;  %v18737_v9 = vor.u32 %v20467_v55, %v18734_v52  ;;  %v18686_v55 = vld [vmem:[%s30071_s5 + $0x2330] sm:$0xf0]  ;;  %v20503_v52 = vld [vmem:[%s30071_s5 + $0x249c] sm:$0xf] }
 0x576   : > { %11903 = vmatpush.bf16.msra.mxu0 %v18593_v63  ;;  %11872 = vmatmul.bf16.vlgmr.msrb.gmra.mxu1 %v30154_v54  ;;  %v20413_v63 = vld [vmem:[%s30071_s5 + $0x21cc] sm:$0xf] }
 0x577   : > { %11916 = vmatpush.bf16.msra.mxu1 %v18785_v18  ;;  %11929 = vmatpush.bf16.msra.mxu3 %v18977_v40  ;;  %v20495_v18 = vld [vmem:[%s30071_s5 + $0x2454] sm:$0xf0]  ;;  %v20461_v40 = vld [vmem:[%s30071_s5 + $0x234c] sm:$0xf]  ;;  %v18521_v39 = vor.u32 %v20413_v63, %v18518_v14  ;;  %v14950_v63 = vld [vmem:[%s30071_s5 + $0x5f8] sm:$0xf0]  ;;  %v11666_v14 = vadd.f32 %v11665_v7, %v11653_v12 }
 0x578   : > { %11885 = vmatmul.bf16.vlgmr.msrb.gmra.mxu3 %v23620_v56  ;;  %v18837_v43 = vor.u32 %v20495_v18, %v18836_v0  ;;  %v18470_v0 = vld [vmem:[%s30071_s5 + $0x2180] sm:$0xf0]  ;;  %v18689_v18 = vor.u32 %v20455_v15, %v18686_v55  ;;  %v20395_v7 = vld [vmem:[%s30071_s5 + $0x213c] sm:$0xf] }
 0x579   : > { %12258 = vmatpush.bf16.msra.mxu2 %v18885_v17  ;;  %v18494_v17 = vld [vmem:[%s30071_s5 + $0x21b0] sm:$0xf0]  ;;  %v20443_v55 = vld [vmem:[%s30071_s5 + $0x22bc] sm:$0xf] }
 0x57a   : > { %11904 = vmatpush.bf16.msra.mxu0 %v18569_v53  ;;  %v20407_v53 = vld [vmem:[%s30071_s5 + $0x219c] sm:$0xf] }
 0x57b   : > { %11917 = vmatpush.bf16.msra.mxu1 %v18761_v19  ;;  %11930 = vmatpush.bf16.msra.mxu3 %v18953_v28  ;;  %v18713_v19 = vor.u32 %v20461_v40, %v18710_v1  ;;  %v18905_v28 = vor.u32 %v20509_v2, %v18902_v31  ;;  %v18881_v40 = vor.u32 %v20503_v52, %v18878_v24  ;;  %v20449_v1 = vld [vmem:[%s30071_s5 + $0x22ec] sm:$0xf]  ;;  %v18662_v31 = vld [vmem:[%s30071_s5 + $0x2300] sm:$0xf0]  ;;  %v11678_v50 = vpop.f32.mrf.mxu3  ;;  %v18638_v24 = vld [vmem:[%s30071_s5 + $0x22d0] sm:$0xf0] }
 0x57c   : > { %v18665_v15 = vor.u32 %v20449_v1, %v18662_v31  ;;  %v18614_v1 = vld [vmem:[%s30071_s5 + $0x22a0] sm:$0xf0]  ;;  %v19427_v31 = vld [vmem:[%s30071_s5 + $0x2f4] sm:$0xf0] }
 0x57d   : > { %12259 = vmatpush.bf16.msra.mxu2 %v18861_v59  ;;  %v19520_v59 = vld [vmem:[%s30071_s5 + $0x5e4] sm:$0xf] }
 0x57e   : > { %11905 = vmatpush.bf16.msra.mxu0 %v18545_v60  ;;  %v18497_v60 = vor.u32 %v20407_v53, %v18494_v17  ;;  %v14953_v2 = vor.u32 %v19520_v59, %v14950_v63  ;;  %v19514_v53 = vld [vmem:[%s30071_s5 + $0x5b4] sm:$0xf]  ;;  %v14926_v17 = vld [vmem:[%s30071_s5 + $0x5c8] sm:$0xf0]  ;;  %v19508_v63 = vld [vmem:[%s30071_s5 + $0x584] sm:$0xf] }
 0x57f   : > { %11918 = vmatpush.bf16.msra.mxu1 %v18737_v9  ;;  %11931 = vmatpush.bf16.msra.mxu3 %v18929_v27  ;;  %v18813_v9 = vor.u32 %v20489_v11, %v18812_v58  ;;  %v20401_v27 = vld [vmem:[%s30071_s5 + $0x216c] sm:$0xf]  ;;  %v11654_v58 = vpop.f32.mrf.mxu0  ;;  %v11667_v11 = vpop.f32.mrf.mxu1  ;;  %v14929_v52 = vor.u32 %v19514_v53, %v14926_v17  ;;  %v19502_v53 = vld [vmem:[%s30071_s5 + $0x554] sm:$0xf] }
 0x581   : > { %12260 = vmatpush.bf16.msra.mxu2 %v18837_v43  ;;  %v18473_v43 = vor.u32 %v20401_v27, %v18470_v0  ;;  %v18422_v27 = vld [vmem:[%s30071_s5 + $0x2120] sm:$0xf0]  ;;  %v20437_v0 = vld [vmem:[%s30071_s5 + $0x228c] sm:$0xf] }
 0x582   : > { %11906 = vmatpush.bf16.msra.mxu0 %v18521_v39  ;;  %v20497_v39 = vld [vmem:[%s30071_s5 + $0x246c] sm:$0xf] }
 0x583   : > { %11919 = vmatpush.bf16.msra.mxu1 %v18713_v19  ;;  %11932 = vmatpush.bf16.msra.mxu3 %v18905_v28  ;;  %v18446_v19 = vld [vmem:[%s30071_s5 + $0x2150] sm:$0xf0]  ;;  %v27649_v28 = vadd.f32 %v11678_v50, %v11666_v14  ;;  %v18857_v12 = vor.u32 %v20497_v39, %v18854_v47  ;;  %v14902_v14 = vld [vmem:[%s30071_s5 + $0x598] sm:$0xf0]  ;;  %v20485_v47 = vld [vmem:[%s30071_s5 + $0x240c] sm:$0xf]  ;;  %v11680_v58 = vpop.f32.mrf.mxu3 }
 0x584   : > { %v18449_v59 = vor.u32 %v20395_v7, %v18446_v19  ;;  %v14905_v39 = vor.u32 %v19508_v63, %v14902_v14  ;;  %v14878_v50 = vld [vmem:[%s30071_s5 + $0x568] sm:$0xf0]  ;;  %v14756_v7 = vld [vmem:[%s30071_s5 + $0x460] sm:$0xf]  ;;  %v19475_v19 = vld [vmem:[%s30071_s5 + $0x474] sm:$0xf0] }
 0x585   : > { %12261 = vmatpush.bf16.msra.mxu2 %v18813_v9  ;;  %v20389_v9 = vld [vmem:[%s30071_s5 + $0x210c] sm:$0xf]  ;;  %v19421_v63 = vld [vmem:[%s30071_s5 + $0x2c4] sm:$0xf0]  ;;  %v14900_v58 = vld [vmem:[%s30071_s5 + $0x580] sm:$0xf] }
 0x586   : > { %11907 = vmatpush.bf16.msra.mxu0 %v18497_v60  ;;  %v18830_v60 = vld [vmem:[%s30071_s5 + $0x2450] sm:$0xf0]  ;;  %v18425_v17 = vor.u32 %v20389_v9, %v18422_v27  ;;  %v14854_v9 = vld [vmem:[%s30071_s5 + $0x538] sm:$0xf0]  ;;  %v14732_v27 = vld [vmem:[%s30071_s5 + $0x430] sm:$0xf] }
 0x587   : > { %11920 = vmatpush.bf16.msra.mxu1 %v18689_v18  ;;  %11933 = vmatpush.bf16.msra.mxu3 %v18881_v40  ;;  %v18641_v18 = vor.u32 %v20443_v55, %v18638_v24  ;;  %v18833_v40 = vor.u32 %v20491_v23, %v18830_v60  ;;  %v18617_v55 = vor.u32 %v20437_v0, %v18614_v1  ;;  %v19496_v60 = vld [vmem:[%s30071_s5 + $0x524] sm:$0xf]  ;;  %v19469_v0 = vld [vmem:[%s30071_s5 + $0x444] sm:$0xf0] }
 0x588   : > { %12262 = vmatmul.bf16.vlgmr.msra.gmra.mxu2 %v22183_v16  ;;  %v14881_v24 = vor.u32 %v19502_v53, %v14878_v50  ;;  %v14757_v23 = vor.u32 %v19475_v19, %v14756_v7  ;;  %v14708_v50 = vld [vmem:[%s30071_s5 + $0x400] sm:$0xf]  ;;  %v19463_v7 = vld [vmem:[%s30071_s5 + $0x414] sm:$0xf0] }
 0x589   : > { %12306 = vmatpush.bf16.msrb.mxu2 %v14953_v2  ;;  %v14564_v2 = vld [vmem:[%s30071_s5 + $0x2e0] sm:$0xf] }
 0x58a   : > { %11908 = vmatpush.bf16.msra.mxu0 %v18473_v43  ;;  %v18806_v43 = vld [vmem:[%s30071_s5 + $0x2420] sm:$0xf0]  ;;  %v14565_v11 = vor.u32 %v19427_v31, %v14564_v2  ;;  %v14857_v2 = vor.u32 %v19496_v60, %v14854_v9  ;;  %v14733_v31 = vor.u32 %v19469_v0, %v14732_v27  ;;  %v14876_v9 = vld [vmem:[%s30071_s5 + $0x550] sm:$0xf]  ;;  %v19505_v27 = vld [vmem:[%s30071_s5 + $0x564] sm:$0xf0]  ;;  %v11692_v0 = vadd.f32 %v26347_v48, %v27649_v28 }
 0x58b   : > { %11921 = vmatpush.bf16.msra.mxu1 %v18665_v15  ;;  %11934 = vmatpush.bf16.msra.mxu3 %v18857_v12  ;;  %v14948_v15 = vld [vmem:[%s30071_s5 + $0x5e0] sm:$0xf]  ;;  %v19523_v12 = vld [vmem:[%s30071_s5 + $0x5f4] sm:$0xf0]  ;;  %v27757_v19 = vpop.f32.mrf.mxu2 }
 0x58c   : > { %v14949_v14 = vor.u32 %v19523_v12, %v14948_v15  ;;  %v19403_v48 = vld [vmem:[%s30071_s5 + $0x234] sm:$0xf0] }
 0x58d   : > { %12307 = vmatpush.bf16.msrb.mxu2 %v14929_v52  ;;  %v18809_v52 = vor.u32 %v20485_v47, %v18806_v43  ;;  %v14516_v47 = vld [vmem:[%s30071_s5 + $0x280] sm:$0xf]  ;;  %v19415_v43 = vld [vmem:[%s30071_s5 + $0x294] sm:$0xf0] }
 0x58e   : > { %11909 = vmatpush.bf16.msra.mxu0 %v18449_v59  ;;  %v14540_v59 = vld [vmem:[%s30071_s5 + $0x2b0] sm:$0xf]  ;;  %v14517_v15 = vor.u32 %v19415_v43, %v14516_v47  ;;  %v14468_v47 = vld [vmem:[%s30071_s5 + $0x220] sm:$0xf] }
 0x58f   : > { %11922 = vmatpush.bf16.msra.mxu1 %v18641_v18  ;;  %11935 = vmatpush.bf16.msra.mxu3 %v18833_v40  ;;  %v14924_v18 = vld [vmem:[%s30071_s5 + $0x5b0] sm:$0xf]  ;;  %v19517_v40 = vld [vmem:[%s30071_s5 + $0x5c4] sm:$0xf0]  ;;  %v14541_v1 = vor.u32 %v19421_v63, %v14540_v59  ;;  %v14806_v59 = vld [vmem:[%s30071_s5 + $0x4d8] sm:$0xf0] }
 0x590   : > { %v14925_v53 = vor.u32 %v19517_v40, %v14924_v18  ;;  %v14684_v63 = vld [vmem:[%s30071_s5 + $0x3d0] sm:$0xf]  ;;  %v19478_v40 = vld [vmem:[%s30071_s5 + $0x494] sm:$0xf] }
 0x591   : > { %12308 = vmatpush.bf16.msrb.mxu2 %v14905_v39  ;;  %v19490_v39 = vld [vmem:[%s30071_s5 + $0x4f4] sm:$0xf] }
 0x592   : > { %11910 = vmatpush.bf16.msra.mxu0 %v18425_v17  ;;  %v14830_v17 = vld [vmem:[%s30071_s5 + $0x508] sm:$0xf0] }
 0x593   : > { %11923 = vmatpush.bf16.msra.mxu1 %v18617_v55  ;;  %11936 = vmatpush.bf16.msra.mxu3 %v18809_v52  ;;  %v14833_v12 = vor.u32 %v19490_v39, %v14830_v17  ;;  %v14709_v55 = vor.u32 %v19463_v7, %v14708_v50  ;;  %v19484_v52 = vld [vmem:[%s30071_s5 + $0x4c4] sm:$0xf]  ;;  %v14782_v39 = vld [vmem:[%s30071_s5 + $0x4a8] sm:$0xf0]  ;;  %v11717_v43 = vpop.f32.mrf.mxu1  ;;  %v14660_v17 = vld [vmem:[%s30071_s5 + $0x3a0] sm:$0xf] }
 0x594   : > { %v19451_v50 = vld [vmem:[%s30071_s5 + $0x3b4] sm:$0xf0]  ;;  %v14852_v7 = vld [vmem:[%s30071_s5 + $0x520] sm:$0xf] }
 0x595   : > { %12309 = vmatpush.bf16.msrb.mxu2 %v14881_v24  ;;  %11911 = vmatmul.bf16.vlgmr.msra.gmra.mxu0 %v23899_v13  ;;  %v14492_v24 = vld [vmem:[%s30071_s5 + $0x250] sm:$0xf] }
 0x596   : > { %11955 = vmatpush.bf16.msrb.mxu0 %v14565_v11  ;;  %11924 = vmatmul.bf16.vlgmr.msra.gmra.mxu1 %v23782_v21  ;;  %v19511_v11 = vld [vmem:[%s30071_s5 + $0x594] sm:$0xf0] }
 0x597   : > { %11968 = vmatpush.bf16.msrb.mxu1 %v14757_v23  ;;  %11981 = vmatpush.bf16.msrb.mxu3 %v14949_v14  ;;  %v19409_v23 = vld [vmem:[%s30071_s5 + $0x264] sm:$0xf0]  ;;  %v14901_v60 = vor.u32 %v19511_v11, %v14900_v58  ;;  %v12057_v58 = vpop.f32.mrf.mxu2  ;;  %v19499_v11 = vld [vmem:[%s30071_s5 + $0x534] sm:$0xf0] }
 0x598   : > { %11937 = vmatmul.bf16.vlgmr.msra.gmra.mxu3 %v22183_v16  ;;  %v19457_v14 = vld [vmem:[%s30071_s5 + $0x3e4] sm:$0xf0]  ;;  %v14493_v18 = vor.u32 %v19409_v23, %v14492_v24  ;;  %v14785_v24 = vor.u32 %v19478_v40, %v14782_v39  ;;  %v14661_v23 = vor.u32 %v19451_v50, %v14660_v17  ;;  %v19706_v40 = vld [vmem:[%s30071_s5 + $0xbb4] sm:$0xf]  ;;  %v19439_v58 = vld [vmem:[%s30071_s5 + $0x354] sm:$0xf0] }
 0x599   : > { %12310 = vmatpush.bf16.msrb.mxu2 %v14857_v2  ;;  %v14809_v2 = vor.u32 %v19484_v52, %v14806_v59  ;;  %v14469_v52 = vor.u32 %v19403_v48, %v14468_v47  ;;  %v19397_v59 = vld [vmem:[%s30071_s5 + $0x204] sm:$0xf0] }
 0x59a   : > { %11956 = vmatpush.bf16.msrb.mxu0 %v14541_v1  ;;  %v11704_v1 = vpop.f32.mrf.mxu0 }
 0x59b   : > { %11969 = vmatpush.bf16.msrb.mxu1 %v14733_v31  ;;  %11982 = vmatpush.bf16.msrb.mxu3 %v14925_v53  ;;  %v14685_v31 = vor.u32 %v19457_v14, %v14684_v63  ;;  %v11705_v28 = vadd.f32 %v11704_v1, %v11692_v0  ;;  %v14877_v53 = vor.u32 %v19505_v27, %v14876_v9  ;;  %v14636_v9 = vld [vmem:[%s30071_s5 + $0x370] sm:$0xf]  ;;  %v19445_v27 = vld [vmem:[%s30071_s5 + $0x384] sm:$0xf0]  ;;  %v15694_v1 = vld [vmem:[%s30071_s5 + $0xbc8] sm:$0xf0] }
 0x59c   : > { %v14853_v63 = vor.u32 %v19499_v11, %v14852_v7  ;;  %v14828_v0 = vld [vmem:[%s30071_s5 + $0x4f0] sm:$0xf]  ;;  %v14637_v48 = vor.u32 %v19445_v27, %v14636_v9  ;;  %v15697_v50 = vor.u32 %v19706_v40, %v15694_v1  ;;  %v14612_v7 = vld [vmem:[%s30071_s5 + $0x340] sm:$0xf]  ;;  %v19619_v40 = vld [vmem:[%s30071_s5 + $0x8f4] sm:$0xf0] }
 0x59d   : > { %12311 = vmatpush.bf16.msrb.mxu2 %v14833_v12  ;;  %v15718_v12 = vld [vmem:[%s30071_s5 + $0xbf8] sm:$0xf0]  ;;  %v14804_v11 = vld [vmem:[%s30071_s5 + $0x4c0] sm:$0xf]  ;;  %v19694_v1 = vld [vmem:[%s30071_s5 + $0xb54] sm:$0xf] }
 0x59e   : > { %11957 = vmatpush.bf16.msrb.mxu0 %v14517_v15  ;;  %v19712_v15 = vld [vmem:[%s30071_s5 + $0xbe4] sm:$0xf] }
 0x59f   : > { %11970 = vmatpush.bf16.msrb.mxu1 %v14709_v55  ;;  %11983 = vmatpush.bf16.msrb.mxu3 %v14901_v60  ;;  %v11718_v55 = vadd.f32 %v11717_v43, %v11705_v28  ;;  %v14444_v60 = vld [vmem:[%s30071_s5 + $0x1f0] sm:$0xf]  ;;  %v15721_v14 = vor.u32 %v19712_v15, %v15718_v12  ;;  %v14420_v28 = vld [vmem:[%s30071_s5 + $0x1c0] sm:$0xf]  ;;  %v19391_v43 = vld [vmem:[%s30071_s5 + $0x1d4] sm:$0xf0] }
 0x5a0   : > { %v19487_v15 = vld [vmem:[%s30071_s5 + $0x4d4] sm:$0xf0]  ;;  %v19700_v12 = vld [vmem:[%s30071_s5 + $0xb84] sm:$0xf] }
 0x5a1   : > { %12312 = vmatpush.bf16.msrb.mxu2 %v14809_v2  ;;  %v11730_v2 = vpop.f32.mrf.mxu3  ;;  %v14805_v9 = vor.u32 %v19487_v15, %v14804_v11  ;;  %v15308_v11 = vld [vmem:[%s30071_s5 + $0x8b0] sm:$0xf]  ;;  %v19613_v15 = vld [vmem:[%s30071_s5 + $0x8c4] sm:$0xf0] }
 0x5a2   : > { %11958 = vmatpush.bf16.msrb.mxu0 %v14493_v18  ;;  %v19493_v18 = vld [vmem:[%s30071_s5 + $0x504] sm:$0xf0]  ;;  %v27845_v39 = vadd.f32 %v11730_v2, %v11718_v55  ;;  %v11706_v47 = vpop.f32.mrf.mxu0  ;;  %v15670_v55 = vld [vmem:[%s30071_s5 + $0xb98] sm:$0xf0]  ;;  %v15646_v2 = vld [vmem:[%s30071_s5 + $0xb68] sm:$0xf0] }
 0x5a3   : > { %11971 = vmatpush.bf16.msrb.mxu1 %v14685_v31  ;;  %11984 = vmatpush.bf16.msrb.mxu3 %v14877_v53  ;;  %v14445_v31 = vor.u32 %v19397_v59, %v14444_v60  ;;  %v11719_v53 = vpop.f32.mrf.mxu1  ;;  %v14829_v17 = vor.u32 %v19493_v18, %v14828_v0  ;;  %v14613_v60 = vor.u32 %v19439_v58, %v14612_v7  ;;  %v14588_v59 = vld [vmem:[%s30071_s5 + $0x310] sm:$0xf]  ;;  %v19481_v0 = vld [vmem:[%s30071_s5 + $0x4a4] sm:$0xf0]  ;;  %v15332_v18 = vld [vmem:[%s30071_s5 + $0x8e0] sm:$0xf] }
 0x5a4   : > { %v15673_v27 = vor.u32 %v19700_v12, %v15670_v55  ;;  %v19715_v53 = vld [vmem:[%s30071_s5 + $0xbf4] sm:$0xf0]  ;;  %v15649_v58 = vor.u32 %v19694_v1, %v15646_v2  ;;  %v19682_v1 = vld [vmem:[%s30071_s5 + $0xaf4] sm:$0xf]  ;;  %v15598_v2 = vld [vmem:[%s30071_s5 + $0xb08] sm:$0xf0] }
 0x5a5   : > { %12313 = vmatpush.bf16.msrb.mxu2 %v14785_v24  ;;  %v14396_v24 = vld [vmem:[%s30071_s5 + $0x190] sm:$0xf] }
 0x5a6   : > { %11959 = vmatpush.bf16.msrb.mxu0 %v14469_v52  ;;  %v14421_v52 = vor.u32 %v19391_v43, %v14420_v28  ;;  %v19667_v28 = vld [vmem:[%s30071_s5 + $0xa74] sm:$0xf0]  ;;  %v15716_v43 = vld [vmem:[%s30071_s5 + $0xbe0] sm:$0xf] }
 0x5a7   : > { %11972 = vmatpush.bf16.msrb.mxu1 %v14661_v23  ;;  %11985 = vmatpush.bf16.msrb.mxu3 %v14853_v63  ;;  %v19385_v23 = vld [vmem:[%s30071_s5 + $0x1a4] sm:$0xf0]  ;;  %v15717_v55 = vor.u32 %v19715_v53, %v15716_v43 }
 0x5a8   : > { %12314 = vmatmul.bf16.vlgmr.msrb.gmra.mxu2 %v22171_v57  ;;  %v19433_v63 = vld [vmem:[%s30071_s5 + $0x324] sm:$0xf0] }
 0x5a9   : > { %12358 = vmatpush.bf16.msra.mxu2 %v15721_v14  ;;  %v14780_v14 = vld [vmem:[%s30071_s5 + $0x490] sm:$0xf]  ;;  %v11732_v47 = vpop.f32.mrf.mxu3 }
 0x5aa   : > { %11960 = vmatpush.bf16.msrb.mxu0 %v14445_v31  ;;  %v15524_v31 = vld [vmem:[%s30071_s5 + $0xa60] sm:$0xf]  ;;  %v14781_v7 = vor.u32 %v19481_v0, %v14780_v14  ;;  %v15309_v14 = vor.u32 %v19613_v15, %v15308_v11  ;;  %v19607_v0 = vld [vmem:[%s30071_s5 + $0x894] sm:$0xf0]  ;;  %v15574_v15 = vld [vmem:[%s30071_s5 + $0xad8] sm:$0xf0] }
 0x5ab   : > { %11973 = vmatpush.bf16.msrb.mxu1 %v14637_v48  ;;  %11986 = vmatpush.bf16.msrb.mxu3 %v14829_v17  ;;  %v14397_v48 = vor.u32 %v19385_v23, %v14396_v24  ;;  %v14589_v17 = vor.u32 %v19433_v63, %v14588_v59  ;;  %v15525_v12 = vor.u32 %v19667_v28, %v15524_v31  ;;  %v15622_v24 = vld [vmem:[%s30071_s5 + $0xb38] sm:$0xf0]  ;;  %v15500_v23 = vld [vmem:[%s30071_s5 + $0xa30] sm:$0xf]  ;;  %v19709_v63 = vld [vmem:[%s30071_s5 + $0xbc4] sm:$0xf0]  ;;  %v27965_v43 = vpop.f32.mrf.mxu2 }
 0x5ac   : > { %v15692_v59 = vld [vmem:[%s30071_s5 + $0xbb0] sm:$0xf]  ;;  %v15476_v31 = vld [vmem:[%s30071_s5 + $0xa00] sm:$0xf]  ;;  %v19655_v47 = vld [vmem:[%s30071_s5 + $0xa14] sm:$0xf0] }
 0x5ad   : > { %12359 = vmatpush.bf16.msra.mxu2 %v15697_v50  ;;  %v15333_v50 = vor.u32 %v19619_v40, %v15332_v18  ;;  %v15693_v40 = vor.u32 %v19709_v63, %v15692_v59  ;;  %v19703_v28 = vld [vmem:[%s30071_s5 + $0xb94] sm:$0xf0]  ;;  %v15236_v63 = vld [vmem:[%s30071_s5 + $0x820] sm:$0xf] }
 0x5ae   : > { %11961 = vmatpush.bf16.msrb.mxu0 %v14421_v52  ;;  %v19688_v52 = vld [vmem:[%s30071_s5 + $0xb24] sm:$0xf] }
 0x5af   : > { %11974 = vmatpush.bf16.msrb.mxu1 %v14613_v60  ;;  %11987 = vmatpush.bf16.msrb.mxu3 %v14805_v9  ;;  %v19661_v60 = vld [vmem:[%s30071_s5 + $0xa44] sm:$0xf0]  ;;  %v15625_v9 = vor.u32 %v19688_v52, %v15622_v24  ;;  %v15644_v52 = vld [vmem:[%s30071_s5 + $0xb50] sm:$0xf] }
 0x5b0   : > { %v15501_v18 = vor.u32 %v19661_v60, %v15500_v23  ;;  %v19697_v24 = vld [vmem:[%s30071_s5 + $0xb64] sm:$0xf0]  ;;  %v11744_v60 = vadd.f32 %v26543_v10, %v27845_v39  ;;  %v15550_v10 = vld [vmem:[%s30071_s5 + $0xaa8] sm:$0xf0]  ;;  %v15428_v39 = vld [vmem:[%s30071_s5 + $0x9a0] sm:$0xf] }
 0x5b1   : > { %12360 = vmatpush.bf16.msra.mxu2 %v15673_v27  ;;  %v15284_v27 = vld [vmem:[%s30071_s5 + $0x880] sm:$0xf] }
 0x5b2   : > { %11962 = vmatpush.bf16.msrb.mxu0 %v14397_v48  ;;  %v15668_v48 = vld [vmem:[%s30071_s5 + $0xb80] sm:$0xf]  ;;  %v15285_v53 = vor.u32 %v19607_v0, %v15284_v27 }
 0x5b3   : > { %11975 = vmatpush.bf16.msrb.mxu1 %v14589_v17  ;;  %11988 = vmatpush.bf16.msrb.mxu3 %v14781_v7  ;;  %v15601_v17 = vor.u32 %v19682_v1, %v15598_v2  ;;  %v19601_v7 = vld [vmem:[%s30071_s5 + $0x864] sm:$0xf0]  ;;  %v15669_v11 = vor.u32 %v19703_v28, %v15668_v48  ;;  %v11769_v27 = vpop.f32.mrf.mxu1  ;;  %v19643_v2 = vld [vmem:[%s30071_s5 + $0x9b4] sm:$0xf0]  ;;  %v12109_v48 = vpop.f32.mrf.mxu2 }
 0x5b4   : > { %v19679_v48 = vld [vmem:[%s30071_s5 + $0xad4] sm:$0xf0] }
 0x5b5   : > { %12361 = vmatpush.bf16.msra.mxu2 %v15649_v58  ;;  %11963 = vmatmul.bf16.vlgmr.msrb.gmra.mxu0 %v22038_v42  ;;  %v15477_v58 = vor.u32 %v19655_v47, %v15476_v31  ;;  %v15620_v31 = vld [vmem:[%s30071_s5 + $0xb20] sm:$0xf]  ;;  %v19691_v47 = vld [vmem:[%s30071_s5 + $0xb34] sm:$0xf0] }
 0x5b6   : > { %12007 = vmatpush.bf16.msra.mxu0 %v15333_v50  ;;  %11976 = vmatmul.bf16.vlgmr.msrb.gmra.mxu1 %v22040_v26  ;;  %v15260_v50 = vld [vmem:[%s30071_s5 + $0x850] sm:$0xf] }
 0x5b7   : > { %12020 = vmatpush.bf16.msra.mxu1 %v15525_v12  ;;  %12033 = vmatpush.bf16.msra.mxu3 %v15717_v55  ;;  %v15452_v12 = vld [vmem:[%s30071_s5 + $0x9d0] sm:$0xf]  ;;  %v19649_v55 = vld [vmem:[%s30071_s5 + $0x9e4] sm:$0xf0]  ;;  %v15261_v23 = vor.u32 %v19601_v7, %v15260_v50 }
 0x5b8   : > { %11989 = vmatmul.bf16.vlgmr.msrb.gmra.mxu3 %v22171_v57  ;;  %v19676_v57 = vld [vmem:[%s30071_s5 + $0xac4] sm:$0xf]  ;;  %v15453_v0 = vor.u32 %v19649_v55, %v15452_v12  ;;  %v15404_v12 = vld [vmem:[%s30071_s5 + $0x970] sm:$0xf] }
 0x5b9   : > { %12362 = vmatpush.bf16.msra.mxu2 %v15625_v9  ;;  %v15577_v59 = vor.u32 %v19676_v57, %v15574_v15  ;;  %v11756_v9 = vpop.f32.mrf.mxu0  ;;  %v15429_v57 = vor.u32 %v19643_v2, %v15428_v39  ;;  %v15621_v15 = vor.u32 %v19691_v47, %v15620_v31  ;;  %v19631_v31 = vld [vmem:[%s30071_s5 + $0x954] sm:$0xf0]  ;;  %v15572_v47 = vld [vmem:[%s30071_s5 + $0xac0] sm:$0xf] }
 0x5ba   : > { %12008 = vmatpush.bf16.msra.mxu0 %v15309_v14  ;;  %v19595_v14 = vld [vmem:[%s30071_s5 + $0x834] sm:$0xf0]  ;;  %v11757_v1 = vadd.f32 %v11756_v9, %v11744_v60  ;;  %v15188_v9 = vld [vmem:[%s30071_s5 + $0x7c0] sm:$0xf] }
 0x5bb   : > { %12021 = vmatpush.bf16.msra.mxu1 %v15501_v18  ;;  %12034 = vmatpush.bf16.msra.mxu3 %v15693_v40  ;;  %v15645_v18 = vor.u32 %v19697_v24, %v15644_v52  ;;  %v19670_v40 = vld [vmem:[%s30071_s5 + $0xa94] sm:$0xf]  ;;  %v15237_v28 = vor.u32 %v19595_v14, %v15236_v63  ;;  %v19637_v52 = vld [vmem:[%s30071_s5 + $0x984] sm:$0xf0]  ;;  %v15596_v24 = vld [vmem:[%s30071_s5 + $0xaf0] sm:$0xf]  ;;  %v11782_v14 = vpop.f32.mrf.mxu3 }
 0x5bc   : > { %v11770_v50 = vadd.f32 %v11769_v27, %v11757_v1  ;;  %v15553_v7 = vor.u32 %v19670_v40, %v15550_v10  ;;  %v16462_v63 = vld [vmem:[%s30071_s5 + $0x11c8] sm:$0xf0]  ;;  %v19583_v27 = vld [vmem:[%s30071_s5 + $0x7d4] sm:$0xf0]  ;;  %v11771_v40 = vpop.f32.mrf.mxu1  ;;  %v15405_v10 = vor.u32 %v19637_v52, %v15404_v12  ;;  %v15380_v1 = vld [vmem:[%s30071_s5 + $0x940] sm:$0xf] }
 0x5bd   : > { %12363 = vmatpush.bf16.msra.mxu2 %v15601_v17  ;;  %v16486_v17 = vld [vmem:[%s30071_s5 + $0x11f8] sm:$0xf0]  ;;  %v16100_v12 = vld [vmem:[%s30071_s5 + $0xee0] sm:$0xf] }
 0x5be   : > { %12009 = vmatpush.bf16.msra.mxu0 %v15285_v53  ;;  %v19904_v53 = vld [vmem:[%s30071_s5 + $0x11e4] sm:$0xf]  ;;  %v16484_v40 = vld [vmem:[%s30071_s5 + $0x11e0] sm:$0xf] }
 0x5bf   : > { %12022 = vmatpush.bf16.msra.mxu1 %v15477_v58  ;;  %12035 = vmatpush.bf16.msra.mxu3 %v15669_v11  ;;  %v15212_v58 = vld [vmem:[%s30071_s5 + $0x7f0] sm:$0xf]  ;;  %v19589_v11 = vld [vmem:[%s30071_s5 + $0x804] sm:$0xf0]  ;;  %v16489_v55 = vor.u32 %v19904_v53, %v16486_v17  ;;  %v19892_v53 = vld [vmem:[%s30071_s5 + $0x1184] sm:$0xf] }
 0x5c0   : > { %v15213_v60 = vor.u32 %v19589_v11, %v15212_v58  ;;  %v16438_v17 = vld [vmem:[%s30071_s5 + $0x1198] sm:$0xf0]  ;;  %v15356_v58 = vld [vmem:[%s30071_s5 + $0x910] sm:$0xf]  ;;  %v15381_v11 = vor.u32 %v19631_v31, %v15380_v1 }
 0x5c1   : > { %12364 = vmatpush.bf16.msra.mxu2 %v15577_v59  ;;  %v19898_v59 = vld [vmem:[%s30071_s5 + $0x11b4] sm:$0xf]  ;;  %v16441_v52 = vor.u32 %v19892_v53, %v16438_v17  ;;  %v16390_v17 = vld [vmem:[%s30071_s5 + $0x1138] sm:$0xf0] }
 0x5c2   : > { %12010 = vmatpush.bf16.msra.mxu0 %v15261_v23  ;;  %v19685_v23 = vld [vmem:[%s30071_s5 + $0xb04] sm:$0xf0]  ;;  %v16465_v2 = vor.u32 %v19898_v59, %v16462_v63  ;;  %v16414_v63 = vld [vmem:[%s30071_s5 + $0x1168] sm:$0xf0] }
 0x5c3   : > { %12023 = vmatpush.bf16.msra.mxu1 %v15453_v0  ;;  %12036 = vmatpush.bf16.msra.mxu3 %v15645_v18  ;;  %v28053_v0 = vadd.f32 %v11782_v14, %v11770_v50  ;;  %v11758_v18 = vpop.f32.mrf.mxu0  ;;  %v15597_v39 = vor.u32 %v19685_v23, %v15596_v24  ;;  %v15164_v50 = vld [vmem:[%s30071_s5 + $0x790] sm:$0xf]  ;;  %v19673_v23 = vld [vmem:[%s30071_s5 + $0xaa4] sm:$0xf0]  ;;  %v16292_v14 = vld [vmem:[%s30071_s5 + $0x1060] sm:$0xf] }
 0x5c4   : > { %v15548_v24 = vld [vmem:[%s30071_s5 + $0xa90] sm:$0xf] }
 0x5c5   : > { %12365 = vmatpush.bf16.msra.mxu2 %v15553_v7  ;;  %v19577_v7 = vld [vmem:[%s30071_s5 + $0x7a4] sm:$0xf0]  ;;  %v15549_v1 = vor.u32 %v19673_v23, %v15548_v24  ;;  %v19799_v24 = vld [vmem:[%s30071_s5 + $0xe94] sm:$0xf0] }
 0x5c6   : > { %12011 = vmatpush.bf16.msra.mxu0 %v15237_v28  ;;  %v15189_v28 = vor.u32 %v19583_v27, %v15188_v9  ;;  %v15165_v59 = vor.u32 %v19577_v7, %v15164_v50  ;;  %v19859_v9 = vld [vmem:[%s30071_s5 + $0x1074] sm:$0xf0]  ;;  %v11784_v27 = vpop.f32.mrf.mxu3  ;;  %v16268_v50 = vld [vmem:[%s30071_s5 + $0x1030] sm:$0xf]  ;;  %v19853_v7 = vld [vmem:[%s30071_s5 + $0x1044] sm:$0xf0] }
 0x5c7   : > { %12024 = vmatpush.bf16.msra.mxu1 %v15429_v57  ;;  %12037 = vmatpush.bf16.msra.mxu3 %v15621_v15  ;;  %v15573_v57 = vor.u32 %v19679_v48, %v15572_v47  ;;  %v19625_v15 = vld [vmem:[%s30071_s5 + $0x924] sm:$0xf0]  ;;  %v16293_v31 = vor.u32 %v19859_v9, %v16292_v14  ;;  %v19880_v47 = vld [vmem:[%s30071_s5 + $0x1124] sm:$0xf]  ;;  %v16076_v48 = vld [vmem:[%s30071_s5 + $0xeb0] sm:$0xf] }
 0x5c8   : > { %12366 = vmatmul.bf16.vlgmr.msra.gmra.mxu2 %v30151_v5  ;;  %v16436_v9 = vld [vmem:[%s30071_s5 + $0x1180] sm:$0xf]  ;;  %v19895_v27 = vld [vmem:[%s30071_s5 + $0x1194] sm:$0xf0] }
 0x5c9   : > { %12410 = vmatpush.bf16.msrb.mxu2 %v16489_v55  ;;  %v19811_v55 = vld [vmem:[%s30071_s5 + $0xef4] sm:$0xf0] }
 0x5ca   : > { %12012 = vmatpush.bf16.msra.mxu0 %v15213_v60  ;;  %v19886_v60 = vld [vmem:[%s30071_s5 + $0x1154] sm:$0xf]  ;;  %v16101_v18 = vor.u32 %v19811_v55, %v16100_v12  ;;  %v16269_v12 = vor.u32 %v19853_v7, %v16268_v50 }
 0x5cb   : > { %12025 = vmatpush.bf16.msra.mxu1 %v15405_v10  ;;  %12038 = vmatpush.bf16.msra.mxu3 %v15597_v39  ;;  %v19907_v10 = vld [vmem:[%s30071_s5 + $0x11f4] sm:$0xf0]  ;;  %v15357_v39 = vor.u32 %v19625_v15, %v15356_v58  ;;  %v16460_v58 = vld [vmem:[%s30071_s5 + $0x11b0] sm:$0xf]  ;;  %v16393_v15 = vor.u32 %v19880_v47, %v16390_v17  ;;  %v19874_v55 = vld [vmem:[%s30071_s5 + $0x10f4] sm:$0xf]  ;;  %v28161_v14 = vpop.f32.mrf.mxu2  ;;  %v11796_v17 = vadd.f32 %v26751_v8, %v28053_v0 }
 0x5cc   : > { %v16485_v53 = vor.u32 %v19907_v10, %v16484_v40  ;;  %v16220_v47 = vld [vmem:[%s30071_s5 + $0xfd0] sm:$0xf]  ;;  %v19862_v7 = vld [vmem:[%s30071_s5 + $0x1094] sm:$0xf]  ;;  %v19787_v8 = vld [vmem:[%s30071_s5 + $0xe34] sm:$0xf0] }
 0x5cd   : > { %12411 = vmatpush.bf16.msrb.mxu2 %v16465_v2  ;;  %v16417_v2 = vor.u32 %v19886_v60, %v16414_v63  ;;  %v16366_v60 = vld [vmem:[%s30071_s5 + $0x1108] sm:$0xf0]  ;;  %v19847_v63 = vld [vmem:[%s30071_s5 + $0x1014] sm:$0xf0] }
 0x5ce   : > { %12013 = vmatpush.bf16.msra.mxu0 %v15189_v28  ;;  %v19805_v28 = vld [vmem:[%s30071_s5 + $0xec4] sm:$0xf0]  ;;  %v16369_v40 = vor.u32 %v19874_v55, %v16366_v60  ;;  %v16388_v60 = vld [vmem:[%s30071_s5 + $0x1120] sm:$0xf] }
 0x5cf   : > { %12026 = vmatpush.bf16.msra.mxu1 %v15381_v11  ;;  %12039 = vmatpush.bf16.msra.mxu3 %v15573_v57  ;;  %v19901_v11 = vld [vmem:[%s30071_s5 + $0x11c4] sm:$0xf0]  ;;  %v16077_v57 = vor.u32 %v19805_v28, %v16076_v48  ;;  %v16412_v28 = vld [vmem:[%s30071_s5 + $0x1150] sm:$0xf] }
 0x5d0   : > { %v16461_v23 = vor.u32 %v19901_v11, %v16460_v58  ;;  %v19841_v48 = vld [vmem:[%s30071_s5 + $0xfe4] sm:$0xf0] }
 0x5d1   : > { %12412 = vmatpush.bf16.msrb.mxu2 %v16441_v52  ;;  %v16052_v52 = vld [vmem:[%s30071_s5 + $0xe80] sm:$0xf] }
 0x5d2   : > { %12014 = vmatpush.bf16.msra.mxu0 %v15165_v59  ;;  %v16244_v59 = vld [vmem:[%s30071_s5 + $0x1000] sm:$0xf]  ;;  %v11808_v58 = vpop.f32.mrf.mxu0 }
 0x5d3   : > { %12027 = vmatpush.bf16.msra.mxu1 %v15357_v39  ;;  %12040 = vmatpush.bf16.msra.mxu3 %v15549_v1  ;;  %v16245_v10 = vor.u32 %v19847_v63, %v16244_v59  ;;  %v16028_v39 = vld [vmem:[%s30071_s5 + $0xe50] sm:$0xf]  ;;  %v19793_v1 = vld [vmem:[%s30071_s5 + $0xe64] sm:$0xf0]  ;;  %v11809_v0 = vadd.f32 %v11808_v58, %v11796_v17  ;;  %v11821_v55 = vpop.f32.mrf.mxu1  ;;  %v12161_v59 = vpop.f32.mrf.mxu2  ;;  %v19883_v63 = vld [vmem:[%s30071_s5 + $0x1134] sm:$0xf0] }
 0x5d4   : > { %v16029_v50 = vor.u32 %v19793_v1, %v16028_v39  ;;  %v15980_v39 = vld [vmem:[%s30071_s5 + $0xdf0] sm:$0xf]  ;;  %v19781_v1 = vld [vmem:[%s30071_s5 + $0xe04] sm:$0xf0]  ;;  %v20090_v17 = vld [vmem:[%s30071_s5 + $0x17b4] sm:$0xf] }
 0x5d5   : > { %12413 = vmatpush.bf16.msrb.mxu2 %v16417_v2  ;;  %12015 = vmatmul.bf16.vlgmr.msra.gmra.mxu0 %v22181_v29  ;;  %v16437_v2 = vor.u32 %v19895_v27, %v16436_v9  ;;  %v20096_v9 = vld [vmem:[%s30071_s5 + $0x17e4] sm:$0xf]  ;;  %v17254_v27 = vld [vmem:[%s30071_s5 + $0x17f8] sm:$0xf0]  ;;  %v15981_v58 = vor.u32 %v19781_v1, %v15980_v39  ;;  %v19871_v59 = vld [vmem:[%s30071_s5 + $0x10d4] sm:$0xf0] }
 0x5d6   : > { %12059 = vmatpush.bf16.msrb.mxu0 %v16101_v18  ;;  %12028 = vmatmul.bf16.vlgmr.msra.gmra.mxu1 %v22376_v30  ;;  %v16053_v18 = vor.u32 %v19799_v24, %v16052_v52  ;;  %v16196_v24 = vld [vmem:[%s30071_s5 + $0xfa0] sm:$0xf]  ;;  %v19817_v39 = vld [vmem:[%s30071_s5 + $0xf24] sm:$0xf0]  ;;  %v16316_v1 = vld [vmem:[%s30071_s5 + $0x1090] sm:$0xf] }
 0x5d7   : > { %12072 = vmatpush.bf16.msrb.mxu1 %v16293_v31  ;;  %12085 = vmatpush.bf16.msrb.mxu3 %v16485_v53  ;;  %v16342_v31 = vld [vmem:[%s30071_s5 + $0x10d8] sm:$0xf0]  ;;  %v19889_v53 = vld [vmem:[%s30071_s5 + $0x1164] sm:$0xf0] }
 0x5d8   : > { %12041 = vmatmul.bf16.vlgmr.msra.gmra.mxu3 %v30151_v5  ;;  %v19868_v5 = vld [vmem:[%s30071_s5 + $0x10c4] sm:$0xf]  ;;  %v16413_v52 = vor.u32 %v19889_v53, %v16412_v28  ;;  %v16364_v28 = vld [vmem:[%s30071_s5 + $0x10f0] sm:$0xf]  ;;  %v19877_v53 = vld [vmem:[%s30071_s5 + $0x1104] sm:$0xf0] }
 0x5d9   : > { %12414 = vmatpush.bf16.msrb.mxu2 %v16393_v15  ;;  %v16345_v11 = vor.u32 %v19868_v5, %v16342_v31  ;;  %v16318_v15 = vld [vmem:[%s30071_s5 + $0x10a8] sm:$0xf0]  ;;  %v17257_v31 = vor.u32 %v20096_v9, %v17254_v27  ;;  %v17206_v9 = vld [vmem:[%s30071_s5 + $0x1798] sm:$0xf0] }
 0x5da   : > { %12060 = vmatpush.bf16.msrb.mxu0 %v16077_v57  ;;  %v16221_v57 = vor.u32 %v19841_v48, %v16220_v47  ;;  %v16172_v47 = vld [vmem:[%s30071_s5 + $0xf70] sm:$0xf]  ;;  %v19829_v48 = vld [vmem:[%s30071_s5 + $0xf84] sm:$0xf0] }
 0x5db   : > { %12073 = vmatpush.bf16.msrb.mxu1 %v16269_v12  ;;  %12086 = vmatpush.bf16.msrb.mxu3 %v16461_v23  ;;  %v16004_v12 = vld [vmem:[%s30071_s5 + $0xe20] sm:$0xf]  ;;  %v19835_v23 = vld [vmem:[%s30071_s5 + $0xfb4] sm:$0xf0] }
 0x5dc   : > { %v16197_v5 = vor.u32 %v19835_v23, %v16196_v24  ;;  %v16148_v24 = vld [vmem:[%s30071_s5 + $0xf40] sm:$0xf]  ;;  %v19823_v23 = vld [vmem:[%s30071_s5 + $0xf54] sm:$0xf0] }
 0x5dd   : > { %12415 = vmatpush.bf16.msrb.mxu2 %v16369_v40  ;;  %v16005_v40 = vor.u32 %v19787_v8, %v16004_v12  ;;  %v15956_v12 = vld [vmem:[%s30071_s5 + $0xdc0] sm:$0xf]  ;;  %v19775_v8 = vld [vmem:[%s30071_s5 + $0xdd4] sm:$0xf0] }
 0x5de   : > { %12061 = vmatpush.bf16.msrb.mxu0 %v16053_v18  ;;  %v11822_v18 = vadd.f32 %v11821_v55, %v11809_v0  ;;  %v11823_v0 = vpop.f32.mrf.mxu1  ;;  %v16365_v55 = vor.u32 %v19877_v53, %v16364_v28  ;;  %v15957_v27 = vor.u32 %v19775_v8, %v15956_v12  ;;  %v20003_v28 = vld [vmem:[%s30071_s5 + $0x14f4] sm:$0xf0]  ;;  %v20078_v53 = vld [vmem:[%s30071_s5 + $0x1754] sm:$0xf] }
 0x5df   : > { %12074 = vmatpush.bf16.msrb.mxu1 %v16245_v10  ;;  %12087 = vmatpush.bf16.msrb.mxu3 %v16437_v2  ;;  %v16321_v10 = vor.u32 %v19862_v7, %v16318_v15  ;;  %v16389_v2 = vor.u32 %v19883_v63, %v16388_v60  ;;  %v11834_v7 = vpop.f32.mrf.mxu3  ;;  %v16173_v15 = vor.u32 %v19829_v48, %v16172_v47  ;;  %v16340_v60 = vld [vmem:[%s30071_s5 + $0x10c0] sm:$0xf]  ;;  %v20084_v63 = vld [vmem:[%s30071_s5 + $0x1784] sm:$0xf]  ;;  %v19865_v47 = vld [vmem:[%s30071_s5 + $0x10a4] sm:$0xf0] }
 0x5e0   : > { %v16868_v48 = vld [vmem:[%s30071_s5 + $0x14e0] sm:$0xf]  ;;  %v20099_v12 = vld [vmem:[%s30071_s5 + $0x17f4] sm:$0xf0] }
 0x5e1   : > { %12416 = vmatpush.bf16.msrb.mxu2 %v16345_v11  ;;  %v28249_v11 = vadd.f32 %v11834_v7, %v11822_v18  ;;  %v15932_v18 = vld [vmem:[%s30071_s5 + $0xd90] sm:$0xf]  ;;  %v16869_v0 = vor.u32 %v20003_v28, %v16868_v48  ;;  %v20066_v48 = vld [vmem:[%s30071_s5 + $0x16f4] sm:$0xf]  ;;  %v17134_v28 = vld [vmem:[%s30071_s5 + $0x1708] sm:$0xf0] }
 0x5e2   : > { %12062 = vmatpush.bf16.msrb.mxu0 %v16029_v50  ;;  %v17230_v50 = vld [vmem:[%s30071_s5 + $0x17c8] sm:$0xf0] }
 0x5e3   : > { %12075 = vmatpush.bf16.msrb.mxu1 %v16221_v57  ;;  %12088 = vmatpush.bf16.msrb.mxu3 %v16413_v52  ;;  %v11810_v57 = vpop.f32.mrf.mxu0  ;;  %v17233_v52 = vor.u32 %v20090_v17, %v17230_v50  ;;  %v17182_v17 = vld [vmem:[%s30071_s5 + $0x1768] sm:$0xf0]  ;;  %v17060_v50 = vld [vmem:[%s30071_s5 + $0x1660] sm:$0xf] }
 0x5e4   : > { %v20051_v57 = vld [vmem:[%s30071_s5 + $0x1674] sm:$0xf0] }
 0x5e5   : > { %12417 = vmatpush.bf16.msrb.mxu2 %v16321_v10  ;;  %v16149_v10 = vor.u32 %v19823_v23, %v16148_v24  ;;  %v16844_v24 = vld [vmem:[%s30071_s5 + $0x14b0] sm:$0xf]  ;;  %v19997_v23 = vld [vmem:[%s30071_s5 + $0x14c4] sm:$0xf0] }
 0x5e6   : > { %12063 = vmatpush.bf16.msrb.mxu0 %v16005_v40  ;;  %v19769_v40 = vld [vmem:[%s30071_s5 + $0xda4] sm:$0xf0] }
 0x5e7   : > { %12076 = vmatpush.bf16.msrb.mxu1 %v16197_v5  ;;  %12089 = vmatpush.bf16.msrb.mxu3 %v16389_v2  ;;  %v16124_v5 = vld [vmem:[%s30071_s5 + $0xf10] sm:$0xf]  ;;  %v16341_v2 = vor.u32 %v19871_v59, %v16340_v60  ;;  %v11836_v7 = vpop.f32.mrf.mxu3  ;;  %v17061_v60 = vor.u32 %v20051_v57, %v17060_v50  ;;  %v17204_v50 = vld [vmem:[%s30071_s5 + $0x1780] sm:$0xf] }
 0x5e8   : > { %12418 = vmatmul.bf16.vlgmr.msrb.gmra.mxu2 %v30152_v34  ;;  %v16125_v8 = vor.u32 %v19817_v39, %v16124_v5  ;;  %v16845_v5 = vor.u32 %v19997_v23, %v16844_v24  ;;  %v20087_v7 = vld [vmem:[%s30071_s5 + $0x1794] sm:$0xf0]  ;;  %v16988_v24 = vld [vmem:[%s30071_s5 + $0x15d0] sm:$0xf]  ;;  %v20033_v23 = vld [vmem:[%s30071_s5 + $0x15e4] sm:$0xf0] }
 0x5e9   : > { %12462 = vmatpush.bf16.msra.mxu2 %v17257_v31  ;;  %v17209_v31 = vor.u32 %v20084_v63, %v17206_v9  ;;  %v20072_v63 = vld [vmem:[%s30071_s5 + $0x1724] sm:$0xf]  ;;  %v17158_v9 = vld [vmem:[%s30071_s5 + $0x1738] sm:$0xf0] }
 0x5ea   : > { %12064 = vmatpush.bf16.msrb.mxu0 %v15981_v58  ;;  %v15933_v58 = vor.u32 %v19769_v40, %v15932_v18  ;;  %v20045_v18 = vld [vmem:[%s30071_s5 + $0x1644] sm:$0xf0]  ;;  %v17228_v40 = vld [vmem:[%s30071_s5 + $0x17b0] sm:$0xf]  ;;  %v17161_v39 = vor.u32 %v20072_v63, %v17158_v9  ;;  %v11848_v9 = vadd.f32 %v26947_v51, %v28249_v11  ;;  %v17086_v51 = vld [vmem:[%s30071_s5 + $0x16a8] sm:$0xf0] }
 0x5eb   : > { %12077 = vmatpush.bf16.msrb.mxu1 %v16173_v15  ;;  %12090 = vmatpush.bf16.msrb.mxu3 %v16365_v55  ;;  %v17252_v15 = vld [vmem:[%s30071_s5 + $0x17e0] sm:$0xf]  ;;  %v16317_v55 = vor.u32 %v19865_v47, %v16316_v1 }
 0x5ec   : > { %v17253_v59 = vor.u32 %v20099_v12, %v17252_v15  ;;  %v16820_v1 = vld [vmem:[%s30071_s5 + $0x1480] sm:$0xf]  ;;  %v17137_v15 = vor.u32 %v20066_v48, %v17134_v28  ;;  %v16796_v12 = vld [vmem:[%s30071_s5 + $0x1450] sm:$0xf]  ;;  %v20075_v28 = vld [vmem:[%s30071_s5 + $0x1734] sm:$0xf0] }
 0x5ed   : > { %12463 = vmatpush.bf16.msra.mxu2 %v17233_v52  ;;  %v17185_v52 = vor.u32 %v20078_v53, %v17182_v17  ;;  %v17012_v53 = vld [vmem:[%s30071_s5 + $0x1600] sm:$0xf]  ;;  %v20039_v17 = vld [vmem:[%s30071_s5 + $0x1614] sm:$0xf0] }
 0x5ee   : > { %12065 = vmatpush.bf16.msrb.mxu0 %v15957_v27  ;;  %v17036_v27 = vld [vmem:[%s30071_s5 + $0x1630] sm:$0xf]  ;;  %v16964_v11 = vld [vmem:[%s30071_s5 + $0x15a0] sm:$0xf] }
 0x5ef   : > { %12078 = vmatpush.bf16.msrb.mxu1 %v16149_v10  ;;  %12091 = vmatpush.bf16.msrb.mxu3 %v16341_v2  ;;  %v20093_v10 = vld [vmem:[%s30071_s5 + $0x17c4] sm:$0xf0]  ;;  %v19991_v2 = vld [vmem:[%s30071_s5 + $0x1494] sm:$0xf0]  ;;  %v17156_v48 = vld [vmem:[%s30071_s5 + $0x1720] sm:$0xf] }
 0x5f0   : > { %v17229_v47 = vor.u32 %v20093_v10, %v17228_v40  ;;  %v16821_v57 = vor.u32 %v19991_v2, %v16820_v1  ;;  %v19979_v40 = vld [vmem:[%s30071_s5 + $0x1434] sm:$0xf0]  ;;  %v20054_v2 = vld [vmem:[%s30071_s5 + $0x1694] sm:$0xf] }
 0x5f1   : > { %12464 = vmatpush.bf16.msra.mxu2 %v17209_v31  ;;  %v17037_v31 = vor.u32 %v20045_v18, %v17036_v27  ;;  %v16772_v18 = vld [vmem:[%s30071_s5 + $0x1420] sm:$0xf] }
 0x5f2   : > { %12066 = vmatpush.bf16.msrb.mxu0 %v15933_v58  ;;  %v28369_v58 = vpop.f32.mrf.mxu2  ;;  %v11860_v10 = vpop.f32.mrf.mxu0 }
 0x5f3   : > { %12079 = vmatpush.bf16.msrb.mxu1 %v16125_v8  ;;  %12092 = vmatpush.bf16.msrb.mxu3 %v16317_v55  ;;  %v19985_v8 = vld [vmem:[%s30071_s5 + $0x1464] sm:$0xf0]  ;;  %v17205_v55 = vor.u32 %v20087_v7, %v17204_v50  ;;  %v20288_v50 = vld [vmem:[%s30071_s5 + $0x1de4] sm:$0xf]  ;;  %v18022_v7 = vld [vmem:[%s30071_s5 + $0x1df8] sm:$0xf0] }
 0x5f4   : > { %v16797_v63 = vor.u32 %v19985_v8, %v16796_v12  ;;  %v16748_v12 = vld [vmem:[%s30071_s5 + $0x13f0] sm:$0xf]  ;;  %v19973_v8 = vld [vmem:[%s30071_s5 + $0x1404] sm:$0xf0] }
 0x5f5   : > { %12465 = vmatpush.bf16.msra.mxu2 %v17185_v52  ;;  %12067 = vmatmul.bf16.vlgmr.msrb.gmra.mxu0 %v22684_v37  ;;  %v17110_v52 = vld [vmem:[%s30071_s5 + $0x16d8] sm:$0xf0] }
 0x5f6   : > { %12111 = vmatpush.bf16.msra.mxu0 %v16869_v0  ;;  %12080 = vmatmul.bf16.vlgmr.msrb.gmra.mxu1 %v22686_v32  ;;  %v17013_v0 = vor.u32 %v20039_v17, %v17012_v53  ;;  %v16773_v17 = vor.u32 %v19979_v40, %v16772_v18  ;;  %v16724_v18 = vld [vmem:[%s30071_s5 + $0x13c0] sm:$0xf]  ;;  %v19967_v40 = vld [vmem:[%s30071_s5 + $0x13d4] sm:$0xf0] }
 0x5f7   : > { %12124 = vmatpush.bf16.msra.mxu1 %v17061_v60  ;;  %12137 = vmatpush.bf16.msra.mxu3 %v17253_v59  ;;  %v17180_v60 = vld [vmem:[%s30071_s5 + $0x1750] sm:$0xf]  ;;  %v20081_v59 = vld [vmem:[%s30071_s5 + $0x1764] sm:$0xf0] }
 0x5f8   : > { %12093 = vmatmul.bf16.vlgmr.msrb.gmra.mxu3 %v30152_v34  ;;  %v20060_v34 = vld [vmem:[%s30071_s5 + $0x16c4] sm:$0xf]  ;;  %v17181_v1 = vor.u32 %v20081_v59, %v17180_v60  ;;  %v20069_v60 = vld [vmem:[%s30071_s5 + $0x1704] sm:$0xf0]  ;;  %v16749_v59 = vor.u32 %v19973_v8, %v16748_v12 }
 0x5f9   : > { %12466 = vmatpush.bf16.msra.mxu2 %v17161_v39  ;;  %v17113_v27 = vor.u32 %v20060_v34, %v17110_v52  ;;  %v16989_v39 = vor.u32 %v20033_v23, %v16988_v24  ;;  %v16940_v34 = vld [vmem:[%s30071_s5 + $0x1570] sm:$0xf]  ;;  %v18025_v52 = vor.u32 %v20288_v50, %v18022_v7  ;;  %v20021_v24 = vld [vmem:[%s30071_s5 + $0x1584] sm:$0xf0] }
 0x5fa   : > { %12112 = vmatpush.bf16.msra.mxu0 %v16845_v5  ;;  %v11873_v5 = vpop.f32.mrf.mxu1  ;;  %v12213_v53 = vpop.f32.mrf.mxu2  ;;  %v17132_v23 = vld [vmem:[%s30071_s5 + $0x16f0] sm:$0xf]  ;;  %v19961_v7 = vld [vmem:[%s30071_s5 + $0x13a4] sm:$0xf0] }
 0x5fb   : > { %12125 = vmatpush.bf16.msra.mxu1 %v17037_v31  ;;  %12138 = vmatpush.bf16.msra.mxu3 %v17229_v47  ;;  %v11861_v31 = vadd.f32 %v11860_v10, %v11848_v9  ;;  %v20027_v47 = vld [vmem:[%s30071_s5 + $0x15b4] sm:$0xf0]  ;;  %v17998_v9 = vld [vmem:[%s30071_s5 + $0x1dc8] sm:$0xf0]  ;;  %v20276_v53 = vld [vmem:[%s30071_s5 + $0x1d84] sm:$0xf] }
 0x5fc   : > { %v16700_v50 = vld [vmem:[%s30071_s5 + $0x1390] sm:$0xf]  ;;  %v20009_v8 = vld [vmem:[%s30071_s5 + $0x1524] sm:$0xf0] }
 0x5fd   : > { %12467 = vmatpush.bf16.msra.mxu2 %v17137_v15  ;;  %v17089_v15 = vor.u32 %v20054_v2, %v17086_v51  ;;  %v17133_v2 = vor.u32 %v20069_v60, %v17132_v23  ;;  %v16916_v51 = vld [vmem:[%s30071_s5 + $0x1540] sm:$0xf]  ;;  %v20270_v23 = vld [vmem:[%s30071_s5 + $0x1d54] sm:$0xf]  ;;  %v16701_v60 = vor.u32 %v19961_v7, %v16700_v50  ;;  %v17996_v50 = vld [vmem:[%s30071_s5 + $0x1db0] sm:$0xf] }
 0x5fe   : > { %12113 = vmatpush.bf16.msra.mxu0 %v16821_v57  ;;  %v11874_v57 = vadd.f32 %v11873_v5, %v11861_v31  ;;  %v11862_v5 = vpop.f32.mrf.mxu0  ;;  %v20015_v31 = vld [vmem:[%s30071_s5 + $0x1554] sm:$0xf0]  ;;  %v20285_v7 = vld [vmem:[%s30071_s5 + $0x1dc4] sm:$0xf0] }
 0x5ff   : > { %12126 = vmatpush.bf16.msra.mxu1 %v17013_v0  ;;  %12139 = vmatpush.bf16.msra.mxu3 %v17205_v55  ;;  %v16965_v0 = vor.u32 %v20027_v47, %v16964_v11  ;;  %v17157_v55 = vor.u32 %v20075_v28, %v17156_v48  ;;  %v17108_v47 = vld [vmem:[%s30071_s5 + $0x16c0] sm:$0xf]  ;;  %v20063_v48 = vld [vmem:[%s30071_s5 + $0x16d4] sm:$0xf0]  ;;  %v16725_v28 = vor.u32 %v19967_v40, %v16724_v18 }
 0x600   : > { %v17109_v12 = vor.u32 %v20063_v48, %v17108_v47  ;;  %v18020_v40 = vld [vmem:[%s30071_s5 + $0x1de0] sm:$0xf]  ;;  %v20291_v5 = vld [vmem:[%s30071_s5 + $0x1df4] sm:$0xf0]  ;;  %v20189_v47 = vld [vmem:[%s30071_s5 + $0x1ac4] sm:$0xf0] }
 0x601   : > { %12468 = vmatpush.bf16.msra.mxu2 %v17113_v27  ;;  %v11886_v27 = vpop.f32.mrf.mxu3  ;;  %v18021_v48 = vor.u32 %v20291_v5, %v18020_v40  ;;  %v17564_v40 = vld [vmem:[%s30071_s5 + $0x1a50] sm:$0xf]  ;;  %v20177_v5 = vld [vmem:[%s30071_s5 + $0x1a64] sm:$0xf0] }
 0x602   : > { %12114 = vmatpush.bf16.msra.mxu0 %v16797_v63  ;;  %v20282_v63 = vld [vmem:[%s30071_s5 + $0x1db4] sm:$0xf]  ;;  %v28457_v10 = vadd.f32 %v11886_v27, %v11874_v57  ;;  %v16892_v57 = vld [vmem:[%s30071_s5 + $0x1510] sm:$0xf] }
 0x603   : > { %12127 = vmatpush.bf16.msra.mxu1 %v16989_v39  ;;  %12140 = vmatpush.bf16.msra.mxu3 %v17181_v1  ;;  %v11875_v39 = vpop.f32.mrf.mxu1  ;;  %v16941_v1 = vor.u32 %v20021_v24, %v16940_v34  ;;  %v18001_v11 = vor.u32 %v20282_v63, %v17998_v9  ;;  %v20057_v24 = vld [vmem:[%s30071_s5 + $0x16a4] sm:$0xf0]  ;;  %v17828_v63 = vld [vmem:[%s30071_s5 + $0x1c60] sm:$0xf]  ;;  %v20243_v9 = vld [vmem:[%s30071_s5 + $0x1c74] sm:$0xf0] }
 0x604   : > { %v16893_v39 = vor.u32 %v20009_v8, %v16892_v57  ;;  %v20258_v8 = vld [vmem:[%s30071_s5 + $0x1cf4] sm:$0xf] }
 0x605   : > { %12469 = vmatpush.bf16.msra.mxu2 %v17089_v15  ;;  %v16917_v15 = vor.u32 %v20015_v31, %v16916_v51  ;;  %v17829_v51 = vor.u32 %v20243_v9, %v17828_v63  ;;  %v17612_v31 = vld [vmem:[%s30071_s5 + $0x1ab0] sm:$0xf]  ;;  %v20279_v63 = vld [vmem:[%s30071_s5 + $0x1d94] sm:$0xf0] }
 0x606   : > { %12115 = vmatpush.bf16.msra.mxu0 %v16773_v17  ;;  %v17974_v17 = vld [vmem:[%s30071_s5 + $0x1d98] sm:$0xf0]  ;;  %v17613_v57 = vor.u32 %v20189_v47, %v17612_v31  ;;  %v20273_v31 = vld [vmem:[%s30071_s5 + $0x1d64] sm:$0xf0]  ;;  %v11900_v47 = vadd.f32 %v27155_v45, %v28457_v10  ;;  %v20171_v45 = vld [vmem:[%s30071_s5 + $0x1a34] sm:$0xf0] }
 0x607   : > { %12128 = vmatpush.bf16.msra.mxu1 %v16965_v0  ;;  %12141 = vmatpush.bf16.msra.mxu3 %v17157_v55  ;;  %v17636_v0 = vld [vmem:[%s30071_s5 + $0x1ae0] sm:$0xf]  ;;  %v20195_v55 = vld [vmem:[%s30071_s5 + $0x1af4] sm:$0xf0]  ;;  %v17977_v34 = vor.u32 %v20276_v53, %v17974_v17  ;;  %v17804_v53 = vld [vmem:[%s30071_s5 + $0x1c30] sm:$0xf] }
 0x608   : > { %12470 = vmatmul.bf16.vlgmr.msra.gmra.mxu2 %v30153_v41  ;;  %v17637_v18 = vor.u32 %v20195_v55, %v17636_v0  ;;  %v20237_v17 = vld [vmem:[%s30071_s5 + $0x1c44] sm:$0xf0]  ;;  %v17588_v0 = vld [vmem:[%s30071_s5 + $0x1a80] sm:$0xf]  ;;  %v20183_v55 = vld [vmem:[%s30071_s5 + $0x1a94] sm:$0xf0] }
 0x609   : > { %12514 = vmatpush.bf16.msrb.mxu2 %v18025_v52  ;;  %v17084_v52 = vld [vmem:[%s30071_s5 + $0x1690] sm:$0xf]  ;;  %v11888_v27 = vpop.f32.mrf.mxu3  ;;  %v17589_v9 = vor.u32 %v20183_v55, %v17588_v0  ;;  %v20219_v0 = vld [vmem:[%s30071_s5 + $0x1bb4] sm:$0xf0]  ;;  %v17924_v55 = vld [vmem:[%s30071_s5 + $0x1d20] sm:$0xf] }
 0x60a   : > { %12116 = vmatpush.bf16.msra.mxu0 %v16749_v59  ;;  %v17950_v59 = vld [vmem:[%s30071_s5 + $0x1d68] sm:$0xf0] }
 0x60b   : > { %12129 = vmatpush.bf16.msra.mxu1 %v16941_v1  ;;  %12142 = vmatpush.bf16.msra.mxu3 %v17133_v2  ;;  %v17085_v1 = vor.u32 %v20057_v24, %v17084_v52  ;;  %v17953_v2 = vor.u32 %v20270_v23, %v17950_v59  ;;  %v17902_v52 = vld [vmem:[%s30071_s5 + $0x1d08] sm:$0xf0]  ;;  %v17780_v24 = vld [vmem:[%s30071_s5 + $0x1c00] sm:$0xf]  ;;  %v20231_v23 = vld [vmem:[%s30071_s5 + $0x1c14] sm:$0xf0] }
 0x60c   : > { %v17972_v59 = vld [vmem:[%s30071_s5 + $0x1d80] sm:$0xf]  ;;  %v17905_v27 = vor.u32 %v20258_v8, %v17902_v52  ;;  %v20267_v52 = vld [vmem:[%s30071_s5 + $0x1d34] sm:$0xf0] }
 0x60d   : > { %12515 = vmatpush.bf16.msrb.mxu2 %v18001_v11  ;;  %v20264_v11 = vld [vmem:[%s30071_s5 + $0x1d24] sm:$0xf]  ;;  %v17732_v8 = vld [vmem:[%s30071_s5 + $0x1ba0] sm:$0xf] }
 0x60e   : > { %12117 = vmatpush.bf16.msra.mxu0 %v16725_v28  ;;  %v17926_v28 = vld [vmem:[%s30071_s5 + $0x1d38] sm:$0xf0] }
 0x60f   : > { %12130 = vmatpush.bf16.msra.mxu1 %v16917_v15  ;;  %12143 = vmatpush.bf16.msra.mxu3 %v17109_v12  ;;  %v17929_v15 = vor.u32 %v20264_v11, %v17926_v28  ;;  %v17805_v12 = vor.u32 %v20237_v17, %v17804_v53  ;;  %v17948_v11 = vld [vmem:[%s30071_s5 + $0x1d50] sm:$0xf]  ;;  %v20246_v28 = vld [vmem:[%s30071_s5 + $0x1c94] sm:$0xf] }
 0x611   : > { %12516 = vmatpush.bf16.msrb.mxu2 %v17977_v34  ;;  %v17997_v34 = vor.u32 %v20285_v7, %v17996_v50  ;;  %v17854_v7 = vld [vmem:[%s30071_s5 + $0x1ca8] sm:$0xf0] }
 0x612   : > { %12118 = vmatpush.bf16.msra.mxu0 %v16701_v60  ;;  %v28565_v60 = vpop.f32.mrf.mxu2  ;;  %v11912_v53 = vpop.f32.mrf.mxu0 }
 0x613   : > { %12131 = vmatpush.bf16.msra.mxu1 %v16893_v39  ;;  %12144 = vmatpush.bf16.msra.mxu3 %v17085_v1  ;;  %v17973_v39 = vor.u32 %v20279_v63, %v17972_v59  ;;  %v17878_v1 = vld [vmem:[%s30071_s5 + $0x1cd8] sm:$0xf0]  ;;  %v11913_v10 = vadd.f32 %v11912_v53, %v11900_v47 }
 0x615   : > { %12517 = vmatpush.bf16.msrb.mxu2 %v17953_v2  ;;  %12119 = vmatmul.bf16.vlgmr.msra.gmra.mxu0 %v22986_v4  ;;  %v17756_v2 = vld [vmem:[%s30071_s5 + $0x1bd0] sm:$0xf] }
 0x616   : > { %12163 = vmatpush.bf16.msrb.mxu0 %v17637_v18  ;;  %12132 = vmatmul.bf16.vlgmr.msra.gmra.mxu1 %v22992_v6  ;;  %v17781_v18 = vor.u32 %v20231_v23, %v17780_v24  ;;  %v20480_v24 = vld [vmem:[%s30071_s5 + $0x23e4] sm:$0xf]  ;;  %v18790_v23 = vld [vmem:[%s30071_s5 + $0x23f8] sm:$0xf0] }
 0x617   : > { %12176 = vmatpush.bf16.msrb.mxu1 %v17829_v51  ;;  %12189 = vmatpush.bf16.msrb.mxu3 %v18021_v48  ;;  %v20225_v51 = vld [vmem:[%s30071_s5 + $0x1be4] sm:$0xf0]  ;;  %v17565_v48 = vor.u32 %v20177_v5, %v17564_v40  ;;  %v17925_v40 = vor.u32 %v20267_v52, %v17924_v55  ;;  %v18793_v5 = vor.u32 %v20480_v24, %v18790_v23  ;;  %v20468_v55 = vld [vmem:[%s30071_s5 + $0x2384] sm:$0xf]  ;;  %v17468_v24 = vld [vmem:[%s30071_s5 + $0x1990] sm:$0xf] }
 0x618   : > { %12145 = vmatmul.bf16.vlgmr.msra.gmra.mxu3 %v30153_v41  ;;  %v20252_v41 = vld [vmem:[%s30071_s5 + $0x1cc4] sm:$0xf]  ;;  %v17757_v50 = vor.u32 %v20225_v51, %v17756_v2  ;;  %v17900_v2 = vld [vmem:[%s30071_s5 + $0x1cf0] sm:$0xf]  ;;  %v20261_v51 = vld [vmem:[%s30071_s5 + $0x1d04] sm:$0xf0] }
 0x619   : > { %12518 = vmatpush.bf16.msrb.mxu2 %v17929_v15  ;;  %v17881_v17 = vor.u32 %v20252_v41, %v17878_v1  ;;  %v11925_v15 = vpop.f32.mrf.mxu1  ;;  %v20165_v41 = vld [vmem:[%s30071_s5 + $0x1a04] sm:$0xf0] }
 0x61a   : > { %12164 = vmatpush.bf16.msrb.mxu0 %v17613_v57  ;;  %v17540_v57 = vld [vmem:[%s30071_s5 + $0x1a20] sm:$0xf]  ;;  %v11926_v59 = vadd.f32 %v11925_v15, %v11913_v10  ;;  %v20213_v1 = vld [vmem:[%s30071_s5 + $0x1b84] sm:$0xf0]  ;;  %v11914_v53 = vpop.f32.mrf.mxu0 }
 0x61b   : > { %12177 = vmatpush.bf16.msrb.mxu1 %v17805_v12  ;;  %12190 = vmatpush.bf16.msrb.mxu3 %v17997_v34  ;;  %v17949_v12 = vor.u32 %v20273_v31, %v17948_v11  ;;  %v12265_v34 = vpop.f32.mrf.mxu2  ;;  %v17541_v63 = vor.u32 %v20171_v45, %v17540_v57  ;;  %v20474_v11 = vld [vmem:[%s30071_s5 + $0x23b4] sm:$0xf]  ;;  %v18766_v31 = vld [vmem:[%s30071_s5 + $0x23c8] sm:$0xf0]  ;;  %v11938_v47 = vpop.f32.mrf.mxu3  ;;  %v17901_v45 = vor.u32 %v20261_v51, %v17900_v2  ;;  %v17684_v15 = vld [vmem:[%s30071_s5 + $0x1b40] sm:$0xf] }
 0x61c   : > { %v18769_v10 = vor.u32 %v20474_v11, %v18766_v31  ;;  %v18742_v34 = vld [vmem:[%s30071_s5 + $0x2398] sm:$0xf0]  ;;  %v20153_v23 = vld [vmem:[%s30071_s5 + $0x19a4] sm:$0xf0]  ;;  %v18718_v2 = vld [vmem:[%s30071_s5 + $0x2368] sm:$0xf0] }
 0x61d   : > { %12519 = vmatpush.bf16.msrb.mxu2 %v17905_v27  ;;  %v17733_v27 = vor.u32 %v20219_v0, %v17732_v8  ;;  %v17876_v8 = vld [vmem:[%s30071_s5 + $0x1cc0] sm:$0xf]  ;;  %v20255_v0 = vld [vmem:[%s30071_s5 + $0x1cd4] sm:$0xf0]  ;;  %v17469_v31 = vor.u32 %v20153_v23, %v17468_v24  ;;  %v20477_v24 = vld [vmem:[%s30071_s5 + $0x23c4] sm:$0xf0] }
 0x61e   : > { %12165 = vmatpush.bf16.msrb.mxu0 %v17589_v9  ;;  %v17857_v9 = vor.u32 %v20246_v28, %v17854_v7  ;;  %v28653_v28 = vadd.f32 %v11938_v47, %v11926_v59  ;;  %v20159_v7 = vld [vmem:[%s30071_s5 + $0x19d4] sm:$0xf0]  ;;  %v18596_v51 = vld [vmem:[%s30071_s5 + $0x2260] sm:$0xf] }
 0x61f   : > { %12178 = vmatpush.bf16.msrb.mxu1 %v17781_v18  ;;  %12191 = vmatpush.bf16.msrb.mxu3 %v17973_v39  ;;  %v17516_v18 = vld [vmem:[%s30071_s5 + $0x19f0] sm:$0xf]  ;;  %v20435_v47 = vld [vmem:[%s30071_s5 + $0x2274] sm:$0xf0] }
 0x620   : > { %v17708_v39 = vld [vmem:[%s30071_s5 + $0x1b70] sm:$0xf]  ;;  %v20483_v53 = vld [vmem:[%s30071_s5 + $0x23f4] sm:$0xf0] }
 0x621   : > { %12520 = vmatpush.bf16.msrb.mxu2 %v17881_v17  ;;  %v17709_v17 = vor.u32 %v20213_v1, %v17708_v39  ;;  %v11927_v57 = vpop.f32.mrf.mxu1  ;;  %v20387_v39 = vld [vmem:[%s30071_s5 + $0x20f4] sm:$0xf0]  ;;  %v20462_v1 = vld [vmem:[%s30071_s5 + $0x2354] sm:$0xf] }
 0x622   : > { %12166 = vmatpush.bf16.msrb.mxu0 %v17565_v48  ;;  %v17517_v48 = vor.u32 %v20165_v41, %v17516_v18  ;;  %v17877_v18 = vor.u32 %v20255_v0, %v17876_v8  ;;  %v18745_v41 = vor.u32 %v20468_v55, %v18742_v34  ;;  %v18721_v57 = vor.u32 %v20462_v1, %v18718_v2  ;;  %v20456_v8 = vld [vmem:[%s30071_s5 + $0x2324] sm:$0xf]  ;;  %v18694_v0 = vld [vmem:[%s30071_s5 + $0x2338] sm:$0xf0]  ;;  %v18572_v55 = vld [vmem:[%s30071_s5 + $0x2230] sm:$0xf] }
 0x623   : > { %12179 = vmatpush.bf16.msrb.mxu1 %v17757_v50  ;;  %12192 = vmatpush.bf16.msrb.mxu3 %v17949_v12  ;;  %v17492_v50 = vld [vmem:[%s30071_s5 + $0x19c0] sm:$0xf]  ;;  %v20207_v12 = vld [vmem:[%s30071_s5 + $0x1b54] sm:$0xf0]  ;;  %v11940_v11 = vpop.f32.mrf.mxu3  ;;  %v20429_v34 = vld [vmem:[%s30071_s5 + $0x2244] sm:$0xf0] }
 0x624   : > { %v17493_v52 = vor.u32 %v20159_v7, %v17492_v50  ;;  %v17685_v59 = vor.u32 %v20207_v12, %v17684_v15  ;;  %v18597_v15 = vor.u32 %v20435_v47, %v18596_v51  ;;  %v18740_v1 = vld [vmem:[%s30071_s5 + $0x2380] sm:$0xf]  ;;  %v20471_v2 = vld [vmem:[%s30071_s5 + $0x2394] sm:$0xf0]  ;;  %v18332_v47 = vld [vmem:[%s30071_s5 + $0x2050] sm:$0xf] }
 0x625   : > { %12521 = vmatpush.bf16.msrb.mxu2 %v17857_v9  ;;  %v20201_v9 = vld [vmem:[%s30071_s5 + $0x1b24] sm:$0xf0] }
 0x626   : > { %12167 = vmatpush.bf16.msrb.mxu0 %v17541_v63  ;;  %v17660_v63 = vld [vmem:[%s30071_s5 + $0x1b10] sm:$0xf] }
 0x627   : > { %12180 = vmatpush.bf16.msrb.mxu1 %v17733_v27  ;;  %12193 = vmatpush.bf16.msrb.mxu3 %v17925_v40  ;;  %v17852_v27 = vld [vmem:[%s30071_s5 + $0x1c90] sm:$0xf]  ;;  %v20249_v40 = vld [vmem:[%s30071_s5 + $0x1ca4] sm:$0xf0] }
 0x628   : > { %12522 = vmatmul.bf16.vlgmr.msrb.gmra.mxu2 %v30154_v54  ;;  %v17853_v7 = vor.u32 %v20249_v40, %v17852_v27  ;;  %v18573_v27 = vor.u32 %v20429_v34, %v18572_v55  ;;  %v18670_v40 = vld [vmem:[%s30071_s5 + $0x2308] sm:$0xf0] }
 0x629   : > { %12566 = vmatpush.bf16.msra.mxu2 %v18793_v5  ;;  %v18404_v5 = vld [vmem:[%s30071_s5 + $0x20e0] sm:$0xf] }
 0x62a   : > { %12168 = vmatpush.bf16.msrb.mxu0 %v17517_v48  ;;  %v18788_v48 = vld [vmem:[%s30071_s5 + $0x23e0] sm:$0xf]  ;;  %v18405_v50 = vor.u32 %v20387_v39, %v18404_v5  ;;  %v20423_v39 = vld [vmem:[%s30071_s5 + $0x2214] sm:$0xf0] }
 0x62b   : > { %12181 = vmatpush.bf16.msrb.mxu1 %v17709_v17  ;;  %12194 = vmatpush.bf16.msrb.mxu3 %v17901_v45  ;;  %v17661_v17 = vor.u32 %v20201_v9, %v17660_v63  ;;  %v18380_v45 = vld [vmem:[%s30071_s5 + $0x20b0] sm:$0xf]  ;;  %v18789_v12 = vor.u32 %v20483_v53, %v18788_v48  ;;  %v18356_v63 = vld [vmem:[%s30071_s5 + $0x2080] sm:$0xf]  ;;  %v20375_v9 = vld [vmem:[%s30071_s5 + $0x2094] sm:$0xf0]  ;;  %v28773_v51 = vpop.f32.mrf.mxu2 }
 0x62c   : > { %v18548_v5 = vld [vmem:[%s30071_s5 + $0x2200] sm:$0xf]  ;;  %v18357_v11 = vor.u32 %v20375_v9, %v18356_v63  ;;  %v20369_v48 = vld [vmem:[%s30071_s5 + $0x2064] sm:$0xf0] }
 0x62d   : > { %12567 = vmatpush.bf16.msra.mxu2 %v18769_v10  ;;  %v20381_v10 = vld [vmem:[%s30071_s5 + $0x20c4] sm:$0xf0]  ;;  %v18549_v53 = vor.u32 %v20423_v39, %v18548_v5  ;;  %v18500_v63 = vld [vmem:[%s30071_s5 + $0x21a0] sm:$0xf] }
 0x62e   : > { %12169 = vmatpush.bf16.msrb.mxu0 %v17493_v52  ;;  %v18764_v52 = vld [vmem:[%s30071_s5 + $0x23b0] sm:$0xf]  ;;  %v18381_v23 = vor.u32 %v20381_v10, %v18380_v45  ;;  %v20465_v10 = vld [vmem:[%s30071_s5 + $0x2364] sm:$0xf0] }
 0x62f   : > { %12182 = vmatpush.bf16.msrb.mxu1 %v17685_v59  ;;  %12195 = vmatpush.bf16.msrb.mxu3 %v17877_v18  ;;  %v18697_v59 = vor.u32 %v20456_v8, %v18694_v0  ;;  %v18765_v18 = vor.u32 %v20477_v24, %v18764_v52  ;;  %v18716_v45 = vld [vmem:[%s30071_s5 + $0x2350] sm:$0xf]  ;;  %v18308_v8 = vld [vmem:[%s30071_s5 + $0x2020] sm:$0xf]  ;;  %v20363_v0 = vld [vmem:[%s30071_s5 + $0x2034] sm:$0xf0] }
 0x630   : > { %v18717_v24 = vor.u32 %v20465_v10, %v18716_v45  ;;  %v18309_v5 = vor.u32 %v20363_v0, %v18308_v8  ;;  %v20351_v45 = vld [vmem:[%s30071_s5 + $0x1fd4] sm:$0xf0] }
 0x631   : > { %12568 = vmatpush.bf16.msra.mxu2 %v18745_v41  ;;  %v20450_v41 = vld [vmem:[%s30071_s5 + $0x22f4] sm:$0xf] }
 0x632   : > { %12170 = vmatpush.bf16.msrb.mxu0 %v17469_v31  ;;  %v18673_v31 = vor.u32 %v20450_v41, %v18670_v40  ;;  %v11964_v55 = vpop.f32.mrf.mxu0  ;;  %v20459_v41 = vld [vmem:[%s30071_s5 + $0x2334] sm:$0xf0] }
 0x633   : > { %12183 = vmatpush.bf16.msrb.mxu1 %v17661_v17  ;;  %12196 = vmatpush.bf16.msrb.mxu3 %v17853_v7  ;;  %v18741_v17 = vor.u32 %v20471_v2, %v18740_v1  ;;  %v18524_v7 = vld [vmem:[%s30071_s5 + $0x21d0] sm:$0xf]  ;;  %v11977_v34 = vpop.f32.mrf.mxu1  ;;  %v11965_v9 = vadd.f32 %v11964_v55, %v27351_v44  ;;  %v12317_v40 = vpop.f32.mrf.mxu2  ;;  %v20357_v2 = vld [vmem:[%s30071_s5 + $0x2004] sm:$0xf0] }
 0x634   : > { %v18284_v44 = vld [vmem:[%s30071_s5 + $0x1ff0] sm:$0xf] }
 0x635   : > { %12569 = vmatpush.bf16.msra.mxu2 %v18721_v57  ;;  %12171 = vmatmul.bf16.vlgmr.msrb.gmra.mxu0 %v23301_v49  ;;  %v20417_v57 = vld [vmem:[%s30071_s5 + $0x21e4] sm:$0xf0]  ;;  %v11978_v39 = vadd.f32 %v11977_v34, %v11965_v9  ;;  %v20554_v55 = vld [vmem:[%s30074_s8 + $0xb0] sm:$0xff]  ;;  %v18452_v34 = vld [vmem:[%s30071_s5 + $0x2140] sm:$0xf] }
 0x636   : > { %12215 = vmatpush.bf16.msra.mxu0 %v18405_v50  ;;  %12184 = vmatmul.bf16.vlgmr.msrb.gmra.mxu1 %v23617_v25  ;;  %v18646_v50 = vld [vmem:[%s30071_s5 + $0x22d8] sm:$0xf0]  ;;  %v18525_v52 = vor.u32 %v20417_v57, %v18524_v7  ;;  %v18260_v57 = vld [vmem:[%s30071_s5 + $0x1fc0] sm:$0xf]  ;;  %v18236_v9 = vld [vmem:[%s30071_s5 + $0x1f90] sm:$0xf] }
 0x637   : > { %12228 = vmatpush.bf16.msra.mxu1 %v18597_v15  ;;  %12241 = vmatpush.bf16.msra.mxu3 %v18789_v12  ;;  %v18333_v15 = vor.u32 %v20369_v48, %v18332_v47  ;;  %v20555_v47 = vld [vmem:[%s30074_s8 + $0xb8] sm:$0xff]  ;;  %v18476_v48 = vld [vmem:[%s30071_s5 + $0x2170] sm:$0xf] }
 0x638   : > { %12197 = vmatmul.bf16.vlgmr.msrb.gmra.mxu3 %v30154_v54  ;;  %v20444_v54 = vld [vmem:[%s30071_s5 + $0x22c4] sm:$0xf]  ;;  %v18428_v40 = vld [vmem:[%s30071_s5 + $0x2110] sm:$0xf] }
 0x639   : > { %12570 = vmatpush.bf16.msra.mxu2 %v18697_v59  ;;  %v18649_v12 = vor.u32 %v20444_v54, %v18646_v50  ;;  %v18622_v59 = vld [vmem:[%s30071_s5 + $0x22a8] sm:$0xf0]  ;;  %v20453_v54 = vld [vmem:[%s30071_s5 + $0x2304] sm:$0xf0]  ;;  %v18285_v50 = vor.u32 %v20357_v2, %v18284_v44  ;;  %v18620_v44 = vld [vmem:[%s30071_s5 + $0x2290] sm:$0xf] }
 0x63a   : > { %12216 = vmatpush.bf16.msra.mxu0 %v18381_v23  ;;  %v20438_v23 = vld [vmem:[%s30071_s5 + $0x2294] sm:$0xf]  ;;  %v20441_v2 = vld [vmem:[%s30071_s5 + $0x22a4] sm:$0xf0] }
 0x63b   : > { %12229 = vmatpush.bf16.msra.mxu1 %v18573_v27  ;;  %12242 = vmatpush.bf16.msra.mxu3 %v18765_v18  ;;  %v20411_v27 = vld [vmem:[%s30071_s5 + $0x21b4] sm:$0xf0]  ;;  %v18692_v18 = vld [vmem:[%s30071_s5 + $0x2320] sm:$0xf]  ;;  %v18625_v1 = vor.u32 %v20438_v23, %v18622_v59  ;;  %v11990_v7 = vpop.f32.mrf.mxu3  ;;  %v18261_v59 = vor.u32 %v20351_v45, %v18260_v57 }
 0x63c   : > { %v28851_v10 = vadd.f32 %v11990_v7, %v11978_v39  ;;  %v20447_v23 = vld [vmem:[%s30071_s5 + $0x22d4] sm:$0xf0]  ;;  %v14374_v39 = vld [vmem:[%s30071_s5 + $0x178] sm:$0xf0]  ;;  %v18621_v7 = vor.u32 %v20441_v2, %v18620_v44  ;;  %v20552_v57 = vld [vmem:[%s30074_s8 + $0xa0] sm:$0xff] }
 0x63d   : > { %12571 = vmatpush.bf16.msra.mxu2 %v18673_v31  ;;  %v18693_v31 = vor.u32 %v20459_v41, %v18692_v18  ;;  %v14710_v44 = vld [vmem:[%s30071_s5 + $0x418] sm:$0xf0]  ;;  %v3714_v2 = vld [vmem:[%s30073_s7] sm:$0x3f] }
 0x63e   : > { %12217 = vmatpush.bf16.msra.mxu0 %v18357_v11  ;;  %v18501_v11 = vor.u32 %v20411_v27, %v18500_v63  ;;  %v20553_v63 = vld [vmem:[%s30074_s8 + $0xa8] sm:$0xff] }
 0x63f   : > { %12230 = vmatpush.bf16.msra.mxu1 %v18549_v53  ;;  %12243 = vmatpush.bf16.msra.mxu3 %v18741_v17  ;;  %v20405_v53 = vld [vmem:[%s30071_s5 + $0x2184] sm:$0xf0]  ;;  %v18668_v17 = vld [vmem:[%s30071_s5 + $0x22f0] sm:$0xf] }
 0x640   : > { %v18477_v8 = vor.u32 %v20405_v53, %v18476_v48  ;;  %v18669_v0 = vor.u32 %v20453_v54, %v18668_v17  ;;  %v20345_v27 = vld [vmem:[%s30071_s5 + $0x1fa4] sm:$0xf0]  ;;  %v19472_v17 = vld [vmem:[%s30071_s5 + $0x464] sm:$0xf]  ;;  %v14758_v54 = vld [vmem:[%s30071_s5 + $0x478] sm:$0xf0] }
 0x641   : > { %12572 = vmatpush.bf16.msra.mxu2 %v18649_v12  ;;  %v11979_v12 = vpop.f32.mrf.mxu1 }
 0x642   : > { %12218 = vmatpush.bf16.msra.mxu0 %v18333_v15  ;;  %v11966_v15 = vpop.f32.mrf.mxu0  ;;  %v14350_v12 = vld [vmem:[%s30071_s5 + $0x148] sm:$0xf0] }
 0x643   : > { %12231 = vmatpush.bf16.msra.mxu1 %v18525_v52  ;;  %12244 = vmatpush.bf16.msra.mxu3 %v18717_v24  ;;  %v20399_v52 = vld [vmem:[%s30071_s5 + $0x2154] sm:$0xf0]  ;;  %v18644_v24 = vld [vmem:[%s30071_s5 + $0x22c0] sm:$0xf]  ;;  %v11992_v48 = vpop.f32.mrf.mxu3  ;;  %v19370_v15 = vld [vmem:[%s30071_s5 + $0x134] sm:$0xf] }
 0x644   : > { %v18453_v18 = vor.u32 %v20399_v52, %v18452_v34  ;;  %v18645_v41 = vor.u32 %v20447_v23, %v18644_v24  ;;  %v19466_v34 = vld [vmem:[%s30071_s5 + $0x434] sm:$0xf]  ;;  %v14734_v52 = vld [vmem:[%s30071_s5 + $0x448] sm:$0xf0]  ;;  %v3713_v24 = vld [vmem:[%s30072_s6] sm:$0x3f]  ;;  %v14353_v23 = vor.u32 %v19370_v15, %v14350_v12 }
 0x645   : > { %12573 = vmatpush.bf16.msra.mxu2 %v18625_v1  ;;  %v20393_v1 = vld [vmem:[%s30071_s5 + $0x2124] sm:$0xf0]  ;;  %v14302_v48 = vld [vmem:[%s30071_s5 + $0xe8] sm:$0xf0] }
 0x646   : > { %12219 = vmatpush.bf16.msra.mxu0 %v18309_v5  ;;  %v19376_v5 = vld [vmem:[%s30071_s5 + $0x164] sm:$0xf] }
 0x647   : > { %12232 = vmatpush.bf16.msra.mxu1 %v18501_v11  ;;  %12245 = vmatpush.bf16.msra.mxu3 %v18693_v31  ;;  %v18237_v11 = vor.u32 %v20345_v27, %v18236_v9  ;;  %v19424_v31 = vld [vmem:[%s30071_s5 + $0x2e4] sm:$0xf]  ;;  %v14377_v53 = vor.u32 %v19376_v5, %v14374_v39  ;;  %v14326_v27 = vld [vmem:[%s30071_s5 + $0x118] sm:$0xf0] }
 0x648   : > { %12574 = vmatmul.bf16.vlgmr.msra.gmra.mxu2 %v23782_v21  ;;  %v19364_v9 = vld [vmem:[%s30071_s5 + $0x104] sm:$0xf]  ;;  %v14518_v5 = vld [vmem:[%s30071_s5 + $0x298] sm:$0xf0] }
 0x649   : > { %13056 = vmatpush.bf16.msrb.mxu2 %v20555_v47  ;;  %v14566_v47 = vld [vmem:[%s30071_s5 + $0x2f8] sm:$0xf0] }
 0x64a   : > { %12220 = vmatpush.bf16.msra.mxu0 %v18285_v50  ;;  %v18429_v50 = vor.u32 %v20393_v1, %v18428_v40  ;;  %v14569_v45 = vor.u32 %v19424_v31, %v14566_v47  ;;  %v19412_v40 = vld [vmem:[%s30071_s5 + $0x284] sm:$0xf]  ;;  %v19358_v47 = vld [vmem:[%s30071_s5 + $0xd4] sm:$0xf] }
 0x64b   : > { %12233 = vmatpush.bf16.msra.mxu1 %v18477_v8  ;;  %12246 = vmatpush.bf16.msra.mxu3 %v18669_v0  ;;  %v14761_v8 = vor.u32 %v19472_v17, %v14758_v54  ;;  %v19418_v0 = vld [vmem:[%s30071_s5 + $0x2b4] sm:$0xf]  ;;  %v28950_v39 = vpop.f32.mrf.mxu2  ;;  %v19460_v1 = vld [vmem:[%s30071_s5 + $0x404] sm:$0xf]  ;;  %v14521_v31 = vor.u32 %v19412_v40, %v14518_v5  ;;  %v12614_v17 = vperm.slane %v3714_v2, 2  ;;  %v14305_v15 = vor.u32 %v19358_v47, %v14302_v48 }
 0x64c   : > { %v14713_v54 = vor.u32 %v19460_v1, %v14710_v44  ;;  %v20548_v40 = vld [vmem:[%s30074_s8 + $0x80] sm:$0xff]  ;;  %v19346_v1 = vld [vmem:[%s30071_s5 + $0x74] sm:$0xf]  ;;  %v14254_v44 = vld [vmem:[%s30071_s5 + $0x88] sm:$0xf0] }
 0x64d   : > { %13057 = vmatpush.bf16.msrb.mxu2 %v20554_v55  ;;  %v14542_v55 = vld [vmem:[%s30071_s5 + $0x2c8] sm:$0xf0]  ;;  %v19442_v47 = vld [vmem:[%s30071_s5 + $0x374] sm:$0xf] }
 0x64e   : > { %12221 = vmatpush.bf16.msra.mxu0 %v18261_v59  ;;  %v20551_v59 = vld [vmem:[%s30074_s8 + $0x98] sm:$0xff]  ;;  %v14638_v48 = vld [vmem:[%s30071_s5 + $0x388] sm:$0xf0] }
 0x64f   : > { %12234 = vmatpush.bf16.msra.mxu1 %v18453_v18  ;;  %12247 = vmatpush.bf16.msra.mxu3 %v18645_v41  ;;  %v12595_v18 = vperm.slane %v3713_v24, 2  ;;  %v14737_v41 = vor.u32 %v19466_v34, %v14734_v52  ;;  %v14278_v34 = vld [vmem:[%s30071_s5 + $0xb8] sm:$0xf0] }
 0x651   : > { %13058 = vmatpush.bf16.msrb.mxu2 %v20553_v63  ;;  %v14545_v63 = vor.u32 %v19418_v0, %v14542_v55  ;;  %v19352_v55 = vld [vmem:[%s30071_s5 + $0xa4] sm:$0xf] }
 0x652   : > { %12222 = vmatpush.bf16.msra.mxu0 %v18237_v11  ;;  %v14329_v11 = vor.u32 %v19364_v9, %v14326_v27  ;;  %v12016_v12 = vpop.f32.mrf.mxu0  ;;  %v19448_v9 = vld [vmem:[%s30071_s5 + $0x3a4] sm:$0xf]  ;;  %v14662_v27 = vld [vmem:[%s30071_s5 + $0x3b8] sm:$0xf0] }
 0x653   : > { %12235 = vmatpush.bf16.msra.mxu1 %v18429_v50  ;;  %12248 = vmatpush.bf16.msra.mxu3 %v18621_v7  ;;  %v19406_v50 = vld [vmem:[%s30071_s5 + $0x254] sm:$0xf]  ;;  %v14494_v7 = vld [vmem:[%s30071_s5 + $0x268] sm:$0xf0] }
 0x654   : > { %v14497_v0 = vor.u32 %v19406_v50, %v14494_v7 }
 0x655   : > { %13059 = vmatpush.bf16.msrb.mxu2 %v20552_v57  ;;  %12223 = vmatmul.bf16.vlgmr.msra.gmra.mxu0 %v23897_v35  ;;  %v19454_v57 = vld [vmem:[%s30071_s5 + $0x3d4] sm:$0xf] }
 0x656   : > { %12267 = vmatpush.bf16.msrb.mxu0 %v14377_v53  ;;  %12236 = vmatmul.bf16.vlgmr.msra.gmra.mxu1 %v23899_v13  ;;  %v12607_v53 = vmul.f32 %v12595_v18, %v27415_v46  ;;  %v12004_v46 = vadd.f32 %v27561_v3, %v28851_v10  ;;  %v12029_v10 = vpop.f32.mrf.mxu1 }
 0x657   : > { %12280 = vmatpush.bf16.msrb.mxu1 %v14569_v45  ;;  %12293 = vmatpush.bf16.msrb.mxu3 %v14761_v8  ;;  %v14686_v45 = vld [vmem:[%s30071_s5 + $0x3e8] sm:$0xf0] }
 0x658   : > { %12249 = vmatmul.bf16.vlgmr.msra.gmra.mxu3 %v23782_v21  ;;  %v20550_v21 = vld [vmem:[%s30074_s8 + $0x90] sm:$0xff]  ;;  %v20549_v8 = vld [vmem:[%s30074_s8 + $0x88] sm:$0xff]  ;;  %v12626_v52 = vadd.f32 %v12614_v17, %v12607_v53  ;;  %v12017_v3 = vadd.f32 %v12016_v12, %v12004_v46  ;;  %v14689_v24 = vor.u32 %v19454_v57, %v14686_v45  ;;  %v14257_v17 = vor.u32 %v19346_v1, %v14254_v44  ;;  %v19340_v57 = vld [vmem:[%s30071_s5 + $0x44] sm:$0xf] }
 0x659   : > { %13060 = vmatpush.bf16.msrb.mxu2 %v20551_v59  ;;  %v14470_v59 = vld [vmem:[%s30071_s5 + $0x238] sm:$0xf0]  ;;  %v14641_v12 = vor.u32 %v19442_v47, %v14638_v48 }
 0x65a   : > { %12268 = vmatpush.bf16.msrb.mxu0 %v14353_v23  ;;  %v19400_v23 = vld [vmem:[%s30071_s5 + $0x224] sm:$0xf]  ;;  %v12030_v18 = vadd.f32 %v12029_v10, %v12017_v3  ;;  %v12632_v2 = vmax.f32 %v12626_v52, 0.0  ;;  %v12018_v50 = vpop.f32.mrf.mxu0  ;;  %v14230_v45 = vld [vmem:[%s30071_s5 + $0x58] sm:$0xf0] }
 0x65b   : > { %12281 = vmatpush.bf16.msrb.mxu1 %v14545_v63  ;;  %12294 = vmatpush.bf16.msrb.mxu3 %v14737_v41  ;;  %v12369_v63 = vpop.f32.mrf.mxu2  ;;  %v14281_v41 = vor.u32 %v19352_v55, %v14278_v34  ;;  %v14473_v5 = vor.u32 %v19400_v23, %v14470_v59  ;;  %v12042_v53 = vpop.f32.mrf.mxu3  ;;  %v19436_v55 = vld [vmem:[%s30071_s5 + $0x344] sm:$0xf]  ;;  %v14614_v34 = vld [vmem:[%s30071_s5 + $0x358] sm:$0xf0]  ;;  %v14233_v52 = vor.u32 %v19340_v57, %v14230_v45  ;;  %v19334_v3 = vld [vmem:[%s30071_s5 + $0x14] sm:$0xf] }
 0x65c   : > { %v12638_v46 = vpack.c.bf16 %v12632_v2, %v12632_v2  ;;  %v19382_v23 = vld [vmem:[%s30071_s5 + $0x194] sm:$0xf]  ;;  %v14398_v59 = vld [vmem:[%s30071_s5 + $0x1a8] sm:$0xf0]  ;;  %v14617_v63 = vor.u32 %v19436_v55, %v14614_v34  ;;  %v19664_v2 = vld [vmem:[%s30071_s5 + $0xa64] sm:$0xf] }
 0x65d   : > { %13061 = vmatpush.bf16.msrb.mxu2 %v20550_v21  ;;  %v19394_v21 = vld [vmem:[%s30071_s5 + $0x1f4] sm:$0xf]  ;;  %v15310_v57 = vld [vmem:[%s30071_s5 + $0x8c8] sm:$0xf0]  ;;  %v19604_v34 = vld [vmem:[%s30071_s5 + $0x884] sm:$0xf] }
 0x65e   : > { %12269 = vmatpush.bf16.msrb.mxu0 %v14329_v11  ;;  %v14665_v11 = vor.u32 %v19448_v9, %v14662_v27  ;;  %v19430_v9 = vld [vmem:[%s30071_s5 + $0x314] sm:$0xf]  ;;  %v19568_v27 = vld [vmem:[%s30071_s5 + $0x764] sm:$0xf] }
 0x65f   : > { %12282 = vmatpush.bf16.msrb.mxu1 %v14521_v31  ;;  %12295 = vmatpush.bf16.msrb.mxu3 %v14713_v54  ;;  %v14446_v31 = vld [vmem:[%s30071_s5 + $0x208] sm:$0xf0]  ;;  %v29027_v54 = vadd.f32 %v12042_v53, %v12030_v18  ;;  %v15142_v18 = vld [vmem:[%s30071_s5 + $0x778] sm:$0xf0]  ;;  %v19562_v53 = vld [vmem:[%s30071_s5 + $0x734] sm:$0xf] }
 0x660   : > { %v14449_v7 = vor.u32 %v19394_v21, %v14446_v31  ;;  %v14401_v21 = vor.u32 %v19382_v23, %v14398_v59  ;;  %v15145_v31 = vor.u32 %v19568_v27, %v15142_v18  ;;  %v19658_v45 = vld [vmem:[%s30071_s5 + $0xa34] sm:$0xf]  ;;  %v15070_v59 = vld [vmem:[%s30071_s5 + $0x6e8] sm:$0xf0] }
 0x661   : > { %13062 = vmatpush.bf16.msrb.mxu2 %v20549_v8  ;;  %v19388_v8 = vld [vmem:[%s30071_s5 + $0x1c4] sm:$0xf]  ;;  %v19646_v27 = vld [vmem:[%s30071_s5 + $0x9d4] sm:$0xf]  ;;  %v15454_v18 = vld [vmem:[%s30071_s5 + $0x9e8] sm:$0xf0] }
 0x662   : > { %12270 = vmatpush.bf16.msrb.mxu0 %v14305_v15  ;;  %v12031_v15 = vpop.f32.mrf.mxu1 }
 0x663   : > { %12283 = vmatpush.bf16.msrb.mxu1 %v14497_v0  ;;  %12296 = vmatpush.bf16.msrb.mxu3 %v14689_v24  ;;  %v14422_v0 = vld [vmem:[%s30071_s5 + $0x1d8] sm:$0xf0]  ;;  %v14206_v24 = vld [vmem:[%s30071_s5 + $0x28] sm:$0xf0]  ;;  %v12044_v1 = vpop.f32.mrf.mxu3 }
 0x664   : > { %v14425_v10 = vor.u32 %v19388_v8, %v14422_v0  ;;  %v14209_v44 = vor.u32 %v19334_v3, %v14206_v24  ;;  %v19556_v8 = vld [vmem:[%s30071_s5 + $0x704] sm:$0xf]  ;;  %v15094_v0 = vld [vmem:[%s30071_s5 + $0x718] sm:$0xf0] }
 0x665   : > { %13063 = vmatpush.bf16.msrb.mxu2 %v20548_v40  ;;  %v19616_v40 = vld [vmem:[%s30071_s5 + $0x8e4] sm:$0xf]  ;;  %v15097_v24 = vor.u32 %v19556_v8, %v15094_v0  ;;  %v19634_v8 = vld [vmem:[%s30071_s5 + $0x974] sm:$0xf]  ;;  %v15406_v0 = vld [vmem:[%s30071_s5 + $0x988] sm:$0xf0] }
 0x666   : > { %12271 = vmatpush.bf16.msrb.mxu0 %v14281_v41  ;;  %v14590_v41 = vld [vmem:[%s30071_s5 + $0x328] sm:$0xf0]  ;;  %v19652_v3 = vld [vmem:[%s30071_s5 + $0xa04] sm:$0xf] }
 0x667   : > { %12284 = vmatpush.bf16.msrb.mxu1 %v14473_v5  ;;  %12297 = vmatpush.bf16.msrb.mxu3 %v14665_v11  ;;  %v15334_v5 = vld [vmem:[%s30071_s5 + $0x8f8] sm:$0xf0]  ;;  %v14593_v47 = vor.u32 %v19430_v9, %v14590_v41  ;;  %v15262_v9 = vld [vmem:[%s30071_s5 + $0x868] sm:$0xf0]  ;;  %v19544_v1 = vld [vmem:[%s30071_s5 + $0x6a4] sm:$0xf] }
 0x668   : > { %13064 = vmatmul.bf16.vlgmr.msrb.gmra.mxu2 %v12638_v46  ;;  %v15526_v11 = vld [vmem:[%s30071_s5 + $0xa78] sm:$0xf0]  ;;  %v15337_v48 = vor.u32 %v19616_v40, %v15334_v5  ;;  %v15502_v46 = vld [vmem:[%s30071_s5 + $0xa48] sm:$0xf0]  ;;  %v12056_v40 = vadd.f32 %v27757_v19, %v29027_v54 }
 0x669   : > { %v15529_v50 = vor.u32 %v19664_v2, %v15526_v11  ;;  %v15505_v55 = vor.u32 %v19658_v45, %v15502_v46  ;;  %v15238_v19 = vld [vmem:[%s30071_s5 + $0x838] sm:$0xf0]  ;;  %v15022_v45 = vld [vmem:[%s30071_s5 + $0x688] sm:$0xf0] }
 0x66a   : > { %12272 = vmatpush.bf16.msrb.mxu0 %v14257_v17  ;;  %v15118_v17 = vld [vmem:[%s30071_s5 + $0x748] sm:$0xf0] }
 0x66b   : > { %12285 = vmatpush.bf16.msrb.mxu1 %v14449_v7  ;;  %12298 = vmatpush.bf16.msrb.mxu3 %v14641_v12  ;;  %v19610_v7 = vld [vmem:[%s30071_s5 + $0x8b4] sm:$0xf]  ;;  %v15121_v15 = vor.u32 %v19562_v53, %v15118_v17 }
 0x66c   : > { %v15313_v12 = vor.u32 %v19610_v7, %v15310_v57  ;;  %v19538_v57 = vld [vmem:[%s30071_s5 + $0x674] sm:$0xf] }
 0x66e   : > { %12273 = vmatpush.bf16.msrb.mxu0 %v14233_v52  ;;  %v15286_v52 = vld [vmem:[%s30071_s5 + $0x898] sm:$0xf0] }
 0x66f   : > { %12286 = vmatpush.bf16.msrb.mxu1 %v14425_v10  ;;  %12299 = vmatpush.bf16.msrb.mxu3 %v14617_v63  ;;  %v15478_v10 = vld [vmem:[%s30071_s5 + $0xa18] sm:$0xf0]  ;;  %v15289_v23 = vor.u32 %v19604_v34, %v15286_v52 }
 0x670   : > { %v15481_v63 = vor.u32 %v19652_v3, %v15478_v10  ;;  %v19532_v3 = vld [vmem:[%s30071_s5 + $0x644] sm:$0xf]  ;;  %v14998_v10 = vld [vmem:[%s30071_s5 + $0x658] sm:$0xf0] }
 0x672   : > { %12274 = vmatpush.bf16.msrb.mxu0 %v14209_v44  ;;  %v15046_v44 = vld [vmem:[%s30071_s5 + $0x6b8] sm:$0xf0]  ;;  %v12068_v2 = vpop.f32.mrf.mxu0 }
 0x673   : > { %12287 = vmatpush.bf16.msrb.mxu1 %v14401_v21  ;;  %12300 = vmatpush.bf16.msrb.mxu3 %v14593_v47  ;;  %v12081_v11 = vpop.f32.mrf.mxu1  ;;  %v15457_v21 = vor.u32 %v19646_v27, %v15454_v18  ;;  %v12069_v54 = vadd.f32 %v12068_v2, %v12056_v40  ;;  %v19640_v47 = vld [vmem:[%s30071_s5 + $0x9a4] sm:$0xf]  ;;  %v15049_v17 = vor.u32 %v19544_v1, %v15046_v44  ;;  %v15382_v27 = vld [vmem:[%s30071_s5 + $0x958] sm:$0xf0]  ;;  %v19574_v1 = vld [vmem:[%s30071_s5 + $0x794] sm:$0xf] }
 0x674   : > { %v15001_v18 = vor.u32 %v19532_v3, %v14998_v10  ;;  %v15166_v44 = vld [vmem:[%s30071_s5 + $0x7a8] sm:$0xf0] }
 0x675   : > { %12275 = vmatmul.bf16.vlgmr.msrb.gmra.mxu0 %v22036_v62  ;;  %v29122_v62 = vpop.f32.mrf.mxu2 }
 0x676   : > { %12319 = vmatpush.bf16.msra.mxu0 %v15145_v31  ;;  %12288 = vmatmul.bf16.vlgmr.msrb.gmra.mxu1 %v22038_v42  ;;  %v19550_v42 = vld [vmem:[%s30071_s5 + $0x6d4] sm:$0xf]  ;;  %v19592_v31 = vld [vmem:[%s30071_s5 + $0x824] sm:$0xf] }
 0x677   : > { %12332 = vmatpush.bf16.msra.mxu1 %v15337_v48  ;;  %12345 = vmatpush.bf16.msra.mxu3 %v15529_v50  ;;  %v15073_v41 = vor.u32 %v19550_v42, %v15070_v59  ;;  %v15430_v48 = vld [vmem:[%s30071_s5 + $0x9b8] sm:$0xf0]  ;;  %v12082_v50 = vadd.f32 %v12081_v11, %v12069_v54  ;;  %v15241_v7 = vor.u32 %v19592_v31, %v15238_v19  ;;  %v19622_v11 = vld [vmem:[%s30071_s5 + $0x914] sm:$0xf]  ;;  %v15358_v19 = vld [vmem:[%s30071_s5 + $0x928] sm:$0xf0] }
 0x678   : > { %12301 = vmatmul.bf16.vlgmr.msrb.gmra.mxu3 %v22040_v26  ;;  %v19598_v26 = vld [vmem:[%s30071_s5 + $0x854] sm:$0xf]  ;;  %v15433_v46 = vor.u32 %v19640_v47, %v15430_v48  ;;  %v15409_v59 = vor.u32 %v19634_v8, %v15406_v0  ;;  %v15910_v31 = vld [vmem:[%s30071_s5 + $0xd78] sm:$0xf0]  ;;  %v19808_v54 = vld [vmem:[%s30071_s5 + $0xee4] sm:$0xf] }
 0x679   : > { %v15265_v5 = vor.u32 %v19598_v26, %v15262_v9  ;;  %v15190_v26 = vld [vmem:[%s30071_s5 + $0x7d8] sm:$0xf0]  ;;  %v19628_v9 = vld [vmem:[%s30071_s5 + $0x944] sm:$0xf]  ;;  %v19802_v0 = vld [vmem:[%s30071_s5 + $0xeb4] sm:$0xf] }
 0x67a   : > { %12320 = vmatpush.bf16.msra.mxu0 %v15121_v15  ;;  %v19586_v15 = vld [vmem:[%s30071_s5 + $0x7f4] sm:$0xf]  ;;  %v15385_v2 = vor.u32 %v19628_v9, %v15382_v27  ;;  %v16102_v47 = vld [vmem:[%s30071_s5 + $0xef8] sm:$0xf0]  ;;  %v19844_v9 = vld [vmem:[%s30071_s5 + $0x1004] sm:$0xf] }
 0x67b   : > { %12333 = vmatpush.bf16.msra.mxu1 %v15313_v12  ;;  %12346 = vmatpush.bf16.msra.mxu3 %v15505_v55  ;;  %v15214_v12 = vld [vmem:[%s30071_s5 + $0x808] sm:$0xf0]  ;;  %v15025_v55 = vor.u32 %v19538_v57, %v15022_v45  ;;  %v12094_v34 = vpop.f32.mrf.mxu3  ;;  %v12083_v42 = vpop.f32.mrf.mxu1  ;;  %v15361_v45 = vor.u32 %v19622_v11, %v15358_v19  ;;  %v16246_v27 = vld [vmem:[%s30071_s5 + $0x1018] sm:$0xf0]  ;;  %v19736_v19 = vld [vmem:[%s30071_s5 + $0xca4] sm:$0xf] }
 0x67c   : > { %v15217_v52 = vor.u32 %v19586_v15, %v15214_v12  ;;  %v19754_v15 = vld [vmem:[%s30071_s5 + $0xd34] sm:$0xf]  ;;  %v15886_v12 = vld [vmem:[%s30071_s5 + $0xd48] sm:$0xf0]  ;;  %v15862_v42 = vld [vmem:[%s30071_s5 + $0xd18] sm:$0xf0] }
 0x67d   : > { %v12421_v53 = vpop.f32.mrf.mxu2  ;;  %v15889_v3 = vor.u32 %v19754_v15, %v15886_v12  ;;  %v19730_v12 = vld [vmem:[%s30071_s5 + $0xc74] sm:$0xf] }
 0x67e   : > { %12321 = vmatpush.bf16.msra.mxu0 %v15097_v24  ;;  %v29186_v24 = vadd.f32 %v12094_v34, %v12082_v50  ;;  %v19856_v53 = vld [vmem:[%s30071_s5 + $0x1064] sm:$0xf]  ;;  %v19850_v34 = vld [vmem:[%s30071_s5 + $0x1034] sm:$0xf] }
 0x67f   : > { %12334 = vmatpush.bf16.msra.mxu1 %v15289_v23  ;;  %12347 = vmatpush.bf16.msra.mxu3 %v15481_v63  ;;  %v12070_v23 = vpop.f32.mrf.mxu0  ;;  %v19580_v63 = vld [vmem:[%s30071_s5 + $0x7c4] sm:$0xf] }
 0x680   : > { %v15193_v40 = vor.u32 %v19580_v63, %v15190_v26  ;;  %v19748_v23 = vld [vmem:[%s30071_s5 + $0xd04] sm:$0xf]  ;;  %v16054_v26 = vld [vmem:[%s30071_s5 + $0xe98] sm:$0xf0] }
 0x681   : > { %v19796_v63 = vld [vmem:[%s30071_s5 + $0xe84] sm:$0xf] }
 0x682   : > { %12322 = vmatpush.bf16.msra.mxu0 %v15073_v41  ;;  %v19526_v41 = vld [vmem:[%s30071_s5 + $0x614] sm:$0xf] }
 0x683   : > { %12335 = vmatpush.bf16.msra.mxu1 %v15265_v5  ;;  %12348 = vmatpush.bf16.msra.mxu3 %v15457_v21  ;;  %v14974_v5 = vld [vmem:[%s30071_s5 + $0x628] sm:$0xf0]  ;;  %v19760_v21 = vld [vmem:[%s30071_s5 + $0xd64] sm:$0xf]  ;;  %v12096_v50 = vpop.f32.mrf.mxu3 }
 0x684   : > { %v14977_v48 = vor.u32 %v19526_v41, %v14974_v5  ;;  %v15913_v57 = vor.u32 %v19760_v21, %v15910_v31  ;;  %v16057_v41 = vor.u32 %v19796_v63, %v16054_v26  ;;  %v16249_v5 = vor.u32 %v19844_v9, %v16246_v27  ;;  %v19832_v50 = vld [vmem:[%s30071_s5 + $0xfa4] sm:$0xf]  ;;  %v15766_v63 = vld [vmem:[%s30071_s5 + $0xc58] sm:$0xf0] }
 0x685   : > { %v12108_v21 = vadd.f32 %v27965_v43, %v29186_v24  ;;  %v16006_v43 = vld [vmem:[%s30071_s5 + $0xe38] sm:$0xf0] }
 0x686   : > { %12323 = vmatpush.bf16.msra.mxu0 %v15049_v17  ;;  %v16294_v17 = vld [vmem:[%s30071_s5 + $0x1078] sm:$0xf0] }
 0x687   : > { %12336 = vmatpush.bf16.msra.mxu1 %v15241_v7  ;;  %12349 = vmatpush.bf16.msra.mxu3 %v15433_v46  ;;  %v15169_v7 = vor.u32 %v19574_v1, %v15166_v44  ;;  %v16105_v46 = vor.u32 %v19808_v54, %v16102_v47  ;;  %v16297_v8 = vor.u32 %v19856_v53, %v16294_v17  ;;  %v16030_v1 = vld [vmem:[%s30071_s5 + $0xe68] sm:$0xf0]  ;;  %v19838_v44 = vld [vmem:[%s30071_s5 + $0xfd4] sm:$0xf]  ;;  %v15814_v54 = vld [vmem:[%s30071_s5 + $0xcb8] sm:$0xf0] }
 0x688   : > { %v19784_v53 = vld [vmem:[%s30071_s5 + $0xe24] sm:$0xf] }
 0x689   : > { %v16009_v15 = vor.u32 %v19784_v53, %v16006_v43  ;;  %v20000_v53 = vld [vmem:[%s30071_s5 + $0x14e4] sm:$0xf]  ;;  %v16870_v43 = vld [vmem:[%s30071_s5 + $0x14f8] sm:$0xf0] }
 0x68a   : > { %12324 = vmatpush.bf16.msra.mxu0 %v15025_v55  ;;  %v16078_v55 = vld [vmem:[%s30071_s5 + $0xec8] sm:$0xf0] }
 0x68b   : > { %12337 = vmatpush.bf16.msra.mxu1 %v15217_v52  ;;  %12350 = vmatpush.bf16.msra.mxu3 %v15409_v59  ;;  %v16270_v52 = vld [vmem:[%s30071_s5 + $0x1048] sm:$0xf0]  ;;  %v16081_v10 = vor.u32 %v19802_v0, %v16078_v55  ;;  %v19778_v55 = vld [vmem:[%s30071_s5 + $0xdf4] sm:$0xf] }
 0x68c   : > { %v16273_v59 = vor.u32 %v19850_v34, %v16270_v52  ;;  %v15982_v34 = vld [vmem:[%s30071_s5 + $0xe08] sm:$0xf0]  ;;  %v19826_v52 = vld [vmem:[%s30071_s5 + $0xf74] sm:$0xf] }
 0x68e   : > { %12325 = vmatpush.bf16.msra.mxu0 %v15001_v18  ;;  %v15865_v18 = vor.u32 %v19748_v23, %v15862_v42  ;;  %v15985_v42 = vor.u32 %v19778_v55, %v15982_v34  ;;  %v19994_v55 = vld [vmem:[%s30071_s5 + $0x14b4] sm:$0xf]  ;;  %v16846_v34 = vld [vmem:[%s30071_s5 + $0x14c8] sm:$0xf0] }
 0x68f   : > { %12338 = vmatpush.bf16.msra.mxu1 %v15193_v40  ;;  %12351 = vmatpush.bf16.msra.mxu3 %v15385_v2  ;;  %v15838_v40 = vld [vmem:[%s30071_s5 + $0xce8] sm:$0xf0] }
 0x690   : > { %v16222_v2 = vld [vmem:[%s30071_s5 + $0xfe8] sm:$0xf0] }
 0x692   : > { %12326 = vmatpush.bf16.msra.mxu0 %v14977_v48  ;;  %v12120_v47 = vpop.f32.mrf.mxu0  ;;  %v16225_v48 = vor.u32 %v19838_v44, %v16222_v2  ;;  %v15742_v2 = vld [vmem:[%s30071_s5 + $0xc28] sm:$0xf0] }
 0x693   : > { %12339 = vmatpush.bf16.msra.mxu1 %v15169_v7  ;;  %12352 = vmatpush.bf16.msra.mxu3 %v15361_v45  ;;  %v12121_v24 = vadd.f32 %v12120_v47, %v12108_v21  ;;  %v12133_v17 = vpop.f32.mrf.mxu1  ;;  %v16198_v7 = vld [vmem:[%s30071_s5 + $0xfb8] sm:$0xf0]  ;;  %v15817_v45 = vor.u32 %v19736_v19, %v15814_v54  ;;  %v15934_v21 = vld [vmem:[%s30071_s5 + $0xda8] sm:$0xf0]  ;;  %v19814_v19 = vld [vmem:[%s30071_s5 + $0xf14] sm:$0xf] }
 0x694   : > { %v16201_v0 = vor.u32 %v19832_v50, %v16198_v7  ;;  %v19952_v54 = vld [vmem:[%s30071_s5 + $0x1364] sm:$0xf]  ;;  %v16678_v47 = vld [vmem:[%s30071_s5 + $0x1378] sm:$0xf0] }
 0x695   : > { %12327 = vmatmul.bf16.vlgmr.msra.gmra.mxu0 %v22173_v61  ;;  %v29275_v61 = vpop.f32.mrf.mxu2  ;;  %v17062_v50 = vld [vmem:[%s30071_s5 + $0x1678] sm:$0xf0] }
 0x696   : > { %12371 = vmatpush.bf16.msrb.mxu0 %v15913_v57  ;;  %12340 = vmatmul.bf16.vlgmr.msra.gmra.mxu1 %v22181_v29  ;;  %v19742_v29 = vld [vmem:[%s30071_s5 + $0xcd4] sm:$0xf] }
 0x697   : > { %12384 = vmatpush.bf16.msrb.mxu1 %v16105_v46  ;;  %12397 = vmatpush.bf16.msrb.mxu3 %v16297_v8  ;;  %v15841_v11 = vor.u32 %v19742_v29, %v15838_v40  ;;  %v12134_v46 = vadd.f32 %v12133_v17, %v12121_v24  ;;  %v15790_v8 = vld [vmem:[%s30071_s5 + $0xc88] sm:$0xf0]  ;;  %v19820_v40 = vld [vmem:[%s30071_s5 + $0xf44] sm:$0xf] }
 0x698   : > { %12353 = vmatmul.bf16.vlgmr.msra.gmra.mxu3 %v22376_v30  ;;  %v19790_v30 = vld [vmem:[%s30071_s5 + $0xe54] sm:$0xf]  ;;  %v20048_v17 = vld [vmem:[%s30071_s5 + $0x1664] sm:$0xf] }
 0x699   : > { %v16033_v31 = vor.u32 %v19790_v30, %v16030_v1  ;;  %v19718_v1 = vld [vmem:[%s30071_s5 + $0xc14] sm:$0xf] }
 0x69a   : > { %12372 = vmatpush.bf16.msrb.mxu0 %v15889_v3  ;;  %v16174_v3 = vld [vmem:[%s30071_s5 + $0xf88] sm:$0xf0]  ;;  %v12122_v9 = vpop.f32.mrf.mxu0  ;;  %v15745_v24 = vor.u32 %v19718_v1, %v15742_v2 }
 0x69b   : > { %12385 = vmatpush.bf16.msrb.mxu1 %v16081_v10  ;;  %12398 = vmatpush.bf16.msrb.mxu3 %v16273_v59  ;;  %v15793_v10 = vor.u32 %v19730_v12, %v15790_v8  ;;  %v12146_v23 = vpop.f32.mrf.mxu3  ;;  %v19724_v59 = vld [vmem:[%s30071_s5 + $0xc44] sm:$0xf]  ;;  %v16177_v27 = vor.u32 %v19826_v52, %v16174_v3  ;;  %v12135_v29 = vpop.f32.mrf.mxu1  ;;  %v19946_v12 = vld [vmem:[%s30071_s5 + $0x1334] sm:$0xf]  ;;  %v16654_v8 = vld [vmem:[%s30071_s5 + $0x1348] sm:$0xf0] }
 0x69c   : > { %v29339_v26 = vadd.f32 %v12146_v23, %v12134_v46  ;;  %v15769_v30 = vor.u32 %v19724_v59, %v15766_v63  ;;  %v20042_v52 = vld [vmem:[%s30071_s5 + $0x1634] sm:$0xf]  ;;  %v17038_v3 = vld [vmem:[%s30071_s5 + $0x1648] sm:$0xf0]  ;;  %v16849_v23 = vor.u32 %v19994_v55, %v16846_v34  ;;  %v16630_v59 = vld [vmem:[%s30071_s5 + $0x1318] sm:$0xf0] }
 0x69d   : > { %v12473_v57 = vpop.f32.mrf.mxu2  ;;  %v17041_v63 = vor.u32 %v20042_v52, %v17038_v3  ;;  %v19988_v9 = vld [vmem:[%s30071_s5 + $0x1484] sm:$0xf]  ;;  %v16798_v1 = vld [vmem:[%s30071_s5 + $0x1468] sm:$0xf0]  ;;  %v20018_v55 = vld [vmem:[%s30071_s5 + $0x1574] sm:$0xf] }
 0x69e   : > { %12373 = vmatpush.bf16.msrb.mxu0 %v15865_v18  ;;  %v19772_v18 = vld [vmem:[%s30071_s5 + $0xdc4] sm:$0xf]  ;;  %v16990_v2 = vld [vmem:[%s30071_s5 + $0x15e8] sm:$0xf0] }
 0x69f   : > { %12386 = vmatpush.bf16.msrb.mxu1 %v16057_v41  ;;  %12399 = vmatpush.bf16.msrb.mxu3 %v16249_v5  ;;  %v15958_v41 = vld [vmem:[%s30071_s5 + $0xdd8] sm:$0xf0]  ;;  %v16942_v34 = vld [vmem:[%s30071_s5 + $0x1588] sm:$0xf0] }
 0x6a0   : > { %v16150_v5 = vld [vmem:[%s30071_s5 + $0xf58] sm:$0xf0]  ;;  %v15961_v44 = vor.u32 %v19772_v18, %v15958_v41  ;;  %v20036_v18 = vld [vmem:[%s30071_s5 + $0x1604] sm:$0xf] }
 0x6a1   : > { %v17014_v41 = vld [vmem:[%s30071_s5 + $0x1618] sm:$0xf0] }
 0x6a2   : > { %12374 = vmatpush.bf16.msrb.mxu0 %v15841_v11  ;;  %v19766_v11 = vld [vmem:[%s30071_s5 + $0xd94] sm:$0xf] }
 0x6a3   : > { %12387 = vmatpush.bf16.msrb.mxu1 %v16033_v31  ;;  %12400 = vmatpush.bf16.msrb.mxu3 %v16225_v48  ;;  %v16153_v31 = vor.u32 %v19820_v40, %v16150_v5  ;;  %v16126_v48 = vld [vmem:[%s30071_s5 + $0xf28] sm:$0xf0]  ;;  %v12148_v7 = vpop.f32.mrf.mxu3  ;;  %v15937_v57 = vor.u32 %v19766_v11, %v15934_v21 }
 0x6a4   : > { %v16129_v46 = vor.u32 %v19814_v19, %v16126_v48  ;;  %v16606_v5 = vld [vmem:[%s30071_s5 + $0x12e8] sm:$0xf0]  ;;  %v16582_v19 = vld [vmem:[%s30071_s5 + $0x12b8] sm:$0xf0]  ;;  %v19976_v48 = vld [vmem:[%s30071_s5 + $0x1424] sm:$0xf] }
 0x6a6   : > { %12375 = vmatpush.bf16.msrb.mxu0 %v15817_v45  ;;  %v16681_v45 = vor.u32 %v19952_v54, %v16678_v47  ;;  %v12160_v54 = vadd.f32 %v28161_v14, %v29339_v26 }
 0x6a7   : > { %12388 = vmatpush.bf16.msrb.mxu1 %v16009_v15  ;;  %12401 = vmatpush.bf16.msrb.mxu3 %v16201_v0  ;;  %v16873_v15 = vor.u32 %v20000_v53, %v16870_v43  ;;  %v17065_v0 = vor.u32 %v20048_v17, %v17062_v50  ;;  %v16774_v53 = vld [vmem:[%s30071_s5 + $0x1438] sm:$0xf0]  ;;  %v20024_v17 = vld [vmem:[%s30071_s5 + $0x15a4] sm:$0xf] }
 0x6a8   : > { %v16966_v50 = vld [vmem:[%s30071_s5 + $0x15b8] sm:$0xf0] }
 0x6aa   : > { %12376 = vmatpush.bf16.msrb.mxu0 %v15793_v10  ;;  %v16657_v10 = vor.u32 %v19946_v12, %v16654_v8  ;;  %v16969_v12 = vor.u32 %v20024_v17, %v16966_v50  ;;  %v19970_v8 = vld [vmem:[%s30071_s5 + $0x13f4] sm:$0xf] }
 0x6ab   : > { %12389 = vmatpush.bf16.msrb.mxu1 %v15985_v42  ;;  %12402 = vmatpush.bf16.msrb.mxu3 %v16177_v27  ;;  %v19940_v42 = vld [vmem:[%s30071_s5 + $0x1304] sm:$0xf]  ;;  %v16822_v27 = vld [vmem:[%s30071_s5 + $0x1498] sm:$0xf0]  ;;  %v29428_v29 = vpop.f32.mrf.mxu2 }
 0x6ac   : > { %v16825_v40 = vor.u32 %v19988_v9, %v16822_v27  ;;  %v16726_v9 = vld [vmem:[%s30071_s5 + $0x13d8] sm:$0xf0] }
 0x6ae   : > { %12377 = vmatpush.bf16.msrb.mxu0 %v15769_v30  ;;  %v17017_v30 = vor.u32 %v20036_v18, %v17014_v41 }
 0x6af   : > { %12390 = vmatpush.bf16.msrb.mxu1 %v15961_v44  ;;  %12403 = vmatpush.bf16.msrb.mxu3 %v16153_v31  ;;  %v20030_v44 = vld [vmem:[%s30071_s5 + $0x15d4] sm:$0xf]  ;;  %v19928_v31 = vld [vmem:[%s30071_s5 + $0x12a4] sm:$0xf] }
 0x6b0   : > { %v16993_v47 = vor.u32 %v20030_v44, %v16990_v2  ;;  %v16585_v26 = vor.u32 %v19928_v31, %v16582_v19  ;;  %v16702_v44 = vld [vmem:[%s30071_s5 + $0x13a8] sm:$0xf0]  ;;  %v17446_v31 = vld [vmem:[%s30071_s5 + $0x1978] sm:$0xf0] }
 0x6b1   : > { %v16894_v19 = vld [vmem:[%s30071_s5 + $0x1528] sm:$0xf0] }
 0x6b2   : > { %12378 = vmatpush.bf16.msrb.mxu0 %v15745_v24  ;;  %v12172_v43 = vpop.f32.mrf.mxu0 }
 0x6b3   : > { %12391 = vmatpush.bf16.msrb.mxu1 %v15937_v57  ;;  %12404 = vmatpush.bf16.msrb.mxu3 %v16129_v46  ;;  %v12185_v24 = vpop.f32.mrf.mxu1  ;;  %v12173_v14 = vadd.f32 %v12172_v43, %v12160_v54  ;;  %v12525_v7 = vpop.f32.mrf.mxu2  ;;  %v16777_v57 = vor.u32 %v19976_v48, %v16774_v53  ;;  %v16558_v46 = vld [vmem:[%s30071_s5 + $0x1288] sm:$0xf0]  ;;  %v20192_v54 = vld [vmem:[%s30071_s5 + $0x1ae4] sm:$0xf]  ;;  %v17830_v43 = vld [vmem:[%s30071_s5 + $0x1c78] sm:$0xf0] }
 0x6b4   : > { %v20240_v53 = vld [vmem:[%s30071_s5 + $0x1c64] sm:$0xf]  ;;  %v20138_v7 = vld [vmem:[%s30071_s5 + $0x1934] sm:$0xf] }
 0x6b5   : > { %12379 = vmatmul.bf16.vlgmr.msrb.gmra.mxu0 %v22380_v20  ;;  %v16633_v20 = vor.u32 %v19940_v42, %v16630_v59  ;;  %v16945_v59 = vor.u32 %v20018_v55, %v16942_v34  ;;  %v20132_v34 = vld [vmem:[%s30071_s5 + $0x1904] sm:$0xf] }
 0x6b6   : > { %12423 = vmatpush.bf16.msra.mxu0 %v16681_v45  ;;  %12392 = vmatmul.bf16.vlgmr.msrb.gmra.mxu1 %v22684_v37  ;;  %v19934_v37 = vld [vmem:[%s30071_s5 + $0x12d4] sm:$0xf] }
 0x6b7   : > { %12436 = vmatpush.bf16.msra.mxu1 %v16873_v15  ;;  %12449 = vmatpush.bf16.msra.mxu3 %v17065_v0  ;;  %v16609_v11 = vor.u32 %v19934_v37, %v16606_v5  ;;  %v19922_v45 = vld [vmem:[%s30071_s5 + $0x1274] sm:$0xf]  ;;  %v12186_v15 = vadd.f32 %v12185_v24, %v12173_v14  ;;  %v16750_v0 = vld [vmem:[%s30071_s5 + $0x1408] sm:$0xf0] }
 0x6b8   : > { %12405 = vmatmul.bf16.vlgmr.msrb.gmra.mxu3 %v22686_v32  ;;  %v19982_v32 = vld [vmem:[%s30071_s5 + $0x1454] sm:$0xf]  ;;  %v16561_v52 = vor.u32 %v19922_v45, %v16558_v46  ;;  %v16753_v3 = vor.u32 %v19970_v8, %v16750_v0  ;;  %v17833_v45 = vor.u32 %v20240_v53, %v17830_v43  ;;  %v17806_v8 = vld [vmem:[%s30071_s5 + $0x1c48] sm:$0xf0] }
 0x6b9   : > { %v16801_v21 = vor.u32 %v19982_v32, %v16798_v1  ;;  %v19910_v5 = vld [vmem:[%s30071_s5 + $0x1214] sm:$0xf]  ;;  %v16510_v32 = vld [vmem:[%s30071_s5 + $0x1228] sm:$0xf0] }
 0x6ba   : > { %12424 = vmatpush.bf16.msra.mxu0 %v16657_v10  ;;  %v19916_v10 = vld [vmem:[%s30071_s5 + $0x1244] sm:$0xf]  ;;  %v12174_v18 = vpop.f32.mrf.mxu0  ;;  %v19958_v1 = vld [vmem:[%s30071_s5 + $0x1394] sm:$0xf]  ;;  %v16513_v48 = vor.u32 %v19910_v5, %v16510_v32 }
 0x6bb   : > { %12437 = vmatpush.bf16.msra.mxu1 %v16849_v23  ;;  %12450 = vmatpush.bf16.msra.mxu3 %v17041_v63  ;;  %v16534_v23 = vld [vmem:[%s30071_s5 + $0x1258] sm:$0xf0]  ;;  %v12198_v42 = vpop.f32.mrf.mxu3  ;;  %v19964_v63 = vld [vmem:[%s30071_s5 + $0x13c4] sm:$0xf]  ;;  %v12187_v41 = vpop.f32.mrf.mxu1  ;;  %v16705_v24 = vor.u32 %v19958_v1, %v16702_v44  ;;  %v20186_v46 = vld [vmem:[%s30071_s5 + $0x1ab4] sm:$0xf] }
 0x6bc   : > { %v29498_v27 = vadd.f32 %v12198_v42, %v12186_v15  ;;  %v16537_v37 = vor.u32 %v19916_v10, %v16534_v23  ;;  %v17614_v15 = vld [vmem:[%s30071_s5 + $0x1ac8] sm:$0xf0]  ;;  %v20180_v10 = vld [vmem:[%s30071_s5 + $0x1a84] sm:$0xf]  ;;  %v17590_v23 = vld [vmem:[%s30071_s5 + $0x1a98] sm:$0xf0] }
 0x6bd   : > { %v17617_v55 = vor.u32 %v20186_v46, %v17614_v15  ;;  %v20228_v42 = vld [vmem:[%s30071_s5 + $0x1c04] sm:$0xf]  ;;  %v17374_v18 = vld [vmem:[%s30071_s5 + $0x18e8] sm:$0xf0]  ;;  %v17350_v1 = vld [vmem:[%s30071_s5 + $0x18b8] sm:$0xf0] }
 0x6be   : > { %12425 = vmatpush.bf16.msra.mxu0 %v16633_v20  ;;  %v20012_v20 = vld [vmem:[%s30071_s5 + $0x1544] sm:$0xf]  ;;  %v12212_v44 = vadd.f32 %v28369_v58, %v29498_v27  ;;  %v20114_v43 = vld [vmem:[%s30071_s5 + $0x1874] sm:$0xf] }
 0x6bf   : > { %12438 = vmatpush.bf16.msra.mxu1 %v16825_v40  ;;  %12451 = vmatpush.bf16.msra.mxu3 %v17017_v30  ;;  %v16918_v40 = vld [vmem:[%s30071_s5 + $0x1558] sm:$0xf0]  ;;  %v16729_v30 = vor.u32 %v19964_v63, %v16726_v9  ;;  %v17593_v9 = vor.u32 %v20180_v10, %v17590_v23  ;;  %v20120_v32 = vld [vmem:[%s30071_s5 + $0x18a4] sm:$0xf] }
 0x6c0   : > { %v16921_v2 = vor.u32 %v20012_v20, %v16918_v40  ;;  %v17566_v20 = vld [vmem:[%s30071_s5 + $0x1a68] sm:$0xf0]  ;;  %v20222_v40 = vld [vmem:[%s30071_s5 + $0x1bd4] sm:$0xf]  ;;  %v17353_v27 = vor.u32 %v20120_v32, %v17350_v1  ;;  %v20108_v15 = vld [vmem:[%s30071_s5 + $0x1844] sm:$0xf] }
 0x6c1   : > { %v20204_v10 = vld [vmem:[%s30071_s5 + $0x1b44] sm:$0xf]  ;;  %v17686_v23 = vld [vmem:[%s30071_s5 + $0x1b58] sm:$0xf0] }
 0x6c2   : > { %12426 = vmatpush.bf16.msra.mxu0 %v16609_v11  ;;  %v20006_v11 = vld [vmem:[%s30071_s5 + $0x1514] sm:$0xf]  ;;  %v18406_v32 = vld [vmem:[%s30071_s5 + $0x20f8] sm:$0xf0] }
 0x6c3   : > { %12439 = vmatpush.bf16.msra.mxu1 %v16801_v21  ;;  %12452 = vmatpush.bf16.msra.mxu3 %v16993_v47  ;;  %v20144_v21 = vld [vmem:[%s30071_s5 + $0x1964] sm:$0xf]  ;;  %v17638_v47 = vld [vmem:[%s30071_s5 + $0x1af8] sm:$0xf0]  ;;  %v12200_v50 = vpop.f32.mrf.mxu3  ;;  %v16897_v14 = vor.u32 %v20006_v11, %v16894_v19 }
 0x6c4   : > { %v17449_v17 = vor.u32 %v20144_v21, %v17446_v31  ;;  %v20168_v11 = vld [vmem:[%s30071_s5 + $0x1a24] sm:$0xf]  ;;  %v17542_v21 = vld [vmem:[%s30071_s5 + $0x1a38] sm:$0xf0] }
 0x6c5   : > { %v20216_v19 = vld [vmem:[%s30071_s5 + $0x1ba4] sm:$0xf]  ;;  %v17545_v53 = vor.u32 %v20168_v11, %v17542_v21 }
 0x6c6   : > { %12427 = vmatpush.bf16.msra.mxu0 %v16585_v26  ;;  %v17641_v26 = vor.u32 %v20192_v54, %v17638_v47  ;;  %v17734_v54 = vld [vmem:[%s30071_s5 + $0x1bb8] sm:$0xf0] }
 0x6c7   : > { %12440 = vmatpush.bf16.msra.mxu1 %v16777_v57  ;;  %12453 = vmatpush.bf16.msra.mxu3 %v16969_v12  ;;  %v17422_v57 = vld [vmem:[%s30071_s5 + $0x1948] sm:$0xf0]  ;;  %v20234_v12 = vld [vmem:[%s30071_s5 + $0x1c34] sm:$0xf]  ;;  %v17737_v50 = vor.u32 %v20216_v19, %v17734_v54 }
 0x6c8   : > { %v17425_v0 = vor.u32 %v20138_v7, %v17422_v57  ;;  %v20210_v7 = vld [vmem:[%s30071_s5 + $0x1b74] sm:$0xf]  ;;  %v17710_v57 = vld [vmem:[%s30071_s5 + $0x1b88] sm:$0xf0] }
 0x6ca   : > { %12428 = vmatpush.bf16.msra.mxu0 %v16561_v52  ;;  %v17398_v52 = vld [vmem:[%s30071_s5 + $0x1918] sm:$0xf0] }
 0x6cb   : > { %12441 = vmatpush.bf16.msra.mxu1 %v16753_v3  ;;  %12454 = vmatpush.bf16.msra.mxu3 %v16945_v59  ;;  %v17809_v3 = vor.u32 %v20234_v12, %v17806_v8  ;;  %v17782_v59 = vld [vmem:[%s30071_s5 + $0x1c18] sm:$0xf0]  ;;  %v29581_v63 = vpop.f32.mrf.mxu2 }
 0x6cc   : > { %v17785_v41 = vor.u32 %v20228_v42, %v17782_v59  ;;  %v17302_v12 = vld [vmem:[%s30071_s5 + $0x1858] sm:$0xf0] }
 0x6cd   : > { %v17305_v59 = vor.u32 %v20108_v15, %v17302_v12  ;;  %v18550_v15 = vld [vmem:[%s30071_s5 + $0x2218] sm:$0xf0] }
 0x6ce   : > { %12429 = vmatpush.bf16.msra.mxu0 %v16537_v37  ;;  %v17758_v37 = vld [vmem:[%s30071_s5 + $0x1be8] sm:$0xf0] }
 0x6cf   : > { %12442 = vmatpush.bf16.msra.mxu1 %v16729_v30  ;;  %12455 = vmatpush.bf16.msra.mxu3 %v16921_v2  ;;  %v17761_v2 = vor.u32 %v20222_v40, %v17758_v37  ;;  %v20336_v40 = vld [vmem:[%s30071_s5 + $0x1f64] sm:$0xf]  ;;  %v18214_v37 = vld [vmem:[%s30071_s5 + $0x1f78] sm:$0xf0] }
 0x6d0   : > { %v18217_v21 = vor.u32 %v20336_v40, %v18214_v37 }
 0x6d2   : > { %12430 = vmatpush.bf16.msra.mxu0 %v16513_v48  ;;  %v12224_v31 = vpop.f32.mrf.mxu0 }
 0x6d3   : > { %12443 = vmatpush.bf16.msra.mxu1 %v16705_v24  ;;  %12456 = vmatpush.bf16.msra.mxu3 %v16897_v14  ;;  %v12225_v47 = vadd.f32 %v12224_v31, %v12212_v44  ;;  %v12237_v58 = vpop.f32.mrf.mxu1  ;;  %v12577_v48 = vpop.f32.mrf.mxu2  ;;  %v17326_v24 = vld [vmem:[%s30071_s5 + $0x1888] sm:$0xf0]  ;;  %v20162_v14 = vld [vmem:[%s30071_s5 + $0x19f4] sm:$0xf]  ;;  %v20432_v44 = vld [vmem:[%s30071_s5 + $0x2264] sm:$0xf] }
 0x6d4   : > { %v20378_v48 = vld [vmem:[%s30071_s5 + $0x20b4] sm:$0xf] }
 0x6d5   : > { %12431 = vmatmul.bf16.vlgmr.msra.gmra.mxu0 %v22984_v38  ;;  %v17401_v38 = vor.u32 %v20132_v34, %v17398_v52  ;;  %v17494_v34 = vld [vmem:[%s30071_s5 + $0x19d8] sm:$0xf0] }
 0x6d6   : > { %12475 = vmatpush.bf16.msrb.mxu0 %v17449_v17  ;;  %12444 = vmatmul.bf16.vlgmr.msra.gmra.mxu1 %v22986_v4  ;;  %v20126_v4 = vld [vmem:[%s30071_s5 + $0x18d4] sm:$0xf]  ;;  %v12238_v17 = vadd.f32 %v12237_v58, %v12225_v47  ;;  %v18190_v58 = vld [vmem:[%s30071_s5 + $0x1f48] sm:$0xf0] }
 0x6d7   : > { %12488 = vmatpush.bf16.msrb.mxu1 %v17641_v26  ;;  %12501 = vmatpush.bf16.msrb.mxu3 %v17833_v45  ;;  %v17377_v5 = vor.u32 %v20126_v4, %v17374_v18  ;;  %v17518_v26 = vld [vmem:[%s30071_s5 + $0x1a08] sm:$0xf0]  ;;  %v17329_v45 = vor.u32 %v20114_v43, %v17326_v24  ;;  %v20150_v18 = vld [vmem:[%s30071_s5 + $0x1994] sm:$0xf] }
 0x6d8   : > { %12457 = vmatmul.bf16.vlgmr.msra.gmra.mxu3 %v22992_v6  ;;  %v20174_v6 = vld [vmem:[%s30071_s5 + $0x1a54] sm:$0xf]  ;;  %v17521_v46 = vor.u32 %v20162_v14, %v17518_v26  ;;  %v17278_v4 = vld [vmem:[%s30071_s5 + $0x1828] sm:$0xf0]  ;;  %v20324_v14 = vld [vmem:[%s30071_s5 + $0x1f04] sm:$0xf] }
 0x6d9   : > { %v17569_v30 = vor.u32 %v20174_v6, %v17566_v20  ;;  %v17689_v6 = vor.u32 %v20204_v10, %v17686_v23  ;;  %v20198_v20 = vld [vmem:[%s30071_s5 + $0x1b14] sm:$0xf]  ;;  %v18574_v24 = vld [vmem:[%s30071_s5 + $0x2248] sm:$0xf0]  ;;  %v18166_v26 = vld [vmem:[%s30071_s5 + $0x1f18] sm:$0xf0] }
 0x6da   : > { %12476 = vmatpush.bf16.msrb.mxu0 %v17425_v0  ;;  %v17713_v0 = vor.u32 %v20210_v7, %v17710_v57  ;;  %v20330_v47 = vld [vmem:[%s30071_s5 + $0x1f34] sm:$0xf]  ;;  %v20372_v57 = vld [vmem:[%s30071_s5 + $0x2084] sm:$0xf]  ;;  %v18526_v10 = vld [vmem:[%s30071_s5 + $0x21e8] sm:$0xf0] }
 0x6db   : > { %12489 = vmatpush.bf16.msrb.mxu1 %v17617_v55  ;;  %12502 = vmatpush.bf16.msrb.mxu3 %v17809_v3  ;;  %v12250_v8 = vpop.f32.mrf.mxu3  ;;  %v20156_v55 = vld [vmem:[%s30071_s5 + $0x19c4] sm:$0xf]  ;;  %v12226_v3 = vpop.f32.mrf.mxu0  ;;  %v20426_v43 = vld [vmem:[%s30071_s5 + $0x2234] sm:$0xf] }
 0x6dc   : > { %v29651_v52 = vadd.f32 %v12250_v8, %v12238_v17  ;;  %v12239_v42 = vpop.f32.mrf.mxu1  ;;  %v18193_v17 = vor.u32 %v20330_v47, %v18190_v58  ;;  %v18577_v7 = vor.u32 %v20426_v43, %v18574_v24  ;;  %v20318_v8 = vld [vmem:[%s30071_s5 + $0x1ed4] sm:$0xf]  ;;  %v20300_v58 = vld [vmem:[%s30071_s5 + $0x1e44] sm:$0xf]  ;;  %v18262_v43 = vld [vmem:[%s30071_s5 + $0x1fd8] sm:$0xf0] }
 0x6dd   : > { %v20414_v3 = vld [vmem:[%s30071_s5 + $0x21d4] sm:$0xf] }
 0x6de   : > { %12477 = vmatpush.bf16.msrb.mxu0 %v17401_v38  ;;  %v20102_v38 = vld [vmem:[%s30071_s5 + $0x1814] sm:$0xf] }
 0x6df   : > { %12490 = vmatpush.bf16.msrb.mxu1 %v17593_v9  ;;  %12503 = vmatpush.bf16.msrb.mxu3 %v17785_v41  ;;  %v17497_v9 = vor.u32 %v20156_v55, %v17494_v34  ;;  %v17470_v41 = vld [vmem:[%s30071_s5 + $0x19a8] sm:$0xf0]  ;;  %v17281_v1 = vor.u32 %v20102_v38, %v17278_v4  ;;  %v18118_v38 = vld [vmem:[%s30071_s5 + $0x1eb8] sm:$0xf0]  ;;  %v20360_v4 = vld [vmem:[%s30071_s5 + $0x2024] sm:$0xf] }
 0x6e0   : > { %v17473_v11 = vor.u32 %v20150_v18, %v17470_v41  ;;  %v18334_v34 = vld [vmem:[%s30071_s5 + $0x2068] sm:$0xf0]  ;;  %v18310_v18 = vld [vmem:[%s30071_s5 + $0x2038] sm:$0xf0] }
 0x6e2   : > { %12478 = vmatpush.bf16.msrb.mxu0 %v17377_v5  ;;  %v17662_v5 = vld [vmem:[%s30071_s5 + $0x1b28] sm:$0xf0] }
 0x6e3   : > { %12491 = vmatpush.bf16.msrb.mxu1 %v17569_v30  ;;  %12504 = vmatpush.bf16.msrb.mxu3 %v17761_v2  ;;  %v20384_v30 = vld [vmem:[%s30071_s5 + $0x20e4] sm:$0xf]  ;;  %v18598_v2 = vld [vmem:[%s30071_s5 + $0x2278] sm:$0xf0]  ;;  %v12252_v31 = vpop.f32.mrf.mxu3  ;;  %v17665_v19 = vor.u32 %v20198_v20, %v17662_v5 }
 0x6e4   : > { %v18409_v54 = vor.u32 %v20384_v30, %v18406_v32  ;;  %v18502_v20 = vld [vmem:[%s30071_s5 + $0x21b8] sm:$0xf0]  ;;  %v18313_v30 = vor.u32 %v20360_v4, %v18310_v18  ;;  %v20306_v32 = vld [vmem:[%s30071_s5 + $0x1e74] sm:$0xf] }
 0x6e5   : > { %v20402_v31 = vld [vmem:[%s30071_s5 + $0x2174] sm:$0xf]  ;;  %v20547_v18 = vld [vmem:[%s30074_s8 + $0x78] sm:$0xff] }
 0x6e6   : > { %12479 = vmatpush.bf16.msrb.mxu0 %v17353_v27  ;;  %v18601_v27 = vor.u32 %v20432_v44, %v18598_v2 }
 0x6e7   : > { %12492 = vmatpush.bf16.msrb.mxu1 %v17545_v53  ;;  %12505 = vmatpush.bf16.msrb.mxu3 %v17737_v50  ;;  %v18382_v53 = vld [vmem:[%s30071_s5 + $0x20c8] sm:$0xf0] }
 0x6e8   : > { %v18385_v50 = vor.u32 %v20378_v48, %v18382_v53  ;;  %v20348_v53 = vld [vmem:[%s30071_s5 + $0x1fc4] sm:$0xf] }
 0x6ea   : > { %12480 = vmatpush.bf16.msrb.mxu0 %v17329_v45  ;;  %v18358_v45 = vld [vmem:[%s30071_s5 + $0x2098] sm:$0xf0] }
 0x6eb   : > { %12493 = vmatpush.bf16.msrb.mxu1 %v17521_v46  ;;  %12506 = vmatpush.bf16.msrb.mxu3 %v17713_v0  ;;  %v20420_v46 = vld [vmem:[%s30071_s5 + $0x2204] sm:$0xf]  ;;  %v18361_v12 = vor.u32 %v20372_v57, %v18358_v45  ;;  %v29740_v0 = vpop.f32.mrf.mxu2  ;;  %v18265_v45 = vor.u32 %v20348_v53, %v18262_v43 }
 0x6ec   : > { %v18553_v55 = vor.u32 %v20420_v46, %v18550_v15  ;;  %v20294_v46 = vld [vmem:[%s30071_s5 + $0x1e14] sm:$0xf]  ;;  %v18046_v15 = vld [vmem:[%s30071_s5 + $0x1e28] sm:$0xf0]  ;;  %v29898_v43 = vld [vmem:[%s30072_s6] sm:$0x3f] }
 0x6ee   : > { %12481 = vmatpush.bf16.msrb.mxu0 %v17305_v59  ;;  %v20312_v59 = vld [vmem:[%s30071_s5 + $0x1ea4] sm:$0xf] }
 0x6ef   : > { %12494 = vmatpush.bf16.msrb.mxu1 %v17497_v9  ;;  %12507 = vmatpush.bf16.msrb.mxu3 %v17689_v6  ;;  %v18529_v9 = vor.u32 %v20414_v3, %v18526_v10  ;;  %v20408_v6 = vld [vmem:[%s30071_s5 + $0x21a4] sm:$0xf]  ;;  %v18121_v37 = vor.u32 %v20312_v59, %v18118_v38  ;;  %v18049_v3 = vor.u32 %v20294_v46, %v18046_v15  ;;  %v20539_v59 = vld [vmem:[%s30074_s8 + $0x38] sm:$0xff]  ;;  %v20522_v38 = vld [vmem:[%s30071_s5 + $0x2534] sm:$0xf] }
 0x6f0   : > { %v18505_v2 = vor.u32 %v20408_v6, %v18502_v20  ;;  %v20538_v6 = vld [vmem:[%s30074_s8 + $0x30] sm:$0xff]  ;;  %v20516_v20 = vld [vmem:[%s30071_s5 + $0x2504] sm:$0xf] }
 0x6f1   : > { %v29917_v46 = vld [vmem:[%s30073_s7] sm:$0x3f] }
 0x6f2   : > { %12482 = vmatpush.bf16.msrb.mxu0 %v17281_v1  ;;  %v12276_v41 = vpop.f32.mrf.mxu0  ;;  %v18094_v1 = vld [vmem:[%s30071_s5 + $0x1e88] sm:$0xf0]  ;;  %v12612_v15 = vperm.slane %v29917_v46, 0 }
 0x6f3   : > { %12495 = vmatpush.bf16.msrb.mxu1 %v17473_v11  ;;  %12508 = vmatpush.bf16.msrb.mxu3 %v17665_v19  ;;  %v12289_v40 = vpop.f32.mrf.mxu1  ;;  %v13067_v44 = vpop.f32.mrf.mxu2  ;;  %v20354_v11 = vld [vmem:[%s30071_s5 + $0x1ff4] sm:$0xf]  ;;  %v18478_v19 = vld [vmem:[%s30071_s5 + $0x2188] sm:$0xf0] }
 0x6f4   : > { %v12290_v5 = vadd.f32 %v12289_v40, %v12276_v41  ;;  %v18481_v48 = vor.u32 %v20402_v31, %v18478_v19  ;;  %v18934_v40 = vld [vmem:[%s30071_s5 + $0x2518] sm:$0xf0]  ;;  %v20504_v44 = vld [vmem:[%s30071_s5 + $0x24a4] sm:$0xf] }
 0x6f5   : > { %12483 = vmatmul.bf16.vlgmr.msrb.gmra.mxu0 %v23289_v33  ;;  %v18169_v33 = vor.u32 %v20324_v14, %v18166_v26  ;;  %v18454_v14 = vld [vmem:[%s30071_s5 + $0x2158] sm:$0xf0] }
 0x6f6   : > { %12527 = vmatpush.bf16.msra.mxu0 %v18217_v21  ;;  %12496 = vmatmul.bf16.vlgmr.msrb.gmra.mxu1 %v23301_v49  ;;  %v18142_v49 = vld [vmem:[%s30071_s5 + $0x1ee8] sm:$0xf0] }
 0x6f7   : > { %12540 = vmatpush.bf16.msra.mxu1 %v18409_v54  ;;  %12553 = vmatpush.bf16.msra.mxu3 %v18601_v27  ;;  %v18145_v23 = vor.u32 %v20318_v8, %v18142_v49  ;;  %v18286_v21 = vld [vmem:[%s30071_s5 + $0x2008] sm:$0xf0]  ;;  %v18097_v54 = vor.u32 %v20306_v32, %v18094_v1  ;;  %v18070_v27 = vld [vmem:[%s30071_s5 + $0x1e58] sm:$0xf0]  ;;  %v20528_v49 = vld [vmem:[%s30071_s5 + $0x2564] sm:$0xf] }
 0x6f8   : > { %12509 = vmatmul.bf16.vlgmr.msrb.gmra.mxu3 %v23617_v25  ;;  %v20366_v25 = vld [vmem:[%s30071_s5 + $0x2054] sm:$0xf]  ;;  %v18289_v47 = vor.u32 %v20354_v11, %v18286_v21  ;;  %v18073_v57 = vor.u32 %v20300_v58, %v18070_v27  ;;  %v18238_v8 = vld [vmem:[%s30071_s5 + $0x1fa8] sm:$0xf0]  ;;  %v20536_v1 = vld [vmem:[%s30074_s8 + $0x20] sm:$0xff] }
 0x6f9   : > { %v18337_v42 = vor.u32 %v20366_v25, %v18334_v34  ;;  %v20390_v25 = vld [vmem:[%s30071_s5 + $0x2114] sm:$0xf]  ;;  %v18430_v34 = vld [vmem:[%s30071_s5 + $0x2128] sm:$0xf0]  ;;  %v20544_v21 = vld [vmem:[%s30074_s8 + $0x60] sm:$0xff] }
 0x6fa   : > { %12528 = vmatpush.bf16.msra.mxu0 %v18193_v17  ;;  %v12278_v17 = vpop.f32.mrf.mxu0  ;;  %v20510_v32 = vld [vmem:[%s30071_s5 + $0x24d4] sm:$0xf]  ;;  %v20535_v58 = vld [vmem:[%s30074_s8 + $0x18] sm:$0xff] }
 0x6fb   : > { %12541 = vmatpush.bf16.msra.mxu1 %v18385_v50  ;;  %12554 = vmatpush.bf16.msra.mxu3 %v18577_v7  ;;  %v12302_v24 = vpop.f32.mrf.mxu3  ;;  %v20396_v50 = vld [vmem:[%s30071_s5 + $0x2144] sm:$0xf]  ;;  %v12291_v7 = vpop.f32.mrf.mxu1  ;;  %v20498_v27 = vld [vmem:[%s30071_s5 + $0x2474] sm:$0xf] }
 0x6fc   : > { %v12303_v26 = vadd.f32 %v12302_v24, %v12290_v5  ;;  %v18937_v5 = vor.u32 %v20516_v20, %v18934_v40  ;;  %v12593_v24 = vperm.slane %v29898_v43, 0  ;;  %v20492_v7 = vld [vmem:[%s30071_s5 + $0x2444] sm:$0xf]  ;;  %v20571_v20 = vld [vmem:[%s30074_s8 + $0x138] sm:$0xff] }
 0x6fe   : > { %12529 = vmatpush.bf16.msra.mxu0 %v18169_v33  ;;  %v20342_v33 = vld [vmem:[%s30071_s5 + $0x1f94] sm:$0xf]  ;;  %v12316_v11 = vadd.f32 %v28773_v51, %v12303_v26  ;;  %v18862_v51 = vld [vmem:[%s30071_s5 + $0x2488] sm:$0xf0] }
 0x6ff   : > { %12542 = vmatpush.bf16.msra.mxu1 %v18361_v12  ;;  %12555 = vmatpush.bf16.msra.mxu3 %v18553_v55  ;;  %v18457_v12 = vor.u32 %v20396_v50, %v18454_v14  ;;  %v18982_v55 = vld [vmem:[%s30071_s5 + $0x2578] sm:$0xf0]  ;;  %v18241_v10 = vor.u32 %v20342_v33, %v18238_v8  ;;  %v12594_v14 = vperm.slane %v29898_v43, 1  ;;  %v18865_v26 = vor.u32 %v20498_v27, %v18862_v51  ;;  %v20542_v33 = vld [vmem:[%s30074_s8 + $0x50] sm:$0xff] }
 0x700   : > { %v20543_v50 = vld [vmem:[%s30074_s8 + $0x58] sm:$0xff]  ;;  %v12613_v8 = vperm.slane %v29917_v46, 1  ;;  %v20558_v27 = vld [vmem:[%s30074_s8 + $0xd0] sm:$0xff] }
 0x702   : > { %12530 = vmatpush.bf16.msra.mxu0 %v18145_v23  ;;  %v18985_v23 = vor.u32 %v20528_v49, %v18982_v55 }
 0x703   : > { %12543 = vmatpush.bf16.msra.mxu1 %v18337_v42  ;;  %12556 = vmatpush.bf16.msra.mxu3 %v18529_v9  ;;  %v18433_v42 = vor.u32 %v20390_v25, %v18430_v34  ;;  %v18958_v9 = vld [vmem:[%s30071_s5 + $0x2548] sm:$0xf0]  ;;  %v12304_v4 = vpop.f32.mrf.mxu3 }
 0x704   : > { %v18961_v41 = vor.u32 %v20522_v38, %v18958_v9  ;;  %v20532_v4 = vld [vmem:[%s30074_s8] sm:$0xff] }
 0x706   : > { %12531 = vmatpush.bf16.msra.mxu0 %v18121_v37  ;;  %v20546_v37 = vld [vmem:[%s30074_s8 + $0x70] sm:$0xff] }
 0x707   : > { %12544 = vmatpush.bf16.msra.mxu1 %v18313_v30  ;;  %12557 = vmatpush.bf16.msra.mxu3 %v18505_v2  ;;  %v20537_v30 = vld [vmem:[%s30074_s8 + $0x28] sm:$0xff]  ;;  %v18886_v2 = vld [vmem:[%s30071_s5 + $0x24b8] sm:$0xf0] }
 0x70a   : > { %12532 = vmatpush.bf16.msra.mxu0 %v18097_v54 }
 0x70b   : > { %12545 = vmatpush.bf16.msra.mxu1 %v18289_v47  ;;  %12558 = vmatpush.bf16.msra.mxu3 %v18481_v48  ;;  %v18889_v47 = vor.u32 %v20504_v44, %v18886_v2  ;;  %v30155_v48 = vld [vmem:[#allocation10_spill] sm:$0xff] }
 0x70c   : > { %v10964_v53 = vadd.f32 %v30155_v48, %v24819_v36  ;;  %v20534_v36 = vld [vmem:[%s30074_s8 + $0x10] sm:$0xff]  ;;  %v12615_v48 = vperm.slane %v29917_v46, 3 }
 0x70e   : > { %12533 = vmatpush.bf16.msra.mxu0 %v18073_v57  ;;  %v18838_v57 = vld [vmem:[%s30071_s5 + $0x2458] sm:$0xf0] }
 0x70f   : > { %12546 = vmatpush.bf16.msra.mxu1 %v18265_v45  ;;  %12559 = vmatpush.bf16.msra.mxu3 %v18457_v12  ;;  %v12605_v45 = vmul.f32 %v12593_v24, %v10964_v53  ;;  %v12606_v12 = vmul.f32 %v12594_v14, %v26183_v22  ;;  %v18814_v22 = vld [vmem:[%s30071_s5 + $0x2428] sm:$0xf0]  ;;  %v20566_v53 = vld [vmem:[%s30074_s8 + $0x110] sm:$0xff] }
 0x711   : > { %v12625_v38 = vadd.f32 %v12613_v8, %v12606_v12 }
 0x712   : > { %12534 = vmatpush.bf16.msra.mxu0 %v18049_v3  ;;  %v12328_v31 = vpop.f32.mrf.mxu0  ;;  %v18841_v3 = vor.u32 %v20492_v7, %v18838_v57  ;;  %v20556_v57 = vld [vmem:[%s30074_s8 + $0xc0] sm:$0xff] }
 0x713   : > { %12547 = vmatpush.bf16.msra.mxu1 %v18241_v10  ;;  %12560 = vmatpush.bf16.msra.mxu3 %v18433_v42  ;;  %v12329_v19 = vadd.f32 %v12328_v31, %v12316_v11  ;;  %v12341_v54 = vpop.f32.mrf.mxu1  ;;  %v20533_v10 = vld [vmem:[%s30074_s8 + $0x8] sm:$0xff]  ;;  %v12624_v42 = vadd.f32 %v12612_v15, %v12605_v45  ;;  %v12631_v40 = vmax.f32 %v12625_v38, 0.0  ;;  %v20559_v31 = vld [vmem:[%s30074_s8 + $0xd8] sm:$0xff]  ;;  %v20564_v15 = vld [vmem:[%s30074_s8 + $0x100] sm:$0xff] }
 0x715   : > { %12535 = vmatmul.bf16.vlgmr.msra.gmra.mxu0 %v23620_v56  ;;  %v18910_v56 = vld [vmem:[%s30071_s5 + $0x24e8] sm:$0xf0]  ;;  %v12342_v17 = vadd.f32 %v12341_v54, %v12329_v19  ;;  %v12596_v19 = vperm.slane %v29898_v43, 3  ;;  %v20567_v54 = vld [vmem:[%s30074_s8 + $0x118] sm:$0xff] }
 0x716   : > { %12579 = vmatpush.bf16.msrb.mxu0 %v18985_v23  ;;  %12548 = vmatmul.bf16.vlgmr.msra.gmra.mxu1 %v23897_v35  ;;  %v20545_v35 = vld [vmem:[%s30074_s8 + $0x68] sm:$0xff]  ;;  %v20486_v23 = vld [vmem:[%s30071_s5 + $0x2414] sm:$0xf] }
 0x717   : > { %13030 = vmatpush.bf16.msrb.mxu1 %v20539_v59  ;;  %13043 = vmatpush.bf16.msrb.mxu3 %v20547_v18  ;;  %v20541_v59 = vld [vmem:[%s30074_s8 + $0x48] sm:$0xff]  ;;  %v18817_v9 = vor.u32 %v20486_v23, %v18814_v22  ;;  %v20563_v18 = vld [vmem:[%s30074_s8 + $0xf8] sm:$0xff]  ;;  %v12608_v51 = vmul.f32 %v12596_v19, %v28653_v28 }
 0x718   : > { %12561 = vmatmul.bf16.vlgmr.msra.gmra.mxu3 %v23899_v13  ;;  %v18913_v13 = vor.u32 %v20510_v32, %v18910_v56  ;;  %v20570_v32 = vld [vmem:[%s30074_s8 + $0x130] sm:$0xff]  ;;  %v12637_v56 = vpack.c.bf16 %v12631_v40, %v12631_v40 }
 0x719   : > { %v12627_v28 = vadd.f32 %v12615_v48, %v12608_v51  ;;  %v12598_v51 = vperm.slane %v29898_v43, 5 }
 0x71a   : > { %12580 = vmatpush.bf16.msrb.mxu0 %v18961_v41  ;;  %v12330_v55 = vpop.f32.mrf.mxu0  ;;  %v12630_v41 = vmax.f32 %v12624_v42, 0.0 }
 0x71b   : > { %13031 = vmatpush.bf16.msrb.mxu1 %v20538_v6  ;;  %13044 = vmatpush.bf16.msrb.mxu3 %v20546_v37  ;;  %v12354_v49 = vpop.f32.mrf.mxu3  ;;  %v12343_v34 = vpop.f32.mrf.mxu1  ;;  %v20540_v6 = vld [vmem:[%s30074_s8 + $0x40] sm:$0xff]  ;;  %v12633_v45 = vmax.f32 %v12627_v28, 0.0 }
 0x71c   : > { %v12355_v25 = vadd.f32 %v12354_v49, %v12342_v17 }
 0x71d   : > { %v12639_v8 = vpack.c.bf16 %v12633_v45, %v12633_v45 }
 0x71e   : > { %12581 = vmatpush.bf16.msrb.mxu0 %v18937_v5  ;;  %v20562_v5 = vld [vmem:[%s30074_s8 + $0xf0] sm:$0xff]  ;;  %v12368_v44 = vadd.f32 %v28950_v39, %v12355_v25  ;;  %v12597_v39 = vperm.slane %v29898_v43, 4 }
 0x71f   : > { %13032 = vmatpush.bf16.msrb.mxu1 %v20537_v30  ;;  %13045 = vmatpush.bf16.msrb.mxu3 %v20545_v35  ;;  %v12636_v30 = vpack.c.bf16 %v12630_v41, %v12630_v41  ;;  %v20561_v35 = vld [vmem:[%s30074_s8 + $0xe8] sm:$0xff] }
 0x722   : > { %12582 = vmatpush.bf16.msrb.mxu0 %v18913_v13  ;;  %v20569_v13 = vld [vmem:[%s30074_s8 + $0x128] sm:$0xff] }
 0x723   : > { %13033 = vmatpush.bf16.msrb.mxu1 %v20536_v1  ;;  %13046 = vmatpush.bf16.msrb.mxu3 %v20544_v21  ;;  %v12356_v37 = vpop.f32.mrf.mxu3  ;;  %v20560_v1 = vld [vmem:[%s30074_s8 + $0xe0] sm:$0xff] }
 0x724   : > { %v20576_v37 = vld [vmem:[%s30074_s8 + $0x160] sm:$0xff] }
 0x726   : > { %12583 = vmatpush.bf16.msrb.mxu0 %v18889_v47  ;;  %v12264_v47 = vadd.f32 %v28565_v60, %v29651_v52  ;;  %v12616_v60 = vperm.slane %v29917_v46, 4 }
 0x727   : > { %13034 = vmatpush.bf16.msrb.mxu1 %v20535_v58  ;;  %13047 = vmatpush.bf16.msrb.mxu3 %v20543_v50 }
 0x728   : > { %v12609_v24 = vmul.f32 %v12597_v39, %v12264_v47 }
 0x72a   : > { %12584 = vmatpush.bf16.msrb.mxu0 %v18865_v26  ;;  %v20557_v26 = vld [vmem:[%s30074_s8 + $0xc8] sm:$0xff]  ;;  %v12628_v7 = vadd.f32 %v12616_v60, %v12609_v24  ;;  %v12617_v24 = vperm.slane %v29917_v46, 5 }
 0x72b   : > { %13035 = vmatpush.bf16.msrb.mxu1 %v20534_v36  ;;  %13048 = vmatpush.bf16.msrb.mxu3 %v20542_v33  ;;  %v20565_v36 = vld [vmem:[%s30074_s8 + $0x108] sm:$0xff] }
 0x72c   : > { %v12634_v33 = vmax.f32 %v12628_v7, 0.0 }
 0x72e   : > { %12585 = vmatpush.bf16.msrb.mxu0 %v18841_v3  ;;  %v12640_v49 = vpack.c.bf16 %v12634_v33, %v12634_v33 }
 0x72f   : > { %13036 = vmatpush.bf16.msrb.mxu1 %v20533_v10  ;;  %13049 = vmatpush.bf16.msrb.mxu3 %v20541_v59 }
 0x732   : > { %12586 = vmatpush.bf16.msrb.mxu0 %v18817_v9  ;;  %v12380_v2 = vpop.f32.mrf.mxu0 }
 0x733   : > { %13037 = vmatpush.bf16.msrb.mxu1 %v20532_v4  ;;  %13050 = vmatpush.bf16.msrb.mxu3 %v20540_v6  ;;  %v12381_v11 = vadd.f32 %v12380_v2, %v12368_v44  ;;  %v12393_v21 = vpop.f32.mrf.mxu1  ;;  %v20579_v4 = vld [vmem:[%s30074_s8 + $0x178] sm:$0xff]  ;;  %v20573_v2 = vld [vmem:[%s30074_s8 + $0x148] sm:$0xff] }
 0x735   : > { %12587 = vmatmul.bf16.vlgmr.msrb.gmra.mxu0 %v22183_v16  ;;  %v20568_v16 = vld [vmem:[%s30074_s8 + $0x120] sm:$0xff]  ;;  %v12394_v58 = vadd.f32 %v12393_v21, %v12381_v11 }
 0x736   : > { %13069 = vmatpush.bf16.msra.mxu0 %v20563_v18  ;;  %13038 = vmatmul.bf16.vlgmr.msrb.gmra.mxu1 %v12636_v30 }
 0x737   : > { %13082 = vmatpush.bf16.msra.mxu1 %v20571_v20  ;;  %13051 = vmatmul.bf16.vlgmr.msrb.gmra.mxu3 %v12637_v56  ;;  %v20577_v20 = vld [vmem:[%s30074_s8 + $0x168] sm:$0xff] }
 0x738   : > { %13095 = vmatpush.bf16.msra.mxu3 %v20579_v4 }
 0x73a   : > { %13070 = vmatpush.bf16.msra.mxu0 %v20562_v5  ;;  %v12382_v17 = vpop.f32.mrf.mxu0  ;;  %v20575_v5 = vld [vmem:[%s30074_s8 + $0x158] sm:$0xff] }
 0x73b   : > { %13083 = vmatpush.bf16.msra.mxu1 %v20570_v32  ;;  %v12406_v52 = vpop.f32.mrf.mxu3  ;;  %v12395_v14 = vpop.f32.mrf.mxu1  ;;  %v20711_v17 = vld [vmem:[%s30075_s9] ss:$0 sm:$0xff] }
 0x73c   : > { %v12407_v50 = vadd.f32 %v12406_v52, %v12394_v58 }
 0x73e   : > { %13071 = vmatpush.bf16.msra.mxu0 %v20561_v35  ;;  %v12420_v55 = vadd.f32 %v29122_v62, %v12407_v50  ;;  %v20578_v62 = vld [vmem:[%s30074_s8 + $0x170] sm:$0xff] }
 0x73f   : > { %13084 = vmatpush.bf16.msra.mxu1 %v20569_v13  ;;  %13096 = vmatpush.bf16.msra.mxu3 %v20578_v62 }
 0x742   : > { %13072 = vmatpush.bf16.msra.mxu0 %v20560_v1  ;;  %v20574_v1 = vld [vmem:[%s30074_s8 + $0x150] sm:$0xff] }
 0x743   : > { %13085 = vmatpush.bf16.msra.mxu1 %v20568_v16  ;;  %v12408_v12 = vpop.f32.mrf.mxu3  ;;  %13097 = vmatpush.bf16.msra.mxu3 %v20577_v20 }
 0x746   : > { %13073 = vmatpush.bf16.msra.mxu0 %v20559_v31 }
 0x747   : > { %13086 = vmatpush.bf16.msra.mxu1 %v20567_v54  ;;  %13098 = vmatpush.bf16.msra.mxu3 %v20576_v37 }
 0x74a   : > { %13074 = vmatpush.bf16.msra.mxu0 %v20558_v27 }
 0x74b   : > { %13087 = vmatpush.bf16.msra.mxu1 %v20566_v53  ;;  %13099 = vmatpush.bf16.msra.mxu3 %v20575_v5 }
 0x74e   : > { %13075 = vmatpush.bf16.msra.mxu0 %v20557_v26 }
 0x74f   : > { %13088 = vmatpush.bf16.msra.mxu1 %v20565_v36  ;;  %13100 = vmatpush.bf16.msra.mxu3 %v20574_v1 }
 0x752   : > { %13076 = vmatpush.bf16.msra.mxu0 %v20556_v57  ;;  %v12432_v25 = vpop.f32.mrf.mxu0 }
 0x753   : > { %13089 = vmatpush.bf16.msra.mxu1 %v20564_v15  ;;  %v12433_v34 = vadd.f32 %v12432_v25, %v12420_v55  ;;  %v12445_v3 = vpop.f32.mrf.mxu1  ;;  %13101 = vmatpush.bf16.msra.mxu3 %v20573_v2 }
 0x755   : > { %13077 = vmatmul.bf16.vlgmr.msra.gmra.mxu0 %v12639_v8  ;;  %v12446_v10 = vadd.f32 %v12445_v3, %v12433_v34 }
 0x756   : > { %13090 = vmatmul.bf16.vlgmr.msra.gmra.mxu1 %v12640_v49 }
 0x75a   : > { %v12434_v22 = vpop.f32.mrf.mxu0 }
 0x75b   : > { %v12458_v23 = vpop.f32.mrf.mxu3  ;;  %v12447_v42 = vpop.f32.mrf.mxu1 }
 0x75c   : > { %v12459_v30 = vadd.f32 %v12458_v23, %v12446_v10 }
 0x75e   : > { %v12472_v35 = vadd.f32 %v29275_v61, %v12459_v30  ;;  %v20572_v61 = vld [vmem:[%s30074_s8 + $0x140] sm:$0xff] }
 0x75f   : > { %13102 = vmatpush.bf16.msra.mxu3 %v20572_v61 }
 0x763   : > { %v12460_v59 = vpop.f32.mrf.mxu3 }
 0x772   : > { %v12484_v38 = vpop.f32.mrf.mxu0 }
 0x773   : > { %v12497_v9 = vpop.f32.mrf.mxu1  ;;  %v12485_v13 = vadd.f32 %v12484_v38, %v12472_v35 }
 0x775   : > { %v12498_v21 = vadd.f32 %v12497_v9, %v12485_v13 }
 0x77a   : > { %v12486_v41 = vpop.f32.mrf.mxu0 }
 0x77b   : > { %v12510_v18 = vpop.f32.mrf.mxu3  ;;  %v12499_v6 = vpop.f32.mrf.mxu1 }
 0x77c   : > { %v12511_v31 = vadd.f32 %v12510_v18, %v12498_v21 }
 0x77e   : > { %v12524_v19 = vadd.f32 %v29428_v29, %v12511_v31 }
 0x783   : > { %v12512_v40 = vpop.f32.mrf.mxu3 }
 0x792   : > { %v12536_v32 = vpop.f32.mrf.mxu0 }
 0x793   : > { %v12549_v56 = vpop.f32.mrf.mxu1  ;;  %v12537_v47 = vadd.f32 %v12536_v32, %v12524_v19 }
 0x795   : > { %v12550_v39 = vadd.f32 %v12549_v56, %v12537_v47 }
 0x79a   : > { %v12538_v44 = vpop.f32.mrf.mxu0 }
 0x79b   : > { %v12562_v16 = vpop.f32.mrf.mxu3  ;;  %v12551_v11 = vpop.f32.mrf.mxu1 }
 0x79c   : > { %v12563_v58 = vadd.f32 %v12562_v16, %v12550_v39 }
 0x79e   : > { %v12576_v27 = vadd.f32 %v29581_v63, %v12563_v58 }
 0x7a3   : > { %v12564_v54 = vpop.f32.mrf.mxu3 }
 0x7b2   : > { %v12588_v48 = vpop.f32.mrf.mxu0 }
 0x7b3   : > { %v12589_v53 = vadd.f32 %v12588_v48, %v12576_v27  ;;  %v13039_v60 = vpop.f32.mrf.mxu1 }
 0x7b4   : > { %v13040_v14 = vadd.f32 %v20711_v17, %v13039_v60 }
 0x7b5   : > { %v12610_v52 = vmul.f32 %v12598_v51, %v12589_v53 }
 0x7b7   : > { %v12629_v29 = vadd.f32 %v12617_v24, %v12610_v52 }
 0x7b9   : > { %v12635_v50 = vmax.f32 %v12629_v29, 0.0 }
 0x7ba   : > { %v13052_v26 = vpop.f32.mrf.mxu3  ;;  %v12590_v28 = vpop.f32.mrf.mxu0 }
 0x7bb   : > { %v12641_v63 = vpack.c.bf16 %v12635_v50, %v12635_v50  ;;  %v13053_v36 = vadd.f32 %v13052_v26, %v13040_v14  ;;  %v13041_v43 = vpop.f32.mrf.mxu1 }
 0x7bd   : > { %13103 = vmatmul.bf16.vlgmr.msra.gmra.mxu3 %v12641_v63  ;;  %v13066_v46 = vadd.f32 %v29740_v0, %v13053_v36 }
 0x7c2   : > { %v13054_v7 = vpop.f32.mrf.mxu3 }
 0x7d2   : > { %v13078_v57 = vpop.f32.mrf.mxu0 }
 0x7d3   : > { %v13079_v45 = vadd.f32 %v13078_v57, %v13066_v46  ;;  %v13091_v15 = vpop.f32.mrf.mxu1 }
 0x7d5   : > { %v13092_v33 = vadd.f32 %v13091_v15, %v13079_v45 }
 0x7da   : > { %v13080_v12 = vpop.f32.mrf.mxu0 }
 0x7db   : > { %v13093_v8 = vpop.f32.mrf.mxu1 }
 0x840   : > { %v13104_v49 = vpop.f32.mrf.mxu3 }
 0x841   : > { %v13105_v55 = vadd.f32 %v13104_v49, %v13092_v33 }
 0x843   : > { %13108 = vst [vmem:[%s355_s28] sm:$0xff] %v13105_v55 }
 0x844   : > { %20743 = shalt.err (!%p20740_p3)
}
 0x845   : > { %20669 = dma.vmem_to_hbm [thread:$0]  (%p20871_p5), %s13123_s29, 128, %s13125_s11, %s13110_s12  }
 0x848   : > { %v13106_v0 = vpop.f32.mrf.mxu3 }
 0x849 PF: > { %p20675_p4 = scmp.ge.s32.totalorder %s20778_s16, 2  ;;  %s13136_s20 = sand.u32 1, %s20766_s13  }
 0x84a   : > { %s13137_s1 = scalar_lea.sflag [#allocation4], %s13136_s20 }
 0x84b   : > { %p20672_p7 = pnand %p20675_p4, %p20875_p6 }
 0x84d   : > { %p20673_p8 = pneg %p20672_p7 }
 0x84f   : > { %20761 = dma.done.wait (%p20673_p8), %s13137_s1, 128  }
 0x850   : > { %20763 = vsyncadd (%p20673_p8), %s13137_s1, 4294967168  ;;  %p20_p9 = scmp.ge.s32.totalorder %s20859_s19, 4   ;;  %s30156_s13 = smov %s20770_s14 }
 0x851   : > { %s30157_s14 = smov %s20774_s15  ;;  %s30158_s15 = smov %s20869_s22 }
 0x852   : > { %s30159_s16 = smov %s20859_s19  ;;  %22 = sbr.rel (!%p20_p9) target bundleno = 6 (0x6), region = 109 }
 0x857   :  { %13143 = vsyncpa [#allocation4], 1 }
 0x858   :  { %13145 = vsyncpa [#allocation4 + $0x1], 1 }

</bundles_post_ra>
